<compile_context>
chip_gen: v7x
topology: tpu7x:2x2x1
jax: 0.10.0
libtpu: 0.0.40
codegen_flags: <defaults>
</compile_context>

<pallas_src>
import jax
import jax.numpy as jnp
from jax import lax
from jax.experimental import pallas as pl
from jax.experimental.pallas import tpu as pltpu

IN_FEATURES = 100 * 100   # 10000
OUT_FEATURES = 6
_LANE = 128
_SUBLANE = 8


def _round_up(n, m):
    return pl.cdiv(n, m) * m


def bobnet_kernel(x_ref, w_ref, b_ref, ot_ref):
    # x_ref:  (TM, 10000)  VMEM  batch tile (bf16 or f32), features lane-dense
    # w_ref:  (6, 10000)   VMEM  natural PyTorch layout, resident across grid
    # b_ref:  (6, 1)       VMEM  f32
    # ot_ref: (6, TM)      VMEM  transposed output (f32), batch on the lane axis
    x = x_ref[...]
    w = w_ref[...]
    b = b_ref[...]

    # z^T = W @ x^T + b  -> (6, TM).  MXU matmul, f32 accumulation.
    zt = lax.dot_general(
        w, x,
        dimension_numbers=(((1,), (1,)), ((), ())),
        preferred_element_type=jnp.float32,
    ) + b

    # ReLU (f32, VPU)
    h = jnp.maximum(zt, 0.0)

    # LogSoftmax over the class axis (sublane axis 0), numerically stable.
    m = jnp.max(h, axis=0, keepdims=True)
    s = h - m
    lse = jnp.log(jnp.sum(jnp.exp(s), axis=0, keepdims=True))
    ot_ref[...] = (s - lse).astype(ot_ref.dtype)


def _vmem_capacity_bytes():
    try:
        cap = getattr(pltpu.get_tpu_info(), "vmem_capacity_bytes", None)
        if cap:
            return int(cap)
    except Exception:
        pass
    return 64 * 1024 * 1024   # conservative fallback: v7x per-TensorCore VMEM


def _pick_tm(itemsize, k_pad):
    """Largest batch-tile (multiple of 128) whose pipeline footprint fits VMEM."""
    budget = min(_vmem_capacity_bytes(), 112 * 1024 * 1024) - 16 * 1024 * 1024
    for cand in (2048, 1024, 512, 256, 128):
        x_bytes = 2 * cand * k_pad * itemsize          # double-buffered x stream
        w_bytes = 2 * _SUBLANE * k_pad * itemsize      # resident W (6 -> 8 sublane pad)
        o_bytes = 2 * _SUBLANE * cand * 4              # f32 output tiles
        if x_bytes + w_bytes + o_bytes <= budget:
            return cand
    return 128


def bobnet_forward(x, w, b, *, tm=None):
    """x: (B, 10000) bf16/f32, w: (6, 10000) (PyTorch layout), b: (6,)."""
    B = x.shape[0]
    itemsize = jnp.dtype(x.dtype).itemsize
    k_pad = _round_up(IN_FEATURES, _LANE)              # 10112 lane-padded width

    w = w.astype(x.dtype)                              # tiny resident operand; match MXU dtype
    bias2d = b.astype(jnp.float32).reshape(OUT_FEATURES, 1)

    # Lane-align the (tiny) OUTPUT only; x itself is never padded/copied in HBM.
    b_out = _round_up(B, _LANE)

    if tm is None:
        tm = _pick_tm(itemsize, k_pad)
    tm = _round_up(max(int(tm), _LANE), _LANE)
    tm = min(tm, b_out)
    # >=2 grid steps when the batch allows, so "parallel" shards tiles across
    # v7x's two TensorCores (no-op / negligible cost on v5e/v6e).
    tm = max(_LANE, min(tm, _round_up(pl.cdiv(b_out, 2), _LANE)))

    grid = pl.cdiv(b_out, tm)

    # VMEM accounting with lane/sublane padding; cap safely below physical VMEM.
    x_bytes = 2 * tm * k_pad * itemsize
    w_bytes = 2 * _SUBLANE * k_pad * itemsize
    o_bytes = 2 * _SUBLANE * tm * 4
    vmem_limit = int(min(
        max(x_bytes + w_bytes + o_bytes + 8 * 1024 * 1024, 32 * 1024 * 1024),
        _vmem_capacity_bytes() - 2 * 1024 * 1024))

    out_t = pl.pallas_call(
        bobnet_kernel,
        out_shape=jax.ShapeDtypeStruct((OUT_FEATURES, b_out), jnp.float32),
        grid_spec=pltpu.PrefetchScalarGridSpec(
            num_scalar_prefetch=0,
            grid=(grid,),
            in_specs=[
                # x: streamed batch tiles (lane axis 10000 == full array dim);
                # the last block may be partial - Pallas handles it, garbage
                # tail columns are discarded by the [:, :B] slice below.
                pl.BlockSpec((tm, IN_FEATURES), lambda i: (i, 0)),
                # W, bias: constant index_map -> fetched once, stay resident.
                pl.BlockSpec((OUT_FEATURES, IN_FEATURES), lambda i: (0, 0)),
                pl.BlockSpec((OUT_FEATURES, 1), lambda i: (0, 0)),
            ],
            out_specs=pl.BlockSpec((OUT_FEATURES, tm), lambda i: (0, i)),
        ),
        compiler_params=pltpu.CompilerParams(
            dimension_semantics=("parallel",),
            vmem_limit_bytes=vmem_limit,
        ),
        cost_estimate=pl.CostEstimate(
            flops=2 * B * IN_FEATURES * OUT_FEATURES,
            bytes_accessed=(itemsize * (B * IN_FEATURES + OUT_FEATURES * IN_FEATURES)
                            + 4 * OUT_FEATURES * (b_out + 1)),
            transcendentals=B * (OUT_FEATURES + 1),    # exp per class + log per row
        ),
    )(x, w, bias2d)

    # (6, b_out) -> (B, 6): slice off lane padding / partial-block garbage, tiny transpose.
    return out_t[:, :B].T


def reference_forward(x, w, b):
    z = x @ w.T + b
    h = jnp.maximum(z, 0.0)
    return jax.nn.log_softmax(h, axis=1)


if __name__ == "__main__":
    key = jax.random.PRNGKey(0)
    k_x, k_w, k_b = jax.random.split(key, 3)

    B = 2
    # Deterministic synthetic parameters (PyTorch-Linear-style uniform init).
    bound = 1.0 / (IN_FEATURES ** 0.5)
    w = jax.random.uniform(k_w, (OUT_FEATURES, IN_FEATURES),
                           minval=-bound, maxval=bound, dtype=jnp.float32)
    b = jax.random.uniform(k_b, (OUT_FEATURES,),
                           minval=-bound, maxval=bound, dtype=jnp.float32)
    x = jax.random.normal(k_x, (B, IN_FEATURES), dtype=jnp.float32)

    # bf16 activations into the MXU (f32 accumulation + f32 epilogue in-kernel).
    x_bf = x.astype(jnp.bfloat16)

    out = bobnet_forward(x_bf, w, b)
    out = jax.block_until_ready(out)

    # Reference on the same bf16-rounded inputs, math in f32.
    ref = reference_forward(x_bf.astype(jnp.float32),
                            w.astype(jnp.bfloat16).astype(jnp.float32), b)
    assert out.shape == (B, OUT_FEATURES)
    assert out.dtype == jnp.float32
    assert jnp.allclose(out, ref, atol=1e-3, rtol=1e-3), (out, ref)

    print("KERNEL_OK")
</pallas_src>

<mosaic_0001>
module attributes {stable_mosaic.version = 11 : i64} {
  func.func @bobnet_kernel(%arg0: i32, %arg1: memref<128x10000xbf16, #tpu.memory_space<vmem>>, %arg2: memref<6x10000xbf16, #tpu.memory_space<vmem>>, %arg3: memref<6x1xf32, #tpu.memory_space<vmem>>, %arg4: memref<6x128xf32, #tpu.memory_space<vmem>>) attributes {dimension_semantics = [#tpu.dimension_semantics<parallel>], iteration_bounds = array<i64: 1>, scalar_prefetch = 0 : i64, scratch_operands = 0 : i64, tpu.core_type = #tpu.core_type<tc>, window_params = [{transform_indices = @transform_0, window_bounds = array<i64: 128, 10000>}, {pipeline_mode = #tpu.pipeline_mode<synchronous>, transform_indices = @transform_1, window_bounds = array<i64: 6, 10000>}, {pipeline_mode = #tpu.pipeline_mode<synchronous>, transform_indices = @transform_2, window_bounds = array<i64: 6, 1>}, {transform_indices = @transform_3, window_bounds = array<i64: 6, 128>}]} {
    %c0 = arith.constant 0 : index
    %c0_0 = arith.constant 0 : index
    %0 = vector.load %arg1[%c0, %c0_0] : memref<128x10000xbf16, #tpu.memory_space<vmem>>, vector<128x10000xbf16>
    %c0_1 = arith.constant 0 : index
    %c0_2 = arith.constant 0 : index
    %1 = vector.load %arg2[%c0_1, %c0_2] : memref<6x10000xbf16, #tpu.memory_space<vmem>>, vector<6x10000xbf16>
    %c0_3 = arith.constant 0 : index
    %c0_4 = arith.constant 0 : index
    %2 = vector.load %arg3[%c0_3, %c0_4] : memref<6x1xf32, #tpu.memory_space<vmem>>, vector<6x1xf32>
    %cst = arith.constant dense<0.000000e+00> : vector<6x128xf32>
    %3 = tpu.matmul %1, %0, %cst {dimension_numbers = #tpu.dot_dimension_numbers<[1], [1], [0], [0], [0, 0, 1, 0], [], []>} : vector<6x10000xbf16>, vector<128x10000xbf16>, vector<6x128xf32> -> vector<6x128xf32>
    %4 = vector.broadcast %2 : vector<6x1xf32> to vector<6x128xf32>
    %5 = arith.addf %3, %4 : vector<6x128xf32>
    %cst_5 = arith.constant 0.000000e+00 : f32
    %6 = vector.broadcast %cst_5 : f32 to vector<6x128xf32>
    %7 = arith.maximumf %5, %6 : vector<6x128xf32>
    %cst_6 = arith.constant dense<0xFF800000> : vector<128xf32>
    %8 = vector.multi_reduction <maximumf>, %7, %cst_6 [0] : vector<6x128xf32> to vector<128xf32>
    %9 = vector.shape_cast %8 : vector<128xf32> to vector<1x128xf32>
    %10 = vector.broadcast %9 : vector<1x128xf32> to vector<6x128xf32>
    %11 = arith.subf %7, %10 : vector<6x128xf32>
    %12 = math.exp %11 : vector<6x128xf32>
    %cst_7 = arith.constant dense<0.000000e+00> : vector<128xf32>
    %13 = vector.multi_reduction <add>, %12, %cst_7 [0] : vector<6x128xf32> to vector<128xf32>
    %14 = vector.shape_cast %13 : vector<128xf32> to vector<1x128xf32>
    %15 = math.log %14 : vector<1x128xf32>
    %16 = vector.broadcast %15 : vector<1x128xf32> to vector<6x128xf32>
    %17 = arith.subf %11, %16 : vector<6x128xf32>
    %c0_8 = arith.constant 0 : index
    %c0_9 = arith.constant 0 : index
    %18 = vector.load %arg4[%c0_8, %c0_9] : memref<6x128xf32, #tpu.memory_space<vmem>>, vector<6x128xf32>
    tpu.vector_store %arg4[%c0_8, %c0_9], %17 {strides = array<i32>} : memref<6x128xf32, #tpu.memory_space<vmem>>, vector<6x128xf32>,
    return
  }
  func.func @transform_0(%arg0: i32) -> (i32, i32) {
    %c0_i32 = arith.constant 0 : i32
    %c0_i32_0 = arith.constant 0 : i32
    return %arg0, %c0_i32 : i32, i32
  }
  func.func @transform_1(%arg0: i32) -> (i32, i32) {
    %c0_i32 = arith.constant 0 : i32
    %c0_i32_0 = arith.constant 0 : i32
    %c0_i32_1 = arith.constant 0 : i32
    return %c0_i32, %c0_i32_0 : i32, i32
  }
  func.func @transform_2(%arg0: i32) -> (i32, i32) {
    %c0_i32 = arith.constant 0 : i32
    %c0_i32_0 = arith.constant 0 : i32
    %c0_i32_1 = arith.constant 0 : i32
    return %c0_i32, %c0_i32_0 : i32, i32
  }
  func.func @transform_3(%arg0: i32) -> (i32, i32) {
    %c0_i32 = arith.constant 0 : i32
    %c0_i32_0 = arith.constant 0 : i32
    return %c0_i32, %arg0 : i32, i32
  }
}

</mosaic_0001>

<bundles_post_ra>
// kernel: tpu_custom_call.1
= control target key start
LH: loop header
LB: loop body
LE: loop exit
PB: predicated region body
PF: predicated region fallthrough
CT: control target
= control target key end

     0   :  { %8 = vsyncpa [#allocation3], 0  ;;  %s21935_s0 = inlined_call_operand.hbm [shape: bf16[2,10000], index: 0, kind: input, shape index: {}]   ;;  %s21936_s1 = inlined_call_operand.hbm [shape: bf16[6,10000], index: 1, kind: input, shape index: {}]   ;;  %s21937_s2 = inlined_call_operand.vmem [shape: f32[6,1], index: 2, kind: input, shape index: {}]   ;;  %s21938_s3 = inlined_call_operand.hbm [shape: f32[6,128], index: 3, kind: output, shape index: {}]  }
   0x1   :  { %9 = vsyncpa [#allocation6], 0 }
   0x2   :  { %10 = vsyncpa [#allocation4], 0 }
   0x3   :  { %15 = vsyncadd [#allocation3], 79632  ;;  %s16196_s12 = smov [#allocation2]   ;;  %s16124_s16 = scalar_lea.hbm %s21935_s0, 1264 }
   0x4   :  { %s16_s13 = sshll.u32 %s16196_s12, 4  ;;  %p16125_p0 = scmp.ne.s32.totalorder %s21935_s0, %s16124_s16  ;;  %s17_s13 = int_to_ptr.vmem [resolvable:$true] %s16_s13 }
   0x5   :  { %p16128_p1 = scmp.lt.u32.totalorder %s16124_s16, %s21935_s0 }
   0x7   :  { %p16130_p2 = pnand %p16128_p1, %p16125_p0 }
   0x9   :  { %16133 = shalt.err (!%p16130_p2)
}
   0xa   :  { %s16134_s21 = scalar_lea.vmem %s17_s13, 1264  ;;  %s16138_s22 = scalar_lea.vmem %s17_s13, 80896 }
   0xb   :  { %p16135_p3 = scmp.ne.s32.totalorder %s17_s13, %s16134_s21  ;;  %p16139_p4 = scmp.lt.s32.totalorder %s17_s13, %s17_s13 }
   0xc   :  { %p16140_p5 = scmp.lt.s32.totalorder %s16138_s22, %s16134_s21 }
   0xe   :  { %p16141_p6 = por %p16140_p5, %p16139_p4 }
  0x10   :  { %p16142_p7 = pnand %p16141_p6, %p16135_p3 }
  0x12   :  { %16145 = shalt.err (!%p16142_p7)
}
  0x13   :  { %s16197_s23 = smov 1264   ;;  %s16198_s24 = smov 79  }
  0x14   :  { %22 = dma.hbm_to_vmem [thread:$0]  %s21935_s0, 1264, %s17_s13, [#allocation3], %s16197_s23, %s16197_s23, %s16198_s24  }
  0x15   :  { %s16199_s27 = smov [#allocation5]   ;;  %s16146_s4 = scalar_lea.hbm %s21936_s1, 5056 }
  0x16   :  { %s29_s28 = sshll.u32 %s16199_s27, 4  ;;  %p16147_p8 = scmp.ne.s32.totalorder %s21936_s1, %s16146_s4  ;;  %s30_s28 = int_to_ptr.vmem [resolvable:$true] %s29_s28 }
  0x17   :  { %p16150_p9 = scmp.lt.u32.totalorder %s16146_s4, %s21936_s1 }
  0x19   :  { %p16152_p10 = pnand %p16150_p9, %p16147_p8 }
  0x1b   :  { %16155 = shalt.err (!%p16152_p10)
}
  0x1c   :  { %s16156_s9 = scalar_lea.vmem %s30_s28, 5056  ;;  %p16161_p12 = scmp.lt.s32.totalorder %s30_s28, %s30_s28 }
  0x1d   :  { %p16157_p11 = scmp.ne.s32.totalorder %s30_s28, %s16156_s9  ;;  %p16162_p13 = scmp.lt.s32.totalorder %s16156_s9, %s16156_s9 }
  0x1f   :  { %p16163_p0 = por %p16162_p13, %p16161_p12 }
  0x21   :  { %p16164_p1 = pnand %p16163_p0, %p16157_p11 }
  0x23   :  { %16167 = shalt.err (!%p16164_p1)
}
  0x24   :  { %32 = dma.hbm_to_vmem [thread:$0]  %s21936_s1, 5056, %s30_s28, [#allocation6]  }
  0x25   :  { %16190 = dma.done.wait [#allocation3], 80896  }
  0x26   :  { %16191 = vsyncadd [#allocation3], 4294886400 }
  0x27   :  { %16192 = dma.done.wait [#allocation6], 5056  }
  0x28   :  { %16193 = vsyncadd [#allocation6], 4294962240  ;;  %v1655_v0 = vlaneseq  ;;  %v16200_v1 = vmov 1966171168   ;;  %v15080_v6 = vld [vmem:[#allocation2] ss:$79 sps:$4 sm:$0xff]  }
  0x29   :  { %v1653_v2 = vunpack.c.l.s4 %v16200_v1  ;;  %v15083_v7 = vld [vmem:[#allocation2 + $0x9e] ss:$79 sps:$4 sm:$0xff]   ;;  %v15089_v9 = vld [vmem:[#allocation2 + $0x1da] ss:$79 sps:$4 sm:$0xff]   ;;  %v15098_v21 = vld [vmem:[#allocation2 + $0x164] ss:$79 sps:$4 sm:$0xff]  }
  0x2a   :  { %v1656_v4 = vshrl.u32 %v1655_v0, 7  ;;  %v15086_v8 = vld [vmem:[#allocation2 + $0x13c] ss:$79 sps:$4 sm:$0xff]   ;;  %v15095_v18 = vld [vmem:[#allocation2 + $0xc6] ss:$79 sps:$4 sm:$0xff]   ;;  %vm13140_vm0 = vcmask 130048  }
  0x2b   :  { %v1654_v3 = vunpack.c.0.s8 %v1653_v2  ;;  %v15092_v17 = vld [vmem:[#allocation2 + $0x28] ss:$79 sps:$4 sm:$0xff]   ;;  %v15101_v24 = vld [vmem:[#allocation2 + $0x202] ss:$79 sps:$4 sm:$0xff]   ;;  %v15114_v51 = vld [vmem:[#allocation2 + $0x33e] ss:$79 sps:$4 sm:$0xff]  }
  0x2c   :  { %v15104_v35 = vld [vmem:[#allocation2 + $0x278] ss:$79 sps:$4 sm:$0xff]   ;;  %v15108_v40 = vld [vmem:[#allocation2 + $0x3b4] ss:$79 sps:$4 sm:$0xff]   ;;  %v15116_v57 = vld [vmem:[#allocation2 + $0x3dc] ss:$79 sps:$4 sm:$0xff]  }
  0x2d   :  { %v16249_v5 = vsub.s32 %v1654_v3, %v1656_v4  ;;  %v15106_v36 = vld [vmem:[#allocation2 + $0x316] ss:$79 sps:$4 sm:$0xff]   ;;  %v15110_v41 = vld [vmem:[#allocation2 + $0x452] ss:$79 sps:$4 sm:$0xff]   ;;  %v15118_v58 = vld [vmem:[#allocation2 + $0x47a] ss:$79 sps:$4 sm:$0xff]  }
  0x2e   :  { %v15112_v50 = vld [vmem:[#allocation2 + $0x2a0] ss:$79 sps:$4 sm:$0xff]   ;;  %v15192_v55 = vld [vmem:[#allocation2 + $0xef8] ss:$79 sps:$4 sm:$0xff]   ;;  %vm16203_vm1 = vmmov 0   ;;  %vm14769_vm2 = vcmask 1045504  }
  0x2f   :  { %22505 = vst [vmem:[#allocation11_spill] sm:$0xff] %v16249_v5  ;;  %v1658_v10 = vrot.slane %v15080_v6, %v16249_v5  ;;  %v1672_v11 = vrot.slane %v15083_v7, %v16249_v5  ;;  %v1686_v12 = vrot.slane %v15086_v8, %v16249_v5  ;;  %v1700_v13 = vrot.slane %v15089_v9, %v16249_v5  ;;  %v15120_v7 = vld [vmem:[#allocation2 + $0x4f0] ss:$79 sps:$4 sm:$0xff]   ;;  %v15194_v33 = vld [vmem:[#allocation2 + $0xf96] ss:$79 sps:$4 sm:$0xff]  }
  0x30   :  { %v2338_v25 = vrot.slane %v15092_v17, %v16249_v5  ;;  %v2352_v26 = vrot.slane %v15095_v18, %v16249_v5  ;;  %v2366_v28 = vrot.slane %v15098_v21, %v16249_v5  ;;  %v2380_v30 = vrot.slane %v15101_v24, %v16249_v5  ;;  %v15122_v8 = vld [vmem:[#allocation2 + $0x58e] ss:$79 sps:$4 sm:$0xff]  }
  0x31   :  { %v1709_v14 = vcombine.high %v1658_v10, %v1672_v11  ;;  %v1708_v15 = vcombine.low %v1658_v10, %v1672_v11  ;;  %v1713_v16 = vcombine.high %v1686_v12, %v1700_v13  ;;  %v1712_v19 = vcombine.low %v1686_v12, %v1700_v13  ;;  %v15124_v12 = vld [vmem:[#allocation2 + $0x62c] ss:$79 sps:$4 sm:$0xff]  }
  0x32   :  { %v2389_v31 = vcombine.high %v2338_v25, %v2352_v26  ;;  %v2388_v34 = vcombine.low %v2338_v25, %v2352_v26  ;;  %v2393_v37 = vcombine.high %v2366_v28, %v2380_v30  ;;  %v2392_v39 = vcombine.low %v2366_v28, %v2380_v30  ;;  %v15126_v13 = vld [vmem:[#allocation2 + $0x6ca] ss:$79 sps:$4 sm:$0xff]  }
  0x33   :  { %v16256_v20 = vrot.slane %v1709_v14, %v16249_v5  ;;  %v16259_v22 = vrot.slane %v1708_v15, %v16249_v5  ;;  %v16262_v23 = vrot.slane %v1713_v16, %v16249_v5  ;;  %v16267_v27 = vrot.slane %v1712_v19, %v16249_v5  ;;  %v15128_v26 = vld [vmem:[#allocation2 + $0x518] ss:$79 sps:$4 sm:$0xff]  }
  0x34   :  { %v16278_v38 = vrot.slane %v2389_v31, %v16249_v5  ;;  %v16281_v42 = vrot.slane %v2388_v34, %v16249_v5  ;;  %v3017_v43 = vrot.slane %v15104_v35, %v16249_v5  ;;  %v3031_v44 = vrot.slane %v15106_v36, %v16249_v5  ;;  %v15130_v28 = vld [vmem:[#allocation2 + $0x5b6] ss:$79 sps:$4 sm:$0xff]   ;;  %v15134_v35 = vld [vmem:[#allocation2 + $0x6f2] ss:$79 sps:$4 sm:$0xff]  }
  0x35   :  { %v1776_v29 = vcombine.low %v16256_v20, %v16262_v23  ;;  %v1772_v32 = vcombine.low %v16259_v22, %v16267_v27  ;;  %v16286_v45 = vrot.slane %v2393_v37, %v16249_v5  ;;  %v16289_v46 = vrot.slane %v2392_v39, %v16249_v5  ;;  %v15132_v34 = vld [vmem:[#allocation2 + $0x654] ss:$79 sps:$4 sm:$0xff]  }
  0x36   :  { %v3045_v47 = vrot.slane %v15108_v40, %v16249_v5  ;;  %v3059_v48 = vrot.slane %v15110_v41, %v16249_v5  ;;  %v3068_v49 = vcombine.high %v3017_v43, %v3031_v44  ;;  %v3067_v52 = vcombine.low %v3017_v43, %v3031_v44 }
  0x37   :  { %13168 = vmatprep.subr.bf16.mxu1 %v1776_v29  ;;  %v2456_v53 = vcombine.low %v16278_v38, %v16286_v45  ;;  %v2452_v54 = vcombine.low %v16281_v42, %v16289_v46  ;;  %v3697_v60 = vrot.slane %v15112_v50, %v16249_v5  ;;  %v3711_v61 = vrot.slane %v15114_v51, %v16249_v5  ;;  %v15188_v29 = vld [vmem:[#allocation2 + $0x100c] ss:$79 sps:$4 sm:$0xff]  }
  0x38   :  { %13169 = vmatpush1.bf16.xpose.msra.mxu1 %v1772_v32  ;;  %v3072_v56 = vcombine.high %v3045_v47, %v3059_v48  ;;  %v16300_v59 = vrot.slane %v3068_v49, %v16249_v5  ;;  %v3071_v62 = vcombine.low %v3045_v47, %v3059_v48  ;;  %v3725_v0 = vrot.slane %v15116_v57, %v16249_v5 }
  0x39   :  { %13968 = vmatprep.subr.bf16.mxu0 %v2456_v53  ;;  %v3739_v1 = vrot.slane %v15118_v58, %v16249_v5  ;;  %v16310_v2 = vrot.slane %v3067_v52, %v16249_v5  ;;  %v3748_v3 = vcombine.high %v3697_v60, %v3711_v61  ;;  %v3747_v6 = vcombine.low %v3697_v60, %v3711_v61  ;;  %v15136_v53 = vld [vmem:[#allocation2 + $0x768] ss:$79 sps:$4 sm:$0xff]   ;;  %v15140_v58 = vld [vmem:[#allocation2 + $0x8a4] ss:$79 sps:$4 sm:$0xff]  }
  0x3a   :  { %v16305_v63 = vrot.slane %v3072_v56, %v16249_v5  ;;  %13969 = vmatpush1.bf16.xpose.msra.mxu0 %v2452_v54  ;;  %v16313_v4 = vrot.slane %v3071_v62, %v16249_v5  ;;  %v4376_v17 = vrot.slane %v15120_v7, %v16249_v5  ;;  %v4390_v21 = vrot.slane %v15122_v8, %v16249_v5  ;;  %v15138_v54 = vld [vmem:[#allocation2 + $0x806] ss:$79 sps:$4 sm:$0xff]   ;;  %v15142_v60 = vld [vmem:[#allocation2 + $0x942] ss:$79 sps:$4 sm:$0xff]  }
  0x3b   :  { %v3752_v10 = vcombine.high %v3725_v0, %v3739_v1  ;;  %v3751_v11 = vcombine.low %v3725_v0, %v3739_v1  ;;  %v16318_v14 = vrot.slane %v3748_v3, %v16249_v5  ;;  %v16323_v16 = vrot.slane %v3747_v6, %v16249_v5 }
  0x3c   :  { %v3135_v9 = vcombine.low %v16300_v59, %v16305_v63  ;;  %v3131_v15 = vcombine.low %v16310_v2, %v16313_v4  ;;  %v4404_v24 = vrot.slane %v15124_v12, %v16249_v5  ;;  %v4418_v25 = vrot.slane %v15126_v13, %v16249_v5  ;;  %v15144_v12 = vld [vmem:[#allocation2 + $0x790] ss:$79 sps:$4 sm:$0xff]  }
  0x3d   :  { %v16327_v18 = vrot.slane %v3752_v10, %v16249_v5  ;;  %v16330_v19 = vrot.slane %v3751_v11, %v16249_v5  ;;  %v4427_v32 = vcombine.high %v4376_v17, %v4390_v21  ;;  %v4426_v36 = vcombine.low %v4376_v17, %v4390_v21  ;;  %v15146_v13 = vld [vmem:[#allocation2 + $0x82e] ss:$79 sps:$4 sm:$0xff]  }
  0x3e   :  { %13170 = vmatprep.subr.bf16.mxu1 %v3135_v9  ;;  %v4431_v37 = vcombine.high %v4404_v24, %v4418_v25  ;;  %v5056_v39 = vrot.slane %v15128_v26, %v16249_v5  ;;  %v5070_v40 = vrot.slane %v15130_v28, %v16249_v5  ;;  %v4430_v41 = vcombine.low %v4404_v24, %v4418_v25  ;;  %v15148_v25 = vld [vmem:[#allocation2 + $0x8cc] ss:$79 sps:$4 sm:$0xff]  }
  0x3f   :  { %v3815_v30 = vcombine.low %v16318_v14, %v16327_v18  ;;  %v3811_v31 = vcombine.low %v16323_v16, %v16330_v19  ;;  %v16344_v43 = vrot.slane %v4427_v32, %v16249_v5  ;;  %v5084_v44 = vrot.slane %v15132_v34, %v16249_v5  ;;  %v15150_v26 = vld [vmem:[#allocation2 + $0x96a] ss:$79 sps:$4 sm:$0xff]  }
  0x40   :  { %13171 = vmatpush1.bf16.xpose.msra.mxu1 %v3131_v15  ;;  %v5098_v47 = vrot.slane %v15134_v35, %v16249_v5  ;;  %v16349_v48 = vrot.slane %v4426_v36, %v16249_v5  ;;  %v16352_v49 = vrot.slane %v4431_v37, %v16249_v5  ;;  %v5107_v50 = vcombine.high %v5056_v39, %v5070_v40 }
  0x41   :  { %13970 = vmatprep.subr.bf16.mxu0 %v3815_v30  ;;  %v16355_v51 = vrot.slane %v4430_v41, %v16249_v5  ;;  %v5106_v52 = vcombine.low %v5056_v39, %v5070_v40  ;;  %v5735_v8 = vrot.slane %v15136_v53, %v16249_v5  ;;  %v5749_v9 = vrot.slane %v15138_v54, %v16249_v5 }
  0x42   :  { %13971 = vmatpush1.bf16.xpose.msra.mxu0 %v3811_v31  ;;  %v5111_v56 = vcombine.high %v5084_v44, %v5098_v47  ;;  %v5110_v57 = vcombine.low %v5084_v44, %v5098_v47  ;;  %v4494_v62 = vcombine.low %v16344_v43, %v16352_v49  ;;  %v16362_v0 = vrot.slane %v5107_v50, %v16249_v5  ;;  %v15152_v50 = vld [vmem:[#allocation2 + $0x9e0] ss:$79 sps:$4 sm:$0xff]  }
  0x43   :  { %v4490_v1 = vcombine.low %v16349_v48, %v16355_v51  ;;  %v16367_v3 = vrot.slane %v5106_v52, %v16249_v5  ;;  %v5763_v10 = vrot.slane %v15140_v58, %v16249_v5  ;;  %v5777_v11 = vrot.slane %v15142_v60, %v16249_v5  ;;  %v15154_v52 = vld [vmem:[#allocation2 + $0xa7e] ss:$79 sps:$4 sm:$0xff]  }
  0x44   :  { %v16370_v6 = vrot.slane %v5111_v56, %v16249_v5  ;;  %v16373_v7 = vrot.slane %v5110_v57, %v16249_v5  ;;  %13172 = vmatprep.subr.bf16.mxu1 %v4494_v62  ;;  %v5786_v24 = vcombine.high %v5735_v8, %v5749_v9  ;;  %v5785_v28 = vcombine.low %v5735_v8, %v5749_v9  ;;  %v15156_v56 = vld [vmem:[#allocation2 + $0xb1c] ss:$79 sps:$4 sm:$0xff]  }
  0x45   :  { %v5790_v30 = vcombine.high %v5763_v10, %v5777_v11  ;;  %v6415_v31 = vrot.slane %v15144_v12, %v16249_v5  ;;  %v6429_v32 = vrot.slane %v15146_v13, %v16249_v5  ;;  %v5789_v34 = vcombine.low %v5763_v10, %v5777_v11  ;;  %v15158_v57 = vld [vmem:[#allocation2 + $0xbba] ss:$79 sps:$4 sm:$0xff]  }
  0x46   :  { %22506 = vst [vmem:[#allocation12_spill] sm:$0xff] %v16373_v7  ;;  %v5174_v17 = vcombine.low %v16362_v0, %v16370_v6  ;;  %v5170_v21 = vcombine.low %v16367_v3, %v16373_v7  ;;  %v16388_v35 = vrot.slane %v5786_v24, %v16249_v5  ;;  %v6443_v36 = vrot.slane %v15148_v25, %v16249_v5  ;;  %v15162_v24 = vld [vmem:[#allocation2 + $0xaa6] ss:$79 sps:$4 sm:$0xff]  }
  0x47   :  { %v6457_v37 = vrot.slane %v15150_v26, %v16249_v5  ;;  %v16393_v39 = vrot.slane %v5785_v28, %v16249_v5  ;;  %v16396_v40 = vrot.slane %v5790_v30, %v16249_v5  ;;  %v6466_v41 = vcombine.high %v6415_v31, %v6429_v32  ;;  %v15082_v7 = vld [vmem:[#allocation2 + $0x4] ss:$79 sps:$4 sm:$0xff]  }
  0x48   :  { %13173 = vmatpush1.bf16.xpose.msra.mxu1 %v4490_v1  ;;  %13972 = vmatprep.subr.bf16.mxu0 %v5174_v17  ;;  %v16399_v44 = vrot.slane %v5789_v34, %v16249_v5  ;;  %v6465_v47 = vcombine.low %v6415_v31, %v6429_v32  ;;  %v7094_v11 = vrot.slane %v15152_v50, %v16249_v5  ;;  %v15164_v31 = vld [vmem:[#allocation2 + $0xb44] ss:$79 sps:$4 sm:$0xff]  }
  0x49   :  { %22507 = vst [vmem:[#allocation13_spill] sm:$0xff] %v16393_v39  ;;  %v6470_v53 = vcombine.high %v6443_v36, %v6457_v37  ;;  %v6469_v54 = vcombine.low %v6443_v36, %v6457_v37  ;;  %v5853_v60 = vcombine.low %v16388_v35, %v16396_v40  ;;  %v16406_v62 = vrot.slane %v6466_v41, %v16249_v5  ;;  %v15166_v32 = vld [vmem:[#allocation2 + $0xbe2] ss:$79 sps:$4 sm:$0xff]  }
  0x4a   :  { %13973 = vmatpush1.bf16.xpose.msra.mxu0 %v5170_v21  ;;  %22508 = vst [vmem:[#allocation14_spill] sm:$0xff] %v16399_v44  ;;  %v5849_v1 = vcombine.low %v16393_v39, %v16399_v44  ;;  %v16411_v8 = vrot.slane %v6465_v47, %v16249_v5  ;;  %v7108_v12 = vrot.slane %v15154_v52, %v16249_v5  ;;  %v15160_v21 = vld [vmem:[#allocation2 + $0xa08] ss:$79 sps:$4 sm:$0xff]   ;;  %v682_v39 = vld [vmem:[#allocation5] sm:$0x77] }
  0x4b   :  { %v16414_v9 = vrot.slane %v6470_v53, %v16249_v5  ;;  %v16417_v10 = vrot.slane %v6469_v54, %v16249_v5  ;;  %13174 = vmatprep.subr.bf16.mxu1 %v5853_v60  ;;  %v7122_v13 = vrot.slane %v15156_v56, %v16249_v5  ;;  %v7136_v17 = vrot.slane %v15158_v57, %v16249_v5 }
  0x4c   :  { %22509 = vst [vmem:[#allocation15_spill] sm:$0xff] %v16411_v8  ;;  %v7145_v30 = vcombine.high %v7094_v11, %v7108_v12  ;;  %v7144_v34 = vcombine.low %v7094_v11, %v7108_v12  ;;  %v7774_v37 = vrot.slane %v15160_v21, %v16249_v5  ;;  %v7788_v41 = vrot.slane %v15162_v24, %v16249_v5  ;;  %v15168_v11 = vld [vmem:[#allocation2 + $0xc58] ss:$79 sps:$4 sm:$0xff]   ;;  %v15172_v21 = vld [vmem:[#allocation2 + $0xd94] ss:$79 sps:$4 sm:$0xff]  }
  0x4d   :  { %22510 = vst [vmem:[#allocation16_spill] sm:$0xff] %v16417_v10  ;;  %v6533_v26 = vcombine.low %v16406_v62, %v16414_v9  ;;  %v6529_v28 = vcombine.low %v16411_v8, %v16417_v10  ;;  %v7149_v36 = vcombine.high %v7122_v13, %v7136_v17  ;;  %v7148_v47 = vcombine.low %v7122_v13, %v7136_v17  ;;  %v15170_v12 = vld [vmem:[#allocation2 + $0xcf6] ss:$79 sps:$4 sm:$0xff]   ;;  %v15174_v24 = vld [vmem:[#allocation2 + $0xe32] ss:$79 sps:$4 sm:$0xff]  }
  0x4e   :  { %v16432_v50 = vrot.slane %v7145_v30, %v16249_v5  ;;  %v7802_v52 = vrot.slane %v15164_v31, %v16249_v5  ;;  %v7816_v53 = vrot.slane %v15166_v32, %v16249_v5  ;;  %v16437_v54 = vrot.slane %v7144_v34, %v16249_v5  ;;  %v15212_v10 = vld [vmem:[#allocation2 + $0x12ac] ss:$79 sps:$4 sm:$0xff]  }
  0x4f   :  { %13974 = vmatprep.subr.bf16.mxu0 %v6533_v26  ;;  %v16440_v56 = vrot.slane %v7149_v36, %v16249_v5  ;;  %v7825_v57 = vcombine.high %v7774_v37, %v7788_v41  ;;  %v16443_v60 = vrot.slane %v7148_v47, %v16249_v5  ;;  %v8481_v47 = vrot.slane %v15172_v21, %v16249_v5  ;;  %v15180_v26 = vld [vmem:[#allocation2 + $0xdbc] ss:$79 sps:$4 sm:$0xff]  }
  0x50   :  { %13175 = vmatpush1.bf16.xpose.msra.mxu1 %v5849_v1  ;;  %22511 = vst [vmem:[#allocation17_spill] sm:$0xff] %v16437_v54  ;;  %v7824_v1 = vcombine.low %v7774_v37, %v7788_v41  ;;  %v7829_v13 = vcombine.high %v7802_v52, %v7816_v53  ;;  %v7828_v17 = vcombine.low %v7802_v52, %v7816_v53  ;;  %v15176_v53 = vld [vmem:[#allocation2 + $0xc80] ss:$79 sps:$4 sm:$0xff]  }
  0x51   :  { %22512 = vst [vmem:[#allocation18_spill] sm:$0xff] %v16443_v60  ;;  %v16450_v30 = vrot.slane %v7825_v57, %v16249_v5  ;;  %v7208_v31 = vcombine.low %v16437_v54, %v16443_v60  ;;  %v8453_v37 = vrot.slane %v15168_v11, %v16249_v5  ;;  %v8467_v41 = vrot.slane %v15170_v12, %v16249_v5  ;;  %v15178_v57 = vld [vmem:[#allocation2 + $0xd1e] ss:$79 sps:$4 sm:$0xff]   ;;  %v15182_v12 = vld [vmem:[#allocation2 + $0xe5a] ss:$79 sps:$4 sm:$0xff]  }
  0x52   :  { %13975 = vmatpush1.bf16.xpose.msra.mxu0 %v6529_v28  ;;  %v7212_v28 = vcombine.low %v16432_v50, %v16440_v56  ;;  %v16455_v32 = vrot.slane %v7824_v1, %v16249_v5  ;;  %v16458_v34 = vrot.slane %v7829_v13, %v16249_v5  ;;  %v16461_v36 = vrot.slane %v7828_v17, %v16249_v5  ;;  %v15204_v54 = vld [vmem:[#allocation2 + $0x1284] ss:$79 sps:$4 sm:$0xff]  }
  0x53   :  { %v8495_v52 = vrot.slane %v15174_v24, %v16249_v5  ;;  %v8504_v11 = vcombine.high %v8453_v37, %v8467_v41  ;;  %v9133_v21 = vrot.slane %v15176_v53, %v16249_v5  ;;  %v9147_v24 = vrot.slane %v15178_v57, %v16249_v5  ;;  %v15186_v57 = vld [vmem:[#allocation2 + $0xf6e] ss:$79 sps:$4 sm:$0xff]  }
  0x54   :  { %22513 = vst [vmem:[#allocation19_spill] sm:$0xff] %v16455_v32  ;;  %22514 = vst [vmem:[#allocation20_spill] sm:$0xff] %v16461_v36  ;;  %13176 = vmatprep.subr.bf16.mxu1 %v7212_v28  ;;  %v7892_v13 = vcombine.low %v16450_v30, %v16458_v34  ;;  %v7888_v17 = vcombine.low %v16455_v32, %v16461_v36  ;;  %v8503_v28 = vcombine.low %v8453_v37, %v8467_v41  ;;  %v15196_v36 = vld [vmem:[#allocation2 + $0x1034] ss:$79 sps:$4 sm:$0xff]  }
  0x55   :  { %v8508_v25 = vcombine.high %v8481_v47, %v8495_v52  ;;  %v8507_v58 = vcombine.low %v8481_v47, %v8495_v52  ;;  %v16476_v1 = vrot.slane %v8504_v11, %v16249_v5  ;;  %v9161_v15 = vrot.slane %v15180_v26, %v16249_v5  ;;  %v15184_v52 = vld [vmem:[#allocation2 + $0xed0] ss:$79 sps:$4 sm:$0xff]   ;;  %v15190_v26 = vld [vmem:[#allocation2 + $0x10aa] ss:$79 sps:$4 sm:$0xff]  }
  0x56   :  { %13976 = vmatprep.subr.bf16.mxu0 %v7892_v13  ;;  %v16481_v61 = vrot.slane %v8503_v28, %v16249_v5  ;;  %v9184_v41 = vcombine.high %v9133_v21, %v9147_v24  ;;  %v9183_v47 = vcombine.low %v9133_v21, %v9147_v24  ;;  %v9812_v24 = vrot.slane %v15184_v52, %v16249_v5 }
  0x57   :  { %v16484_v37 = vrot.slane %v8508_v25, %v16249_v5  ;;  %v16487_v53 = vrot.slane %v8507_v58, %v16249_v5 }
  0x58   :  { %13177 = vmatpush1.bf16.xpose.msra.mxu1 %v7208_v31  ;;  %v9175_v31 = vrot.slane %v15182_v12, %v16249_v5  ;;  %22515 = vst [vmem:[#allocation21_spill] sm:$0xff] %v16481_v61  ;;  %v16494_v25 = vrot.slane %v9184_v41, %v16249_v5  ;;  %v16499_v28 = vrot.slane %v9183_v47, %v16249_v5 }
  0x59   :  { %22516 = vst [vmem:[#allocation22_spill] sm:$0xff] %v16487_v53  ;;  %v8567_v58 = vcombine.low %v16481_v61, %v16487_v53  ;;  %v9840_v41 = vrot.slane %v15188_v29, %v16249_v5  ;;  %v9854_v12 = vrot.slane %v15190_v26, %v16249_v5  ;;  %v10492_v29 = vrot.slane %v15192_v55, %v16249_v5 }
  0x5a   :  { %13977 = vmatpush1.bf16.xpose.msra.mxu0 %v7888_v17  ;;  %v9188_v13 = vcombine.high %v9161_v15, %v9175_v31  ;;  %v9187_v11 = vcombine.low %v9161_v15, %v9175_v31  ;;  %v8571_v17 = vcombine.low %v16476_v1, %v16484_v37  ;;  %22517 = vst [vmem:[#allocation23_spill] sm:$0xff] %v16499_v28 }
  0x5b   :  { %v9826_v31 = vrot.slane %v15186_v57, %v16249_v5  ;;  %v15198_v57 = vld [vmem:[#allocation2 + $0x10d2] ss:$79 sps:$4 sm:$0xff]   ;;  %v9867_v32 = vcombine.high %v9840_v41, %v9854_v12  ;;  %v10506_v26 = vrot.slane %v15194_v33, %v16249_v5  ;;  %v9866_v60 = vcombine.low %v9840_v41, %v9854_v12  ;;  %v15200_v12 = vld [vmem:[#allocation2 + $0x1148] ss:$79 sps:$4 sm:$0xff]  }
  0x5c   :  { %v16502_v21 = vrot.slane %v9188_v13, %v16249_v5  ;;  %v16505_v15 = vrot.slane %v9187_v11, %v16249_v5  ;;  %13178 = vmatprep.subr.bf16.mxu1 %v8571_v17  ;;  %v10520_v53 = vrot.slane %v15196_v36, %v16249_v5  ;;  %v15202_v41 = vld [vmem:[#allocation2 + $0x11e6] ss:$79 sps:$4 sm:$0xff]   ;;  %v15206_v36 = vld [vmem:[#allocation2 + $0x1322] ss:$79 sps:$4 sm:$0xff]  }
  0x5d   :  { %v9863_v52 = vcombine.high %v9812_v24, %v9826_v31  ;;  %v9862_v17 = vcombine.low %v9812_v24, %v9826_v31  ;;  %v16528_v24 = vrot.slane %v9867_v32, %v16249_v5  ;;  %v10543_v31 = vcombine.high %v10492_v29, %v10506_v26 }
  0x5e   :  { %22518 = vst [vmem:[#allocation24_spill] sm:$0xff] %v16505_v15  ;;  %v9251_v13 = vcombine.low %v16494_v25, %v16502_v21  ;;  %v9247_v11 = vcombine.low %v16499_v28, %v16505_v15  ;;  %v16531_v55 = vrot.slane %v9866_v60, %v16249_v5  ;;  %v10542_v33 = vcombine.low %v10492_v29, %v10506_v26  ;;  %v15208_v15 = vld [vmem:[#allocation2 + $0x1170] ss:$79 sps:$4 sm:$0xff]  }
  0x5f   :  { %v16520_v47 = vrot.slane %v9863_v52, %v16249_v5  ;;  %v16525_v61 = vrot.slane %v9862_v17, %v16249_v5  ;;  %v16538_v32 = vrot.slane %v10543_v31, %v16249_v5  ;;  %v11171_v26 = vrot.slane %v15200_v12, %v16249_v5  ;;  %v15210_v28 = vld [vmem:[#allocation2 + $0x120e] ss:$79 sps:$4 sm:$0xff]  }
  0x60   :  { %13179 = vmatpush1.bf16.xpose.msra.mxu1 %v8567_v58  ;;  %13978 = vmatprep.subr.bf16.mxu0 %v9251_v13  ;;  %v10534_v58 = vrot.slane %v15198_v57, %v16249_v5  ;;  %22520 = vst [vmem:[#allocation26_spill] sm:$0xff] %v16531_v55  ;;  %v16543_v17 = vrot.slane %v10542_v33, %v16249_v5 }
  0x61   :  { %22519 = vst [vmem:[#allocation25_spill] sm:$0xff] %v16525_v61  ;;  %v9926_v60 = vcombine.low %v16525_v61, %v16531_v55  ;;  %v11199_v31 = vrot.slane %v15204_v54, %v16249_v5  ;;  %v11213_v57 = vrot.slane %v15206_v36, %v16249_v5  ;;  %v11851_v54 = vrot.slane %v15208_v15, %v16249_v5 }
  0x62   :  { %13979 = vmatpush1.bf16.xpose.msra.mxu0 %v9247_v11  ;;  %v10547_v13 = vcombine.high %v10520_v53, %v10534_v58  ;;  %v10546_v52 = vcombine.low %v10520_v53, %v10534_v58  ;;  %v9930_v11 = vcombine.low %v16520_v47, %v16528_v24  ;;  %22521 = vst [vmem:[#allocation27_spill] sm:$0xff] %v16543_v17 }
  0x63   :  { %v11185_v58 = vrot.slane %v15202_v41, %v16249_v5  ;;  %v15214_v41 = vld [vmem:[#allocation2 + $0x134a] ss:$79 sps:$4 sm:$0xff]   ;;  %v11226_v8 = vcombine.high %v11199_v31, %v11213_v57  ;;  %v11865_v36 = vrot.slane %v15210_v28, %v16249_v5  ;;  %v11225_v44 = vcombine.low %v11199_v31, %v11213_v57  ;;  %v16577_v31 = vld [vmem:[#allocation5 + $0xa0] sm:$0x77] }
  0x64   :  { %v16546_v29 = vrot.slane %v10547_v13, %v16249_v5  ;;  %v16549_v53 = vrot.slane %v10546_v52, %v16249_v5  ;;  %13180 = vmatprep.subr.bf16.mxu1 %v9930_v11  ;;  %v11893_v55 = vrot.slane %v15214_v41, %v16249_v5  ;;  %v1777_v41 = vcombine.high %v16256_v20, %v16262_v23 }
  0x65   :  { %v11222_v12 = vcombine.high %v11171_v26, %v11185_v58  ;;  %v11221_v11 = vcombine.low %v11171_v26, %v11185_v58  ;;  %v15085_v26 = vld [vmem:[#allocation2 + $0xa2] ss:$79 sps:$4 sm:$0xff]   ;;  %v16572_v15 = vrot.slane %v11226_v8, %v16249_v5  ;;  %v11902_v28 = vcombine.high %v11851_v54, %v11865_v36 }
  0x66   :  { %22522 = vst [vmem:[#allocation28_spill] sm:$0xff] %v16549_v53  ;;  %v10610_v13 = vcombine.low %v16538_v32, %v16546_v29  ;;  %v10606_v52 = vcombine.low %v16543_v17, %v16549_v53  ;;  %v16575_v57 = vrot.slane %v11225_v44, %v16249_v5  ;;  %v11901_v58 = vcombine.low %v11851_v54, %v11865_v36  ;;  %v15088_v54 = vld [vmem:[#allocation2 + $0x140] ss:$79 sps:$4 sm:$0xff]   ;;  %v15241_v17 = vld [vmem:[#allocation2 + $0x80a] ss:$79 sps:$4 sm:$0xff]  }
  0x67   :  { %v16564_v33 = vrot.slane %v11222_v12, %v16249_v5  ;;  %v16569_v61 = vrot.slane %v11221_v11, %v16249_v5  ;;  %v14808_v12 = vcombine.high %v682_v39, %v682_v39  ;;  %v15091_v36 = vld [vmem:[#allocation2 + $0x1de] ss:$79 sps:$4 sm:$0xff]   ;;  %v14848_v20 = vcombine.high %v16577_v31, %v16577_v31 }
  0x68   :  { %13181 = vmatpush1.bf16.xpose.msra.mxu1 %v9926_v60  ;;  %13980 = vmatprep.subr.bf16.mxu0 %v10610_v13  ;;  %v11879_v60 = vrot.slane %v15212_v10, %v16249_v5  ;;  %22524 = vst [vmem:[#allocation30_spill] sm:$0xff] %v16575_v57  ;;  %v16589_v44 = vrot.slane %v11901_v58, %v16249_v5  ;;  %v15240_v53 = vld [vmem:[#allocation2 + $0x76c] ss:$79 sps:$4 sm:$0xff]  }
  0x69   :  { %22523 = vst [vmem:[#allocation29_spill] sm:$0xff] %v16569_v61  ;;  %v11289_v11 = vcombine.low %v16564_v33, %v16572_v15  ;;  %v11285_v8 = vcombine.low %v16569_v61, %v16575_v57  ;;  %13200 = vmatprep.mubr.bf16.mxu1 %v14808_v12  ;;  %v16604_v58 = vrot.slane %v15082_v7, %v16249_v5  ;;  %v16617_v7 = vld [vmem:[#allocation5 + $0x8] sm:$0x77] }
  0x6a   :  { %13981 = vmatpush1.bf16.xpose.msra.mxu0 %v10606_v52  ;;  %v11906_v13 = vcombine.high %v11879_v60, %v11893_v55  ;;  %v11905_v10 = vcombine.low %v11879_v60, %v11893_v55  ;;  %v16584_v52 = vrot.slane %v11902_v28, %v16249_v5  ;;  %22526 = vst [vmem:[#allocation32_spill] sm:$0xff] %v16589_v44  ;;  %22529 = vst [vmem:[#allocation35_spill] sm:$0xff] %v16617_v7  ;;  %v15097_v57 = vld [vmem:[#allocation2 + $0xca] ss:$79 sps:$4 sm:$0xff]  }
  0x6b   :  { %13182 = vmatprep.subr.bf16.mxu1 %v11289_v11  ;;  %14000 = vmatprep.mubr.bf16.mxu0 %v14848_v20  ;;  %v2457_v11 = vcombine.high %v16278_v38, %v16286_v45  ;;  %v16623_v23 = vrot.slane %v15091_v36, %v16249_v5  ;;  %v14807_v20 = vcombine.low %v682_v39, %v682_v39  ;;  %v15100_v45 = vld [vmem:[#allocation2 + $0x168] ss:$79 sps:$4 sm:$0xff]  }
  0x6c   :  { %22525 = vst [vmem:[#allocation31_spill] sm:$0xff] %v16584_v52  ;;  %v16592_v55 = vrot.slane %v11906_v13, %v16249_v5  ;;  %v16595_v60 = vrot.slane %v11905_v10, %v16249_v5  ;;  %v16607_v13 = vrot.slane %v15085_v26, %v16249_v5  ;;  %v16620_v26 = vrot.slane %v15088_v54, %v16249_v5 }
  0x6d   :  { %v14810_v28 = vcombine.high %v16617_v7, %v16617_v7  ;;  %v3136_v54 = vcombine.high %v16300_v59, %v16305_v63  ;;  %v14847_v36 = vcombine.low %v16577_v31, %v16577_v31  ;;  %v22532_v59 = vcombine.high %v16259_v22, %v16267_v27  ;;  %v15231_v27 = vld [vmem:[#allocation2 + $0x47e] ss:$79 sps:$4 sm:$0xff]  }
  0x6e   :  { %22527 = vst [vmem:[#allocation33_spill] sm:$0xff] %v16592_v55  ;;  %22528 = vst [vmem:[#allocation34_spill] sm:$0xff] %v16595_v60  ;;  %v11969_v10 = vcombine.low %v16584_v52, %v16592_v55  ;;  %v11965_v12 = vcombine.low %v16589_v44, %v16595_v60  ;;  %v1711_v38 = vcombine.high %v16604_v58, %v16607_v13  ;;  %v15237_v44 = vld [vmem:[#allocation2 + $0x5ba] ss:$79 sps:$4 sm:$0xff]  }
  0x6f   :  { %v1715_v39 = vcombine.high %v16620_v26, %v16623_v23  ;;  %v16646_v60 = vrot.slane %v15097_v57, %v16249_v5  ;;  %v3816_v63 = vcombine.high %v16318_v14, %v16327_v18  ;;  %v16654_v31 = vrot.slane %v15100_v45, %v16249_v5  ;;  %v15227_v18 = vld [vmem:[#allocation2 + $0x456] ss:$79 sps:$4 sm:$0xff]  }
  0x70   :  { %13183 = vmatpush1.bf16.xpose.msra.mxu1 %v11285_v8  ;;  %13982 = vmatprep.subr.bf16.mxu0 %v11969_v10  ;;  %v15094_v8 = vld [vmem:[#allocation2 + $0x2c] ss:$79 sps:$4 sm:$0xff]   ;;  %v4495_v57 = vcombine.high %v16344_v43, %v16352_v49  ;;  %v15229_v45 = vld [vmem:[#allocation2 + $0x342] ss:$79 sps:$4 sm:$0xff]   ;;  %v3066_v43 = vrot.slane %v15227_v18, %v16249_v5 }
  0x71   :  { %13208 = vmatprep.subr.bf16.mxu1 %v1777_v41  ;;  %v15103_v41 = vld [vmem:[#allocation2 + $0x206] ss:$79 sps:$4 sm:$0xff]   ;;  %v16643_v7 = vrot.slane %v15094_v8, %v16249_v5  ;;  %v16679_v14 = vrot.slane %v1715_v39, %v16249_v5  ;;  %v15236_v18 = vld [vmem:[#allocation2 + $0x51c] ss:$79 sps:$4 sm:$0xff]  }
  0x72   :  { %13983 = vmatpush1.bf16.xpose.msra.mxu0 %v11965_v12  ;;  %v16629_v10 = vld [vmem:[#allocation5 + $0xa8] sm:$0x77]  ;;  %v16638_v12 = vrot.slane %v1711_v38, %v16249_v5 }
  0x73   :  { %14008 = vmatprep.subr.bf16.mxu0 %v2457_v11  ;;  %22530 = vst [vmem:[#allocation36_spill] sm:$0xff] %v16629_v10  ;;  %v14850_v11 = vcombine.high %v16629_v10, %v16629_v10  ;;  %v15224_v38 = vld [vmem:[#allocation2 + $0x27c] ss:$79 sps:$4 sm:$0xff]   ;;  %v15226_v10 = vld [vmem:[#allocation2 + $0x3b8] ss:$79 sps:$4 sm:$0xff]   ;;  %22534 = vst [vmem:[#allocation38_spill] sm:$0xff] %v16679_v14 }
  0x74   :  { %22531 = vst [vmem:[#allocation37_spill] sm:$0xff] %v16638_v12  ;;  %v15225_v8 = vld [vmem:[#allocation2 + $0x31a] ss:$79 sps:$4 sm:$0xff]  }
  0x75   :  { %v3038_v39 = vrot.slane %v15225_v8, %v16249_v5  ;;  %v15235_v8 = vld [vmem:[#allocation2 + $0x6ce] ss:$79 sps:$4 sm:$0xff]  }
  0x77   :  { %13201 = vmatmul.mubr.bf16.vlgmr.msra.gmra.mrb[0].mxu1 %v14807_v20  ;;  %v16657_v20 = vrot.slane %v15103_v41, %v16249_v5  ;;  %v15230_v41 = vld [vmem:[#allocation2 + $0x3e0] ss:$79 sps:$4 sm:$0xff]  }
  0x78   :  { %13209 = vmatpush1.bf16.xpose.msra.mxu1 %v22532_v59  ;;  %13240 = vmatprep.mubr.bf16.mxu1 %v14810_v28  ;;  %v15228_v28 = vld [vmem:[#allocation2 + $0x2a4] ss:$79 sps:$4 sm:$0xff]   ;;  %v22533_v59 = vcombine.high %v16281_v42, %v16289_v46  ;;  %v1714_v42 = vcombine.low %v16620_v26, %v16623_v23  ;;  %v3024_v46 = vrot.slane %v15224_v38, %v16249_v5 }
  0x79   :  { %13210 = vmatprep.subr.bf16.mxu1 %v3136_v54  ;;  %14001 = vmatmul.mubr.bf16.vlgmr.msra.gmra.mrb[0].mxu0 %v14847_v36  ;;  %v2391_v36 = vcombine.high %v16643_v7, %v16646_v60  ;;  %v1710_v54 = vcombine.low %v16604_v58, %v16607_v13  ;;  %v2395_v49 = vcombine.high %v16654_v31, %v16657_v20 }
  0x7a   :  { %14009 = vmatpush1.bf16.xpose.msra.mxu0 %v22533_v59  ;;  %14040 = vmatprep.mubr.bf16.mxu0 %v14850_v11  ;;  %v15232_v11 = vld [vmem:[#allocation2 + $0x4f4] ss:$79 sps:$4 sm:$0xff]   ;;  %v3052_v59 = vrot.slane %v15226_v10, %v16249_v5  ;;  %v3704_v58 = vrot.slane %v15228_v28, %v16249_v5  ;;  %v3718_v13 = vrot.slane %v15229_v45, %v16249_v5  ;;  %v15234_v10 = vld [vmem:[#allocation2 + $0x630] ss:$79 sps:$4 sm:$0xff]  }
  0x7b   :  { %14010 = vmatprep.subr.bf16.mxu0 %v3816_v63  ;;  %v15233_v63 = vld [vmem:[#allocation2 + $0x592] ss:$79 sps:$4 sm:$0xff]   ;;  %v2390_v28 = vcombine.low %v16643_v7, %v16646_v60  ;;  %v2394_v45 = vcombine.low %v16654_v31, %v16657_v20  ;;  %v3732_v22 = vrot.slane %v15230_v41, %v16249_v5  ;;  %v3746_v23 = vrot.slane %v15231_v27, %v16249_v5  ;;  %v15239_v27 = vld [vmem:[#allocation2 + $0x6f6] ss:$79 sps:$4 sm:$0xff]  }
  0x7c   :  { %v22535_v26 = vcombine.high %v16310_v2, %v16313_v4  ;;  %v16715_v61 = vrot.slane %v2391_v36, %v16249_v5  ;;  %v16718_v55 = vrot.slane %v1710_v54, %v16249_v5  ;;  %v16721_v60 = vrot.slane %v1714_v42, %v16249_v5  ;;  %v15238_v4 = vld [vmem:[#allocation2 + $0x658] ss:$79 sps:$4 sm:$0xff]  }
  0x7d   :  { %v16724_v7 = vrot.slane %v2395_v49, %v16249_v5  ;;  %v3070_v31 = vcombine.high %v3024_v46, %v3038_v39  ;;  %v3074_v20 = vcombine.high %v3052_v59, %v3066_v43  ;;  %v3750_v2 = vcombine.high %v3704_v58, %v3718_v13 }
  0x7e   :  { %v3069_v41 = vcombine.low %v3024_v46, %v3038_v39  ;;  %v4383_v36 = vrot.slane %v15232_v11, %v16249_v5  ;;  %v4397_v38 = vrot.slane %v15233_v63, %v16249_v5  ;;  %v22536_v54 = vcombine.high %v16323_v16, %v16330_v19  ;;  %v15242_v46 = vld [vmem:[#allocation2 + $0x8a8] ss:$79 sps:$4 sm:$0xff]  }
  0x7f   :  { %v16735_v49 = vrot.slane %v2394_v45, %v16249_v5  ;;  %v3754_v42 = vcombine.high %v3732_v22, %v3746_v23  ;;  %v3749_v52 = vcombine.low %v3704_v58, %v3718_v13  ;;  %v22538_v39 = vcombine.high %v16362_v0, %v16370_v6  ;;  %v15244_v63 = vld [vmem:[#allocation2 + $0x794] ss:$79 sps:$4 sm:$0xff]   ;;  %v15246_v6 = vld [vmem:[#allocation2 + $0x8d0] ss:$79 sps:$4 sm:$0xff]  }
  0x80   :  { %13211 = vmatpush1.bf16.xpose.msra.mxu1 %v22535_v26  ;;  %v3073_v26 = vcombine.low %v3052_v59, %v3066_v43  ;;  %v15243_v43 = vld [vmem:[#allocation2 + $0x946] ss:$79 sps:$4 sm:$0xff]   ;;  %v4411_v11 = vrot.slane %v15234_v10, %v16249_v5  ;;  %v4425_v16 = vrot.slane %v15235_v8, %v16249_v5  ;;  %v5063_v19 = vrot.slane %v15236_v18, %v16249_v5  ;;  %v15247_v10 = vld [vmem:[#allocation2 + $0x96e] ss:$79 sps:$4 sm:$0xff]  }
  0x81   :  { %13212 = vmatprep.subr.bf16.mxu1 %v4495_v57  ;;  %v16732_v57 = vrot.slane %v2390_v28, %v16249_v5  ;;  %22537 = vst [vmem:[#allocation39_spill] sm:$0xff] %v16735_v49  ;;  %v5077_v59 = vrot.slane %v15237_v44, %v16249_v5  ;;  %v15245_v28 = vld [vmem:[#allocation2 + $0x832] ss:$79 sps:$4 sm:$0xff]   ;;  %v16747_v13 = vrot.slane %v3070_v31, %v16249_v5 }
  0x82   :  { %14011 = vmatpush1.bf16.xpose.msra.mxu0 %v22536_v54  ;;  %v16750_v45 = vrot.slane %v3074_v20, %v16249_v5  ;;  %v16753_v0 = vrot.slane %v3750_v2, %v16249_v5  ;;  %v16756_v8 = vrot.slane %v3069_v41, %v16249_v5  ;;  %v16759_v44 = vrot.slane %v3073_v26, %v16249_v5 }
  0x83   :  { %14012 = vmatprep.subr.bf16.mxu0 %v22538_v39  ;;  %v3753_v18 = vcombine.low %v3732_v22, %v3746_v23  ;;  %v4429_v54 = vcombine.high %v4383_v36, %v4397_v38  ;;  %v16762_v39 = vrot.slane %v3754_v42, %v16249_v5  ;;  %v16765_v31 = vrot.slane %v3749_v52, %v16249_v5  ;;  %v15248_v22 = vld [vmem:[#allocation2 + $0x9e4] ss:$79 sps:$4 sm:$0xff]  }
  0x84   :  { %22539 = vst [vmem:[#allocation40_spill] sm:$0xff] %v16756_v8  ;;  %22540 = vst [vmem:[#allocation41_spill] sm:$0xff] %v16759_v44  ;;  %v5091_v20 = vrot.slane %v15238_v4, %v16249_v5  ;;  %v5105_v2 = vrot.slane %v15239_v27, %v16249_v5  ;;  %v22542_v58 = vcombine.high %v16349_v48, %v16355_v51  ;;  %v15249_v23 = vld [vmem:[#allocation2 + $0xa82] ss:$79 sps:$4 sm:$0xff]  }
  0x85   :  { %22541 = vst [vmem:[#allocation42_spill] sm:$0xff] %v16765_v31  ;;  %v4433_v41 = vcombine.high %v4411_v11, %v4425_v16  ;;  %v5109_v8 = vcombine.high %v5063_v19, %v5077_v59  ;;  %v4428_v26 = vcombine.low %v4383_v36, %v4397_v38  ;;  %v4432_v44 = vcombine.low %v4411_v11, %v4425_v16  ;;  %v15252_v11 = vld [vmem:[#allocation2 + $0xa0c] ss:$79 sps:$4 sm:$0xff]  }
  0x86   :  { %v22543_v42 = vcombine.high %v16388_v35, %v16396_v40  ;;  %v5742_v52 = vrot.slane %v15240_v53, %v16249_v5  ;;  %v5756_v4 = vrot.slane %v15241_v17, %v16249_v5  ;;  %v5770_v27 = vrot.slane %v15242_v46, %v16249_v5  ;;  %v15250_v35 = vld [vmem:[#allocation2 + $0xb20] ss:$79 sps:$4 sm:$0xff]   ;;  %v15253_v53 = vld [vmem:[#allocation2 + $0xaaa] ss:$79 sps:$4 sm:$0xff]  }
  0x87   :  { %v5784_v31 = vrot.slane %v15243_v43, %v16249_v5  ;;  %v16780_v48 = vrot.slane %v3753_v18, %v16249_v5  ;;  %v16783_v51 = vrot.slane %v4429_v54, %v16249_v5  ;;  %v6422_v38 = vrot.slane %v15244_v63, %v16249_v5  ;;  %v15251_v40 = vld [vmem:[#allocation2 + $0xbbe] ss:$79 sps:$4 sm:$0xff]  }
  0x88   :  { %13213 = vmatpush1.bf16.xpose.msra.mxu1 %v22542_v58  ;;  %v6436_v36 = vrot.slane %v15245_v28, %v16249_v5  ;;  %v22546_v17 = vld [vmem:[#allocation12_spill] sm:$0xff]  ;;  %v5113_v46 = vcombine.high %v5091_v20, %v5105_v2  ;;  %v5108_v43 = vcombine.low %v5063_v19, %v5077_v59  ;;  %v6450_v58 = vrot.slane %v15246_v6, %v16249_v5 }
  0x89   :  { %13214 = vmatprep.subr.bf16.mxu1 %v22543_v42  ;;  %22544 = vst [vmem:[#allocation43_spill] sm:$0xff] %v16780_v48  ;;  %22545 = vst [vmem:[#allocation44_spill] sm:$0xff] %v16783_v51  ;;  %v22547_v16 = vcombine.high %v16367_v3, %v22546_v17  ;;  %v6464_v18 = vrot.slane %v15247_v10, %v16249_v5  ;;  %v22548_v54 = vcombine.high %v16406_v62, %v16414_v9  ;;  %v15254_v17 = vld [vmem:[#allocation2 + $0xb48] ss:$79 sps:$4 sm:$0xff]  }
  0x8a   :  { %v16796_v63 = vrot.slane %v4433_v41, %v16249_v5  ;;  %v16799_v28 = vrot.slane %v5109_v8, %v16249_v5  ;;  %v16802_v42 = vrot.slane %v4428_v26, %v16249_v5  ;;  %v16805_v3 = vrot.slane %v4432_v44, %v16249_v5 }
  0x8b   :  { %14013 = vmatpush1.bf16.xpose.msra.mxu0 %v22547_v16  ;;  %v5112_v19 = vcombine.low %v5091_v20, %v5105_v2  ;;  %v5788_v59 = vcombine.high %v5742_v52, %v5756_v4  ;;  %v5792_v6 = vcombine.high %v5770_v27, %v5784_v31  ;;  %v5787_v10 = vcombine.low %v5742_v52, %v5756_v4  ;;  %v15255_v16 = vld [vmem:[#allocation2 + $0xbe6] ss:$79 sps:$4 sm:$0xff]   ;;  %v15256_v20 = vld [vmem:[#allocation2 + $0xc5c] ss:$79 sps:$4 sm:$0xff]  }
  0x8c   :  { %14014 = vmatprep.subr.bf16.mxu0 %v22548_v54  ;;  %22549 = vst [vmem:[#allocation12_spill] sm:$0xff] %v16799_v28  ;;  %22550 = vst [vmem:[#allocation45_spill] sm:$0xff] %v16802_v42  ;;  %v6468_v62 = vcombine.high %v6422_v38, %v6436_v36  ;;  %v5791_v9 = vcombine.low %v5770_v27, %v5784_v31  ;;  %v7101_v41 = vrot.slane %v15248_v22, %v16249_v5  ;;  %v15257_v2 = vld [vmem:[#allocation2 + $0xcfa] ss:$79 sps:$4 sm:$0xff]   ;;  %v15259_v52 = vld [vmem:[#allocation2 + $0xe36] ss:$79 sps:$4 sm:$0xff]  }
  0x8d   :  { %22551 = vst [vmem:[#allocation46_spill] sm:$0xff] %v16805_v3  ;;  %v7115_v54 = vrot.slane %v15249_v23, %v16249_v5  ;;  %v16810_v8 = vrot.slane %v5113_v46, %v16249_v5  ;;  %v16813_v26 = vrot.slane %v5108_v43, %v16249_v5  ;;  %v6472_v44 = vcombine.high %v6450_v58, %v6464_v18  ;;  %v15258_v3 = vld [vmem:[#allocation2 + $0xd98] ss:$79 sps:$4 sm:$0xff]   ;;  %v22555_v28 = vld [vmem:[#allocation14_spill] sm:$0xff] }
  0x8e   :  { %v6467_v42 = vcombine.low %v6422_v38, %v6436_v36  ;;  %v22554_v4 = vld [vmem:[#allocation13_spill] sm:$0xff]  ;;  %v7129_v31 = vrot.slane %v15250_v35, %v16249_v5  ;;  %v7143_v22 = vrot.slane %v15251_v40, %v16249_v5  ;;  %v16821_v23 = vrot.slane %v15252_v11, %v16249_v5  ;;  %v15262_v11 = vld [vmem:[#allocation2 + $0xdc0] ss:$79 sps:$4 sm:$0xff]  }
  0x8f   :  { %22552 = vst [vmem:[#allocation47_spill] sm:$0xff] %v16810_v8  ;;  %22553 = vst [vmem:[#allocation48_spill] sm:$0xff] %v16813_v26  ;;  %v22556_v51 = vcombine.high %v22554_v4, %v22555_v28  ;;  %v16824_v27 = vrot.slane %v15253_v53, %v16249_v5  ;;  %v15260_v46 = vld [vmem:[#allocation2 + $0xc84] ss:$79 sps:$4 sm:$0xff]   ;;  %v22557_v36 = vcombine.high %v16432_v50, %v16440_v56  ;;  %v15263_v53 = vld [vmem:[#allocation2 + $0xe5e] ss:$79 sps:$4 sm:$0xff]  }
  0x90   :  { %v15261_v38 = vld [vmem:[#allocation2 + $0xd22] ss:$79 sps:$4 sm:$0xff]   ;;  %v16830_v43 = vrot.slane %v5112_v19, %v16249_v5  ;;  %v16836_v35 = vrot.slane %v5792_v6, %v16249_v5  ;;  %v16839_v40 = vrot.slane %v5787_v10, %v16249_v5  ;;  %v16842_v28 = vrot.slane %v6468_v62, %v16249_v5 }
  0x91   :  { %13215 = vmatpush1.bf16.xpose.msra.mxu1 %v22556_v51  ;;  %v16833_v51 = vrot.slane %v5788_v59, %v16249_v5  ;;  %v16845_v50 = vrot.slane %v5791_v9, %v16249_v5  ;;  %v6471_v56 = vcombine.low %v6450_v58, %v6464_v18  ;;  %v7147_v19 = vcombine.high %v7101_v41, %v7115_v54  ;;  %v22563_v4 = vld [vmem:[#allocation15_spill] sm:$0xff] }
  0x92   :  { %13216 = vmatprep.subr.bf16.mxu1 %v22557_v36  ;;  %22558 = vst [vmem:[#allocation13_spill] sm:$0xff] %v16830_v43  ;;  %22559 = vst [vmem:[#allocation14_spill] sm:$0xff] %v16836_v35  ;;  %v22564_v36 = vld [vmem:[#allocation16_spill] sm:$0xff]  ;;  %v16851_v6 = vrot.slane %v6472_v44, %v16249_v5  ;;  %v16854_v10 = vrot.slane %v6467_v42, %v16249_v5  ;;  %v7823_v62 = vrot.slane %v15255_v16, %v16249_v5 }
  0x93   :  { %22560 = vst [vmem:[#allocation49_spill] sm:$0xff] %v16839_v40  ;;  %22561 = vst [vmem:[#allocation50_spill] sm:$0xff] %v16842_v28  ;;  %v22565_v59 = vcombine.high %v22563_v4, %v22564_v36  ;;  %v7809_v40 = vrot.slane %v15254_v17, %v16249_v5  ;;  %v22567_v9 = vcombine.high %v16450_v30, %v16458_v34  ;;  %v15265_v44 = vld [vmem:[#allocation2 + $0xf72] ss:$79 sps:$4 sm:$0xff]  }
  0x94   :  { %22562 = vst [vmem:[#allocation51_spill] sm:$0xff] %v16845_v50  ;;  %22566 = vst [vmem:[#allocation15_spill] sm:$0xff] %v16854_v10  ;;  %v7151_v58 = vcombine.high %v7129_v31, %v7143_v22  ;;  %v7827_v18 = vcombine.high %v16821_v23, %v16824_v27  ;;  %v7146_v4 = vcombine.low %v7101_v41, %v7115_v54  ;;  %v15266_v54 = vld [vmem:[#allocation2 + $0x1010] ss:$79 sps:$4 sm:$0xff]  }
  0x95   :  { %14015 = vmatpush1.bf16.xpose.msra.mxu0 %v22565_v59  ;;  %v7150_v36 = vcombine.low %v7129_v31, %v7143_v22  ;;  %v15264_v59 = vld [vmem:[#allocation2 + $0xed4] ss:$79 sps:$4 sm:$0xff]   ;;  %v8460_v50 = vrot.slane %v15256_v20, %v16249_v5  ;;  %v8474_v42 = vrot.slane %v15257_v2, %v16249_v5  ;;  %v8488_v17 = vrot.slane %v15258_v3, %v16249_v5  ;;  %v15267_v31 = vld [vmem:[#allocation2 + $0x10ae] ss:$79 sps:$4 sm:$0xff]  }
  0x96   :  { %14016 = vmatprep.subr.bf16.mxu0 %v22567_v9  ;;  %v8502_v16 = vrot.slane %v15259_v52, %v16249_v5  ;;  %v16868_v10 = vrot.slane %v6471_v56, %v16249_v5  ;;  %v16871_v30 = vrot.slane %v7147_v19, %v16249_v5  ;;  %v9140_v34 = vrot.slane %v15260_v46, %v16249_v5  ;;  %v15268_v52 = vld [vmem:[#allocation2 + $0xefc] ss:$79 sps:$4 sm:$0xff]   ;;  %v22570_v9 = vld [vmem:[#allocation17_spill] sm:$0xff] }
  0x97   :  { %v9154_v41 = vrot.slane %v15261_v38, %v16249_v5  ;;  %v7831_v22 = vcombine.high %v7809_v40, %v7823_v62  ;;  %v7826_v20 = vcombine.low %v16821_v23, %v16824_v27  ;;  %v9168_v3 = vrot.slane %v15262_v11, %v16249_v5  ;;  %v15269_v56 = vld [vmem:[#allocation2 + $0xf9a] ss:$79 sps:$4 sm:$0xff]  }
  0x98   :  { %22568 = vst [vmem:[#allocation16_spill] sm:$0xff] %v16868_v10  ;;  %22569 = vst [vmem:[#allocation52_spill] sm:$0xff] %v16871_v30  ;;  %v9182_v2 = vrot.slane %v15263_v53, %v16249_v5  ;;  %v22571_v10 = vld [vmem:[#allocation18_spill] sm:$0xff]  ;;  %v16883_v46 = vrot.slane %v7151_v58, %v16249_v5  ;;  %v16886_v38 = vrot.slane %v7827_v18, %v16249_v5  ;;  %v15271_v58 = vld [vmem:[#allocation2 + $0x10d6] ss:$79 sps:$4 sm:$0xff]  }
  0x99   :  { %v22572_v19 = vcombine.high %v22570_v9, %v22571_v10  ;;  %v16889_v30 = vrot.slane %v7146_v4, %v16249_v5  ;;  %v7830_v23 = vcombine.low %v7809_v40, %v7823_v62  ;;  %v22576_v27 = vcombine.high %v16476_v1, %v16484_v37  ;;  %v15273_v40 = vld [vmem:[#allocation2 + $0x11ea] ss:$79 sps:$4 sm:$0xff]  }
  0x9a   :  { %22573 = vst [vmem:[#allocation17_spill] sm:$0xff] %v16883_v46  ;;  %22574 = vst [vmem:[#allocation18_spill] sm:$0xff] %v16886_v38  ;;  %v16895_v11 = vrot.slane %v7150_v36, %v16249_v5  ;;  %v8506_v53 = vcombine.high %v8460_v50, %v8474_v42  ;;  %v8510_v10 = vcombine.high %v8488_v17, %v8502_v16  ;;  %v22578_v62 = vld [vmem:[#allocation19_spill] sm:$0xff]  ;;  %v22579_v38 = vld [vmem:[#allocation20_spill] sm:$0xff] }
  0x9b   :  { %13217 = vmatpush1.bf16.xpose.msra.mxu1 %v22572_v19  ;;  %22575 = vst [vmem:[#allocation53_spill] sm:$0xff] %v16889_v30  ;;  %v8505_v9 = vcombine.low %v8460_v50, %v8474_v42  ;;  %v15270_v19 = vld [vmem:[#allocation2 + $0x1038] ss:$79 sps:$4 sm:$0xff]   ;;  %v9186_v46 = vcombine.high %v9140_v34, %v9154_v41  ;;  %v8509_v28 = vcombine.low %v8488_v17, %v8502_v16 }
  0x9c   :  { %13218 = vmatprep.subr.bf16.mxu1 %v22576_v27  ;;  %22577 = vst [vmem:[#allocation54_spill] sm:$0xff] %v16895_v11  ;;  %v9819_v18 = vrot.slane %v15264_v59, %v16249_v5  ;;  %v9833_v4 = vrot.slane %v15265_v44, %v16249_v5  ;;  %v15272_v30 = vld [vmem:[#allocation2 + $0x114c] ss:$79 sps:$4 sm:$0xff]   ;;  %v22580_v1 = vcombine.high %v22578_v62, %v22579_v38  ;;  %v15274_v27 = vld [vmem:[#allocation2 + $0x1288] ss:$79 sps:$4 sm:$0xff]  }
  0x9d   :  { %v16903_v37 = vrot.slane %v7831_v22, %v16249_v5  ;;  %v16906_v36 = vrot.slane %v7826_v20, %v16249_v5  ;;  %v9190_v50 = vcombine.high %v9168_v3, %v9182_v2  ;;  %v9185_v42 = vcombine.low %v9140_v34, %v9154_v41  ;;  %v15275_v17 = vld [vmem:[#allocation2 + $0x1326] ss:$79 sps:$4 sm:$0xff]  }
  0x9e   :  { %14017 = vmatpush1.bf16.xpose.msra.mxu0 %v22580_v1  ;;  %v22583_v59 = vcombine.high %v16494_v25, %v16502_v21  ;;  %v16912_v44 = vrot.slane %v7830_v23, %v16249_v5  ;;  %v9189_v16 = vcombine.low %v9168_v3, %v9182_v2  ;;  %v9847_v38 = vrot.slane %v15266_v54, %v16249_v5  ;;  %v15276_v62 = vld [vmem:[#allocation2 + $0x1174] ss:$79 sps:$4 sm:$0xff]   ;;  %v15278_v1 = vld [vmem:[#allocation2 + $0x12b0] ss:$79 sps:$4 sm:$0xff]  }
  0x9f   :  { %22581 = vst [vmem:[#allocation19_spill] sm:$0xff] %v16903_v37  ;;  %22582 = vst [vmem:[#allocation20_spill] sm:$0xff] %v16906_v36  ;;  %v9861_v22 = vrot.slane %v15267_v31, %v16249_v5  ;;  %v16917_v20 = vrot.slane %v8506_v53, %v16249_v5  ;;  %v16920_v34 = vrot.slane %v8510_v10, %v16249_v5  ;;  %v15277_v21 = vld [vmem:[#allocation2 + $0x1212] ss:$79 sps:$4 sm:$0xff]   ;;  %v15279_v2 = vld [vmem:[#allocation2 + $0x134e] ss:$79 sps:$4 sm:$0xff]  }
  0xa0   :  { %14018 = vmatprep.subr.bf16.mxu0 %v22583_v59  ;;  %22584 = vst [vmem:[#allocation55_spill] sm:$0xff] %v16912_v44  ;;  %v10499_v41 = vrot.slane %v15268_v52, %v16249_v5  ;;  %v10513_v25 = vrot.slane %v15269_v56, %v16249_v5  ;;  %v16925_v23 = vrot.slane %v9186_v46, %v16249_v5  ;;  %v22592_v46 = vld [vmem:[#allocation21_spill] sm:$0xff]  ;;  %v22593_v59 = vld [vmem:[#allocation22_spill] sm:$0xff] }
  0xa1   :  { %22585 = vst [vmem:[#allocation56_spill] sm:$0xff] %v16917_v20  ;;  %22586 = vst [vmem:[#allocation57_spill] sm:$0xff] %v16920_v34  ;;  %v16928_v54 = vrot.slane %v8505_v9, %v16249_v5  ;;  %v16931_v31 = vrot.slane %v8509_v28, %v16249_v5  ;;  %v9865_v3 = vcombine.high %v9819_v18, %v9833_v4 }
  0xa2   :  { %22587 = vst [vmem:[#allocation58_spill] sm:$0xff] %v16925_v23  ;;  %v16934_v53 = vrot.slane %v9190_v50, %v16249_v5  ;;  %v16937_v52 = vrot.slane %v9185_v42, %v16249_v5  ;;  %v10527_v56 = vrot.slane %v15270_v19, %v16249_v5  ;;  %v10541_v10 = vrot.slane %v15271_v58, %v16249_v5 }
  0xa3   :  { %22588 = vst [vmem:[#allocation59_spill] sm:$0xff] %v16928_v54  ;;  %22589 = vst [vmem:[#allocation60_spill] sm:$0xff] %v16931_v31  ;;  %v22594_v23 = vcombine.high %v22592_v46, %v22593_v59  ;;  %v16945_v9 = vrot.slane %v9189_v16, %v16249_v5  ;;  %v9869_v28 = vcombine.high %v9847_v38, %v9861_v22 }
  0xa4   :  { %22590 = vst [vmem:[#allocation61_spill] sm:$0xff] %v16934_v53  ;;  %22591 = vst [vmem:[#allocation62_spill] sm:$0xff] %v16937_v52  ;;  %v11178_v54 = vrot.slane %v15272_v30, %v16249_v5  ;;  %v11192_v50 = vrot.slane %v15273_v40, %v16249_v5  ;;  %v22596_v42 = vcombine.high %v16520_v47, %v16528_v24  ;;  %v22598_v30 = vld [vmem:[#allocation23_spill] sm:$0xff] }
  0xa5   :  { %13219 = vmatpush1.bf16.xpose.msra.mxu1 %v22594_v23  ;;  %22595 = vst [vmem:[#allocation21_spill] sm:$0xff] %v16945_v9  ;;  %v10545_v52 = vcombine.high %v10499_v41, %v10513_v25  ;;  %v9864_v19 = vcombine.low %v9819_v18, %v9833_v4  ;;  %v11206_v58 = vrot.slane %v15274_v27, %v16249_v5  ;;  %v22599_v9 = vld [vmem:[#allocation24_spill] sm:$0xff] }
  0xa6   :  { %13220 = vmatprep.subr.bf16.mxu1 %v22596_v42  ;;  %v11220_v31 = vrot.slane %v15275_v17, %v16249_v5  ;;  %v16955_v23 = vrot.slane %v9865_v3, %v16249_v5  ;;  %v9868_v16 = vcombine.low %v9847_v38, %v9861_v22  ;;  %v10544_v46 = vcombine.low %v10499_v41, %v10513_v25 }
  0xa7   :  { %v11858_v59 = vrot.slane %v15276_v62, %v16249_v5  ;;  %v22600_v40 = vcombine.high %v22598_v30, %v22599_v9  ;;  %v10549_v53 = vcombine.high %v10527_v56, %v10541_v10  ;;  %v10548_v47 = vcombine.low %v10527_v56, %v10541_v10  ;;  %v22609_v10 = vld [vmem:[#allocation25_spill] sm:$0xff] }
  0xa8   :  { %22597 = vst [vmem:[#allocation22_spill] sm:$0xff] %v16955_v23  ;;  %v11872_v24 = vrot.slane %v15277_v21, %v16249_v5  ;;  %v11886_v18 = vrot.slane %v15278_v1, %v16249_v5  ;;  %v22601_v4 = vcombine.high %v16538_v32, %v16546_v29  ;;  %v11224_v27 = vcombine.high %v11178_v54, %v11192_v50 }
  0xa9   :  { %14019 = vmatpush1.bf16.xpose.msra.mxu0 %v22600_v40  ;;  %v11228_v17 = vcombine.high %v11206_v58, %v11220_v31  ;;  %v11900_v38 = vrot.slane %v15279_v2, %v16249_v5  ;;  %v11223_v22 = vcombine.low %v11178_v54, %v11192_v50  ;;  %v16968_v62 = vrot.slane %v9869_v28, %v16249_v5 }
  0xaa   :  { %14020 = vmatprep.subr.bf16.mxu0 %v22601_v4  ;;  %v11904_v41 = vcombine.high %v11858_v59, %v11872_v24  ;;  %v11227_v25 = vcombine.low %v11206_v58, %v11220_v31  ;;  %v11903_v3 = vcombine.low %v11858_v59, %v11872_v24  ;;  %v16971_v56 = vrot.slane %v10545_v52, %v16249_v5  ;;  %v22610_v52 = vld [vmem:[#allocation26_spill] sm:$0xff]  ;;  %v22622_v24 = vld [vmem:[#allocation28_spill] sm:$0xff]  ;;  %v22649_v59 = vld [vmem:[#allocation29_spill] sm:$0xff] }
  0xab   :  { %22602 = vst [vmem:[#allocation23_spill] sm:$0xff] %v16968_v62  ;;  %v16974_v21 = vrot.slane %v9864_v19, %v16249_v5  ;;  %v11908_v1 = vcombine.high %v11886_v18, %v11900_v38  ;;  %v11907_v32 = vcombine.low %v11886_v18, %v11900_v38  ;;  %v16977_v29 = vrot.slane %v10549_v53, %v16249_v5  ;;  %v22625_v38 = vld [vmem:[#allocation40_spill] sm:$0xff]  ;;  %v22648_v42 = vld [vmem:[#allocation62_spill] sm:$0xff] }
  0xac   :  { %22603 = vst [vmem:[#allocation24_spill] sm:$0xff] %v16971_v56  ;;  %v16980_v2 = vrot.slane %v9868_v16, %v16249_v5  ;;  %v16983_v54 = vrot.slane %v10544_v46, %v16249_v5  ;;  %v16986_v31 = vrot.slane %v10548_v47, %v16249_v5  ;;  %v22611_v9 = vcombine.high %v22609_v10, %v22610_v52  ;;  %v22621_v47 = vld [vmem:[#allocation27_spill] sm:$0xff]  ;;  %v22630_v10 = vld [vmem:[#allocation44_spill] sm:$0xff]  ;;  %v22647_v4 = vld [vmem:[#allocation21_spill] sm:$0xff] }
  0xad   :  { %22604 = vst [vmem:[#allocation63_spill] sm:$0xff] %v16974_v21  ;;  %22605 = vst [vmem:[#allocation64_spill] sm:$0xff] %v16977_v29  ;;  %v16992_v28 = vrot.slane %v11224_v27, %v16249_v5  ;;  %v16995_v50 = vrot.slane %v11228_v17, %v16249_v5  ;;  %v16998_v53 = vrot.slane %v11223_v22, %v16249_v5  ;;  %v22624_v17 = vld [vmem:[#allocation41_spill] sm:$0xff]  ;;  %v22653_v22 = vld [vmem:[#allocation32_spill] sm:$0xff] }
  0xae   :  { %22606 = vst [vmem:[#allocation65_spill] sm:$0xff] %v16980_v2  ;;  %22607 = vst [vmem:[#allocation66_spill] sm:$0xff] %v16983_v54  ;;  %13221 = vmatpush1.bf16.xpose.msra.mxu1 %v22611_v9  ;;  %v22615_v19 = vcombine.high %v16564_v33, %v16572_v15  ;;  %v17006_v58 = vrot.slane %v11904_v41, %v16249_v5  ;;  %v17009_v16 = vrot.slane %v11227_v25, %v16249_v5  ;;  %v22626_v41 = vld [vmem:[#allocation42_spill] sm:$0xff]  ;;  %v22631_v9 = vld [vmem:[#allocation12_spill] sm:$0xff] }
  0xaf   :  { %22608 = vst [vmem:[#allocation67_spill] sm:$0xff] %v16986_v31  ;;  %22612 = vst [vmem:[#allocation25_spill] sm:$0xff] %v16992_v28  ;;  %v17012_v46 = vrot.slane %v11903_v3, %v16249_v5  ;;  %v17017_v30 = vrot.slane %v11908_v1, %v16249_v5  ;;  %v17020_v40 = vrot.slane %v11907_v32, %v16249_v5  ;;  %v22627_v3 = vld [vmem:[#allocation31_spill] sm:$0xff]  ;;  %v22628_v1 = vld [vmem:[#allocation33_spill] sm:$0xff] }
  0xb0   :  { %22613 = vst [vmem:[#allocation26_spill] sm:$0xff] %v16995_v50  ;;  %22614 = vst [vmem:[#allocation68_spill] sm:$0xff] %v16998_v53  ;;  %13222 = vmatprep.subr.bf16.mxu1 %v22615_v19  ;;  %v22623_v18 = vcombine.high %v22621_v47, %v22622_v24  ;;  %v22629_v32 = vcombine.high %v22627_v3, %v22628_v1  ;;  %v22632_v47 = vld [vmem:[#allocation46_spill] sm:$0xff]  ;;  %v22633_v24 = vld [vmem:[#allocation45_spill] sm:$0xff]  ;;  %v22652_v52 = vcombine.low %v16638_v12, %v16679_v14 }
  0xb1   :  { %22616 = vst [vmem:[#allocation69_spill] sm:$0xff] %v17006_v58  ;;  %22617 = vst [vmem:[#allocation70_spill] sm:$0xff] %v17009_v16  ;;  %v22642_v27 = vld [vmem:[#allocation53_spill] sm:$0xff]  ;;  %v22645_v3 = vld [vmem:[#allocation60_spill] sm:$0xff]  ;;  %v3137_v15 = vcombine.low %v16747_v13, %v16750_v45 }
  0xb2   :  { %22618 = vst [vmem:[#allocation71_spill] sm:$0xff] %v17012_v46  ;;  %22619 = vst [vmem:[#allocation72_spill] sm:$0xff] %v17017_v30  ;;  %14021 = vmatpush1.bf16.xpose.msra.mxu0 %v22623_v18  ;;  %v22643_v25 = vld [vmem:[#allocation61_spill] sm:$0xff]  ;;  %v22646_v33 = vld [vmem:[#allocation59_spill] sm:$0xff] }
  0xb3   :  { %22620 = vst [vmem:[#allocation73_spill] sm:$0xff] %v17020_v40  ;;  %14022 = vmatprep.subr.bf16.mxu0 %v22629_v32  ;;  %v22644_v32 = vld [vmem:[#allocation58_spill] sm:$0xff]  ;;  %v17086_v19 = vld [vmem:[#allocation5 + $0x10] sm:$0x77]  ;;  %v22656_v14 = vld [vmem:[#allocation35_spill] sm:$0xff] }
  0xb4   :  { %v22650_v5 = vld [vmem:[#allocation30_spill] sm:$0xff]  ;;  %v17101_v12 = vld [vmem:[#allocation5 + $0xb0] sm:$0x77] }
  0xb5   :  { %v22651_v18 = vcombine.high %v22649_v59, %v22650_v5  ;;  %v22654_v1 = vld [vmem:[#allocation34_spill] sm:$0xff]  ;;  %v22657_v5 = vcombine.low %v16715_v61, %v16724_v7  ;;  %v1774_v59 = vcombine.low %v16718_v55, %v16721_v60 }
  0xb6   :  { %v22655_v26 = vcombine.high %v22653_v22, %v22654_v1  ;;  %v22658_v22 = vld [vmem:[#allocation36_spill] sm:$0xff]  ;;  %v14852_v1 = vcombine.high %v17101_v12, %v17101_v12 }
  0xb7   :  { %13223 = vmatpush1.bf16.xpose.msra.mxu1 %v22651_v18  ;;  %v14812_v18 = vcombine.high %v17086_v19, %v17086_v19 }
  0xb8   :  { %13248 = vmatprep.subr.bf16.mxu1 %v22652_v52  ;;  %v14809_v52 = vcombine.low %v22656_v14, %v22656_v14  ;;  %v2454_v14 = vcombine.low %v16732_v57, %v16735_v49  ;;  %v3813_v49 = vcombine.low %v22626_v41, %v16780_v48 }
  0xba   :  { %14023 = vmatpush1.bf16.xpose.msra.mxu0 %v22655_v26  ;;  %v14849_v26 = vcombine.low %v22658_v22, %v22658_v22  ;;  %v3133_v22 = vcombine.low %v22625_v38, %v22624_v17 }
  0xbb   :  { %14048 = vmatprep.subr.bf16.mxu0 %v22657_v5  ;;  %v3817_v5 = vcombine.low %v16753_v0, %v16762_v39 }
  0xbe   :  { %13241 = vmatmul.mubr.bf16.vlgmr.msra.gmra.mrb[0].mxu1 %v14809_v52  ;;  %v4496_v52 = vcombine.low %v22630_v10, %v16796_v63 }
  0xbf   :  { %13249 = vmatpush1.bf16.xpose.msra.mxu1 %v1774_v59  ;;  %13280 = vmatprep.mubr.bf16.mxu1 %v14812_v18  ;;  %v5176_v59 = vcombine.low %v22631_v9, %v16810_v8  ;;  %v5855_v18 = vcombine.low %v16833_v51, %v16836_v35  ;;  %v22664_v8 = vld [vmem:[#allocation52_spill] sm:$0xff]  ;;  %v22667_v35 = vld [vmem:[#allocation18_spill] sm:$0xff] }
  0xc0   :  { %13250 = vmatprep.subr.bf16.mxu1 %v3137_v15  ;;  %v4492_v15 = vcombine.low %v22633_v24, %v22632_v47  ;;  %v22665_v47 = vld [vmem:[#allocation16_spill] sm:$0xff]  ;;  %v22666_v24 = vld [vmem:[#allocation15_spill] sm:$0xff] }
  0xc1   :  { %14041 = vmatmul.mubr.bf16.vlgmr.msra.gmra.mrb[0].mxu0 %v14849_v26  ;;  %v22659_v26 = vld [vmem:[#allocation48_spill] sm:$0xff]  ;;  %v6531_v48 = vcombine.low %v22666_v24, %v22665_v47 }
  0xc2   :  { %14049 = vmatpush1.bf16.xpose.msra.mxu0 %v2454_v14  ;;  %14080 = vmatprep.mubr.bf16.mxu0 %v14852_v1  ;;  %v5172_v14 = vcombine.low %v22659_v26, %v16830_v43  ;;  %v22660_v1 = vld [vmem:[#allocation50_spill] sm:$0xff]  ;;  %v7894_v43 = vcombine.low %v22667_v35, %v16903_v37 }
  0xc3   :  { %14050 = vmatprep.subr.bf16.mxu0 %v3817_v5  ;;  %v6535_v5 = vcombine.low %v22660_v1, %v16851_v6 }
  0xc7   :  { %13251 = vmatpush1.bf16.xpose.msra.mxu1 %v3133_v22  ;;  %v22661_v22 = vld [vmem:[#allocation51_spill] sm:$0xff] }
  0xc8   :  { %13252 = vmatprep.subr.bf16.mxu1 %v4496_v52  ;;  %v22662_v52 = vld [vmem:[#allocation49_spill] sm:$0xff] }
  0xca   :  { %14051 = vmatpush1.bf16.xpose.msra.mxu0 %v3813_v49  ;;  %v5851_v49 = vcombine.low %v22662_v52, %v22661_v22 }
  0xcb   :  { %14052 = vmatprep.subr.bf16.mxu0 %v5176_v59  ;;  %v22663_v59 = vld [vmem:[#allocation17_spill] sm:$0xff] }
  0xcc   :  { %v7214_v9 = vcombine.low %v22664_v8, %v22663_v59 }
  0xcf   :  { %13253 = vmatpush1.bf16.xpose.msra.mxu1 %v4492_v15  ;;  %v7210_v15 = vcombine.low %v22642_v27, %v16895_v11  ;;  %v15320_v11 = vld [vmem:[#allocation2 + $0x4f8] ss:$79 sps:$4 sm:$0xff]  }
  0xd0   :  { %13254 = vmatprep.subr.bf16.mxu1 %v5855_v18  ;;  %v8573_v18 = vcombine.low %v16917_v20, %v16920_v34 }
  0xd2   :  { %14053 = vmatpush1.bf16.xpose.msra.mxu0 %v5172_v14  ;;  %v7890_v14 = vcombine.low %v16906_v36, %v16912_v44  ;;  %v15288_v44 = vld [vmem:[#allocation2 + $0xa6] ss:$79 sps:$4 sm:$0xff]   ;;  %v15302_v36 = vld [vmem:[#allocation2 + $0x20a] ss:$79 sps:$4 sm:$0xff]  }
  0xd3   :  { %14054 = vmatprep.subr.bf16.mxu0 %v6535_v5  ;;  %v9253_v5 = vcombine.low %v22644_v32, %v22643_v25  ;;  %v15290_v25 = vld [vmem:[#allocation2 + $0x144] ss:$79 sps:$4 sm:$0xff]   ;;  %v15300_v32 = vld [vmem:[#allocation2 + $0x16c] ss:$79 sps:$4 sm:$0xff]  }
  0xd7   :  { %13255 = vmatpush1.bf16.xpose.msra.mxu1 %v5851_v49  ;;  %v10612_v49 = vcombine.low %v16971_v56, %v16977_v29 }
  0xd8   :  { %13256 = vmatprep.subr.bf16.mxu1 %v7214_v9  ;;  %v9249_v9 = vcombine.low %v22648_v42, %v22647_v4  ;;  %v22668_v4 = vld [vmem:[#allocation11_spill] sm:$0xff] }
  0xd9   :  { %v1808_v29 = vrot.slane %v15288_v44, %v22668_v4  ;;  %v15304_v44 = vld [vmem:[#allocation2 + $0x280] ss:$79 sps:$4 sm:$0xff]  }
  0xda   :  { %14055 = vmatpush1.bf16.xpose.msra.mxu0 %v6531_v48  ;;  %v8569_v48 = vcombine.low %v22646_v33, %v22645_v3  ;;  %v15310_v3 = vld [vmem:[#allocation2 + $0x45a] ss:$79 sps:$4 sm:$0xff]  }
  0xdb   :  { %14056 = vmatprep.subr.bf16.mxu0 %v7894_v43  ;;  %v9932_v43 = vcombine.low %v16955_v23, %v16968_v62  ;;  %v9928_v62 = vcombine.low %v16974_v21, %v16980_v2  ;;  %v10608_v23 = vcombine.low %v16983_v54, %v16986_v31  ;;  %v15308_v21 = vld [vmem:[#allocation2 + $0x3bc] ss:$79 sps:$4 sm:$0xff]   ;;  %v15314_v54 = vld [vmem:[#allocation2 + $0x346] ss:$79 sps:$4 sm:$0xff]  }
  0xdc   :  { %v15312_v31 = vld [vmem:[#allocation2 + $0x2a8] ss:$79 sps:$4 sm:$0xff]  }
  0xdd   :  { %v17186_v33 = vld [vmem:[#allocation5 + $0xb8] sm:$0x77] }
  0xdf   :  { %13257 = vmatpush1.bf16.xpose.msra.mxu1 %v7210_v15  ;;  %v15286_v15 = vld [vmem:[#allocation2 + $0x8] ss:$79 sps:$4 sm:$0xff]  }
  0xe0   :  { %13258 = vmatprep.subr.bf16.mxu1 %v8573_v18  ;;  %v15292_v18 = vld [vmem:[#allocation2 + $0x1e2] ss:$79 sps:$4 sm:$0xff]   ;;  %v1794_v42 = vrot.slane %v15286_v15, %v22668_v4  ;;  %v2516_v15 = vrot.slane %v15302_v36, %v22668_v4  ;;  %v11967_v36 = vcombine.low %v17012_v46, %v17020_v40  ;;  %v3153_v46 = vrot.slane %v15304_v44, %v22668_v4 }
  0xe1   :  { %v1836_v56 = vrot.slane %v15292_v18, %v22668_v4  ;;  %v17208_v44 = vrot.slane %v15312_v31, %v22668_v4 }
  0xe2   :  { %14057 = vmatpush1.bf16.xpose.msra.mxu0 %v7890_v14  ;;  %v15296_v14 = vld [vmem:[#allocation2 + $0x30] ss:$79 sps:$4 sm:$0xff]  }
  0xe3   :  { %14058 = vmatprep.subr.bf16.mxu0 %v9253_v5  ;;  %v15298_v5 = vld [vmem:[#allocation2 + $0xce] ss:$79 sps:$4 sm:$0xff]  }
  0xe4   :  { %v2488_v2 = vrot.slane %v15298_v5, %v22668_v4 }
  0xe7   :  { %13259 = vmatpush1.bf16.xpose.msra.mxu1 %v8569_v48  ;;  %v11291_v48 = vcombine.low %v16992_v28, %v16995_v50  ;;  %v2502_v50 = vrot.slane %v15300_v32, %v22668_v4  ;;  %v1845_v28 = vcombine.high %v1794_v42, %v1808_v29 }
  0xe8   :  { %13260 = vmatprep.subr.bf16.mxu1 %v9932_v43  ;;  %v1822_v43 = vrot.slane %v15290_v25, %v22668_v4  ;;  %v15306_v25 = vld [vmem:[#allocation2 + $0x31e] ss:$79 sps:$4 sm:$0xff]  }
  0xe9   :  { %v2529_v32 = vcombine.high %v2502_v50, %v2516_v15  ;;  %v2528_v40 = vcombine.low %v2502_v50, %v2516_v15  ;;  %v15328_v50 = vld [vmem:[#allocation2 + $0x520] ss:$79 sps:$4 sm:$0xff]  }
  0xea   :  { %14059 = vmatpush1.bf16.xpose.msra.mxu0 %v9249_v9  ;;  %v11971_v9 = vcombine.low %v17006_v58, %v17017_v30  ;;  %v1849_v18 = vcombine.high %v1822_v43, %v1836_v56  ;;  %v15316_v30 = vld [vmem:[#allocation2 + $0x3e4] ss:$79 sps:$4 sm:$0xff]   ;;  %v1848_v34 = vcombine.low %v1822_v43, %v1836_v56 }
  0xeb   :  { %14060 = vmatprep.subr.bf16.mxu0 %v10612_v49  ;;  %v2474_v49 = vrot.slane %v15296_v14, %v22668_v4  ;;  %v11287_v14 = vcombine.low %v16998_v53, %v17009_v16  ;;  %v1844_v53 = vcombine.low %v1794_v42, %v1808_v29  ;;  %v15322_v58 = vld [vmem:[#allocation2 + $0x596] ss:$79 sps:$4 sm:$0xff]   ;;  %v3195_v29 = vrot.slane %v15310_v3, %v22668_v4  ;;  %v15330_v42 = vld [vmem:[#allocation2 + $0x5be] ss:$79 sps:$4 sm:$0xff]  }
  0xec   :  { %v17192_v16 = vrot.slane %v1849_v18, %v22668_v4  ;;  %v3181_v18 = vrot.slane %v15308_v21, %v22668_v4  ;;  %v15324_v56 = vld [vmem:[#allocation2 + $0x634] ss:$79 sps:$4 sm:$0xff]   ;;  %v17225_v31 = vrot.slane %v1848_v34, %v22668_v4  ;;  %v17238_v34 = vrot.slane %v2528_v40, %v22668_v4 }
  0xed   :  { %v2525_v5 = vcombine.high %v2474_v49, %v2488_v2  ;;  %v2524_v20 = vcombine.low %v2474_v49, %v2488_v2  ;;  %v15326_v2 = vld [vmem:[#allocation2 + $0x6d2] ss:$79 sps:$4 sm:$0xff]   ;;  %v17259_v40 = vrot.slane %v15330_v42, %v22668_v4 }
  0xee   :  { %v22670_v43 = vld [vmem:[#allocation37_spill] sm:$0xff]  ;;  %v22671_v49 = vld [vmem:[#allocation38_spill] sm:$0xff] }
  0xef   :  { %13261 = vmatpush1.bf16.xpose.msra.mxu1 %v9928_v62  ;;  %v15318_v62 = vld [vmem:[#allocation2 + $0x482] ss:$79 sps:$4 sm:$0xff]   ;;  %v17197_v27 = vrot.slane %v2525_v5, %v22668_v4  ;;  %v22672_v15 = vcombine.high %v22670_v43, %v22671_v49  ;;  %v14854_v5 = vcombine.high %v17186_v33, %v17186_v33  ;;  %v15332_v43 = vld [vmem:[#allocation2 + $0x65c] ss:$79 sps:$4 sm:$0xff]   ;;  %v3208_v33 = vcombine.high %v3181_v18, %v3195_v29 }
  0xf0   :  { %13262 = vmatprep.subr.bf16.mxu1 %v11291_v48  ;;  %v14811_v48 = vcombine.low %v17086_v19, %v17086_v19  ;;  %v3167_v19 = vrot.slane %v15306_v25, %v22668_v4  ;;  %v17211_v25 = vrot.slane %v15314_v54, %v22668_v4  ;;  %v3875_v21 = vrot.slane %v15318_v62, %v22668_v4  ;;  %v15334_v49 = vld [vmem:[#allocation2 + $0x6fa] ss:$79 sps:$4 sm:$0xff]  }
  0xf1   :  { %v17228_v54 = vrot.slane %v2524_v20, %v22668_v4  ;;  %v3207_v20 = vcombine.low %v3181_v18, %v3195_v29  ;;  %v17244_v62 = vrot.slane %v15320_v11, %v22668_v4  ;;  %v17265_v11 = vrot.slane %v15332_v43, %v22668_v4 }
  0xf2   :  { %14061 = vmatpush1.bf16.xpose.msra.mxu0 %v10608_v23  ;;  %v17184_v23 = vld [vmem:[#allocation5 + $0x18] sm:$0x77]  ;;  %v22674_v29 = vcombine.high %v16718_v55, %v16721_v60  ;;  %v22676_v43 = vcombine.low %v17101_v12, %v17101_v12 }
  0xf3   :  { %14062 = vmatprep.subr.bf16.mxu0 %v11971_v9  ;;  %22669 = vst [vmem:[#allocation27_spill] sm:$0xff] %v17184_v23  ;;  %v17189_v9 = vrot.slane %v1845_v28, %v22668_v4  ;;  %v17200_v28 = vrot.slane %v2529_v32, %v22668_v4  ;;  %v14814_v3 = vcombine.high %v17184_v23, %v17184_v23 }
  0xf4   :  { %v17222_v32 = vrot.slane %v1844_v53, %v22668_v4  ;;  %v22673_v53 = vcombine.high %v16715_v61, %v16724_v7  ;;  %v3884_v23 = vcombine.high %v17208_v44, %v17211_v25  ;;  %v17250_v61 = vrot.slane %v15324_v56, %v22668_v4 }
  0xf5   :  { %v17253_v7 = vrot.slane %v15326_v2, %v22668_v4  ;;  %v17276_v56 = vrot.slane %v3208_v33, %v22668_v4  ;;  %v3883_v2 = vcombine.low %v17208_v44, %v17211_v25  ;;  %v17299_v44 = vrot.slane %v3207_v20, %v22668_v4  ;;  %v15340_v25 = vld [vmem:[#allocation2 + $0x8ac] ss:$79 sps:$4 sm:$0xff]   ;;  %v15346_v33 = vld [vmem:[#allocation2 + $0x836] ss:$79 sps:$4 sm:$0xff]   ;;  %v15350_v20 = vld [vmem:[#allocation2 + $0x972] ss:$79 sps:$4 sm:$0xff]  }
  0xf6   :  { %v17287_v42 = vrot.slane %v3884_v23, %v22668_v4  ;;  %v15338_v23 = vld [vmem:[#allocation2 + $0x80e] ss:$79 sps:$4 sm:$0xff]  }
  0xf7   :  { %13263 = vmatpush1.bf16.xpose.msra.mxu1 %v11287_v14  ;;  %v17214_v14 = vrot.slane %v15316_v30, %v22668_v4  ;;  %v3204_v30 = vcombine.high %v3153_v46, %v3167_v19 }
  0xf8   :  { %13288 = vmatprep.subr.bf16.mxu1 %v22672_v15  ;;  %v17247_v15 = vrot.slane %v15322_v58, %v22668_v4  ;;  %v17268_v58 = vrot.slane %v15334_v49, %v22668_v4 }
  0xf9   :  { %v3888_v37 = vcombine.high %v17214_v14, %v3875_v21  ;;  %v3887_v60 = vcombine.low %v17214_v14, %v3875_v21  ;;  %v15342_v14 = vld [vmem:[#allocation2 + $0x94a] ss:$79 sps:$4 sm:$0xff]  }
  0xfa   :  { %14063 = vmatpush1.bf16.xpose.msra.mxu0 %v11967_v36  ;;  %v3203_v36 = vcombine.low %v3153_v46, %v3167_v19  ;;  %v17256_v46 = vrot.slane %v15328_v50, %v22668_v4  ;;  %v17262_v19 = vrot.slane %v3204_v30, %v22668_v4  ;;  %v22675_v50 = vcombine.high %v16747_v13, %v16750_v45  ;;  %v22677_v21 = vld [vmem:[#allocation39_spill] sm:$0xff] }
  0xfb   :  { %14088 = vmatprep.subr.bf16.mxu0 %v22673_v53  ;;  %v17290_v55 = vrot.slane %v3888_v37, %v22668_v4  ;;  %v4563_v13 = vcombine.high %v17244_v62, %v17247_v15  ;;  %v4567_v45 = vcombine.high %v17250_v61, %v17253_v7  ;;  %v22678_v49 = vcombine.high %v16732_v57, %v22677_v21  ;;  %v15344_v53 = vld [vmem:[#allocation2 + $0x798] ss:$79 sps:$4 sm:$0xff]  }
  0xfc   :  { %v5243_v37 = vcombine.high %v17256_v46, %v17259_v40  ;;  %v5247_v12 = vcombine.high %v17265_v11, %v17268_v58  ;;  %v17325_v21 = vrot.slane %v3887_v60, %v22668_v4 }
  0xfd   :  { %v17330_v30 = vrot.slane %v4563_v13, %v22668_v4  ;;  %v15356_v13 = vld [vmem:[#allocation2 + $0xb24] ss:$79 sps:$4 sm:$0xff]  }
  0xfe   :  { %13281 = vmatmul.mubr.bf16.vlgmr.msra.gmra.mrb[0].mxu1 %v14811_v48  ;;  %v17279_v48 = vrot.slane %v3203_v36, %v22668_v4  ;;  %v15348_v36 = vld [vmem:[#allocation2 + $0x8d4] ss:$79 sps:$4 sm:$0xff]   ;;  %v17342_v60 = vrot.slane %v5243_v37, %v22668_v4 }
  0xff   :  { %13289 = vmatpush1.bf16.xpose.msra.mxu1 %v22674_v29  ;;  %13320 = vmatprep.mubr.bf16.mxu1 %v14814_v3  ;;  %v15336_v3 = vld [vmem:[#allocation2 + $0x770] ss:$79 sps:$4 sm:$0xff]  }
 0x100   :  { %13290 = vmatprep.subr.bf16.mxu1 %v22675_v50  ;;  %v4566_v50 = vcombine.low %v17250_v61, %v17253_v7  ;;  %v22681_v61 = vcombine.high %v22625_v38, %v22624_v17  ;;  %v5885_v7 = vrot.slane %v15338_v23, %v22668_v4  ;;  %v6551_v17 = vrot.slane %v15344_v53, %v22668_v4 }
 0x101   :  { %14081 = vmatmul.mubr.bf16.vlgmr.msra.gmra.mrb[0].mxu0 %v22676_v43  ;;  %v22679_v43 = vcombine.high %v16753_v0, %v16762_v39  ;;  %v5242_v0 = vcombine.low %v17256_v46, %v17259_v40  ;;  %v5246_v39 = vcombine.low %v17265_v11, %v17268_v58  ;;  %v5899_v46 = vrot.slane %v15340_v25, %v22668_v4  ;;  %v15352_v11 = vld [vmem:[#allocation2 + $0x9e8] ss:$79 sps:$4 sm:$0xff]  }
 0x102   :  { %14089 = vmatpush1.bf16.xpose.msra.mxu0 %v22678_v49  ;;  %14120 = vmatprep.mubr.bf16.mxu0 %v14854_v5  ;;  %v17322_v5 = vrot.slane %v3883_v2, %v22668_v4  ;;  %v4562_v49 = vcombine.low %v17244_v62, %v17247_v15  ;;  %v17339_v2 = vrot.slane %v4567_v45, %v22668_v4  ;;  %v15354_v58 = vld [vmem:[#allocation2 + $0xa86] ss:$79 sps:$4 sm:$0xff]   ;;  %v15358_v45 = vld [vmem:[#allocation2 + $0xbc2] ss:$79 sps:$4 sm:$0xff]  }
 0x103   :  { %14090 = vmatprep.subr.bf16.mxu0 %v22679_v43  ;;  %v17345_v62 = vrot.slane %v5247_v12, %v22668_v4  ;;  %v5871_v15 = vrot.slane %v15336_v3, %v22668_v4  ;;  %v5913_v40 = vrot.slane %v15342_v14, %v22668_v4  ;;  %v22682_v3 = vcombine.high %v22630_v10, %v16796_v63  ;;  %v15360_v14 = vld [vmem:[#allocation2 + $0xa10] ss:$79 sps:$4 sm:$0xff]   ;;  %v15364_v43 = vld [vmem:[#allocation2 + $0xb4c] ss:$79 sps:$4 sm:$0xff]   ;;  %v22685_v63 = vld [vmem:[#allocation43_spill] sm:$0xff] }
 0x104   :  { %22680 = vst [vmem:[#allocation28_spill] sm:$0xff] %v17322_v5  ;;  %v6565_v38 = vrot.slane %v15346_v33, %v22668_v4  ;;  %v6579_v23 = vrot.slane %v15348_v36, %v22668_v4  ;;  %v6593_v25 = vrot.slane %v15350_v20, %v22668_v4  ;;  %v15362_v12 = vld [vmem:[#allocation2 + $0xaae] ss:$79 sps:$4 sm:$0xff]   ;;  %v17364_v57 = vrot.slane %v4562_v49, %v22668_v4 }
 0x105   :  { %v17367_v37 = vrot.slane %v4566_v50, %v22668_v4  ;;  %v22686_v10 = vcombine.high %v22626_v41, %v22685_v63  ;;  %v17373_v53 = vrot.slane %v5242_v0, %v22668_v4  ;;  %v22688_v20 = vld [vmem:[#allocation12_spill] sm:$0xff]  ;;  %v17383_v50 = vrot.slane %v5246_v39, %v22668_v4 }
 0x106   :  { %22683 = vst [vmem:[#allocation41_spill] sm:$0xff] %v17364_v57  ;;  %v5922_v29 = vcombine.high %v5871_v15, %v5885_v7  ;;  %v5921_v18 = vcombine.low %v5871_v15, %v5885_v7  ;;  %v5926_v0 = vcombine.high %v5899_v46, %v5913_v40  ;;  %v6602_v63 = vcombine.high %v6551_v17, %v6565_v38  ;;  %v15382_v41 = vld [vmem:[#allocation2 + $0xe62] ss:$79 sps:$4 sm:$0xff]  }
 0x107   :  { %13291 = vmatpush1.bf16.xpose.msra.mxu1 %v22681_v61  ;;  %v15366_v61 = vld [vmem:[#allocation2 + $0xbea] ss:$79 sps:$4 sm:$0xff]   ;;  %22684 = vst [vmem:[#allocation40_spill] sm:$0xff] %v17367_v37  ;;  %22687 = vst [vmem:[#allocation42_spill] sm:$0xff] %v17373_v53  ;;  %v5925_v5 = vcombine.low %v5899_v46, %v5913_v40  ;;  %v17388_v33 = vrot.slane %v15352_v11, %v22668_v4  ;;  %v17391_v36 = vrot.slane %v15354_v58, %v22668_v4 }
 0x108   :  { %13292 = vmatprep.subr.bf16.mxu1 %v22682_v3  ;;  %v22689_v3 = vld [vmem:[#allocation47_spill] sm:$0xff]  ;;  %22691 = vst [vmem:[#allocation31_spill] sm:$0xff] %v17383_v50  ;;  %v17397_v39 = vrot.slane %v15358_v45, %v22668_v4  ;;  %v17400_v15 = vrot.slane %v15360_v14, %v22668_v4  ;;  %v17403_v7 = vrot.slane %v15362_v12, %v22668_v4  ;;  %v22692_v11 = vld [vmem:[#allocation45_spill] sm:$0xff]  ;;  %v22693_v58 = vld [vmem:[#allocation46_spill] sm:$0xff] }
 0x109   :  { %v22690_v49 = vcombine.high %v22688_v20, %v22689_v3  ;;  %v17394_v20 = vrot.slane %v15356_v13, %v22668_v4  ;;  %v17406_v46 = vrot.slane %v15364_v43, %v22668_v4  ;;  %v17409_v40 = vrot.slane %v15366_v61, %v22668_v4  ;;  %v22696_v12 = vld [vmem:[#allocation14_spill] sm:$0xff]  ;;  %v15380_v14 = vld [vmem:[#allocation2 + $0xdc4] ss:$79 sps:$4 sm:$0xff]  }
 0x10a   :  { %14091 = vmatpush1.bf16.xpose.msra.mxu0 %v22686_v10  ;;  %v6606_v10 = vcombine.high %v6579_v23, %v6593_v25  ;;  %v22694_v3 = vcombine.high %v22692_v11, %v22693_v58  ;;  %v17415_v13 = vrot.slane %v5922_v29, %v22668_v4  ;;  %v6601_v45 = vcombine.low %v6551_v17, %v6565_v38  ;;  %v15368_v29 = vld [vmem:[#allocation2 + $0xc60] ss:$79 sps:$4 sm:$0xff]  }
 0x10b   :  { %14092 = vmatprep.subr.bf16.mxu0 %v22690_v49  ;;  %v22697_v49 = vcombine.high %v16833_v51, %v22696_v12  ;;  %v17423_v43 = vrot.slane %v5926_v0, %v22668_v4  ;;  %v17426_v61 = vrot.slane %v6602_v63, %v22668_v4  ;;  %v6605_v58 = vcombine.low %v6579_v23, %v6593_v25  ;;  %v15372_v63 = vld [vmem:[#allocation2 + $0xd9c] ss:$79 sps:$4 sm:$0xff]   ;;  %v15378_v25 = vld [vmem:[#allocation2 + $0xd26] ss:$79 sps:$4 sm:$0xff]  }
 0x10c   :  { %22695 = vst [vmem:[#allocation33_spill] sm:$0xff] %v17415_v13  ;;  %v17429_v11 = vrot.slane %v6606_v10, %v22668_v4  ;;  %v17432_v17 = vrot.slane %v5921_v18, %v22668_v4  ;;  %v17435_v38 = vrot.slane %v5925_v5, %v22668_v4  ;;  %v7281_v51 = vcombine.high %v17388_v33, %v17391_v36  ;;  %v15374_v12 = vld [vmem:[#allocation2 + $0xe3a] ss:$79 sps:$4 sm:$0xff]  }
 0x10d   :  { %22698 = vst [vmem:[#allocation44_spill] sm:$0xff] %v17423_v43  ;;  %22699 = vst [vmem:[#allocation29_spill] sm:$0xff] %v17426_v61  ;;  %v7285_v0 = vcombine.high %v17394_v20, %v17397_v39  ;;  %v22703_v10 = vld [vmem:[#allocation13_spill] sm:$0xff]  ;;  %v7961_v18 = vcombine.high %v17400_v15, %v17403_v7  ;;  %v7965_v5 = vcombine.high %v17406_v46, %v17409_v40 }
 0x10e   :  { %22700 = vst [vmem:[#allocation30_spill] sm:$0xff] %v17429_v11  ;;  %22701 = vst [vmem:[#allocation32_spill] sm:$0xff] %v17432_v17  ;;  %v15376_v23 = vld [vmem:[#allocation2 + $0xc88] ss:$79 sps:$4 sm:$0xff]   ;;  %v17461_v57 = vrot.slane %v6605_v58, %v22668_v4  ;;  %v7280_v37 = vcombine.low %v17388_v33, %v17391_v36  ;;  %v17466_v53 = vrot.slane %v7281_v51, %v22668_v4 }
 0x10f   :  { %13293 = vmatpush1.bf16.xpose.msra.mxu1 %v22694_v3  ;;  %22702 = vst [vmem:[#allocation34_spill] sm:$0xff] %v17435_v38  ;;  %v15370_v3 = vld [vmem:[#allocation2 + $0xcfe] ss:$79 sps:$4 sm:$0xff]   ;;  %v7284_v50 = vcombine.low %v17394_v20, %v17397_v39  ;;  %v17478_v58 = vrot.slane %v7961_v18, %v22668_v4  ;;  %v17481_v33 = vrot.slane %v7965_v5, %v22668_v4  ;;  %v15388_v51 = vld [vmem:[#allocation2 + $0x1014] ss:$79 sps:$4 sm:$0xff]  }
 0x110   :  { %13294 = vmatprep.subr.bf16.mxu1 %v22697_v49  ;;  %v22704_v49 = vcombine.high %v22659_v26, %v22703_v10  ;;  %v22705_v26 = vcombine.high %v22660_v1, %v16851_v6  ;;  %22707 = vst [vmem:[#allocation36_spill] sm:$0xff] %v17461_v57  ;;  %22708 = vst [vmem:[#allocation48_spill] sm:$0xff] %v17466_v53  ;;  %v7960_v6 = vcombine.low %v17400_v15, %v17403_v7  ;;  %v15394_v5 = vld [vmem:[#allocation2 + $0xf9e] ss:$79 sps:$4 sm:$0xff]  }
 0x111   :  { %v7964_v1 = vcombine.low %v17406_v46, %v17409_v40  ;;  %22709 = vst [vmem:[#allocation50_spill] sm:$0xff] %v17478_v58  ;;  %22710 = vst [vmem:[#allocation51_spill] sm:$0xff] %v17481_v33  ;;  %v8589_v36 = vrot.slane %v15368_v29, %v22668_v4  ;;  %v22711_v20 = vcombine.high %v22662_v52, %v22661_v22  ;;  %v15384_v46 = vld [vmem:[#allocation2 + $0xed8] ss:$79 sps:$4 sm:$0xff]  }
 0x112   :  { %14093 = vmatpush1.bf16.xpose.msra.mxu0 %v22704_v49  ;;  %v17458_v49 = vrot.slane %v6601_v45, %v22668_v4  ;;  %v17475_v45 = vrot.slane %v7285_v0, %v22668_v4  ;;  %v8603_v39 = vrot.slane %v15370_v3, %v22668_v4  ;;  %v8617_v15 = vrot.slane %v15372_v63, %v22668_v4  ;;  %v15386_v40 = vld [vmem:[#allocation2 + $0xf76] ss:$79 sps:$4 sm:$0xff]   ;;  %v15390_v0 = vld [vmem:[#allocation2 + $0x10b2] ss:$79 sps:$4 sm:$0xff]  }
 0x113   :  { %14094 = vmatprep.subr.bf16.mxu0 %v22705_v26  ;;  %v8631_v7 = vrot.slane %v15374_v12, %v22668_v4  ;;  %v22712_v29 = vcombine.high %v22664_v8, %v22663_v59  ;;  %v9269_v22 = vrot.slane %v15376_v23, %v22668_v4  ;;  %v9283_v52 = vrot.slane %v15378_v25, %v22668_v4  ;;  %v15392_v12 = vld [vmem:[#allocation2 + $0xf00] ss:$79 sps:$4 sm:$0xff]   ;;  %v15396_v26 = vld [vmem:[#allocation2 + $0x103c] ss:$79 sps:$4 sm:$0xff]   ;;  %v22736_v33 = vld [vmem:[#allocation61_spill] sm:$0xff] }
 0x114   :  { %22706 = vst [vmem:[#allocation35_spill] sm:$0xff] %v17458_v49  ;;  %v9297_v3 = vrot.slane %v15380_v14, %v22668_v4  ;;  %v9311_v63 = vrot.slane %v15382_v41, %v22668_v4  ;;  %v17500_v10 = vrot.slane %v7280_v37, %v22668_v4  ;;  %v17503_v18 = vrot.slane %v7284_v50, %v22668_v4  ;;  %v22717_v23 = vld [vmem:[#allocation19_spill] sm:$0xff] }
 0x115   :  { %v22715_v8 = vcombine.high %v22666_v24, %v22665_v47  ;;  %v17509_v59 = vrot.slane %v7960_v6, %v22668_v4  ;;  %v22718_v37 = vcombine.high %v22667_v35, %v22717_v23  ;;  %v17519_v50 = vrot.slane %v7964_v1, %v22668_v4  ;;  %v22733_v47 = vld [vmem:[#allocation55_spill] sm:$0xff] }
 0x116   :  { %22713 = vst [vmem:[#allocation49_spill] sm:$0xff] %v17500_v10  ;;  %22714 = vst [vmem:[#allocation17_spill] sm:$0xff] %v17503_v18  ;;  %v8640_v25 = vcombine.high %v8589_v36, %v8603_v39  ;;  %v8644_v24 = vcombine.high %v8617_v15, %v8631_v7  ;;  %v9320_v6 = vcombine.high %v9269_v22, %v9283_v52  ;;  %v15414_v10 = vld [vmem:[#allocation2 + $0x1352] ss:$79 sps:$4 sm:$0xff]  }
 0x117   :  { %13295 = vmatpush1.bf16.xpose.msra.mxu1 %v22711_v20  ;;  %v15398_v20 = vld [vmem:[#allocation2 + $0x10da] ss:$79 sps:$4 sm:$0xff]   ;;  %22716 = vst [vmem:[#allocation52_spill] sm:$0xff] %v17509_v59  ;;  %22719 = vst [vmem:[#allocation16_spill] sm:$0xff] %v17519_v50  ;;  %v8643_v49 = vcombine.low %v8617_v15, %v8631_v7  ;;  %v9948_v41 = vrot.slane %v15384_v46, %v22668_v4  ;;  %v9962_v14 = vrot.slane %v15386_v40, %v22668_v4  ;;  %v15410_v50 = vld [vmem:[#allocation2 + $0x1216] ss:$79 sps:$4 sm:$0xff]  }
 0x118   :  { %13296 = vmatprep.subr.bf16.mxu1 %v22712_v29  ;;  %v8639_v29 = vcombine.low %v8589_v36, %v8603_v39  ;;  %v9976_v58 = vrot.slane %v15388_v51, %v22668_v4  ;;  %v9990_v35 = vrot.slane %v15390_v0, %v22668_v4  ;;  %v17528_v1 = vrot.slane %v15392_v12, %v22668_v4  ;;  %v22720_v15 = vld [vmem:[#allocation53_spill] sm:$0xff]  ;;  %v22721_v7 = vld [vmem:[#allocation54_spill] sm:$0xff]  ;;  %v22724_v12 = vld [vmem:[#allocation56_spill] sm:$0xff] }
 0x119   :  { %v17531_v36 = vrot.slane %v15394_v5, %v22668_v4  ;;  %v17534_v39 = vrot.slane %v15396_v26, %v22668_v4  ;;  %v17537_v23 = vrot.slane %v15398_v20, %v22668_v4  ;;  %v22722_v46 = vcombine.high %v22720_v15, %v22721_v7  ;;  %v22725_v5 = vld [vmem:[#allocation57_spill] sm:$0xff]  ;;  %v22732_v0 = vld [vmem:[#allocation20_spill] sm:$0xff]  ;;  %v22735_v18 = vld [vmem:[#allocation58_spill] sm:$0xff] }
 0x11a   :  { %14095 = vmatpush1.bf16.xpose.msra.mxu0 %v22715_v8  ;;  %v9324_v8 = vcombine.high %v9297_v3, %v9311_v63  ;;  %v17543_v40 = vrot.slane %v8640_v25, %v22668_v4  ;;  %v9319_v51 = vcombine.low %v9269_v22, %v9283_v52  ;;  %v17551_v26 = vrot.slane %v8644_v24, %v22668_v4  ;;  %v15400_v22 = vld [vmem:[#allocation2 + $0x1150] ss:$79 sps:$4 sm:$0xff]   ;;  %v15406_v24 = vld [vmem:[#allocation2 + $0x132a] ss:$79 sps:$4 sm:$0xff]  }
 0x11b   :  { %14096 = vmatprep.subr.bf16.mxu0 %v22718_v37  ;;  %v22726_v37 = vcombine.high %v22724_v12, %v22725_v5  ;;  %v17554_v20 = vrot.slane %v9320_v6, %v22668_v4  ;;  %v17560_v25 = vrot.slane %v8639_v29, %v22668_v4  ;;  %v17563_v52 = vrot.slane %v8643_v49, %v22668_v4  ;;  %v15402_v5 = vld [vmem:[#allocation2 + $0x11ee] ss:$79 sps:$4 sm:$0xff]   ;;  %v15408_v59 = vld [vmem:[#allocation2 + $0x1178] ss:$79 sps:$4 sm:$0xff]   ;;  %v15412_v49 = vld [vmem:[#allocation2 + $0x12b4] ss:$79 sps:$4 sm:$0xff]  }
 0x11c   :  { %22723 = vst [vmem:[#allocation15_spill] sm:$0xff] %v17543_v40  ;;  %22727 = vst [vmem:[#allocation18_spill] sm:$0xff] %v17551_v26  ;;  %v17557_v15 = vrot.slane %v9324_v8, %v22668_v4  ;;  %v9323_v7 = vcombine.low %v9297_v3, %v9311_v63  ;;  %v10003_v12 = vcombine.high %v9976_v58, %v9990_v35 }
 0x11d   :  { %22728 = vst [vmem:[#allocation11_spill] sm:$0xff] %v17554_v20  ;;  %22730 = vst [vmem:[#allocation38_spill] sm:$0xff] %v17560_v25  ;;  %v22734_v6 = vcombine.high %v22732_v0, %v22733_v47  ;;  %v10679_v8 = vcombine.high %v17528_v1, %v17531_v36  ;;  %v10683_v29 = vcombine.high %v17534_v39, %v17537_v23  ;;  %v22745_v0 = vld [vmem:[#allocation60_spill] sm:$0xff] }
 0x11e   :  { %22729 = vst [vmem:[#allocation37_spill] sm:$0xff] %v17557_v15  ;;  %22731 = vst [vmem:[#allocation39_spill] sm:$0xff] %v17563_v52  ;;  %v22737_v47 = vcombine.high %v22735_v18, %v22736_v33  ;;  %v17585_v57 = vrot.slane %v9323_v7, %v22668_v4  ;;  %v9998_v3 = vcombine.low %v9948_v41, %v9962_v14 }
 0x11f   :  { %13297 = vmatpush1.bf16.xpose.msra.mxu1 %v22722_v46  ;;  %v9999_v46 = vcombine.high %v9948_v41, %v9962_v14  ;;  %v10002_v40 = vcombine.low %v9976_v58, %v9990_v35  ;;  %v17591_v63 = vrot.slane %v10003_v12, %v22668_v4  ;;  %v17594_v33 = vrot.slane %v10679_v8, %v22668_v4  ;;  %v22747_v35 = vld [vmem:[#allocation22_spill] sm:$0xff]  ;;  %v22748_v12 = vld [vmem:[#allocation23_spill] sm:$0xff] }
 0x120   :  { %13298 = vmatprep.subr.bf16.mxu1 %v22726_v37  ;;  %v15404_v37 = vld [vmem:[#allocation2 + $0x128c] ss:$79 sps:$4 sm:$0xff]   ;;  %22739 = vst [vmem:[#allocation12_spill] sm:$0xff] %v17585_v57  ;;  %v17597_v18 = vrot.slane %v10683_v29, %v22668_v4  ;;  %v11349_v58 = vrot.slane %v15406_v24, %v22668_v4  ;;  %v22749_v8 = vcombine.high %v22747_v35, %v22748_v12 }
 0x121   :  { %v17588_v53 = vrot.slane %v9999_v46, %v22668_v4  ;;  %22741 = vst [vmem:[#allocation45_spill] sm:$0xff] %v17591_v63  ;;  %22742 = vst [vmem:[#allocation46_spill] sm:$0xff] %v17594_v33  ;;  %v11321_v46 = vrot.slane %v15402_v5, %v22668_v4  ;;  %v11335_v41 = vrot.slane %v15404_v37, %v22668_v4  ;;  %v22752_v35 = vld [vmem:[#allocation62_spill] sm:$0xff] }
 0x122   :  { %14097 = vmatpush1.bf16.xpose.msra.mxu0 %v22734_v6  ;;  %v17582_v6 = vrot.slane %v9319_v51, %v22668_v4  ;;  %22743 = vst [vmem:[#allocation14_spill] sm:$0xff] %v17597_v18  ;;  %v11307_v51 = vrot.slane %v15400_v22, %v22668_v4  ;;  %v11987_v29 = vrot.slane %v15408_v59, %v22668_v4  ;;  %v22753_v59 = vld [vmem:[#allocation21_spill] sm:$0xff] }
 0x123   :  { %14098 = vmatprep.subr.bf16.mxu0 %v22737_v47  ;;  %22740 = vst [vmem:[#allocation47_spill] sm:$0xff] %v17588_v53  ;;  %v22744_v47 = vld [vmem:[#allocation59_spill] sm:$0xff]  ;;  %v12001_v22 = vrot.slane %v15410_v50, %v22668_v4  ;;  %v17616_v5 = vrot.slane %v9998_v3, %v22668_v4  ;;  %v17619_v37 = vrot.slane %v10002_v40, %v22668_v4  ;;  %v22756_v3 = vld [vmem:[#allocation64_spill] sm:$0xff]  ;;  %v22761_v50 = vld [vmem:[#allocation65_spill] sm:$0xff] }
 0x124   :  { %22738 = vst [vmem:[#allocation43_spill] sm:$0xff] %v17582_v6  ;;  %v22746_v7 = vcombine.high %v22744_v47, %v22745_v0  ;;  %v12015_v0 = vrot.slane %v15412_v49, %v22668_v4  ;;  %v12029_v47 = vrot.slane %v15414_v10, %v22668_v4  ;;  %v10678_v24 = vcombine.low %v17528_v1, %v17531_v36  ;;  %v22755_v49 = vld [vmem:[#allocation24_spill] sm:$0xff]  ;;  %v22760_v10 = vld [vmem:[#allocation63_spill] sm:$0xff] }
 0x125   :  { %22750 = vst [vmem:[#allocation13_spill] sm:$0xff] %v17616_v5  ;;  %22751 = vst [vmem:[#allocation19_spill] sm:$0xff] %v17619_v37  ;;  %v22754_v12 = vcombine.high %v22752_v35, %v22753_v59  ;;  %v22757_v40 = vcombine.high %v22755_v49, %v22756_v3  ;;  %v11358_v36 = vcombine.high %v11307_v51, %v11321_v46  ;;  %v22763_v3 = vld [vmem:[#allocation25_spill] sm:$0xff] }
 0x126   :  { %v17638_v35 = vrot.slane %v10678_v24, %v22668_v4  ;;  %v11361_v14 = vcombine.low %v11335_v41, %v11349_v58  ;;  %v22762_v33 = vcombine.high %v22760_v10, %v22761_v50  ;;  %v22772_v50 = vld [vmem:[#allocation66_spill] sm:$0xff]  ;;  %v22773_v10 = vld [vmem:[#allocation67_spill] sm:$0xff]  ;;  %v6669_v49 = vcombine.low %v17426_v61, %v17429_v11 }
 0x127   :  { %13299 = vmatpush1.bf16.xpose.msra.mxu1 %v22746_v7  ;;  %v10682_v7 = vcombine.low %v17534_v39, %v17537_v23  ;;  %v12038_v39 = vcombine.high %v11987_v29, %v12001_v22  ;;  %v12042_v23 = vcombine.high %v12015_v0, %v12029_v47  ;;  %v17652_v5 = vrot.slane %v11358_v36, %v22668_v4  ;;  %v22794_v36 = vld [vmem:[#allocation35_spill] sm:$0xff] }
 0x128   :  { %13300 = vmatprep.subr.bf16.mxu1 %v22749_v8  ;;  %v11362_v8 = vcombine.high %v11335_v41, %v11349_v58  ;;  %22758 = vst [vmem:[#allocation53_spill] sm:$0xff] %v17638_v35  ;;  %v17667_v41 = vrot.slane %v11361_v14, %v22668_v4  ;;  %v12037_v58 = vcombine.low %v11987_v29, %v12001_v22  ;;  %v17703_v14 = vld [vmem:[#allocation5 + $0xc0] sm:$0x77] }
 0x129   :  { %v17641_v59 = vrot.slane %v10682_v7, %v22668_v4  ;;  %22766 = vst [vmem:[#allocation56_spill] sm:$0xff] %v17652_v5  ;;  %v12041_v7 = vcombine.low %v12015_v0, %v12029_v47  ;;  %v1912_v29 = vcombine.low %v17189_v9, %v17192_v16  ;;  %v22780_v47 = vld [vmem:[#allocation68_spill] sm:$0xff] }
 0x12a   :  { %14099 = vmatpush1.bf16.xpose.msra.mxu0 %v22754_v12  ;;  %v11357_v12 = vcombine.low %v11307_v51, %v11321_v46  ;;  %v17655_v24 = vrot.slane %v11362_v8, %v22668_v4  ;;  %v17658_v51 = vrot.slane %v12038_v39, %v22668_v4  ;;  %v17661_v46 = vrot.slane %v12042_v23, %v22668_v4  ;;  %v22775_v39 = vld [vmem:[#allocation69_spill] sm:$0xff]  ;;  %v22776_v23 = vld [vmem:[#allocation72_spill] sm:$0xff] }
 0x12b   :  { %14100 = vmatprep.subr.bf16.mxu0 %v22757_v40  ;;  %22759 = vst [vmem:[#allocation54_spill] sm:$0xff] %v17641_v59  ;;  %v22764_v40 = vld [vmem:[#allocation26_spill] sm:$0xff]  ;;  %22771 = vst [vmem:[#allocation61_spill] sm:$0xff] %v17667_v41  ;;  %v17684_v22 = vrot.slane %v12037_v58, %v22668_v4  ;;  %v17687_v0 = vrot.slane %v12041_v7, %v22668_v4 }
 0x12c   :  { %v22765_v1 = vcombine.high %v22763_v3, %v22764_v40  ;;  %22767 = vst [vmem:[#allocation57_spill] sm:$0xff] %v17655_v24  ;;  %22768 = vst [vmem:[#allocation20_spill] sm:$0xff] %v17658_v51  ;;  %v22777_v3 = vcombine.high %v22775_v39, %v22776_v23  ;;  %v22783_v39 = vld [vmem:[#allocation71_spill] sm:$0xff]  ;;  %v22784_v23 = vld [vmem:[#allocation73_spill] sm:$0xff] }
 0x12d   :  { %22769 = vst [vmem:[#allocation55_spill] sm:$0xff] %v17661_v46  ;;  %22778 = vst [vmem:[#allocation59_spill] sm:$0xff] %v17684_v22  ;;  %v22785_v58 = vcombine.high %v22783_v39, %v22784_v23  ;;  %v2588_v39 = vcombine.low %v17228_v54, %v17238_v34  ;;  %v14856_v23 = vcombine.high %v17703_v14, %v17703_v14 }
 0x12e   :  { %22779 = vst [vmem:[#allocation60_spill] sm:$0xff] %v17687_v0 }
 0x12f   :  { %13301 = vmatpush1.bf16.xpose.msra.mxu1 %v22762_v33  ;;  %v17664_v33 = vrot.slane %v11357_v12, %v22668_v4  ;;  %v22781_v12 = vld [vmem:[#allocation70_spill] sm:$0xff] }
 0x130   :  { %13302 = vmatprep.subr.bf16.mxu1 %v22765_v1  ;;  %v22774_v1 = vcombine.high %v22772_v50, %v22773_v10  ;;  %v22782_v40 = vcombine.high %v22780_v47, %v22781_v12  ;;  %v2592_v50 = vcombine.low %v17197_v27, %v17200_v28  ;;  %v1908_v47 = vcombine.low %v17222_v32, %v17225_v31 }
 0x131   :  { %22770 = vst [vmem:[#allocation58_spill] sm:$0xff] %v17664_v33 }
 0x132   :  { %14101 = vmatpush1.bf16.xpose.msra.mxu0 %v22774_v1  ;;  %v17696_v1 = vld [vmem:[#allocation5 + $0x20] sm:$0x77] }
 0x133   :  { %14102 = vmatprep.subr.bf16.mxu0 %v22777_v3  ;;  %v22786_v3 = vld [vmem:[#allocation27_spill] sm:$0xff]  ;;  %v14816_v12 = vcombine.high %v17696_v1, %v17696_v1 }
 0x134   :  { %v14813_v7 = vcombine.low %v22786_v3, %v22786_v3  ;;  %v4630_v3 = vcombine.low %v17330_v30, %v17339_v2 }
 0x137   :  { %13303 = vmatpush1.bf16.xpose.msra.mxu1 %v22782_v40  ;;  %v16123_v40 = vld [vmem:[#allocation5 + $0xb8] sm:$0x77] }
 0x138   :  { %13328 = vmatprep.subr.bf16.mxu1 %v1912_v29  ;;  %v3271_v29 = vcombine.low %v17262_v19, %v17276_v56  ;;  %v14853_v10 = vcombine.low %v16123_v40, %v16123_v40 }
 0x13a   :  { %14103 = vmatpush1.bf16.xpose.msra.mxu0 %v22785_v58  ;;  %v3267_v58 = vcombine.low %v17279_v48, %v17299_v44 }
 0x13b   :  { %14128 = vmatprep.subr.bf16.mxu0 %v2592_v50  ;;  %v3951_v50 = vcombine.low %v17287_v42, %v17290_v55 }
 0x13e   :  { %13321 = vmatmul.mubr.bf16.vlgmr.msra.gmra.mrb[0].mxu1 %v14813_v7  ;;  %v22787_v7 = vld [vmem:[#allocation28_spill] sm:$0xff] }
 0x13f   :  { %13329 = vmatpush1.bf16.xpose.msra.mxu1 %v1908_v47  ;;  %13360 = vmatprep.mubr.bf16.mxu1 %v14816_v12  ;;  %v3947_v40 = vcombine.low %v22787_v7, %v17325_v21  ;;  %v5310_v47 = vcombine.low %v17342_v60, %v17345_v62  ;;  %v22789_v12 = vld [vmem:[#allocation41_spill] sm:$0xff] }
 0x140   :  { %13330 = vmatprep.subr.bf16.mxu1 %v3271_v29 }
 0x141   :  { %14121 = vmatmul.mubr.bf16.vlgmr.msra.gmra.mrb[0].mxu0 %v14853_v10  ;;  %v22788_v10 = vld [vmem:[#allocation40_spill] sm:$0xff] }
 0x142   :  { %14129 = vmatpush1.bf16.xpose.msra.mxu0 %v2588_v39  ;;  %14160 = vmatprep.mubr.bf16.mxu0 %v14856_v23  ;;  %v4626_v29 = vcombine.low %v22789_v12, %v22788_v10  ;;  %v5989_v39 = vcombine.low %v17415_v13, %v17423_v43  ;;  %v22790_v23 = vld [vmem:[#allocation31_spill] sm:$0xff]  ;;  %v22796_v13 = vld [vmem:[#allocation50_spill] sm:$0xff] }
 0x143   :  { %14130 = vmatprep.subr.bf16.mxu0 %v3951_v50  ;;  %v22791_v50 = vld [vmem:[#allocation42_spill] sm:$0xff]  ;;  %v22795_v43 = vld [vmem:[#allocation51_spill] sm:$0xff] }
 0x144   :  { %v5306_v8 = vcombine.low %v22791_v50, %v22790_v23  ;;  %v8028_v23 = vcombine.low %v22796_v13, %v22795_v43 }
 0x147   :  { %13331 = vmatpush1.bf16.xpose.msra.mxu1 %v3267_v58  ;;  %v5985_v58 = vcombine.low %v17432_v17, %v17435_v38  ;;  %v22800_v38 = vld [vmem:[#allocation16_spill] sm:$0xff] }
 0x148   :  { %13332 = vmatprep.subr.bf16.mxu1 %v4630_v3  ;;  %v22792_v3 = vld [vmem:[#allocation48_spill] sm:$0xff] }
 0x149   :  { %v22801_v17 = vld [vmem:[#allocation52_spill] sm:$0xff] }
 0x14a   :  { %14131 = vmatpush1.bf16.xpose.msra.mxu0 %v3947_v40  ;;  %v7348_v40 = vcombine.low %v22792_v3, %v17475_v45  ;;  %v8024_v61 = vcombine.low %v22801_v17, %v22800_v38  ;;  %v15423_v17 = vld [vmem:[#allocation2 + $0xaa] ss:$79 sps:$4 sm:$0xff]  }
 0x14b   :  { %14132 = vmatprep.subr.bf16.mxu0 %v5310_v47  ;;  %v22793_v47 = vld [vmem:[#allocation36_spill] sm:$0xff] }
 0x14c   :  { %v6665_v10 = vcombine.low %v22794_v36, %v22793_v47  ;;  %v9387_v47 = vcombine.low %v17554_v20, %v17557_v15  ;;  %v15424_v15 = vld [vmem:[#allocation2 + $0x148] ss:$79 sps:$4 sm:$0xff]  }
 0x14f   :  { %13333 = vmatpush1.bf16.xpose.msra.mxu1 %v4626_v29  ;;  %v22797_v29 = vld [vmem:[#allocation17_spill] sm:$0xff] }
 0x150   :  { %13334 = vmatprep.subr.bf16.mxu1 %v5989_v39  ;;  %v22798_v39 = vld [vmem:[#allocation49_spill] sm:$0xff] }
 0x152   :  { %14133 = vmatpush1.bf16.xpose.msra.mxu0 %v5306_v8  ;;  %v7344_v8 = vcombine.low %v22798_v39, %v22797_v29 }
 0x153   :  { %14134 = vmatprep.subr.bf16.mxu0 %v6669_v49  ;;  %v22799_v49 = vld [vmem:[#allocation15_spill] sm:$0xff] }
 0x154   :  { %v8707_v11 = vcombine.low %v22799_v49, %v17551_v26  ;;  %v17787_v26 = vld [vmem:[#allocation5 + $0x28] sm:$0x77] }
 0x155   :  { %22804 = vst [vmem:[#allocation22_spill] sm:$0xff] %v17787_v26 }
 0x157   :  { %13335 = vmatpush1.bf16.xpose.msra.mxu1 %v5985_v58  ;;  %v9383_v58 = vcombine.low %v17582_v6, %v17585_v57 }
 0x158   :  { %13336 = vmatprep.subr.bf16.mxu1 %v7348_v40  ;;  %v22802_v40 = vld [vmem:[#allocation46_spill] sm:$0xff] }
 0x159   :  { %v10746_v38 = vcombine.low %v22802_v40, %v17597_v18  ;;  %v1829_v18 = vrot.slane %v15424_v15, %v22668_v4 }
 0x15a   :  { %14135 = vmatpush1.bf16.xpose.msra.mxu0 %v6665_v10  ;;  %v8703_v10 = vcombine.low %v17560_v25, %v17563_v52  ;;  %v15429_v25 = vld [vmem:[#allocation2 + $0xd2] ss:$79 sps:$4 sm:$0xff]  }
 0x15b   :  { %14136 = vmatprep.subr.bf16.mxu0 %v8028_v23  ;;  %v10066_v23 = vcombine.low %v17588_v53, %v17591_v63  ;;  %v15430_v63 = vld [vmem:[#allocation2 + $0x170] ss:$79 sps:$4 sm:$0xff]  }
 0x15c   :  { %v15431_v53 = vld [vmem:[#allocation2 + $0x20e] ss:$79 sps:$4 sm:$0xff]  }
 0x15f   :  { %13337 = vmatpush1.bf16.xpose.msra.mxu1 %v7344_v8  ;;  %v15422_v8 = vld [vmem:[#allocation2 + $0xc] ss:$79 sps:$4 sm:$0xff]  }
 0x160   :  { %13338 = vmatprep.subr.bf16.mxu1 %v8707_v11  ;;  %v15425_v11 = vld [vmem:[#allocation2 + $0x1e6] ss:$79 sps:$4 sm:$0xff]   ;;  %v1801_v57 = vrot.slane %v15422_v8, %v22668_v4  ;;  %v2523_v8 = vrot.slane %v15431_v53, %v22668_v4  ;;  %v14815_v53 = vcombine.low %v17696_v1, %v17696_v1 }
 0x161   :  { %v1843_v40 = vrot.slane %v15425_v11, %v22668_v4  ;;  %v15432_v11 = vld [vmem:[#allocation2 + $0x284] ss:$79 sps:$4 sm:$0xff]  }
 0x162   :  { %14137 = vmatpush1.bf16.xpose.msra.mxu0 %v8024_v61  ;;  %v15428_v61 = vld [vmem:[#allocation2 + $0x34] ss:$79 sps:$4 sm:$0xff]   ;;  %v3160_v49 = vrot.slane %v15432_v11, %v22668_v4 }
 0x163   :  { %14138 = vmatprep.subr.bf16.mxu0 %v9387_v47  ;;  %v22803_v47 = vld [vmem:[#allocation13_spill] sm:$0xff]  ;;  %v1851_v15 = vcombine.high %v1829_v18, %v1843_v40  ;;  %v1850_v20 = vcombine.low %v1829_v18, %v1843_v40  ;;  %v22806_v40 = vcombine.high %v17189_v9, %v17192_v16 }
 0x164   :  { %v10062_v52 = vcombine.low %v22803_v47, %v17619_v37  ;;  %v2481_v37 = vrot.slane %v15428_v61, %v22668_v4  ;;  %v2495_v47 = vrot.slane %v15429_v25, %v22668_v4  ;;  %v15435_v61 = vld [vmem:[#allocation2 + $0x45e] ss:$79 sps:$4 sm:$0xff]   ;;  %v12101_v25 = vcombine.low %v17684_v22, %v17687_v0  ;;  %v15445_v11 = vld [vmem:[#allocation2 + $0x5c2] ss:$79 sps:$4 sm:$0xff]  }
 0x165   :  { %v17789_v0 = vld [vmem:[#allocation5 + $0xc8] sm:$0x77]  ;;  %v3202_v18 = vrot.slane %v15435_v61, %v22668_v4 }
 0x166   :  { %22805 = vst [vmem:[#allocation23_spill] sm:$0xff] %v17789_v0  ;;  %v2526_v22 = vcombine.low %v2481_v37, %v2495_v47  ;;  %v14858_v16 = vcombine.high %v17789_v0, %v17789_v0 }
 0x167   :  { %13339 = vmatpush1.bf16.xpose.msra.mxu1 %v8703_v10  ;;  %v11425_v10 = vcombine.low %v17652_v5, %v17655_v24  ;;  %v2509_v24 = vrot.slane %v15430_v63, %v22668_v4  ;;  %v15433_v5 = vld [vmem:[#allocation2 + $0x322] ss:$79 sps:$4 sm:$0xff]  }
 0x168   :  { %13340 = vmatprep.subr.bf16.mxu1 %v10066_v23  ;;  %v1815_v23 = vrot.slane %v15423_v17, %v22668_v4  ;;  %v3174_v63 = vrot.slane %v15433_v5, %v22668_v4 }
 0x169   :  { %v2530_v1 = vcombine.low %v2509_v24, %v2523_v8 }
 0x16a   :  { %14139 = vmatpush1.bf16.xpose.msra.mxu0 %v9383_v58  ;;  %v12105_v58 = vcombine.low %v17658_v51, %v17661_v46  ;;  %v1847_v17 = vcombine.high %v1801_v57, %v1815_v23  ;;  %v2527_v46 = vcombine.high %v2481_v37, %v2495_v47  ;;  %v15434_v51 = vld [vmem:[#allocation2 + $0x3c0] ss:$79 sps:$4 sm:$0xff]   ;;  %v15442_v47 = vld [vmem:[#allocation2 + $0x638] ss:$79 sps:$4 sm:$0xff]   ;;  %v3206_v61 = vcombine.high %v3160_v49, %v3174_v63 }
 0x16b   :  { %14140 = vmatprep.subr.bf16.mxu0 %v10746_v38  ;;  %v10742_v38 = vcombine.low %v17638_v35, %v17641_v59  ;;  %v11421_v59 = vcombine.low %v17664_v33, %v17667_v41  ;;  %v15436_v35 = vld [vmem:[#allocation2 + $0x2ac] ss:$79 sps:$4 sm:$0xff]   ;;  %v17785_v41 = vrot.slane %v1851_v15, %v22668_v4  ;;  %v1846_v33 = vcombine.low %v1801_v57, %v1815_v23  ;;  %v15444_v15 = vld [vmem:[#allocation2 + $0x524] ss:$79 sps:$4 sm:$0xff]  }
 0x16c   :  { %v17782_v6 = vrot.slane %v1847_v17, %v22668_v4  ;;  %v17794_v29 = vrot.slane %v2527_v46, %v22668_v4  ;;  %v3188_v57 = vrot.slane %v15434_v51, %v22668_v4  ;;  %v17805_v37 = vrot.slane %v15436_v35, %v22668_v4  ;;  %v15440_v46 = vld [vmem:[#allocation2 + $0x4fc] ss:$79 sps:$4 sm:$0xff]  }
 0x16d   :  { %v15441_v51 = vld [vmem:[#allocation2 + $0x59a] ss:$79 sps:$4 sm:$0xff]   ;;  %v14818_v23 = vcombine.high %v17787_v26, %v17787_v26  ;;  %v17821_v9 = vrot.slane %v1846_v33, %v22668_v4  ;;  %v17824_v35 = vrot.slane %v1850_v20, %v22668_v4  ;;  %v22807_v20 = vcombine.high %v17197_v27, %v17200_v28 }
 0x16e   :  { %v3205_v0 = vcombine.low %v3160_v49, %v3174_v63  ;;  %v17847_v33 = vrot.slane %v15441_v51, %v22668_v4  ;;  %v17850_v27 = vrot.slane %v15442_v47, %v22668_v4  ;;  %v17856_v49 = vrot.slane %v15444_v15, %v22668_v4 }
 0x16f   :  { %13341 = vmatpush1.bf16.xpose.msra.mxu1 %v10062_v52  ;;  %v2531_v52 = vcombine.high %v2509_v24, %v2523_v8  ;;  %v15443_v8 = vld [vmem:[#allocation2 + $0x6d6] ss:$79 sps:$4 sm:$0xff]   ;;  %v17859_v63 = vrot.slane %v15445_v11, %v22668_v4  ;;  %v22808_v51 = vcombine.high %v17222_v32, %v17225_v31  ;;  %v22809_v15 = vcombine.high %v17262_v19, %v17276_v56 }
 0x170   :  { %13342 = vmatprep.subr.bf16.mxu1 %v11425_v10  ;;  %v15437_v10 = vld [vmem:[#allocation2 + $0x34a] ss:$79 sps:$4 sm:$0xff]   ;;  %v17853_v28 = vrot.slane %v15443_v8, %v22668_v4 }
 0x171   :  { %v17797_v17 = vrot.slane %v2531_v52, %v22668_v4  ;;  %v17808_v5 = vrot.slane %v15437_v10, %v22668_v4  ;;  %v17827_v52 = vrot.slane %v2526_v22, %v22668_v4  ;;  %v15446_v10 = vld [vmem:[#allocation2 + $0x660] ss:$79 sps:$4 sm:$0xff]   ;;  %v3209_v22 = vcombine.low %v3188_v57, %v3202_v18 }
 0x172   :  { %14141 = vmatpush1.bf16.xpose.msra.mxu0 %v10742_v38  ;;  %v15438_v38 = vld [vmem:[#allocation2 + $0x3e8] ss:$79 sps:$4 sm:$0xff]   ;;  %v4569_v56 = vcombine.high %v17850_v27, %v17853_v28 }
 0x173   :  { %14142 = vmatprep.subr.bf16.mxu0 %v12105_v58  ;;  %v15439_v58 = vld [vmem:[#allocation2 + $0x486] ss:$79 sps:$4 sm:$0xff]   ;;  %v3886_v26 = vcombine.high %v17805_v37, %v17808_v5  ;;  %v3885_v8 = vcombine.low %v17805_v37, %v17808_v5  ;;  %v17900_v37 = vrot.slane %v3209_v22, %v22668_v4 }
 0x174   :  { %v17814_v24 = vrot.slane %v15439_v58, %v22668_v4  ;;  %v17844_v58 = vrot.slane %v15440_v46, %v22668_v4  ;;  %v15448_v5 = vld [vmem:[#allocation2 + $0x774] ss:$79 sps:$4 sm:$0xff]   ;;  %v15469_v46 = vld [vmem:[#allocation2 + $0xd2a] ss:$79 sps:$4 sm:$0xff]  }
 0x175   :  { %v17887_v11 = vrot.slane %v3886_v26, %v22668_v4  ;;  %v5245_v26 = vcombine.high %v17856_v49, %v17859_v63 }
 0x176   :  { %v4565_v19 = vcombine.high %v17844_v58, %v17847_v33  ;;  %v4564_v22 = vcombine.low %v17844_v58, %v17847_v33 }
 0x177   :  { %13343 = vmatpush1.bf16.xpose.msra.mxu1 %v11421_v59  ;;  %v17811_v59 = vrot.slane %v15438_v38, %v22668_v4  ;;  %v15447_v38 = vld [vmem:[#allocation2 + $0x6fe] ss:$79 sps:$4 sm:$0xff]   ;;  %v17943_v58 = vrot.slane %v5245_v26, %v22668_v4 }
 0x178   :  { %13368 = vmatprep.subr.bf16.mxu1 %v22806_v40  ;;  %v17837_v40 = vrot.slane %v2530_v1, %v22668_v4  ;;  %v17862_v1 = vrot.slane %v3206_v61, %v22668_v4 }
 0x179   :  { %v3890_v39 = vcombine.high %v17811_v59, %v17814_v24  ;;  %v3889_v31 = vcombine.low %v17811_v59, %v17814_v24  ;;  %v15449_v59 = vld [vmem:[#allocation2 + $0x812] ss:$79 sps:$4 sm:$0xff]  }
 0x17a   :  { %14143 = vmatpush1.bf16.xpose.msra.mxu0 %v12101_v25  ;;  %v3210_v25 = vcombine.high %v3188_v57, %v3202_v18  ;;  %v17865_v57 = vrot.slane %v15446_v10, %v22668_v4  ;;  %v17868_v18 = vrot.slane %v15447_v38, %v22668_v4  ;;  %v22812_v10 = vcombine.high %v17287_v42, %v17290_v55  ;;  %v15450_v38 = vld [vmem:[#allocation2 + $0x8b0] ss:$79 sps:$4 sm:$0xff]  }
 0x17b   :  { %14168 = vmatprep.subr.bf16.mxu0 %v22807_v20  ;;  %v17890_v32 = vrot.slane %v3890_v39, %v22668_v4  ;;  %v22811_v39 = vcombine.high %v17228_v54, %v17238_v34  ;;  %v15451_v20 = vld [vmem:[#allocation2 + $0x94e] ss:$79 sps:$4 sm:$0xff]   ;;  %v17931_v42 = vrot.slane %v4565_v19, %v22668_v4  ;;  %v4568_v55 = vcombine.low %v17850_v27, %v17853_v28 }
 0x17c   :  { %v17876_v47 = vrot.slane %v3210_v25, %v22668_v4  ;;  %v15452_v54 = vld [vmem:[#allocation2 + $0x79c] ss:$79 sps:$4 sm:$0xff]   ;;  %v17926_v25 = vrot.slane %v3889_v31, %v22668_v4  ;;  %v17940_v31 = vrot.slane %v4569_v56, %v22668_v4  ;;  %v5878_v19 = vrot.slane %v15448_v5, %v22668_v4 }
 0x17d   :  { %v22813_v27 = vcombine.high %v17279_v48, %v17299_v44  ;;  %v5892_v28 = vrot.slane %v15449_v59, %v22668_v4  ;;  %v6558_v56 = vrot.slane %v15452_v54, %v22668_v4  ;;  %v15457_v5 = vld [vmem:[#allocation2 + $0xa8a] ss:$79 sps:$4 sm:$0xff]   ;;  %v17965_v59 = vrot.slane %v4564_v22, %v22668_v4 }
 0x17e   :  { %13361 = vmatmul.mubr.bf16.vlgmr.msra.gmra.mrb[0].mxu1 %v14815_v53  ;;  %v17879_v53 = vrot.slane %v3205_v0, %v22668_v4 }
 0x17f   :  { %13369 = vmatpush1.bf16.xpose.msra.mxu1 %v22808_v51  ;;  %13400 = vmatprep.mubr.bf16.mxu1 %v14818_v23  ;;  %v22810_v23 = vcombine.low %v17703_v14, %v17703_v14  ;;  %v5249_v14 = vcombine.high %v17865_v57, %v17868_v18  ;;  %v15453_v51 = vld [vmem:[#allocation2 + $0x83a] ss:$79 sps:$4 sm:$0xff]  }
 0x180   :  { %13370 = vmatprep.subr.bf16.mxu1 %v22809_v15  ;;  %v15454_v15 = vld [vmem:[#allocation2 + $0x8d8] ss:$79 sps:$4 sm:$0xff]   ;;  %v6572_v26 = vrot.slane %v15453_v51, %v22668_v4  ;;  %v15461_v51 = vld [vmem:[#allocation2 + $0xab2] ss:$79 sps:$4 sm:$0xff]  }
 0x181   :  { %14161 = vmatmul.mubr.bf16.vlgmr.msra.gmra.mrb[0].mxu0 %v22810_v23  ;;  %v15455_v23 = vld [vmem:[#allocation2 + $0x976] ss:$79 sps:$4 sm:$0xff]   ;;  %v17946_v33 = vrot.slane %v5249_v14, %v22668_v4  ;;  %v6586_v48 = vrot.slane %v15454_v15, %v22668_v4  ;;  %v15456_v14 = vld [vmem:[#allocation2 + $0x9ec] ss:$79 sps:$4 sm:$0xff]   ;;  %v15462_v15 = vld [vmem:[#allocation2 + $0xb50] ss:$79 sps:$4 sm:$0xff]  }
 0x182   :  { %14169 = vmatpush1.bf16.xpose.msra.mxu0 %v22811_v39  ;;  %14200 = vmatprep.mubr.bf16.mxu0 %v14858_v16  ;;  %v17923_v16 = vrot.slane %v3885_v8, %v22668_v4  ;;  %v5244_v39 = vcombine.low %v17856_v49, %v17859_v63  ;;  %v5248_v8 = vcombine.low %v17865_v57, %v17868_v18 }
 0x183   :  { %14170 = vmatprep.subr.bf16.mxu0 %v22812_v10  ;;  %v5906_v49 = vrot.slane %v15450_v38, %v22668_v4  ;;  %v5920_v63 = vrot.slane %v15451_v20, %v22668_v4  ;;  %v22814_v18 = vcombine.high %v17330_v30, %v17339_v2  ;;  %v6600_v44 = vrot.slane %v15455_v23, %v22668_v4  ;;  %v15458_v38 = vld [vmem:[#allocation2 + $0xb28] ss:$79 sps:$4 sm:$0xff]   ;;  %v15463_v23 = vld [vmem:[#allocation2 + $0xbee] ss:$79 sps:$4 sm:$0xff]  }
 0x184   :  { %v17968_v10 = vrot.slane %v4568_v55, %v22668_v4  ;;  %v15459_v20 = vld [vmem:[#allocation2 + $0xbc6] ss:$79 sps:$4 sm:$0xff]   ;;  %v22815_v2 = vcombine.high %v22787_v7, %v17325_v21  ;;  %v17974_v54 = vrot.slane %v5244_v39, %v22668_v4  ;;  %v5924_v21 = vcombine.high %v5878_v19, %v5892_v28  ;;  %v15467_v39 = vld [vmem:[#allocation2 + $0xe3e] ss:$79 sps:$4 sm:$0xff]  }
 0x185   :  { %v15460_v30 = vld [vmem:[#allocation2 + $0xa14] ss:$79 sps:$4 sm:$0xff]   ;;  %v5923_v7 = vcombine.low %v5878_v19, %v5892_v28  ;;  %v6604_v57 = vcombine.high %v6558_v56, %v6572_v26  ;;  %v6608_v34 = vcombine.high %v6586_v48, %v6600_v44  ;;  %v5927_v61 = vcombine.low %v5906_v49, %v5920_v63 }
 0x186   :  { %22816 = vst [vmem:[#allocation62_spill] sm:$0xff] %v17974_v54  ;;  %v7237_v22 = vrot.slane %v15456_v14, %v22668_v4  ;;  %v7251_v55 = vrot.slane %v15457_v5, %v22668_v4  ;;  %v7265_v0 = vrot.slane %v15458_v38, %v22668_v4  ;;  %v17995_v19 = vrot.slane %v15462_v15, %v22668_v4  ;;  %v15466_v38 = vld [vmem:[#allocation2 + $0xda0] ss:$79 sps:$4 sm:$0xff]   ;;  %v15470_v54 = vld [vmem:[#allocation2 + $0xdc8] ss:$79 sps:$4 sm:$0xff]  }
 0x187   :  { %13371 = vmatpush1.bf16.xpose.msra.mxu1 %v22813_v27  ;;  %v22817_v27 = vcombine.high %v17342_v60, %v17345_v62  ;;  %v7279_v60 = vrot.slane %v15459_v20, %v22668_v4  ;;  %v7917_v62 = vrot.slane %v15460_v30, %v22668_v4  ;;  %v17998_v28 = vrot.slane %v15463_v23, %v22668_v4  ;;  %v22821_v20 = vld [vmem:[#allocation33_spill] sm:$0xff]  ;;  %v22822_v30 = vld [vmem:[#allocation44_spill] sm:$0xff] }
 0x188   :  { %13372 = vmatprep.subr.bf16.mxu1 %v22814_v18  ;;  %v17984_v18 = vrot.slane %v5248_v8, %v22668_v4  ;;  %v7931_v8 = vrot.slane %v15461_v51, %v22668_v4  ;;  %v18004_v14 = vrot.slane %v5924_v21, %v22668_v4  ;;  %v6603_v5 = vcombine.low %v6558_v56, %v6572_v26 }
 0x189   :  { %v22823_v51 = vcombine.high %v22821_v20, %v22822_v30  ;;  %v18015_v23 = vrot.slane %v6604_v57, %v22668_v4  ;;  %v18021_v21 = vrot.slane %v5923_v7, %v22668_v4  ;;  %v18024_v56 = vrot.slane %v5927_v61, %v22668_v4  ;;  %v15464_v30 = vld [vmem:[#allocation2 + $0xc64] ss:$79 sps:$4 sm:$0xff]   ;;  %v22832_v7 = vld [vmem:[#allocation30_spill] sm:$0xff] }
 0x18a   :  { %14171 = vmatpush1.bf16.xpose.msra.mxu0 %v22815_v2  ;;  %22818 = vst [vmem:[#allocation21_spill] sm:$0xff] %v17984_v18  ;;  %v5928_v2 = vcombine.high %v5906_v49, %v5920_v63  ;;  %v22819_v49 = vld [vmem:[#allocation40_spill] sm:$0xff]  ;;  %v7283_v26 = vcombine.high %v7237_v22, %v7251_v55  ;;  %v7967_v57 = vcombine.high %v17995_v19, %v17998_v28  ;;  %v22831_v61 = vld [vmem:[#allocation29_spill] sm:$0xff] }
 0x18b   :  { %14172 = vmatprep.subr.bf16.mxu0 %v22817_v27  ;;  %v22820_v63 = vcombine.high %v22789_v12, %v22819_v49  ;;  %22825 = vst [vmem:[#allocation64_spill] sm:$0xff] %v18015_v23  ;;  %v18018_v12 = vrot.slane %v6608_v34, %v22668_v4  ;;  %v6607_v27 = vcombine.low %v6586_v48, %v6600_v44  ;;  %22827 = vst [vmem:[#allocation65_spill] sm:$0xff] %v18021_v21  ;;  %v15465_v34 = vld [vmem:[#allocation2 + $0xd02] ss:$79 sps:$4 sm:$0xff]   ;;  %v15471_v44 = vld [vmem:[#allocation2 + $0xe66] ss:$79 sps:$4 sm:$0xff]  }
 0x18c   :  { %v18012_v15 = vrot.slane %v5928_v2, %v22668_v4  ;;  %22828 = vst [vmem:[#allocation25_spill] sm:$0xff] %v18024_v56  ;;  %v7287_v49 = vcombine.high %v7265_v0, %v7279_v60  ;;  %v7963_v2 = vcombine.high %v7917_v62, %v7931_v8  ;;  %v7282_v48 = vcombine.low %v7237_v22, %v7251_v55  ;;  %v22840_v55 = vld [vmem:[#allocation32_spill] sm:$0xff]  ;;  %v22841_v21 = vld [vmem:[#allocation34_spill] sm:$0xff] }
 0x18d   :  { %22826 = vst [vmem:[#allocation63_spill] sm:$0xff] %v18018_v12  ;;  %v18044_v24 = vrot.slane %v6607_v27, %v22668_v4  ;;  %v18047_v23 = vrot.slane %v7283_v26, %v22668_v4  ;;  %v18058_v27 = vrot.slane %v7967_v57, %v22668_v4  ;;  %v8596_v22 = vrot.slane %v15464_v30, %v22668_v4  ;;  %v15472_v57 = vld [vmem:[#allocation2 + $0xedc] ss:$79 sps:$4 sm:$0xff]  }
 0x18e   :  { %22824 = vst [vmem:[#allocation24_spill] sm:$0xff] %v18012_v15  ;;  %v22842_v26 = vcombine.high %v22840_v55, %v22841_v21  ;;  %v18075_v21 = vrot.slane %v15470_v54, %v22668_v4  ;;  %v15477_v54 = vld [vmem:[#allocation2 + $0xfa2] ss:$79 sps:$4 sm:$0xff]  }
 0x18f   :  { %13373 = vmatpush1.bf16.xpose.msra.mxu1 %v22820_v63  ;;  %v22829_v63 = vld [vmem:[#allocation31_spill] sm:$0xff]  ;;  %22835 = vst [vmem:[#allocation66_spill] sm:$0xff] %v18044_v24  ;;  %22836 = vst [vmem:[#allocation67_spill] sm:$0xff] %v18047_v23  ;;  %v9955_v23 = vrot.slane %v15472_v57, %v22668_v4 }
 0x190   :  { %13374 = vmatprep.subr.bf16.mxu1 %v22823_v51  ;;  %v22830_v20 = vcombine.high %v22791_v50, %v22829_v63  ;;  %v22833_v51 = vcombine.high %v22831_v61, %v22832_v7  ;;  %v15468_v50 = vld [vmem:[#allocation2 + $0xc8c] ss:$79 sps:$4 sm:$0xff]   ;;  %v7286_v61 = vcombine.low %v7265_v0, %v7279_v60  ;;  %v7962_v7 = vcombine.low %v7917_v62, %v7931_v8 }
 0x191   :  { %v18052_v63 = vrot.slane %v7287_v49, %v22668_v4  ;;  %22839 = vst [vmem:[#allocation68_spill] sm:$0xff] %v18058_v27  ;;  %v8610_v0 = vrot.slane %v15465_v34, %v22668_v4  ;;  %v8624_v60 = vrot.slane %v15466_v38, %v22668_v4  ;;  %v8638_v62 = vrot.slane %v15467_v39, %v22668_v4  ;;  %v15473_v38 = vld [vmem:[#allocation2 + $0xf7a] ss:$79 sps:$4 sm:$0xff]   ;;  %v15487_v27 = vld [vmem:[#allocation2 + $0x1356] ss:$79 sps:$4 sm:$0xff]  }
 0x192   :  { %14173 = vmatpush1.bf16.xpose.msra.mxu0 %v22830_v20  ;;  %v18041_v20 = vrot.slane %v6603_v5, %v22668_v4  ;;  %v18055_v5 = vrot.slane %v7963_v2, %v22668_v4  ;;  %v9290_v49 = vrot.slane %v15469_v46, %v22668_v4  ;;  %v9318_v2 = vrot.slane %v15471_v44, %v22668_v4  ;;  %v15474_v34 = vld [vmem:[#allocation2 + $0x1018] ss:$79 sps:$4 sm:$0xff]   ;;  %v15478_v44 = vld [vmem:[#allocation2 + $0x1040] ss:$79 sps:$4 sm:$0xff]  }
 0x193   :  { %14174 = vmatprep.subr.bf16.mxu0 %v22833_v51  ;;  %v7966_v51 = vcombine.low %v17995_v19, %v17998_v28  ;;  %22837 = vst [vmem:[#allocation69_spill] sm:$0xff] %v18052_v63  ;;  %v22843_v19 = vcombine.high %v22792_v3, %v17475_v45  ;;  %v9276_v28 = vrot.slane %v15468_v50, %v22668_v4  ;;  %v15475_v45 = vld [vmem:[#allocation2 + $0x10b6] ss:$79 sps:$4 sm:$0xff]   ;;  %v22846_v50 = vld [vmem:[#allocation36_spill] sm:$0xff] }
 0x194   :  { %22834 = vst [vmem:[#allocation26_spill] sm:$0xff] %v18041_v20  ;;  %22838 = vst [vmem:[#allocation72_spill] sm:$0xff] %v18055_v5  ;;  %v18079_v39 = vrot.slane %v7282_v48, %v22668_v4  ;;  %v18082_v30 = vrot.slane %v7286_v61, %v22668_v4  ;;  %v15476_v3 = vld [vmem:[#allocation2 + $0xf04] ss:$79 sps:$4 sm:$0xff]   ;;  %v22847_v55 = vcombine.high %v22794_v36, %v22846_v50 }
 0x195   :  { %v18088_v46 = vrot.slane %v7962_v7, %v22668_v4  ;;  %v18098_v8 = vrot.slane %v7966_v51, %v22668_v4  ;;  %v8642_v36 = vcombine.high %v8596_v22, %v8610_v0  ;;  %v8641_v50 = vcombine.low %v8596_v22, %v8610_v0  ;;  %v15486_v5 = vld [vmem:[#allocation2 + $0x12b8] ss:$79 sps:$4 sm:$0xff]  }
 0x196   :  { %22844 = vst [vmem:[#allocation70_spill] sm:$0xff] %v18079_v39  ;;  %22845 = vst [vmem:[#allocation71_spill] sm:$0xff] %v18082_v30  ;;  %v9322_v20 = vcombine.high %v9276_v28, %v9290_v49  ;;  %v9326_v24 = vcombine.high %v18075_v21, %v9318_v2  ;;  %v8645_v48 = vcombine.low %v8624_v60, %v8638_v62  ;;  %v15485_v30 = vld [vmem:[#allocation2 + $0x121a] ss:$79 sps:$4 sm:$0xff]  }
 0x197   :  { %13375 = vmatpush1.bf16.xpose.msra.mxu1 %v22842_v26  ;;  %22848 = vst [vmem:[#allocation73_spill] sm:$0xff] %v18088_v46  ;;  %v15479_v26 = vld [vmem:[#allocation2 + $0x10de] ss:$79 sps:$4 sm:$0xff]   ;;  %22850 = vst [vmem:[#allocation27_spill] sm:$0xff] %v18098_v8  ;;  %v9969_v61 = vrot.slane %v15473_v38, %v22668_v4  ;;  %v18108_v51 = vrot.slane %v15476_v3, %v22668_v4  ;;  %v18111_v22 = vrot.slane %v15477_v54, %v22668_v4  ;;  %v22855_v3 = vld [vmem:[#allocation15_spill] sm:$0xff] }
 0x198   :  { %13376 = vmatprep.subr.bf16.mxu1 %v22843_v19  ;;  %v22849_v19 = vcombine.high %v22796_v13, %v22795_v43  ;;  %v9983_v13 = vrot.slane %v15474_v34, %v22668_v4  ;;  %v9997_v43 = vrot.slane %v15475_v45, %v22668_v4  ;;  %v18114_v0 = vrot.slane %v15478_v44, %v22668_v4  ;;  %v22856_v54 = vld [vmem:[#allocation18_spill] sm:$0xff]  ;;  %v22867_v45 = vld [vmem:[#allocation37_spill] sm:$0xff] }
 0x199   :  { %v18123_v38 = vrot.slane %v8642_v36, %v22668_v4  ;;  %v9321_v34 = vcombine.low %v9276_v28, %v9290_v49  ;;  %v22857_v7 = vcombine.high %v22855_v3, %v22856_v54  ;;  %v18140_v36 = vrot.slane %v8641_v50, %v22668_v4  ;;  %v22864_v3 = vld [vmem:[#allocation16_spill] sm:$0xff]  ;;  %v15480_v54 = vld [vmem:[#allocation2 + $0x1154] ss:$79 sps:$4 sm:$0xff]  }
 0x19a   :  { %14175 = vmatpush1.bf16.xpose.msra.mxu0 %v22847_v55  ;;  %v8646_v55 = vcombine.high %v8624_v60, %v8638_v62  ;;  %v22851_v60 = vld [vmem:[#allocation49_spill] sm:$0xff]  ;;  %v18143_v28 = vrot.slane %v8645_v48, %v22668_v4  ;;  %v9325_v49 = vcombine.low %v18075_v21, %v9318_v2  ;;  %v22866_v2 = vld [vmem:[#allocation11_spill] sm:$0xff]  ;;  %v11314_v8 = vrot.slane %v15480_v54, %v22668_v4 }
 0x19b   :  { %14176 = vmatprep.subr.bf16.mxu0 %v22849_v19  ;;  %v18117_v19 = vrot.slane %v15479_v26, %v22668_v4  ;;  %v22852_v62 = vld [vmem:[#allocation17_spill] sm:$0xff]  ;;  %22854 = vst [vmem:[#allocation28_spill] sm:$0xff] %v18123_v38  ;;  %v18134_v26 = vrot.slane %v9322_v20, %v22668_v4  ;;  %22861 = vst [vmem:[#allocation35_spill] sm:$0xff] %v18140_v36  ;;  %v10681_v20 = vcombine.high %v18108_v51, %v18111_v22  ;;  %v22875_v36 = vld [vmem:[#allocation38_spill] sm:$0xff] }
 0x19c   :  { %v22853_v57 = vcombine.high %v22851_v60, %v22852_v62  ;;  %v18131_v44 = vrot.slane %v8646_v55, %v22668_v4  ;;  %v18137_v60 = vrot.slane %v9326_v24, %v22668_v4  ;;  %22862 = vst [vmem:[#allocation51_spill] sm:$0xff] %v18143_v28  ;;  %v10001_v62 = vcombine.high %v9955_v23, %v9969_v61  ;;  %v15481_v50 = vld [vmem:[#allocation2 + $0x11f2] ss:$79 sps:$4 sm:$0xff]  }
 0x19d   :  { %22859 = vst [vmem:[#allocation42_spill] sm:$0xff] %v18134_v26  ;;  %v10685_v24 = vcombine.high %v18114_v0, %v18117_v19  ;;  %v22868_v46 = vcombine.high %v22866_v2, %v22867_v45  ;;  %v18163_v39 = vrot.slane %v9321_v34, %v22668_v4  ;;  %v18166_v48 = vrot.slane %v9325_v49, %v22668_v4  ;;  %v22876_v28 = vld [vmem:[#allocation39_spill] sm:$0xff] }
 0x19e   :  { %22858 = vst [vmem:[#allocation41_spill] sm:$0xff] %v18131_v44  ;;  %22860 = vst [vmem:[#allocation48_spill] sm:$0xff] %v18137_v60  ;;  %v18169_v21 = vrot.slane %v10001_v62, %v22668_v4  ;;  %v10000_v45 = vcombine.low %v9955_v23, %v9969_v61  ;;  %v18175_v26 = vrot.slane %v10681_v20, %v22668_v4 }
 0x19f   :  { %13377 = vmatpush1.bf16.xpose.msra.mxu1 %v22853_v57  ;;  %v10005_v57 = vcombine.high %v9983_v13, %v9997_v43  ;;  %22869 = vst [vmem:[#allocation50_spill] sm:$0xff] %v18163_v39  ;;  %22870 = vst [vmem:[#allocation40_spill] sm:$0xff] %v18166_v48  ;;  %v18178_v34 = vrot.slane %v10685_v24, %v22668_v4  ;;  %v22877_v49 = vcombine.high %v22875_v36, %v22876_v28 }
 0x1a0   :  { %13378 = vmatprep.subr.bf16.mxu1 %v22857_v7  ;;  %v22863_v7 = vld [vmem:[#allocation52_spill] sm:$0xff]  ;;  %22871 = vst [vmem:[#allocation33_spill] sm:$0xff] %v18169_v21  ;;  %22873 = vst [vmem:[#allocation31_spill] sm:$0xff] %v18175_v26  ;;  %v11328_v62 = vrot.slane %v15481_v50, %v22668_v4  ;;  %v12008_v54 = vrot.slane %v15485_v30, %v22668_v4  ;;  %v12022_v36 = vrot.slane %v15486_v5, %v22668_v4  ;;  %v22886_v30 = vld [vmem:[#allocation46_spill] sm:$0xff] }
 0x1a1   :  { %v22865_v55 = vcombine.high %v22863_v7, %v22864_v3  ;;  %v15482_v7 = vld [vmem:[#allocation2 + $0x1290] ss:$79 sps:$4 sm:$0xff]   ;;  %v18172_v2 = vrot.slane %v10005_v57, %v22668_v4  ;;  %22874 = vst [vmem:[#allocation29_spill] sm:$0xff] %v18178_v34  ;;  %v22879_v57 = vld [vmem:[#allocation45_spill] sm:$0xff]  ;;  %v12036_v28 = vrot.slane %v15487_v27, %v22668_v4  ;;  %v18197_v50 = vrot.slane %v10000_v45, %v22668_v4  ;;  %v22892_v5 = vld [vmem:[#allocation19_spill] sm:$0xff] }
 0x1a2   :  { %v15483_v3 = vld [vmem:[#allocation2 + $0x132e] ss:$79 sps:$4 sm:$0xff]   ;;  %v11342_v23 = vrot.slane %v15482_v7, %v22668_v4  ;;  %v22891_v27 = vld [vmem:[#allocation13_spill] sm:$0xff] }
 0x1a3   :  { %14177 = vmatpush1.bf16.xpose.msra.mxu0 %v22865_v55  ;;  %v15484_v55 = vld [vmem:[#allocation2 + $0x117c] ss:$79 sps:$4 sm:$0xff]   ;;  %22872 = vst [vmem:[#allocation44_spill] sm:$0xff] %v18172_v2  ;;  %v11356_v61 = vrot.slane %v15483_v3, %v22668_v4  ;;  %22881 = vst [vmem:[#allocation30_spill] sm:$0xff] %v18197_v50  ;;  %v10680_v3 = vcombine.low %v18108_v51, %v18111_v22  ;;  %v11360_v22 = vcombine.high %v11314_v8, %v11328_v62 }
 0x1a4   :  { %14178 = vmatprep.subr.bf16.mxu0 %v22868_v46  ;;  %v10004_v46 = vcombine.low %v9983_v13, %v9997_v43  ;;  %v22878_v43 = vld [vmem:[#allocation47_spill] sm:$0xff]  ;;  %v11994_v24 = vrot.slane %v15484_v55, %v22668_v4  ;;  %v22884_v55 = vld [vmem:[#allocation12_spill] sm:$0xff]  ;;  %v22887_v45 = vld [vmem:[#allocation14_spill] sm:$0xff]  ;;  %v22893_v26 = vcombine.high %v22891_v27, %v22892_v5 }
 0x1a5   :  { %v22880_v20 = vcombine.high %v22878_v43, %v22879_v57  ;;  %v22883_v43 = vld [vmem:[#allocation43_spill] sm:$0xff]  ;;  %v11363_v13 = vcombine.low %v11342_v23, %v11356_v61  ;;  %v18233_v50 = vrot.slane %v11360_v22, %v22668_v4  ;;  %v22903_v5 = vld [vmem:[#allocation53_spill] sm:$0xff]  ;;  %v22904_v27 = vld [vmem:[#allocation54_spill] sm:$0xff] }
 0x1a6   :  { %v18200_v7 = vrot.slane %v10004_v46, %v22668_v4  ;;  %v22885_v57 = vcombine.high %v22883_v43, %v22884_v55  ;;  %v22888_v46 = vcombine.high %v22886_v30, %v22887_v45  ;;  %v18219_v43 = vrot.slane %v10680_v3, %v22668_v4  ;;  %v22894_v45 = vld [vmem:[#allocation56_spill] sm:$0xff] }
 0x1a7   :  { %13379 = vmatpush1.bf16.xpose.msra.mxu1 %v22877_v49  ;;  %v10684_v49 = vcombine.low %v18114_v0, %v18117_v19  ;;  %v12040_v0 = vcombine.high %v11994_v24, %v12008_v54  ;;  %v12044_v19 = vcombine.high %v12022_v36, %v12036_v28  ;;  %22897 = vst [vmem:[#allocation49_spill] sm:$0xff] %v18233_v50  ;;  %v22925_v22 = vld [vmem:[#allocation68_spill] sm:$0xff] }
 0x1a8   :  { %13380 = vmatprep.subr.bf16.mxu1 %v22880_v20  ;;  %22882 = vst [vmem:[#allocation32_spill] sm:$0xff] %v18200_v7  ;;  %v11364_v20 = vcombine.high %v11342_v23, %v11356_v61  ;;  %22889 = vst [vmem:[#allocation34_spill] sm:$0xff] %v18219_v43  ;;  %v18248_v23 = vrot.slane %v11363_v13, %v22668_v4  ;;  %v12039_v61 = vcombine.low %v11994_v24, %v12008_v54 }
 0x1a9   :  { %v18222_v55 = vrot.slane %v10684_v49, %v22668_v4  ;;  %v12043_v49 = vcombine.low %v12022_v36, %v12036_v28  ;;  %v1914_v24 = vcombine.low %v17782_v6, %v17785_v41  ;;  %v22911_v28 = vld [vmem:[#allocation58_spill] sm:$0xff] }
 0x1aa   :  { %v18236_v3 = vrot.slane %v11364_v20, %v22668_v4  ;;  %22902 = vst [vmem:[#allocation16_spill] sm:$0xff] %v18248_v23  ;;  %v18265_v54 = vrot.slane %v12039_v61, %v22668_v4  ;;  %v22924_v20 = vld [vmem:[#allocation26_spill] sm:$0xff] }
 0x1ab   :  { %14179 = vmatpush1.bf16.xpose.msra.mxu0 %v22885_v57  ;;  %22890 = vst [vmem:[#allocation36_spill] sm:$0xff] %v18222_v55  ;;  %v11359_v57 = vcombine.low %v11314_v8, %v11328_v62  ;;  %v18239_v8 = vrot.slane %v12040_v0, %v22668_v4  ;;  %v18242_v62 = vrot.slane %v12044_v19, %v22668_v4  ;;  %v22906_v0 = vld [vmem:[#allocation20_spill] sm:$0xff]  ;;  %v22907_v19 = vld [vmem:[#allocation55_spill] sm:$0xff] }
 0x1ac   :  { %14180 = vmatprep.subr.bf16.mxu0 %v22888_v46  ;;  %v22895_v46 = vld [vmem:[#allocation57_spill] sm:$0xff]  ;;  %22898 = vst [vmem:[#allocation17_spill] sm:$0xff] %v18236_v3  ;;  %22909 = vst [vmem:[#allocation11_spill] sm:$0xff] %v18265_v54  ;;  %v18268_v36 = vrot.slane %v12043_v49, %v22668_v4 }
 0x1ad   :  { %v22896_v51 = vcombine.high %v22894_v45, %v22895_v46  ;;  %22899 = vst [vmem:[#allocation15_spill] sm:$0xff] %v18239_v8  ;;  %22900 = vst [vmem:[#allocation18_spill] sm:$0xff] %v18242_v62  ;;  %v22908_v45 = vcombine.high %v22906_v0, %v22907_v19  ;;  %v22914_v0 = vld [vmem:[#allocation59_spill] sm:$0xff]  ;;  %v22915_v19 = vld [vmem:[#allocation60_spill] sm:$0xff] }
 0x1ae   :  { %22910 = vst [vmem:[#allocation37_spill] sm:$0xff] %v18268_v36  ;;  %v22916_v61 = vcombine.high %v22914_v0, %v22915_v19  ;;  %v2590_v0 = vcombine.low %v17827_v52, %v17837_v40  ;;  %v3953_v19 = vcombine.low %v17887_v11, %v17890_v32 }
 0x1af   :  { %13381 = vmatpush1.bf16.xpose.msra.mxu1 %v22893_v26  ;;  %v18245_v26 = vrot.slane %v11359_v57, %v22668_v4  ;;  %v22912_v57 = vld [vmem:[#allocation61_spill] sm:$0xff] }
 0x1b0   :  { %13382 = vmatprep.subr.bf16.mxu1 %v22896_v51  ;;  %v22905_v51 = vcombine.high %v22903_v5, %v22904_v27  ;;  %v22913_v46 = vcombine.high %v22911_v28, %v22912_v57  ;;  %v2594_v5 = vcombine.low %v17794_v29, %v17797_v17  ;;  %v1910_v28 = vcombine.low %v17821_v9, %v17824_v35  ;;  %v22918_v27 = vld [vmem:[#allocation23_spill] sm:$0xff] }
 0x1b1   :  { %22901 = vst [vmem:[#allocation52_spill] sm:$0xff] %v18245_v26  ;;  %v14857_v13 = vcombine.low %v22918_v27, %v22918_v27  ;;  %v3269_v27 = vcombine.low %v17879_v53, %v17900_v37 }
 0x1b3   :  { %14181 = vmatpush1.bf16.xpose.msra.mxu0 %v22905_v51  ;;  %v18277_v51 = vld [vmem:[#allocation5 + $0x30] sm:$0x77] }
 0x1b4   :  { %14182 = vmatprep.subr.bf16.mxu0 %v22908_v45  ;;  %v22917_v45 = vld [vmem:[#allocation22_spill] sm:$0xff]  ;;  %v14820_v57 = vcombine.high %v18277_v51, %v18277_v51 }
 0x1b5   :  { %v14817_v49 = vcombine.low %v22917_v45, %v22917_v45  ;;  %v3949_v45 = vcombine.low %v17923_v16, %v17926_v25 }
 0x1b7   :  { %13383 = vmatpush1.bf16.xpose.msra.mxu1 %v22913_v46  ;;  %v18288_v46 = vld [vmem:[#allocation5 + $0xd0] sm:$0x77] }
 0x1b8   :  { %13408 = vmatprep.subr.bf16.mxu1 %v1914_v24  ;;  %v3273_v24 = vcombine.low %v17862_v1, %v17876_v47 }
 0x1bb   :  { %14183 = vmatpush1.bf16.xpose.msra.mxu0 %v22916_v61  ;;  %v4632_v61 = vcombine.low %v17931_v42, %v17940_v31 }
 0x1bc   :  { %14208 = vmatprep.subr.bf16.mxu0 %v2594_v5  ;;  %v14860_v5 = vcombine.high %v18288_v46, %v18288_v46 }
 0x1be   :  { %13401 = vmatmul.mubr.bf16.vlgmr.msra.gmra.mrb[0].mxu1 %v14817_v49  ;;  %v5312_v49 = vcombine.low %v17943_v58, %v17946_v33 }
 0x1bf   :  { %13409 = vmatpush1.bf16.xpose.msra.mxu1 %v1910_v28  ;;  %13440 = vmatprep.mubr.bf16.mxu1 %v14820_v57  ;;  %v5991_v28 = vcombine.low %v18004_v14, %v18012_v15  ;;  %v22919_v57 = vld [vmem:[#allocation62_spill] sm:$0xff]  ;;  %v22926_v15 = vld [vmem:[#allocation72_spill] sm:$0xff] }
 0x1c0   :  { %13410 = vmatprep.subr.bf16.mxu1 %v3273_v24  ;;  %v5308_v24 = vcombine.low %v22919_v57, %v17984_v18  ;;  %v8030_v18 = vcombine.low %v22926_v15, %v22925_v22 }
 0x1c2   :  { %14201 = vmatmul.mubr.bf16.vlgmr.msra.gmra.mrb[0].mxu0 %v14857_v13  ;;  %v4628_v13 = vcombine.low %v17965_v59, %v17968_v10 }
 0x1c3   :  { %14209 = vmatpush1.bf16.xpose.msra.mxu0 %v2590_v0  ;;  %14240 = vmatprep.mubr.bf16.mxu0 %v14860_v5  ;;  %v22920_v0 = vld [vmem:[#allocation64_spill] sm:$0xff] }
 0x1c4   :  { %14210 = vmatprep.subr.bf16.mxu0 %v3953_v19  ;;  %v6671_v5 = vcombine.low %v22920_v0, %v18018_v12  ;;  %v22921_v19 = vld [vmem:[#allocation65_spill] sm:$0xff] }
 0x1c7   :  { %13411 = vmatpush1.bf16.xpose.msra.mxu1 %v3269_v27  ;;  %v5987_v27 = vcombine.low %v22921_v19, %v18024_v56  ;;  %v22929_v56 = vld [vmem:[#allocation27_spill] sm:$0xff]  ;;  %v22930_v19 = vld [vmem:[#allocation73_spill] sm:$0xff] }
 0x1c8   :  { %13412 = vmatprep.subr.bf16.mxu1 %v4632_v61  ;;  %v22922_v61 = vld [vmem:[#allocation67_spill] sm:$0xff]  ;;  %v8026_v12 = vcombine.low %v22930_v19, %v22929_v56  ;;  %v15496_v19 = vld [vmem:[#allocation2 + $0xae] ss:$79 sps:$4 sm:$0xff]  }
 0x1cb   :  { %14211 = vmatpush1.bf16.xpose.msra.mxu0 %v3949_v45  ;;  %v7350_v45 = vcombine.low %v22922_v61, %v18052_v63  ;;  %v22931_v63 = vld [vmem:[#allocation42_spill] sm:$0xff] }
 0x1cc   :  { %14212 = vmatprep.subr.bf16.mxu0 %v5312_v49  ;;  %v22923_v49 = vld [vmem:[#allocation66_spill] sm:$0xff] }
 0x1cd   :  { %v6667_v30 = vcombine.low %v22924_v20, %v22923_v49  ;;  %v9389_v49 = vcombine.low %v22931_v63, %v18137_v60  ;;  %v15498_v60 = vld [vmem:[#allocation2 + $0x14c] ss:$79 sps:$4 sm:$0xff]  }
 0x1cf   :  { %13413 = vmatpush1.bf16.xpose.msra.mxu1 %v4628_v13  ;;  %v22927_v13 = vld [vmem:[#allocation71_spill] sm:$0xff] }
 0x1d0   :  { %13414 = vmatprep.subr.bf16.mxu1 %v5991_v28  ;;  %v22928_v28 = vld [vmem:[#allocation70_spill] sm:$0xff] }
 0x1d3   :  { %14213 = vmatpush1.bf16.xpose.msra.mxu0 %v5308_v24  ;;  %v7346_v24 = vcombine.low %v22928_v28, %v22927_v13  ;;  %v9385_v13 = vcombine.low %v18163_v39, %v18166_v48 }
 0x1d4   :  { %14214 = vmatprep.subr.bf16.mxu0 %v6671_v5  ;;  %v8709_v5 = vcombine.low %v18123_v38, %v18131_v44  ;;  %v22934_v44 = vld [vmem:[#allocation31_spill] sm:$0xff]  ;;  %v18370_v38 = vld [vmem:[#allocation5 + $0x38] sm:$0x77] }
 0x1d5   :  { %v10748_v56 = vcombine.low %v22934_v44, %v18178_v34  ;;  %v1958_v34 = vrot.slane %v15498_v60, %v22668_v4  ;;  %22936 = vst [vmem:[#allocation38_spill] sm:$0xff] %v18370_v38 }
 0x1d7   :  { %13415 = vmatpush1.bf16.xpose.msra.mxu1 %v5987_v27  ;;  %v22932_v27 = vld [vmem:[#allocation51_spill] sm:$0xff] }
 0x1d8   :  { %13416 = vmatprep.subr.bf16.mxu1 %v7350_v45  ;;  %v22933_v45 = vld [vmem:[#allocation35_spill] sm:$0xff] }
 0x1db   :  { %14215 = vmatpush1.bf16.xpose.msra.mxu0 %v6667_v30  ;;  %v8705_v30 = vcombine.low %v22933_v45, %v22932_v27  ;;  %v15506_v45 = vld [vmem:[#allocation2 + $0xd6] ss:$79 sps:$4 sm:$0xff]  }
 0x1dc   :  { %14216 = vmatprep.subr.bf16.mxu0 %v8030_v18  ;;  %v10068_v18 = vcombine.low %v18169_v21, %v18172_v2  ;;  %v15508_v2 = vld [vmem:[#allocation2 + $0x174] ss:$79 sps:$4 sm:$0xff]  }
 0x1dd   :  { %v15510_v21 = vld [vmem:[#allocation2 + $0x212] ss:$79 sps:$4 sm:$0xff]  }
 0x1df   :  { %13417 = vmatpush1.bf16.xpose.msra.mxu1 %v7346_v24  ;;  %v15494_v24 = vld [vmem:[#allocation2 + $0x10] ss:$79 sps:$4 sm:$0xff]  }
 0x1e0   :  { %13418 = vmatprep.subr.bf16.mxu1 %v8709_v5  ;;  %v15500_v5 = vld [vmem:[#allocation2 + $0x1ea] ss:$79 sps:$4 sm:$0xff]   ;;  %v1930_v48 = vrot.slane %v15494_v24, %v22668_v4  ;;  %v2652_v24 = vrot.slane %v15510_v21, %v22668_v4  ;;  %v14819_v21 = vcombine.low %v18277_v51, %v18277_v51 }
 0x1e1   :  { %v1972_v44 = vrot.slane %v15500_v5, %v22668_v4  ;;  %v15512_v5 = vld [vmem:[#allocation2 + $0x288] ss:$79 sps:$4 sm:$0xff]  }
 0x1e2   :  { %v3289_v28 = vrot.slane %v15512_v5, %v22668_v4  ;;  %v15538_v5 = vld [vmem:[#allocation2 + $0x5c6] ss:$79 sps:$4 sm:$0xff]  }
 0x1e3   :  { %14217 = vmatpush1.bf16.xpose.msra.mxu0 %v8026_v12  ;;  %v15504_v12 = vld [vmem:[#allocation2 + $0x38] ss:$79 sps:$4 sm:$0xff]   ;;  %v1985_v60 = vcombine.high %v1958_v34, %v1972_v44  ;;  %v1984_v63 = vcombine.low %v1958_v34, %v1972_v44  ;;  %v22938_v34 = vcombine.high %v17782_v6, %v17785_v41 }
 0x1e4   :  { %14218 = vmatprep.subr.bf16.mxu0 %v9389_v49  ;;  %v22935_v49 = vld [vmem:[#allocation30_spill] sm:$0xff] }
 0x1e5   :  { %v10064_v27 = vcombine.low %v22935_v49, %v18200_v7  ;;  %v2610_v7 = vrot.slane %v15504_v12, %v22668_v4  ;;  %v2624_v49 = vrot.slane %v15506_v45, %v22668_v4  ;;  %v15518_v12 = vld [vmem:[#allocation2 + $0x462] ss:$79 sps:$4 sm:$0xff]  }
 0x1e6   :  { %v3331_v44 = vrot.slane %v15518_v12, %v22668_v4 }
 0x1e7   :  { %13419 = vmatpush1.bf16.xpose.msra.mxu1 %v8705_v30  ;;  %v11427_v30 = vcombine.low %v18233_v50, %v18236_v3  ;;  %v2638_v3 = vrot.slane %v15508_v2, %v22668_v4  ;;  %v15514_v50 = vld [vmem:[#allocation2 + $0x326] ss:$79 sps:$4 sm:$0xff]   ;;  %v12103_v2 = vcombine.low %v18265_v54, %v18268_v36  ;;  %v2660_v54 = vcombine.low %v2610_v7, %v2624_v49 }
 0x1e8   :  { %13420 = vmatprep.subr.bf16.mxu1 %v10068_v18  ;;  %v1944_v18 = vrot.slane %v15496_v19, %v22668_v4  ;;  %v18372_v36 = vld [vmem:[#allocation5 + $0xd8] sm:$0x77]  ;;  %v3303_v45 = vrot.slane %v15514_v50, %v22668_v4 }
 0x1e9   :  { %22937 = vst [vmem:[#allocation39_spill] sm:$0xff] %v18372_v36  ;;  %v2664_v51 = vcombine.low %v2638_v3, %v2652_v24  ;;  %v14862_v6 = vcombine.high %v18372_v36, %v18372_v36 }
 0x1ea   :  { %v1981_v19 = vcombine.high %v1930_v48, %v1944_v18  ;;  %v3340_v12 = vcombine.high %v3289_v28, %v3303_v45  ;;  %v3339_v36 = vcombine.low %v3289_v28, %v3303_v45  ;;  %v18442_v45 = vrot.slane %v15538_v5, %v22668_v4 }
 0x1eb   :  { %14219 = vmatpush1.bf16.xpose.msra.mxu0 %v9385_v13  ;;  %v12107_v13 = vcombine.low %v18239_v8, %v18242_v62  ;;  %v2661_v62 = vcombine.high %v2610_v7, %v2624_v49  ;;  %v15516_v8 = vld [vmem:[#allocation2 + $0x3c4] ss:$79 sps:$4 sm:$0xff]   ;;  %v15532_v49 = vld [vmem:[#allocation2 + $0x63c] ss:$79 sps:$4 sm:$0xff]  }
 0x1ec   :  { %14220 = vmatprep.subr.bf16.mxu0 %v10748_v56  ;;  %v10744_v56 = vcombine.low %v18219_v43, %v18222_v55  ;;  %v11423_v55 = vcombine.low %v18245_v26, %v18248_v23  ;;  %v15520_v43 = vld [vmem:[#allocation2 + $0x2b0] ss:$79 sps:$4 sm:$0xff]   ;;  %v18365_v39 = vrot.slane %v1981_v19, %v22668_v4  ;;  %v18368_v23 = vrot.slane %v1985_v60, %v22668_v4  ;;  %v15536_v60 = vld [vmem:[#allocation2 + $0x528] ss:$79 sps:$4 sm:$0xff]  }
 0x1ed   :  { %v1980_v26 = vcombine.low %v1930_v48, %v1944_v18  ;;  %v18377_v22 = vrot.slane %v2661_v62, %v22668_v4  ;;  %v3317_v48 = vrot.slane %v15516_v8, %v22668_v4  ;;  %v18388_v7 = vrot.slane %v15520_v43, %v22668_v4  ;;  %v15528_v62 = vld [vmem:[#allocation2 + $0x500] ss:$79 sps:$4 sm:$0xff]  }
 0x1ee   :  { %v15530_v8 = vld [vmem:[#allocation2 + $0x59e] ss:$79 sps:$4 sm:$0xff]   ;;  %v14822_v18 = vcombine.high %v18370_v38, %v18370_v38  ;;  %v18407_v43 = vrot.slane %v1984_v63, %v22668_v4  ;;  %v22939_v63 = vcombine.high %v17794_v29, %v17797_v17  ;;  %v18433_v29 = vrot.slane %v15532_v49, %v22668_v4 }
 0x1ef   :  { %13421 = vmatpush1.bf16.xpose.msra.mxu1 %v10064_v27  ;;  %v2665_v27 = vcombine.high %v2638_v3, %v2652_v24  ;;  %v18404_v41 = vrot.slane %v1980_v26, %v22668_v4  ;;  %v15534_v24 = vld [vmem:[#allocation2 + $0x6da] ss:$79 sps:$4 sm:$0xff]   ;;  %v18430_v26 = vrot.slane %v15530_v8, %v22668_v4  ;;  %v18439_v28 = vrot.slane %v15536_v60, %v22668_v4 }
 0x1f0   :  { %13422 = vmatprep.subr.bf16.mxu1 %v11427_v30  ;;  %v15522_v30 = vld [vmem:[#allocation2 + $0x34e] ss:$79 sps:$4 sm:$0xff]   ;;  %v18436_v17 = vrot.slane %v15534_v24, %v22668_v4  ;;  %v22940_v8 = vcombine.high %v17821_v9, %v17824_v35  ;;  %v22941_v60 = vcombine.high %v17862_v1, %v17876_v47 }
 0x1f1   :  { %v18380_v19 = vrot.slane %v2665_v27, %v22668_v4  ;;  %v18391_v50 = vrot.slane %v15522_v30, %v22668_v4  ;;  %v18410_v27 = vrot.slane %v2660_v54, %v22668_v4  ;;  %v15540_v30 = vld [vmem:[#allocation2 + $0x664] ss:$79 sps:$4 sm:$0xff]   ;;  %v3343_v54 = vcombine.low %v3317_v48, %v3331_v44 }
 0x1f2   :  { %v4703_v47 = vcombine.high %v18433_v29, %v18436_v17 }
 0x1f3   :  { %14221 = vmatpush1.bf16.xpose.msra.mxu0 %v10744_v56  ;;  %v15524_v56 = vld [vmem:[#allocation2 + $0x3ec] ss:$79 sps:$4 sm:$0xff]   ;;  %v4020_v38 = vcombine.high %v18388_v7, %v18391_v50  ;;  %v4019_v24 = vcombine.low %v18388_v7, %v18391_v50  ;;  %v18483_v7 = vrot.slane %v3343_v54, %v22668_v4 }
 0x1f4   :  { %14222 = vmatprep.subr.bf16.mxu0 %v12107_v13  ;;  %v15526_v13 = vld [vmem:[#allocation2 + $0x48a] ss:$79 sps:$4 sm:$0xff]  }
 0x1f5   :  { %v18397_v3 = vrot.slane %v15526_v13, %v22668_v4  ;;  %v18427_v13 = vrot.slane %v15528_v62, %v22668_v4  ;;  %v18470_v5 = vrot.slane %v4020_v38, %v22668_v4  ;;  %v22943_v38 = vcombine.high %v17827_v52, %v17837_v40  ;;  %v15544_v50 = vld [vmem:[#allocation2 + $0x778] ss:$79 sps:$4 sm:$0xff]   ;;  %v15552_v52 = vld [vmem:[#allocation2 + $0x7a0] ss:$79 sps:$4 sm:$0xff]  }
 0x1f6   :  { %v22969_v62 = vld [vmem:[#allocation25_spill] sm:$0xff] }
 0x1f7   :  { %13423 = vmatpush1.bf16.xpose.msra.mxu1 %v11423_v55  ;;  %v18394_v55 = vrot.slane %v15524_v56, %v22668_v4  ;;  %v15542_v56 = vld [vmem:[#allocation2 + $0x702] ss:$79 sps:$4 sm:$0xff]   ;;  %v4699_v1 = vcombine.high %v18427_v13, %v18430_v26  ;;  %v4698_v54 = vcombine.low %v18427_v13, %v18430_v26 }
 0x1f8   :  { %13448 = vmatprep.subr.bf16.mxu1 %v22938_v34  ;;  %v18420_v34 = vrot.slane %v2664_v51, %v22668_v4  ;;  %v18445_v51 = vrot.slane %v3340_v12, %v22668_v4 }
 0x1f9   :  { %v4024_v15 = vcombine.high %v18394_v55, %v18397_v3  ;;  %v4023_v35 = vcombine.low %v18394_v55, %v18397_v3  ;;  %v15546_v55 = vld [vmem:[#allocation2 + $0x816] ss:$79 sps:$4 sm:$0xff]  }
 0x1fb   :  { %14223 = vmatpush1.bf16.xpose.msra.mxu0 %v12103_v2  ;;  %v3344_v2 = vcombine.high %v3317_v48, %v3331_v44  ;;  %v18448_v48 = vrot.slane %v15540_v30, %v22668_v4  ;;  %v18451_v44 = vrot.slane %v15542_v56, %v22668_v4  ;;  %v18473_v9 = vrot.slane %v4024_v15, %v22668_v4  ;;  %v15548_v56 = vld [vmem:[#allocation2 + $0x8b4] ss:$79 sps:$4 sm:$0xff]  }
 0x1fc   :  { %14248 = vmatprep.subr.bf16.mxu0 %v22939_v63  ;;  %v5379_v15 = vcombine.high %v18439_v28, %v18442_v45  ;;  %v22944_v30 = vcombine.high %v17887_v11, %v17890_v32  ;;  %v15550_v63 = vld [vmem:[#allocation2 + $0x952] ss:$79 sps:$4 sm:$0xff]   ;;  %v18514_v11 = vrot.slane %v4699_v1, %v22668_v4  ;;  %v4702_v32 = vcombine.low %v18433_v29, %v18436_v17 }
 0x1fd   :  { %v18459_v49 = vrot.slane %v3344_v2, %v22668_v4  ;;  %v18509_v2 = vrot.slane %v4023_v35, %v22668_v4  ;;  %v18523_v35 = vrot.slane %v4703_v47, %v22668_v4  ;;  %v6007_v1 = vrot.slane %v15544_v50, %v22668_v4  ;;  %v15562_v50 = vld [vmem:[#allocation2 + $0xa8e] ss:$79 sps:$4 sm:$0xff]  }
 0x1fe   :  { %13441 = vmatmul.mubr.bf16.vlgmr.msra.gmra.mrb[0].mxu1 %v14819_v21  ;;  %v18462_v21 = vrot.slane %v3339_v36, %v22668_v4  ;;  %v18526_v13 = vrot.slane %v5379_v15, %v22668_v4  ;;  %v22945_v29 = vcombine.high %v17879_v53, %v17900_v37  ;;  %v6021_v17 = vrot.slane %v15546_v55, %v22668_v4 }
 0x1ff   :  { %13449 = vmatpush1.bf16.xpose.msra.mxu1 %v22940_v8  ;;  %13480 = vmatprep.mubr.bf16.mxu1 %v14822_v18  ;;  %v22942_v18 = vcombine.low %v18288_v46, %v18288_v46  ;;  %v5383_v46 = vcombine.high %v18448_v48, %v18451_v44  ;;  %v15554_v8 = vld [vmem:[#allocation2 + $0x83e] ss:$79 sps:$4 sm:$0xff]   ;;  %v6687_v47 = vrot.slane %v15552_v52, %v22668_v4 }
 0x200   :  { %13450 = vmatprep.subr.bf16.mxu1 %v22941_v60  ;;  %v15556_v60 = vld [vmem:[#allocation2 + $0x8dc] ss:$79 sps:$4 sm:$0xff]   ;;  %v6701_v15 = vrot.slane %v15554_v8, %v22668_v4  ;;  %v18548_v55 = vrot.slane %v4698_v54, %v22668_v4  ;;  %v15570_v8 = vld [vmem:[#allocation2 + $0xab6] ss:$79 sps:$4 sm:$0xff]  }
 0x201   :  { %v18529_v26 = vrot.slane %v5383_v46, %v22668_v4  ;;  %v6715_v53 = vrot.slane %v15556_v60, %v22668_v4  ;;  %v15560_v46 = vld [vmem:[#allocation2 + $0x9f0] ss:$79 sps:$4 sm:$0xff]   ;;  %v15572_v60 = vld [vmem:[#allocation2 + $0xb54] ss:$79 sps:$4 sm:$0xff]  }
 0x202   :  { %14241 = vmatmul.mubr.bf16.vlgmr.msra.gmra.mrb[0].mxu0 %v22942_v18  ;;  %v15558_v18 = vld [vmem:[#allocation2 + $0x97a] ss:$79 sps:$4 sm:$0xff]   ;;  %v7366_v54 = vrot.slane %v15560_v46, %v22668_v4  ;;  %v6737_v46 = vcombine.low %v6687_v47, %v6701_v15 }
 0x203   :  { %14249 = vmatpush1.bf16.xpose.msra.mxu0 %v22943_v38  ;;  %14280 = vmatprep.mubr.bf16.mxu0 %v14862_v6  ;;  %v18506_v6 = vrot.slane %v4019_v24, %v22668_v4  ;;  %v5378_v38 = vcombine.low %v18439_v28, %v18442_v45  ;;  %v5382_v24 = vcombine.low %v18448_v48, %v18451_v44 }
 0x204   :  { %14250 = vmatprep.subr.bf16.mxu0 %v22944_v30  ;;  %v6035_v28 = vrot.slane %v15548_v56, %v22668_v4  ;;  %v6049_v45 = vrot.slane %v15550_v63, %v22668_v4  ;;  %v22946_v44 = vcombine.high %v17931_v42, %v17940_v31  ;;  %v6729_v37 = vrot.slane %v15558_v18, %v22668_v4  ;;  %v15564_v56 = vld [vmem:[#allocation2 + $0xb2c] ss:$79 sps:$4 sm:$0xff]   ;;  %v15574_v18 = vld [vmem:[#allocation2 + $0xbf2] ss:$79 sps:$4 sm:$0xff]  }
 0x205   :  { %v18551_v30 = vrot.slane %v4702_v32, %v22668_v4  ;;  %v15566_v63 = vld [vmem:[#allocation2 + $0xbca] ss:$79 sps:$4 sm:$0xff]   ;;  %v22947_v31 = vcombine.high %v17923_v16, %v17926_v25  ;;  %v18557_v52 = vrot.slane %v5378_v38, %v22668_v4  ;;  %v6058_v16 = vcombine.high %v6007_v1, %v6021_v17 }
 0x206   :  { %v15568_v42 = vld [vmem:[#allocation2 + $0xa18] ss:$79 sps:$4 sm:$0xff]   ;;  %v6057_v25 = vcombine.low %v6007_v1, %v6021_v17  ;;  %v6738_v48 = vcombine.high %v6687_v47, %v6701_v15  ;;  %v6742_v40 = vcombine.high %v6715_v53, %v6729_v37  ;;  %v6061_v12 = vcombine.low %v6035_v28, %v6049_v45 }
 0x207   :  { %13451 = vmatpush1.bf16.xpose.msra.mxu1 %v22945_v29  ;;  %v22948_v29 = vcombine.high %v17943_v58, %v17946_v33  ;;  %v7380_v32 = vrot.slane %v15562_v50, %v22668_v4  ;;  %v7394_v36 = vrot.slane %v15564_v56, %v22668_v4  ;;  %v7408_v58 = vrot.slane %v15566_v63, %v22668_v4  ;;  %v22951_v56 = vld [vmem:[#allocation24_spill] sm:$0xff] }
 0x208   :  { %13452 = vmatprep.subr.bf16.mxu1 %v22946_v44  ;;  %v18567_v44 = vrot.slane %v5382_v24, %v22668_v4  ;;  %v8046_v33 = vrot.slane %v15568_v42, %v22668_v4  ;;  %v8060_v24 = vrot.slane %v15570_v8, %v22668_v4  ;;  %v18578_v1 = vrot.slane %v15572_v60, %v22668_v4  ;;  %v15588_v38 = vld [vmem:[#allocation2 + $0xdcc] ss:$79 sps:$4 sm:$0xff]  }
 0x209   :  { %v18581_v17 = vrot.slane %v15574_v18, %v22668_v4  ;;  %v22952_v63 = vcombine.high %v18004_v14, %v22951_v56  ;;  %v18598_v8 = vrot.slane %v6738_v48, %v22668_v4  ;;  %v18604_v60 = vrot.slane %v6057_v25, %v22668_v4  ;;  %v22958_v14 = vld [vmem:[#allocation21_spill] sm:$0xff] }
 0x20a   :  { %22949 = vst [vmem:[#allocation47_spill] sm:$0xff] %v18567_v44  ;;  %v18607_v47 = vrot.slane %v6061_v12, %v22668_v4  ;;  %v7417_v15 = vcombine.high %v7366_v54, %v7380_v32  ;;  %v7421_v18 = vcombine.high %v7394_v36, %v7408_v58  ;;  %v22960_v12 = vld [vmem:[#allocation63_spill] sm:$0xff]  ;;  %v7416_v50 = vcombine.low %v7366_v54, %v7380_v32  ;;  %v22968_v32 = vld [vmem:[#allocation65_spill] sm:$0xff] }
 0x20b   :  { %14251 = vmatpush1.bf16.xpose.msra.mxu0 %v22947_v31  ;;  %v6062_v31 = vcombine.high %v6035_v28, %v6049_v45  ;;  %v22950_v28 = vcombine.high %v17965_v59, %v17968_v10  ;;  %v18587_v45 = vrot.slane %v6058_v16, %v22668_v4  ;;  %22954 = vst [vmem:[#allocation43_spill] sm:$0xff] %v18598_v8  ;;  %22956 = vst [vmem:[#allocation46_spill] sm:$0xff] %v18604_v60  ;;  %v15582_v56 = vld [vmem:[#allocation2 + $0xe42] ss:$79 sps:$4 sm:$0xff]  }
 0x20c   :  { %14252 = vmatprep.subr.bf16.mxu0 %v22948_v29  ;;  %v18601_v59 = vrot.slane %v6742_v40, %v22668_v4  ;;  %v6741_v10 = vcombine.low %v6715_v53, %v6729_v37  ;;  %22957 = vst [vmem:[#allocation14_spill] sm:$0xff] %v18607_v47  ;;  %v22959_v29 = vcombine.high %v22919_v57, %v22958_v14  ;;  %v15578_v40 = vld [vmem:[#allocation2 + $0xd06] ss:$79 sps:$4 sm:$0xff]   ;;  %v15584_v57 = vld [vmem:[#allocation2 + $0xc90] ss:$79 sps:$4 sm:$0xff]  }
 0x20d   :  { %v18595_v42 = vrot.slane %v6062_v31, %v22668_v4  ;;  %v8097_v16 = vcombine.high %v8046_v33, %v8060_v24  ;;  %v8101_v48 = vcombine.high %v18578_v1, %v18581_v17  ;;  %v15576_v31 = vld [vmem:[#allocation2 + $0xc68] ss:$79 sps:$4 sm:$0xff]   ;;  %v22961_v25 = vcombine.high %v22920_v0, %v22960_v12  ;;  %v15586_v53 = vld [vmem:[#allocation2 + $0xd2e] ss:$79 sps:$4 sm:$0xff]  }
 0x20e   :  { %22955 = vst [vmem:[#allocation12_spill] sm:$0xff] %v18601_v59  ;;  %v18624_v14 = vrot.slane %v6737_v46, %v22668_v4  ;;  %v15590_v37 = vld [vmem:[#allocation2 + $0xe6a] ss:$79 sps:$4 sm:$0xff]   ;;  %v18630_v3 = vrot.slane %v7417_v15, %v22668_v4  ;;  %v7420_v0 = vcombine.low %v7394_v36, %v7408_v58  ;;  %v8096_v12 = vcombine.low %v8046_v33, %v8060_v24 }
 0x20f   :  { %13453 = vmatpush1.bf16.xpose.msra.mxu1 %v22950_v28  ;;  %22953 = vst [vmem:[#allocation45_spill] sm:$0xff] %v18595_v42  ;;  %v15580_v28 = vld [vmem:[#allocation2 + $0xda4] ss:$79 sps:$4 sm:$0xff]   ;;  %v18638_v46 = vrot.slane %v8097_v16, %v22668_v4  ;;  %v8725_v54 = vrot.slane %v15576_v31, %v22668_v4  ;;  %v22970_v15 = vcombine.high %v22968_v32, %v22969_v62  ;;  %v15592_v31 = vld [vmem:[#allocation2 + $0xee0] ss:$79 sps:$4 sm:$0xff]  }
 0x210   :  { %13454 = vmatprep.subr.bf16.mxu1 %v22952_v63  ;;  %22962 = vst [vmem:[#allocation13_spill] sm:$0xff] %v18624_v14  ;;  %22964 = vst [vmem:[#allocation56_spill] sm:$0xff] %v18630_v3  ;;  %v18635_v63 = vrot.slane %v7421_v18, %v22668_v4  ;;  %v8739_v36 = vrot.slane %v15578_v40, %v22668_v4  ;;  %v8753_v58 = vrot.slane %v15580_v28, %v22668_v4  ;;  %v15594_v40 = vld [vmem:[#allocation2 + $0xf7e] ss:$79 sps:$4 sm:$0xff]  }
 0x211   :  { %22966 = vst [vmem:[#allocation53_spill] sm:$0xff] %v18638_v46  ;;  %v8767_v33 = vrot.slane %v15582_v56, %v22668_v4  ;;  %v9405_v18 = vrot.slane %v15584_v57, %v22668_v4  ;;  %v9419_v16 = vrot.slane %v15586_v53, %v22668_v4  ;;  %v18658_v62 = vrot.slane %v15588_v38, %v22668_v4  ;;  %v15596_v32 = vld [vmem:[#allocation2 + $0x101c] ss:$79 sps:$4 sm:$0xff]   ;;  %v15602_v53 = vld [vmem:[#allocation2 + $0xfa6] ss:$79 sps:$4 sm:$0xff]  }
 0x212   :  { %22965 = vst [vmem:[#allocation57_spill] sm:$0xff] %v18635_v63  ;;  %v18662_v28 = vrot.slane %v7416_v50, %v22668_v4  ;;  %v18665_v56 = vrot.slane %v7420_v0, %v22668_v4  ;;  %v22975_v57 = vld [vmem:[#allocation66_spill] sm:$0xff]  ;;  %v18671_v38 = vrot.slane %v8096_v12, %v22668_v4  ;;  %v22978_v24 = vld [vmem:[#allocation72_spill] sm:$0xff]  ;;  %v10084_v3 = vrot.slane %v15592_v31, %v22668_v4 }
 0x213   :  { %14253 = vmatpush1.bf16.xpose.msra.mxu0 %v22959_v29  ;;  %v18627_v29 = vrot.slane %v6741_v10, %v22668_v4  ;;  %v18641_v10 = vrot.slane %v8101_v48, %v22668_v4  ;;  %v9447_v48 = vrot.slane %v15590_v37, %v22668_v4  ;;  %v15604_v37 = vld [vmem:[#allocation2 + $0x1044] ss:$79 sps:$4 sm:$0xff]   ;;  %v9456_v47 = vcombine.high %v9405_v18, %v9419_v16  ;;  %v15620_v46 = vld [vmem:[#allocation2 + $0x12bc] ss:$79 sps:$4 sm:$0xff]  }
 0x214   :  { %14254 = vmatprep.subr.bf16.mxu0 %v22961_v25  ;;  %v8100_v25 = vcombine.low %v18578_v1, %v18581_v17  ;;  %v22971_v1 = vld [vmem:[#allocation69_spill] sm:$0xff]  ;;  %22973 = vst [vmem:[#allocation20_spill] sm:$0xff] %v18662_v28  ;;  %22974 = vst [vmem:[#allocation55_spill] sm:$0xff] %v18665_v56  ;;  %v22979_v14 = vld [vmem:[#allocation68_spill] sm:$0xff]  ;;  %v8779_v50 = vcombine.low %v8753_v58, %v8767_v33  ;;  %v10098_v0 = vrot.slane %v15594_v40, %v22668_v4 }
 0x215   :  { %22963 = vst [vmem:[#allocation19_spill] sm:$0xff] %v18627_v29  ;;  %22967 = vst [vmem:[#allocation54_spill] sm:$0xff] %v18641_v10  ;;  %v22972_v17 = vcombine.high %v22922_v61, %v22971_v1  ;;  %v15598_v61 = vld [vmem:[#allocation2 + $0x10ba] ss:$79 sps:$4 sm:$0xff]   ;;  %v22976_v1 = vcombine.high %v22924_v20, %v22975_v57  ;;  %v22980_v29 = vcombine.high %v22978_v24, %v22979_v14  ;;  %v15618_v56 = vld [vmem:[#allocation2 + $0x121e] ss:$79 sps:$4 sm:$0xff]  }
 0x216   :  { %22977 = vst [vmem:[#allocation58_spill] sm:$0xff] %v18671_v38  ;;  %v18681_v60 = vrot.slane %v8100_v25, %v22668_v4  ;;  %v8776_v20 = vcombine.high %v8725_v54, %v8739_v36  ;;  %v8775_v57 = vcombine.low %v8725_v54, %v8739_v36  ;;  %v9460_v8 = vcombine.high %v18658_v62, %v9447_v48  ;;  %v15622_v10 = vld [vmem:[#allocation2 + $0x135a] ss:$79 sps:$4 sm:$0xff]  }
 0x217   :  { %13455 = vmatpush1.bf16.xpose.msra.mxu1 %v22970_v15  ;;  %v15600_v15 = vld [vmem:[#allocation2 + $0xf08] ss:$79 sps:$4 sm:$0xff]   ;;  %v10112_v14 = vrot.slane %v15596_v32, %v22668_v4  ;;  %v18694_v54 = vrot.slane %v15602_v53, %v22668_v4  ;;  %v18697_v36 = vrot.slane %v15604_v37, %v22668_v4  ;;  %v9455_v32 = vcombine.low %v9405_v18, %v9419_v16 }
 0x218   :  { %13456 = vmatprep.subr.bf16.mxu1 %v22972_v17  ;;  %v15606_v17 = vld [vmem:[#allocation2 + $0x10e2] ss:$79 sps:$4 sm:$0xff]   ;;  %22981 = vst [vmem:[#allocation61_spill] sm:$0xff] %v18681_v60  ;;  %v18691_v25 = vrot.slane %v15600_v15, %v22668_v4  ;;  %v18706_v40 = vrot.slane %v8776_v20, %v22668_v4  ;;  %v18723_v20 = vrot.slane %v8775_v57, %v22668_v4 }
 0x219   :  { %v18700_v24 = vrot.slane %v15606_v17, %v22668_v4  ;;  %v22986_v15 = vld [vmem:[#allocation28_spill] sm:$0xff]  ;;  %v22987_v53 = vld [vmem:[#allocation41_spill] sm:$0xff]  ;;  %v18717_v17 = vrot.slane %v9456_v47, %v22668_v4  ;;  %v18726_v18 = vrot.slane %v8779_v50, %v22668_v4  ;;  %v9459_v16 = vcombine.low %v18658_v62, %v9447_v48  ;;  %v22997_v48 = vld [vmem:[#allocation42_spill] sm:$0xff] }
 0x21a   :  { %22985 = vst [vmem:[#allocation59_spill] sm:$0xff] %v18706_v40  ;;  %v22988_v12 = vcombine.high %v22986_v15, %v22987_v53  ;;  %22992 = vst [vmem:[#allocation62_spill] sm:$0xff] %v18723_v20  ;;  %v22995_v15 = vld [vmem:[#allocation27_spill] sm:$0xff]  ;;  %v10815_v47 = vcombine.high %v18691_v25, %v18694_v54  ;;  %v18746_v28 = vrot.slane %v9455_v32, %v22668_v4 }
 0x21b   :  { %14255 = vmatpush1.bf16.xpose.msra.mxu0 %v22976_v1  ;;  %v8780_v1 = vcombine.high %v8753_v58, %v8767_v33  ;;  %v22982_v58 = vld [vmem:[#allocation70_spill] sm:$0xff]  ;;  %v22983_v33 = vld [vmem:[#allocation71_spill] sm:$0xff]  ;;  %22990 = vst [vmem:[#allocation22_spill] sm:$0xff] %v18717_v17  ;;  %22993 = vst [vmem:[#allocation64_spill] sm:$0xff] %v18726_v18  ;;  %v18749_v50 = vrot.slane %v9459_v16, %v22668_v4 }
 0x21c   :  { %14256 = vmatprep.subr.bf16.mxu0 %v22980_v29  ;;  %v10126_v29 = vrot.slane %v15598_v61, %v22668_v4  ;;  %v22984_v31 = vcombine.high %v22982_v58, %v22983_v33  ;;  %v18720_v58 = vrot.slane %v9460_v8, %v22668_v4  ;;  %v10135_v33 = vcombine.high %v10084_v3, %v10098_v0  ;;  %v15608_v53 = vld [vmem:[#allocation2 + $0x1158] ss:$79 sps:$4 sm:$0xff]   ;;  %v22998_v61 = vld [vmem:[#allocation48_spill] sm:$0xff] }
 0x21d   :  { %v18714_v37 = vrot.slane %v8780_v1, %v22668_v4  ;;  %v10819_v8 = vcombine.high %v18697_v36, %v18700_v24  ;;  %v15610_v57 = vld [vmem:[#allocation2 + $0x11f6] ss:$79 sps:$4 sm:$0xff]   ;;  %v22999_v38 = vcombine.high %v22997_v48, %v22998_v61  ;;  %23000 = vst [vmem:[#allocation67_spill] sm:$0xff] %v18746_v28  ;;  %23001 = vst [vmem:[#allocation26_spill] sm:$0xff] %v18749_v50 }
 0x21e   :  { %22991 = vst [vmem:[#allocation23_spill] sm:$0xff] %v18720_v58  ;;  %v18752_v62 = vrot.slane %v10135_v33, %v22668_v4  ;;  %v10134_v61 = vcombine.low %v10084_v3, %v10098_v0  ;;  %v18758_v17 = vrot.slane %v10815_v47, %v22668_v4  ;;  %v11443_v60 = vrot.slane %v15608_v53, %v22668_v4  ;;  %v23006_v20 = vld [vmem:[#allocation35_spill] sm:$0xff] }
 0x21f   :  { %13457 = vmatpush1.bf16.xpose.msra.mxu1 %v22984_v31  ;;  %22989 = vst [vmem:[#allocation60_spill] sm:$0xff] %v18714_v37  ;;  %v10139_v31 = vcombine.high %v10112_v14, %v10126_v29  ;;  %v18761_v32 = vrot.slane %v10819_v8, %v22668_v4  ;;  %v23007_v18 = vld [vmem:[#allocation51_spill] sm:$0xff]  ;;  %v11457_v33 = vrot.slane %v15610_v57, %v22668_v4 }
 0x220   :  { %13458 = vmatprep.subr.bf16.mxu1 %v22988_v12  ;;  %v22994_v12 = vld [vmem:[#allocation73_spill] sm:$0xff]  ;;  %23002 = vst [vmem:[#allocation24_spill] sm:$0xff] %v18752_v62  ;;  %23004 = vst [vmem:[#allocation63_spill] sm:$0xff] %v18758_v17  ;;  %v23008_v16 = vcombine.high %v23006_v20, %v23007_v18  ;;  %v12137_v53 = vrot.slane %v15618_v56, %v22668_v4  ;;  %v12151_v20 = vrot.slane %v15620_v46, %v22668_v4  ;;  %v23017_v56 = vld [vmem:[#allocation31_spill] sm:$0xff] }
 0x221   :  { %v22996_v1 = vcombine.high %v22994_v12, %v22995_v15  ;;  %v15612_v12 = vld [vmem:[#allocation2 + $0x1294] ss:$79 sps:$4 sm:$0xff]   ;;  %v18755_v48 = vrot.slane %v10139_v31, %v22668_v4  ;;  %23005 = vst [vmem:[#allocation65_spill] sm:$0xff] %v18761_v32  ;;  %v23010_v31 = vld [vmem:[#allocation44_spill] sm:$0xff]  ;;  %v12165_v18 = vrot.slane %v15622_v10, %v22668_v4  ;;  %v18780_v57 = vrot.slane %v10134_v61, %v22668_v4 }
 0x222   :  { %v15614_v15 = vld [vmem:[#allocation2 + $0x1332] ss:$79 sps:$4 sm:$0xff]   ;;  %v11471_v3 = vrot.slane %v15612_v12, %v22668_v4 }
 0x223   :  { %14257 = vmatpush1.bf16.xpose.msra.mxu0 %v22996_v1  ;;  %v15616_v1 = vld [vmem:[#allocation2 + $0x1180] ss:$79 sps:$4 sm:$0xff]   ;;  %23003 = vst [vmem:[#allocation21_spill] sm:$0xff] %v18755_v48  ;;  %v11485_v0 = vrot.slane %v15614_v15, %v22668_v4  ;;  %23012 = vst [vmem:[#allocation25_spill] sm:$0xff] %v18780_v57  ;;  %v10814_v15 = vcombine.low %v18691_v25, %v18694_v54  ;;  %v23018_v61 = vld [vmem:[#allocation29_spill] sm:$0xff]  ;;  %v11494_v54 = vcombine.high %v11443_v60, %v11457_v33 }
 0x224   :  { %14258 = vmatprep.subr.bf16.mxu0 %v22999_v38  ;;  %v10138_v38 = vcombine.low %v10112_v14, %v10126_v29  ;;  %v23009_v29 = vld [vmem:[#allocation33_spill] sm:$0xff]  ;;  %v12123_v8 = vrot.slane %v15616_v1, %v22668_v4  ;;  %v23015_v1 = vld [vmem:[#allocation40_spill] sm:$0xff]  ;;  %v23022_v10 = vld [vmem:[#allocation30_spill] sm:$0xff] }
 0x225   :  { %v23011_v47 = vcombine.high %v23009_v29, %v23010_v31  ;;  %v23014_v29 = vld [vmem:[#allocation50_spill] sm:$0xff]  ;;  %v11497_v14 = vcombine.low %v11471_v3, %v11485_v0  ;;  %v23023_v46 = vld [vmem:[#allocation32_spill] sm:$0xff]  ;;  %v18816_v57 = vrot.slane %v11494_v54, %v22668_v4 }
 0x226   :  { %v18783_v12 = vrot.slane %v10138_v38, %v22668_v4  ;;  %v23016_v31 = vcombine.high %v23014_v29, %v23015_v1  ;;  %v23019_v38 = vcombine.high %v23017_v56, %v23018_v61  ;;  %v18802_v29 = vrot.slane %v10814_v15, %v22668_v4  ;;  %v23025_v61 = vld [vmem:[#allocation49_spill] sm:$0xff]  ;;  %v23056_v54 = vld [vmem:[#allocation54_spill] sm:$0xff] }
 0x227   :  { %13459 = vmatpush1.bf16.xpose.msra.mxu1 %v23008_v16  ;;  %v10818_v16 = vcombine.low %v18697_v36, %v18700_v24  ;;  %v12174_v36 = vcombine.high %v12123_v8, %v12137_v53  ;;  %v12178_v24 = vcombine.high %v12151_v20, %v12165_v18  ;;  %v23024_v17 = vcombine.high %v23022_v10, %v23023_v46  ;;  %v23034_v46 = vld [vmem:[#allocation34_spill] sm:$0xff]  ;;  %v23035_v10 = vld [vmem:[#allocation36_spill] sm:$0xff] }
 0x228   :  { %13460 = vmatprep.subr.bf16.mxu1 %v23011_v47  ;;  %23013 = vst [vmem:[#allocation69_spill] sm:$0xff] %v18783_v12  ;;  %v11498_v47 = vcombine.high %v11471_v3, %v11485_v0  ;;  %23020 = vst [vmem:[#allocation66_spill] sm:$0xff] %v18802_v29  ;;  %v18831_v3 = vrot.slane %v11497_v14, %v22668_v4  ;;  %v12173_v0 = vcombine.low %v12123_v8, %v12137_v53 }
 0x229   :  { %v18805_v1 = vrot.slane %v10818_v16, %v22668_v4  ;;  %23028 = vst [vmem:[#allocation68_spill] sm:$0xff] %v18816_v57  ;;  %v12177_v16 = vcombine.low %v12151_v20, %v12165_v18  ;;  %v2048_v8 = vcombine.low %v18365_v39, %v18368_v23  ;;  %v23042_v18 = vld [vmem:[#allocation52_spill] sm:$0xff] }
 0x22a   :  { %v18819_v15 = vrot.slane %v11498_v47, %v22668_v4  ;;  %23033 = vst [vmem:[#allocation73_spill] sm:$0xff] %v18831_v3  ;;  %v18848_v53 = vrot.slane %v12173_v0, %v22668_v4  ;;  %v23055_v47 = vld [vmem:[#allocation13_spill] sm:$0xff] }
 0x22b   :  { %14259 = vmatpush1.bf16.xpose.msra.mxu0 %v23016_v31  ;;  %23021 = vst [vmem:[#allocation72_spill] sm:$0xff] %v18805_v1  ;;  %v11493_v31 = vcombine.low %v11443_v60, %v11457_v33  ;;  %v18822_v60 = vrot.slane %v12174_v36, %v22668_v4  ;;  %v18825_v33 = vrot.slane %v12178_v24, %v22668_v4  ;;  %v23037_v36 = vld [vmem:[#allocation15_spill] sm:$0xff]  ;;  %v23038_v24 = vld [vmem:[#allocation18_spill] sm:$0xff] }
 0x22c   :  { %14260 = vmatprep.subr.bf16.mxu0 %v23019_v38  ;;  %v23026_v38 = vld [vmem:[#allocation17_spill] sm:$0xff]  ;;  %23029 = vst [vmem:[#allocation70_spill] sm:$0xff] %v18819_v15  ;;  %23040 = vst [vmem:[#allocation27_spill] sm:$0xff] %v18848_v53  ;;  %v18851_v20 = vrot.slane %v12177_v16, %v22668_v4 }
 0x22d   :  { %v23027_v25 = vcombine.high %v23025_v61, %v23026_v38  ;;  %23030 = vst [vmem:[#allocation71_spill] sm:$0xff] %v18822_v60  ;;  %23031 = vst [vmem:[#allocation28_spill] sm:$0xff] %v18825_v33  ;;  %v23039_v61 = vcombine.high %v23037_v36, %v23038_v24  ;;  %v23045_v36 = vld [vmem:[#allocation11_spill] sm:$0xff]  ;;  %v23046_v24 = vld [vmem:[#allocation37_spill] sm:$0xff] }
 0x22e   :  { %23041 = vst [vmem:[#allocation42_spill] sm:$0xff] %v18851_v20  ;;  %v23047_v0 = vcombine.high %v23045_v36, %v23046_v24  ;;  %v2724_v36 = vcombine.low %v18410_v27, %v18420_v34  ;;  %v4087_v24 = vcombine.low %v18470_v5, %v18473_v9 }
 0x22f   :  { %13461 = vmatpush1.bf16.xpose.msra.mxu1 %v23024_v17  ;;  %v18828_v17 = vrot.slane %v11493_v31, %v22668_v4  ;;  %v23043_v31 = vld [vmem:[#allocation16_spill] sm:$0xff] }
 0x230   :  { %13462 = vmatprep.subr.bf16.mxu1 %v23027_v25  ;;  %v23036_v25 = vcombine.high %v23034_v46, %v23035_v10  ;;  %v23044_v38 = vcombine.high %v23042_v18, %v23043_v31  ;;  %v2728_v46 = vcombine.low %v18377_v22, %v18380_v19  ;;  %v2044_v18 = vcombine.low %v18404_v41, %v18407_v43  ;;  %v23049_v10 = vld [vmem:[#allocation39_spill] sm:$0xff] }
 0x231   :  { %23032 = vst [vmem:[#allocation41_spill] sm:$0xff] %v18828_v17  ;;  %v14861_v14 = vcombine.low %v23049_v10, %v23049_v10  ;;  %v3403_v10 = vcombine.low %v18462_v21, %v18483_v7 }
 0x233   :  { %14261 = vmatpush1.bf16.xpose.msra.mxu0 %v23036_v25  ;;  %v18860_v25 = vld [vmem:[#allocation5 + $0x40] sm:$0x77] }
 0x234   :  { %14262 = vmatprep.subr.bf16.mxu0 %v23039_v61  ;;  %v23048_v61 = vld [vmem:[#allocation38_spill] sm:$0xff]  ;;  %v14824_v31 = vcombine.high %v18860_v25, %v18860_v25 }
 0x235   :  { %v14821_v16 = vcombine.low %v23048_v61, %v23048_v61  ;;  %v4083_v61 = vcombine.low %v18506_v6, %v18509_v2 }
 0x237   :  { %13463 = vmatpush1.bf16.xpose.msra.mxu1 %v23044_v38  ;;  %v18871_v38 = vld [vmem:[#allocation5 + $0xe0] sm:$0x77] }
 0x238   :  { %13488 = vmatprep.subr.bf16.mxu1 %v2048_v8  ;;  %v3407_v8 = vcombine.low %v18445_v51, %v18459_v49 }
 0x23b   :  { %14263 = vmatpush1.bf16.xpose.msra.mxu0 %v23047_v0  ;;  %v4766_v0 = vcombine.low %v18514_v11, %v18523_v35 }
 0x23c   :  { %14288 = vmatprep.subr.bf16.mxu0 %v2728_v46  ;;  %v14864_v46 = vcombine.high %v18871_v38, %v18871_v38 }
 0x23e   :  { %13481 = vmatmul.mubr.bf16.vlgmr.msra.gmra.mrb[0].mxu1 %v14821_v16  ;;  %v5446_v16 = vcombine.low %v18526_v13, %v18529_v26 }
 0x23f   :  { %13489 = vmatpush1.bf16.xpose.msra.mxu1 %v2044_v18  ;;  %13520 = vmatprep.mubr.bf16.mxu1 %v14824_v31  ;;  %v6125_v18 = vcombine.low %v18587_v45, %v18595_v42  ;;  %v5442_v31 = vcombine.low %v18557_v52, %v18567_v44  ;;  %v23057_v42 = vld [vmem:[#allocation53_spill] sm:$0xff] }
 0x240   :  { %13490 = vmatprep.subr.bf16.mxu1 %v3407_v8  ;;  %v23050_v8 = vld [vmem:[#allocation43_spill] sm:$0xff]  ;;  %v8164_v44 = vcombine.low %v23057_v42, %v23056_v54 }
 0x242   :  { %14281 = vmatmul.mubr.bf16.vlgmr.msra.gmra.mrb[0].mxu0 %v14861_v14  ;;  %v4762_v14 = vcombine.low %v18548_v55, %v18551_v30 }
 0x243   :  { %14289 = vmatpush1.bf16.xpose.msra.mxu0 %v2724_v36  ;;  %14320 = vmatprep.mubr.bf16.mxu0 %v14864_v46  ;;  %v6805_v36 = vcombine.low %v23050_v8, %v18601_v59  ;;  %v23051_v46 = vld [vmem:[#allocation14_spill] sm:$0xff] }
 0x244   :  { %14290 = vmatprep.subr.bf16.mxu0 %v4087_v24  ;;  %v23052_v24 = vld [vmem:[#allocation46_spill] sm:$0xff] }
 0x247   :  { %13491 = vmatpush1.bf16.xpose.msra.mxu1 %v3403_v10  ;;  %v6121_v10 = vcombine.low %v23052_v24, %v23051_v46  ;;  %v23060_v46 = vld [vmem:[#allocation61_spill] sm:$0xff]  ;;  %v23061_v24 = vld [vmem:[#allocation58_spill] sm:$0xff] }
 0x248   :  { %13492 = vmatprep.subr.bf16.mxu1 %v4766_v0  ;;  %v23053_v0 = vld [vmem:[#allocation56_spill] sm:$0xff]  ;;  %v8160_v59 = vcombine.low %v23061_v24, %v23060_v46 }
 0x249   :  { %v15631_v24 = vld [vmem:[#allocation2 + $0xb2] ss:$79 sps:$4 sm:$0xff]  }
 0x24b   :  { %14291 = vmatpush1.bf16.xpose.msra.mxu0 %v4083_v61  ;;  %v7484_v61 = vcombine.low %v23053_v0, %v18635_v63  ;;  %v23062_v63 = vld [vmem:[#allocation22_spill] sm:$0xff] }
 0x24c   :  { %14292 = vmatprep.subr.bf16.mxu0 %v5446_v16  ;;  %v23054_v16 = vld [vmem:[#allocation19_spill] sm:$0xff] }
 0x24d   :  { %v6801_v56 = vcombine.low %v23055_v47, %v23054_v16  ;;  %v9523_v16 = vcombine.low %v23062_v63, %v18720_v58  ;;  %v15632_v58 = vld [vmem:[#allocation2 + $0x150] ss:$79 sps:$4 sm:$0xff]  }
 0x24f   :  { %13493 = vmatpush1.bf16.xpose.msra.mxu1 %v4762_v14  ;;  %v23058_v14 = vld [vmem:[#allocation55_spill] sm:$0xff] }
 0x250   :  { %13494 = vmatprep.subr.bf16.mxu1 %v6125_v18  ;;  %v23059_v18 = vld [vmem:[#allocation20_spill] sm:$0xff] }
 0x253   :  { %14293 = vmatpush1.bf16.xpose.msra.mxu0 %v5442_v31  ;;  %v7480_v31 = vcombine.low %v23059_v18, %v23058_v14  ;;  %v9519_v14 = vcombine.low %v18746_v28, %v18749_v50 }
 0x254   :  { %14294 = vmatprep.subr.bf16.mxu0 %v6805_v36  ;;  %v8843_v36 = vcombine.low %v18706_v40, %v18714_v37  ;;  %v23065_v37 = vld [vmem:[#allocation63_spill] sm:$0xff] }
 0x255   :  { %v10882_v46 = vcombine.low %v23065_v37, %v18761_v32  ;;  %v1965_v32 = vrot.slane %v15632_v58, %v22668_v4  ;;  %v18953_v40 = vld [vmem:[#allocation5 + $0x48] sm:$0x77] }
 0x256   :  { %23067 = vst [vmem:[#allocation48_spill] sm:$0xff] %v18953_v40 }
 0x257   :  { %13495 = vmatpush1.bf16.xpose.msra.mxu1 %v6121_v10  ;;  %v23063_v10 = vld [vmem:[#allocation64_spill] sm:$0xff] }
 0x258   :  { %13496 = vmatprep.subr.bf16.mxu1 %v7484_v61  ;;  %v23064_v61 = vld [vmem:[#allocation62_spill] sm:$0xff] }
 0x25b   :  { %14295 = vmatpush1.bf16.xpose.msra.mxu0 %v6801_v56  ;;  %v8839_v56 = vcombine.low %v23064_v61, %v23063_v10  ;;  %v15637_v61 = vld [vmem:[#allocation2 + $0xda] ss:$79 sps:$4 sm:$0xff]  }
 0x25c   :  { %14296 = vmatprep.subr.bf16.mxu0 %v8164_v44  ;;  %v10202_v44 = vcombine.low %v18752_v62, %v18755_v48  ;;  %v15638_v48 = vld [vmem:[#allocation2 + $0x178] ss:$79 sps:$4 sm:$0xff]  }
 0x25d   :  { %v15639_v62 = vld [vmem:[#allocation2 + $0x216] ss:$79 sps:$4 sm:$0xff]  }
 0x25f   :  { %13497 = vmatpush1.bf16.xpose.msra.mxu1 %v7480_v31  ;;  %v15630_v31 = vld [vmem:[#allocation2 + $0x14] ss:$79 sps:$4 sm:$0xff]  }
 0x260   :  { %13498 = vmatprep.subr.bf16.mxu1 %v8843_v36  ;;  %v15633_v36 = vld [vmem:[#allocation2 + $0x1ee] ss:$79 sps:$4 sm:$0xff]   ;;  %v1937_v50 = vrot.slane %v15630_v31, %v22668_v4  ;;  %v2659_v31 = vrot.slane %v15639_v62, %v22668_v4  ;;  %v14823_v62 = vcombine.low %v18860_v25, %v18860_v25 }
 0x261   :  { %v1979_v37 = vrot.slane %v15633_v36, %v22668_v4  ;;  %v15640_v36 = vld [vmem:[#allocation2 + $0x28c] ss:$79 sps:$4 sm:$0xff]  }
 0x262   :  { %v3296_v18 = vrot.slane %v15640_v36, %v22668_v4  ;;  %v15653_v36 = vld [vmem:[#allocation2 + $0x5ca] ss:$79 sps:$4 sm:$0xff]  }
 0x263   :  { %14297 = vmatpush1.bf16.xpose.msra.mxu0 %v8160_v59  ;;  %v15636_v59 = vld [vmem:[#allocation2 + $0x3c] ss:$79 sps:$4 sm:$0xff]   ;;  %v1987_v58 = vcombine.high %v1965_v32, %v1979_v37  ;;  %v1986_v63 = vcombine.low %v1965_v32, %v1979_v37  ;;  %v23069_v32 = vcombine.high %v18365_v39, %v18368_v23 }
 0x264   :  { %14298 = vmatprep.subr.bf16.mxu0 %v9523_v16  ;;  %v23066_v16 = vld [vmem:[#allocation25_spill] sm:$0xff] }
 0x265   :  { %v10198_v10 = vcombine.low %v23066_v16, %v18783_v12  ;;  %v2617_v12 = vrot.slane %v15636_v59, %v22668_v4  ;;  %v2631_v16 = vrot.slane %v15637_v61, %v22668_v4  ;;  %v15643_v59 = vld [vmem:[#allocation2 + $0x466] ss:$79 sps:$4 sm:$0xff]  }
 0x266   :  { %v3338_v37 = vrot.slane %v15643_v59, %v22668_v4 }
 0x267   :  { %13499 = vmatpush1.bf16.xpose.msra.mxu1 %v8839_v56  ;;  %v11561_v56 = vcombine.low %v18816_v57, %v18819_v15  ;;  %v2645_v15 = vrot.slane %v15638_v48, %v22668_v4  ;;  %v15641_v57 = vld [vmem:[#allocation2 + $0x32a] ss:$79 sps:$4 sm:$0xff]   ;;  %v12237_v48 = vcombine.low %v18848_v53, %v18851_v20  ;;  %v2662_v53 = vcombine.low %v2617_v12, %v2631_v16 }
 0x268   :  { %13500 = vmatprep.subr.bf16.mxu1 %v10202_v44  ;;  %v1951_v44 = vrot.slane %v15631_v24, %v22668_v4  ;;  %v18955_v20 = vld [vmem:[#allocation5 + $0xe8] sm:$0x77]  ;;  %v3310_v61 = vrot.slane %v15641_v57, %v22668_v4 }
 0x269   :  { %23068 = vst [vmem:[#allocation35_spill] sm:$0xff] %v18955_v20  ;;  %v2666_v25 = vcombine.low %v2645_v15, %v2659_v31  ;;  %v14866_v39 = vcombine.high %v18955_v20, %v18955_v20 }
 0x26a   :  { %v1983_v24 = vcombine.high %v1937_v50, %v1951_v44  ;;  %v3342_v59 = vcombine.high %v3296_v18, %v3310_v61  ;;  %v3341_v20 = vcombine.low %v3296_v18, %v3310_v61  ;;  %v19025_v61 = vrot.slane %v15653_v36, %v22668_v4 }
 0x26b   :  { %14299 = vmatpush1.bf16.xpose.msra.mxu0 %v9519_v14  ;;  %v12241_v14 = vcombine.low %v18822_v60, %v18825_v33  ;;  %v2663_v33 = vcombine.high %v2617_v12, %v2631_v16  ;;  %v15642_v60 = vld [vmem:[#allocation2 + $0x3c8] ss:$79 sps:$4 sm:$0xff]   ;;  %v15650_v16 = vld [vmem:[#allocation2 + $0x640] ss:$79 sps:$4 sm:$0xff]  }
 0x26c   :  { %14300 = vmatprep.subr.bf16.mxu0 %v10882_v46  ;;  %v10878_v46 = vcombine.low %v18802_v29, %v18805_v1  ;;  %v11557_v1 = vcombine.low %v18828_v17, %v18831_v3  ;;  %v15644_v29 = vld [vmem:[#allocation2 + $0x2b4] ss:$79 sps:$4 sm:$0xff]   ;;  %v18948_v28 = vrot.slane %v1983_v24, %v22668_v4  ;;  %v18951_v3 = vrot.slane %v1987_v58, %v22668_v4  ;;  %v15652_v58 = vld [vmem:[#allocation2 + $0x52c] ss:$79 sps:$4 sm:$0xff]  }
 0x26d   :  { %v1982_v17 = vcombine.low %v1937_v50, %v1951_v44  ;;  %v18960_v54 = vrot.slane %v2663_v33, %v22668_v4  ;;  %v3324_v50 = vrot.slane %v15642_v60, %v22668_v4  ;;  %v18971_v12 = vrot.slane %v15644_v29, %v22668_v4  ;;  %v15648_v33 = vld [vmem:[#allocation2 + $0x504] ss:$79 sps:$4 sm:$0xff]  }
 0x26e   :  { %v15649_v60 = vld [vmem:[#allocation2 + $0x5a2] ss:$79 sps:$4 sm:$0xff]   ;;  %v14826_v44 = vcombine.high %v18953_v40, %v18953_v40  ;;  %v18990_v29 = vrot.slane %v1986_v63, %v22668_v4  ;;  %v23070_v63 = vcombine.high %v18377_v22, %v18380_v19  ;;  %v19016_v22 = vrot.slane %v15650_v16, %v22668_v4 }
 0x26f   :  { %13501 = vmatpush1.bf16.xpose.msra.mxu1 %v10198_v10  ;;  %v2667_v10 = vcombine.high %v2645_v15, %v2659_v31  ;;  %v18987_v23 = vrot.slane %v1982_v17, %v22668_v4  ;;  %v15651_v31 = vld [vmem:[#allocation2 + $0x6de] ss:$79 sps:$4 sm:$0xff]   ;;  %v19013_v17 = vrot.slane %v15649_v60, %v22668_v4  ;;  %v19022_v18 = vrot.slane %v15652_v58, %v22668_v4 }
 0x270   :  { %13502 = vmatprep.subr.bf16.mxu1 %v11561_v56  ;;  %v15645_v56 = vld [vmem:[#allocation2 + $0x352] ss:$79 sps:$4 sm:$0xff]   ;;  %v19019_v19 = vrot.slane %v15651_v31, %v22668_v4  ;;  %v23071_v60 = vcombine.high %v18404_v41, %v18407_v43  ;;  %v23072_v58 = vcombine.high %v18445_v51, %v18459_v49 }
 0x271   :  { %v18963_v24 = vrot.slane %v2667_v10, %v22668_v4  ;;  %v18974_v57 = vrot.slane %v15645_v56, %v22668_v4  ;;  %v18993_v10 = vrot.slane %v2662_v53, %v22668_v4  ;;  %v15654_v56 = vld [vmem:[#allocation2 + $0x668] ss:$79 sps:$4 sm:$0xff]   ;;  %v3345_v53 = vcombine.low %v3324_v50, %v3338_v37 }
 0x272   :  { %v4705_v49 = vcombine.high %v19016_v22, %v19019_v19 }
 0x273   :  { %14301 = vmatpush1.bf16.xpose.msra.mxu0 %v10878_v46  ;;  %v15646_v46 = vld [vmem:[#allocation2 + $0x3f0] ss:$79 sps:$4 sm:$0xff]   ;;  %v4022_v40 = vcombine.high %v18971_v12, %v18974_v57  ;;  %v4021_v31 = vcombine.low %v18971_v12, %v18974_v57  ;;  %v19066_v12 = vrot.slane %v3345_v53, %v22668_v4 }
 0x274   :  { %14302 = vmatprep.subr.bf16.mxu0 %v12241_v14  ;;  %v15647_v14 = vld [vmem:[#allocation2 + $0x48e] ss:$79 sps:$4 sm:$0xff]  }
 0x275   :  { %v18980_v15 = vrot.slane %v15647_v14, %v22668_v4  ;;  %v19010_v14 = vrot.slane %v15648_v33, %v22668_v4  ;;  %v19053_v36 = vrot.slane %v4022_v40, %v22668_v4  ;;  %v23074_v40 = vcombine.high %v18410_v27, %v18420_v34  ;;  %v15656_v57 = vld [vmem:[#allocation2 + $0x77c] ss:$79 sps:$4 sm:$0xff]   ;;  %v15660_v27 = vld [vmem:[#allocation2 + $0x7a4] ss:$79 sps:$4 sm:$0xff]  }
 0x276   :  { %v23100_v33 = vld [vmem:[#allocation14_spill] sm:$0xff] }
 0x277   :  { %13503 = vmatpush1.bf16.xpose.msra.mxu1 %v11557_v1  ;;  %v18977_v1 = vrot.slane %v15646_v46, %v22668_v4  ;;  %v15655_v46 = vld [vmem:[#allocation2 + $0x706] ss:$79 sps:$4 sm:$0xff]   ;;  %v4701_v51 = vcombine.high %v19010_v14, %v19013_v17  ;;  %v4700_v53 = vcombine.low %v19010_v14, %v19013_v17 }
 0x278   :  { %13528 = vmatprep.subr.bf16.mxu1 %v23069_v32  ;;  %v19003_v32 = vrot.slane %v2666_v25, %v22668_v4  ;;  %v19028_v25 = vrot.slane %v3342_v59, %v22668_v4 }
 0x279   :  { %v4026_v42 = vcombine.high %v18977_v1, %v18980_v15  ;;  %v4025_v43 = vcombine.low %v18977_v1, %v18980_v15  ;;  %v15657_v1 = vld [vmem:[#allocation2 + $0x81a] ss:$79 sps:$4 sm:$0xff]  }
 0x27b   :  { %14303 = vmatpush1.bf16.xpose.msra.mxu0 %v12237_v48  ;;  %v3346_v48 = vcombine.high %v3324_v50, %v3338_v37  ;;  %v19031_v50 = vrot.slane %v15654_v56, %v22668_v4  ;;  %v19034_v37 = vrot.slane %v15655_v46, %v22668_v4  ;;  %v19056_v41 = vrot.slane %v4026_v42, %v22668_v4  ;;  %v15658_v46 = vld [vmem:[#allocation2 + $0x8b8] ss:$79 sps:$4 sm:$0xff]  }
 0x27c   :  { %14328 = vmatprep.subr.bf16.mxu0 %v23070_v63  ;;  %v5381_v42 = vcombine.high %v19022_v18, %v19025_v61  ;;  %v23075_v56 = vcombine.high %v18470_v5, %v18473_v9  ;;  %v15659_v63 = vld [vmem:[#allocation2 + $0x956] ss:$79 sps:$4 sm:$0xff]   ;;  %v19097_v5 = vrot.slane %v4701_v51, %v22668_v4  ;;  %v4704_v9 = vcombine.low %v19016_v22, %v19019_v19 }
 0x27d   :  { %v19042_v16 = vrot.slane %v3346_v48, %v22668_v4  ;;  %v19092_v48 = vrot.slane %v4025_v43, %v22668_v4  ;;  %v19106_v43 = vrot.slane %v4705_v49, %v22668_v4  ;;  %v6014_v51 = vrot.slane %v15656_v57, %v22668_v4  ;;  %v15665_v57 = vld [vmem:[#allocation2 + $0xa92] ss:$79 sps:$4 sm:$0xff]  }
 0x27e   :  { %13521 = vmatmul.mubr.bf16.vlgmr.msra.gmra.mrb[0].mxu1 %v14823_v62  ;;  %v19045_v62 = vrot.slane %v3341_v20, %v22668_v4  ;;  %v19109_v14 = vrot.slane %v5381_v42, %v22668_v4  ;;  %v23076_v22 = vcombine.high %v18462_v21, %v18483_v7  ;;  %v6028_v19 = vrot.slane %v15657_v1, %v22668_v4 }
 0x27f   :  { %13529 = vmatpush1.bf16.xpose.msra.mxu1 %v23071_v60  ;;  %13560 = vmatprep.mubr.bf16.mxu1 %v14826_v44  ;;  %v23073_v44 = vcombine.low %v18871_v38, %v18871_v38  ;;  %v5385_v38 = vcombine.high %v19031_v50, %v19034_v37  ;;  %v15661_v60 = vld [vmem:[#allocation2 + $0x842] ss:$79 sps:$4 sm:$0xff]   ;;  %v6694_v49 = vrot.slane %v15660_v27, %v22668_v4 }
 0x280   :  { %13530 = vmatprep.subr.bf16.mxu1 %v23072_v58  ;;  %v15662_v58 = vld [vmem:[#allocation2 + $0x8e0] ss:$79 sps:$4 sm:$0xff]   ;;  %v6708_v42 = vrot.slane %v15661_v60, %v22668_v4  ;;  %v19131_v1 = vrot.slane %v4700_v53, %v22668_v4  ;;  %v15669_v60 = vld [vmem:[#allocation2 + $0xaba] ss:$79 sps:$4 sm:$0xff]  }
 0x281   :  { %v19112_v17 = vrot.slane %v5385_v38, %v22668_v4  ;;  %v6722_v21 = vrot.slane %v15662_v58, %v22668_v4  ;;  %v15664_v38 = vld [vmem:[#allocation2 + $0x9f4] ss:$79 sps:$4 sm:$0xff]   ;;  %v15670_v58 = vld [vmem:[#allocation2 + $0xb58] ss:$79 sps:$4 sm:$0xff]  }
 0x282   :  { %14321 = vmatmul.mubr.bf16.vlgmr.msra.gmra.mrb[0].mxu0 %v23073_v44  ;;  %v15663_v44 = vld [vmem:[#allocation2 + $0x97e] ss:$79 sps:$4 sm:$0xff]   ;;  %v7373_v53 = vrot.slane %v15664_v38, %v22668_v4  ;;  %v6739_v38 = vcombine.low %v6694_v49, %v6708_v42 }
 0x283   :  { %14329 = vmatpush1.bf16.xpose.msra.mxu0 %v23074_v40  ;;  %14360 = vmatprep.mubr.bf16.mxu0 %v14866_v39  ;;  %v19089_v39 = vrot.slane %v4021_v31, %v22668_v4  ;;  %v5380_v40 = vcombine.low %v19022_v18, %v19025_v61  ;;  %v5384_v31 = vcombine.low %v19031_v50, %v19034_v37 }
 0x284   :  { %14330 = vmatprep.subr.bf16.mxu0 %v23075_v56  ;;  %v6042_v18 = vrot.slane %v15658_v46, %v22668_v4  ;;  %v6056_v61 = vrot.slane %v15659_v63, %v22668_v4  ;;  %v23077_v37 = vcombine.high %v18514_v11, %v18523_v35  ;;  %v6736_v7 = vrot.slane %v15663_v44, %v22668_v4  ;;  %v15666_v46 = vld [vmem:[#allocation2 + $0xb30] ss:$79 sps:$4 sm:$0xff]   ;;  %v15671_v44 = vld [vmem:[#allocation2 + $0xbf6] ss:$79 sps:$4 sm:$0xff]  }
 0x285   :  { %v19134_v56 = vrot.slane %v4704_v9, %v22668_v4  ;;  %v15667_v63 = vld [vmem:[#allocation2 + $0xbce] ss:$79 sps:$4 sm:$0xff]   ;;  %v23078_v35 = vcombine.high %v18506_v6, %v18509_v2  ;;  %v19140_v27 = vrot.slane %v5380_v40, %v22668_v4  ;;  %v6060_v6 = vcombine.high %v6014_v51, %v6028_v19 }
 0x286   :  { %v15668_v11 = vld [vmem:[#allocation2 + $0xa1c] ss:$79 sps:$4 sm:$0xff]   ;;  %v6059_v2 = vcombine.low %v6014_v51, %v6028_v19  ;;  %v6740_v50 = vcombine.high %v6694_v49, %v6708_v42  ;;  %v6744_v34 = vcombine.high %v6722_v21, %v6736_v7  ;;  %v6063_v59 = vcombine.low %v6042_v18, %v6056_v61 }
 0x287   :  { %13531 = vmatpush1.bf16.xpose.msra.mxu1 %v23076_v22  ;;  %v23079_v22 = vcombine.high %v18526_v13, %v18529_v26  ;;  %v7387_v9 = vrot.slane %v15665_v57, %v22668_v4  ;;  %v7401_v20 = vrot.slane %v15666_v46, %v22668_v4  ;;  %v7415_v13 = vrot.slane %v15667_v63, %v22668_v4  ;;  %v23082_v46 = vld [vmem:[#allocation45_spill] sm:$0xff]  ;;  %v15678_v40 = vld [vmem:[#allocation2 + $0xdd0] ss:$79 sps:$4 sm:$0xff]  }
 0x288   :  { %13532 = vmatprep.subr.bf16.mxu1 %v23077_v37  ;;  %v19150_v37 = vrot.slane %v5384_v31, %v22668_v4  ;;  %v8053_v26 = vrot.slane %v15668_v11, %v22668_v4  ;;  %v8067_v31 = vrot.slane %v15669_v60, %v22668_v4  ;;  %v19161_v51 = vrot.slane %v15670_v58, %v22668_v4 }
 0x289   :  { %v19164_v19 = vrot.slane %v15671_v44, %v22668_v4  ;;  %v23083_v63 = vcombine.high %v18587_v45, %v23082_v46  ;;  %v19181_v60 = vrot.slane %v6740_v50, %v22668_v4  ;;  %v19187_v58 = vrot.slane %v6059_v2, %v22668_v4  ;;  %v23089_v45 = vld [vmem:[#allocation47_spill] sm:$0xff] }
 0x28a   :  { %23080 = vst [vmem:[#allocation51_spill] sm:$0xff] %v19150_v37  ;;  %v19190_v49 = vrot.slane %v6063_v59, %v22668_v4  ;;  %v7419_v42 = vcombine.high %v7373_v53, %v7387_v9  ;;  %v7423_v44 = vcombine.high %v7401_v20, %v7415_v13  ;;  %v23091_v59 = vld [vmem:[#allocation12_spill] sm:$0xff]  ;;  %v15675_v46 = vld [vmem:[#allocation2 + $0xe46] ss:$79 sps:$4 sm:$0xff]   ;;  %v7418_v57 = vcombine.low %v7373_v53, %v7387_v9  ;;  %v23099_v9 = vld [vmem:[#allocation46_spill] sm:$0xff] }
 0x28b   :  { %14331 = vmatpush1.bf16.xpose.msra.mxu0 %v23078_v35  ;;  %v6064_v35 = vcombine.high %v6042_v18, %v6056_v61  ;;  %v23081_v18 = vcombine.high %v18548_v55, %v18551_v30  ;;  %v19170_v61 = vrot.slane %v6060_v6, %v22668_v4  ;;  %23085 = vst [vmem:[#allocation44_spill] sm:$0xff] %v19181_v60  ;;  %23087 = vst [vmem:[#allocation40_spill] sm:$0xff] %v19187_v58 }
 0x28c   :  { %14332 = vmatprep.subr.bf16.mxu0 %v23079_v22  ;;  %v19184_v55 = vrot.slane %v6744_v34, %v22668_v4  ;;  %v6743_v30 = vcombine.low %v6722_v21, %v6736_v7  ;;  %23088 = vst [vmem:[#allocation31_spill] sm:$0xff] %v19190_v49  ;;  %v23090_v22 = vcombine.high %v18557_v52, %v23089_v45  ;;  %v15673_v34 = vld [vmem:[#allocation2 + $0xd0a] ss:$79 sps:$4 sm:$0xff]   ;;  %v15676_v52 = vld [vmem:[#allocation2 + $0xc94] ss:$79 sps:$4 sm:$0xff]  }
 0x28d   :  { %v19178_v11 = vrot.slane %v6064_v35, %v22668_v4  ;;  %v8099_v6 = vcombine.high %v8053_v26, %v8067_v31  ;;  %v8103_v50 = vcombine.high %v19161_v51, %v19164_v19  ;;  %v15672_v35 = vld [vmem:[#allocation2 + $0xc6c] ss:$79 sps:$4 sm:$0xff]   ;;  %v23092_v2 = vcombine.high %v23050_v8, %v23091_v59  ;;  %v15677_v21 = vld [vmem:[#allocation2 + $0xd32] ss:$79 sps:$4 sm:$0xff]  }
 0x28e   :  { %23086 = vst [vmem:[#allocation50_spill] sm:$0xff] %v19184_v55  ;;  %v19207_v45 = vrot.slane %v6739_v38, %v22668_v4  ;;  %v15679_v7 = vld [vmem:[#allocation2 + $0xe6e] ss:$79 sps:$4 sm:$0xff]   ;;  %v19213_v15 = vrot.slane %v7419_v42, %v22668_v4  ;;  %v7422_v8 = vcombine.low %v7401_v20, %v7415_v13  ;;  %v8098_v59 = vcombine.low %v8053_v26, %v8067_v31  ;;  %v23109_v31 = vld [vmem:[#allocation53_spill] sm:$0xff] }
 0x28f   :  { %13533 = vmatpush1.bf16.xpose.msra.mxu1 %v23081_v18  ;;  %23084 = vst [vmem:[#allocation33_spill] sm:$0xff] %v19178_v11  ;;  %v15674_v18 = vld [vmem:[#allocation2 + $0xda8] ss:$79 sps:$4 sm:$0xff]   ;;  %v19221_v38 = vrot.slane %v8099_v6, %v22668_v4  ;;  %v8732_v53 = vrot.slane %v15672_v35, %v22668_v4  ;;  %v23101_v42 = vcombine.high %v23099_v9, %v23100_v33  ;;  %v15680_v35 = vld [vmem:[#allocation2 + $0xee4] ss:$79 sps:$4 sm:$0xff]  }
 0x290   :  { %13534 = vmatprep.subr.bf16.mxu1 %v23083_v63  ;;  %23093 = vst [vmem:[#allocation29_spill] sm:$0xff] %v19207_v45  ;;  %23095 = vst [vmem:[#allocation32_spill] sm:$0xff] %v19213_v15  ;;  %v19218_v63 = vrot.slane %v7423_v44, %v22668_v4  ;;  %v8746_v20 = vrot.slane %v15673_v34, %v22668_v4  ;;  %v8760_v13 = vrot.slane %v15674_v18, %v22668_v4  ;;  %v15681_v34 = vld [vmem:[#allocation2 + $0xf82] ss:$79 sps:$4 sm:$0xff]  }
 0x291   :  { %23097 = vst [vmem:[#allocation17_spill] sm:$0xff] %v19221_v38  ;;  %v8774_v26 = vrot.slane %v15675_v46, %v22668_v4  ;;  %v9412_v44 = vrot.slane %v15676_v52, %v22668_v4  ;;  %v9426_v6 = vrot.slane %v15677_v21, %v22668_v4  ;;  %v19241_v33 = vrot.slane %v15678_v40, %v22668_v4  ;;  %v15682_v9 = vld [vmem:[#allocation2 + $0x1020] ss:$79 sps:$4 sm:$0xff]   ;;  %v23106_v52 = vld [vmem:[#allocation19_spill] sm:$0xff] }
 0x292   :  { %23096 = vst [vmem:[#allocation49_spill] sm:$0xff] %v19218_v63  ;;  %v19245_v18 = vrot.slane %v7418_v57, %v22668_v4  ;;  %v19248_v46 = vrot.slane %v7422_v8, %v22668_v4  ;;  %v19254_v40 = vrot.slane %v8098_v59, %v22668_v4  ;;  %v15685_v21 = vld [vmem:[#allocation2 + $0xfaa] ss:$79 sps:$4 sm:$0xff]   ;;  %v10091_v15 = vrot.slane %v15680_v35, %v22668_v4  ;;  %v15694_v38 = vld [vmem:[#allocation2 + $0x12c0] ss:$79 sps:$4 sm:$0xff]  }
 0x293   :  { %14333 = vmatpush1.bf16.xpose.msra.mxu0 %v23090_v22  ;;  %v19210_v22 = vrot.slane %v6743_v30, %v22668_v4  ;;  %v19224_v30 = vrot.slane %v8103_v50, %v22668_v4  ;;  %v9454_v50 = vrot.slane %v15679_v7, %v22668_v4  ;;  %v15686_v7 = vld [vmem:[#allocation2 + $0x1048] ss:$79 sps:$4 sm:$0xff]   ;;  %v23110_v45 = vld [vmem:[#allocation54_spill] sm:$0xff]  ;;  %v9458_v49 = vcombine.high %v9412_v44, %v9426_v6 }
 0x294   :  { %14334 = vmatprep.subr.bf16.mxu0 %v23092_v2  ;;  %v8102_v2 = vcombine.low %v19161_v51, %v19164_v19  ;;  %v23102_v51 = vld [vmem:[#allocation57_spill] sm:$0xff]  ;;  %23104 = vst [vmem:[#allocation36_spill] sm:$0xff] %v19245_v18  ;;  %23105 = vst [vmem:[#allocation15_spill] sm:$0xff] %v19248_v46  ;;  %v8781_v57 = vcombine.low %v8760_v13, %v8774_v26  ;;  %v10105_v8 = vrot.slane %v15681_v34, %v22668_v4 }
 0x295   :  { %23094 = vst [vmem:[#allocation30_spill] sm:$0xff] %v19210_v22  ;;  %23098 = vst [vmem:[#allocation34_spill] sm:$0xff] %v19224_v30  ;;  %v23103_v19 = vcombine.high %v23053_v0, %v23102_v51  ;;  %v15683_v0 = vld [vmem:[#allocation2 + $0x10be] ss:$79 sps:$4 sm:$0xff]   ;;  %v23107_v51 = vcombine.high %v23055_v47, %v23106_v52  ;;  %v23111_v22 = vcombine.high %v23109_v31, %v23110_v45  ;;  %v15693_v46 = vld [vmem:[#allocation2 + $0x1222] ss:$79 sps:$4 sm:$0xff]  }
 0x296   :  { %23108 = vst [vmem:[#allocation18_spill] sm:$0xff] %v19254_v40  ;;  %v19264_v58 = vrot.slane %v8102_v2, %v22668_v4  ;;  %v8778_v47 = vcombine.high %v8732_v53, %v8746_v20  ;;  %v8777_v52 = vcombine.low %v8732_v53, %v8746_v20  ;;  %v9462_v60 = vcombine.high %v19241_v33, %v9454_v50  ;;  %v15695_v30 = vld [vmem:[#allocation2 + $0x135e] ss:$79 sps:$4 sm:$0xff]  }
 0x297   :  { %13535 = vmatpush1.bf16.xpose.msra.mxu1 %v23101_v42  ;;  %v15684_v42 = vld [vmem:[#allocation2 + $0xf0c] ss:$79 sps:$4 sm:$0xff]   ;;  %v10119_v45 = vrot.slane %v15682_v9, %v22668_v4  ;;  %v19277_v53 = vrot.slane %v15685_v21, %v22668_v4  ;;  %v19280_v20 = vrot.slane %v15686_v7, %v22668_v4  ;;  %v9457_v9 = vcombine.low %v9412_v44, %v9426_v6 }
 0x298   :  { %13536 = vmatprep.subr.bf16.mxu1 %v23103_v19  ;;  %v15687_v19 = vld [vmem:[#allocation2 + $0x10e6] ss:$79 sps:$4 sm:$0xff]   ;;  %23112 = vst [vmem:[#allocation52_spill] sm:$0xff] %v19264_v58  ;;  %v19274_v2 = vrot.slane %v15684_v42, %v22668_v4  ;;  %v19289_v34 = vrot.slane %v8778_v47, %v22668_v4  ;;  %v23118_v21 = vld [vmem:[#allocation60_spill] sm:$0xff]  ;;  %v19306_v47 = vrot.slane %v8777_v52, %v22668_v4 }
 0x299   :  { %v19283_v31 = vrot.slane %v15687_v19, %v22668_v4  ;;  %v23117_v42 = vld [vmem:[#allocation59_spill] sm:$0xff]  ;;  %v19300_v19 = vrot.slane %v9458_v49, %v22668_v4  ;;  %v19309_v44 = vrot.slane %v8781_v57, %v22668_v4  ;;  %v9461_v6 = vcombine.low %v19241_v33, %v9454_v50  ;;  %v23128_v50 = vld [vmem:[#allocation22_spill] sm:$0xff] }
 0x29a   :  { %23116 = vst [vmem:[#allocation16_spill] sm:$0xff] %v19289_v34  ;;  %v23119_v59 = vcombine.high %v23117_v42, %v23118_v21  ;;  %23123 = vst [vmem:[#allocation39_spill] sm:$0xff] %v19306_v47  ;;  %v23126_v42 = vld [vmem:[#allocation61_spill] sm:$0xff]  ;;  %v10817_v49 = vcombine.high %v19274_v2, %v19277_v53  ;;  %v15688_v21 = vld [vmem:[#allocation2 + $0x115c] ss:$79 sps:$4 sm:$0xff]   ;;  %v19329_v18 = vrot.slane %v9457_v9, %v22668_v4 }
 0x29b   :  { %14335 = vmatpush1.bf16.xpose.msra.mxu0 %v23107_v51  ;;  %v8782_v51 = vcombine.high %v8760_v13, %v8774_v26  ;;  %v23113_v13 = vld [vmem:[#allocation20_spill] sm:$0xff]  ;;  %v23114_v26 = vld [vmem:[#allocation55_spill] sm:$0xff]  ;;  %23121 = vst [vmem:[#allocation37_spill] sm:$0xff] %v19300_v19  ;;  %23124 = vst [vmem:[#allocation43_spill] sm:$0xff] %v19309_v44  ;;  %v19332_v57 = vrot.slane %v9461_v6, %v22668_v4  ;;  %v11450_v58 = vrot.slane %v15688_v21, %v22668_v4 }
 0x29c   :  { %14336 = vmatprep.subr.bf16.mxu0 %v23111_v22  ;;  %v10133_v22 = vrot.slane %v15683_v0, %v22668_v4  ;;  %v23115_v35 = vcombine.high %v23113_v13, %v23114_v26  ;;  %v19303_v13 = vrot.slane %v9462_v60, %v22668_v4  ;;  %v10137_v26 = vcombine.high %v10091_v15, %v10105_v8  ;;  %v15689_v52 = vld [vmem:[#allocation2 + $0x11fa] ss:$79 sps:$4 sm:$0xff]  }
 0x29d   :  { %v19297_v7 = vrot.slane %v8782_v51, %v22668_v4  ;;  %v10821_v60 = vcombine.high %v19280_v20, %v19283_v31  ;;  %v23129_v0 = vld [vmem:[#allocation23_spill] sm:$0xff]  ;;  %23131 = vst [vmem:[#allocation56_spill] sm:$0xff] %v19329_v18  ;;  %23132 = vst [vmem:[#allocation13_spill] sm:$0xff] %v19332_v57  ;;  %v19341_v19 = vrot.slane %v10817_v49, %v22668_v4  ;;  %v23137_v47 = vld [vmem:[#allocation62_spill] sm:$0xff] }
 0x29e   :  { %23122 = vst [vmem:[#allocation38_spill] sm:$0xff] %v19303_v13  ;;  %v23130_v40 = vcombine.high %v23128_v50, %v23129_v0  ;;  %v19335_v33 = vrot.slane %v10137_v26, %v22668_v4  ;;  %v10136_v0 = vcombine.low %v10091_v15, %v10105_v8  ;;  %v23138_v44 = vld [vmem:[#allocation64_spill] sm:$0xff]  ;;  %v11464_v26 = vrot.slane %v15689_v52, %v22668_v4 }
 0x29f   :  { %13537 = vmatpush1.bf16.xpose.msra.mxu1 %v23115_v35  ;;  %23120 = vst [vmem:[#allocation11_spill] sm:$0xff] %v19297_v7  ;;  %v10141_v35 = vcombine.high %v10119_v45, %v10133_v22  ;;  %23135 = vst [vmem:[#allocation12_spill] sm:$0xff] %v19341_v19  ;;  %v19344_v9 = vrot.slane %v10821_v60, %v22668_v4  ;;  %v23139_v6 = vcombine.high %v23137_v47, %v23138_v44 }
 0x2a0   :  { %13538 = vmatprep.subr.bf16.mxu1 %v23119_v59  ;;  %v23125_v59 = vld [vmem:[#allocation58_spill] sm:$0xff]  ;;  %23133 = vst [vmem:[#allocation45_spill] sm:$0xff] %v19335_v33  ;;  %v12144_v21 = vrot.slane %v15693_v46, %v22668_v4  ;;  %v12158_v47 = vrot.slane %v15694_v38, %v22668_v4  ;;  %v12172_v44 = vrot.slane %v15695_v30, %v22668_v4  ;;  %v23148_v46 = vld [vmem:[#allocation63_spill] sm:$0xff]  ;;  %v23153_v30 = vld [vmem:[#allocation25_spill] sm:$0xff] }
 0x2a1   :  { %v23127_v51 = vcombine.high %v23125_v59, %v23126_v42  ;;  %v15690_v59 = vld [vmem:[#allocation2 + $0x1298] ss:$79 sps:$4 sm:$0xff]   ;;  %v19338_v50 = vrot.slane %v10141_v35, %v22668_v4  ;;  %23136 = vst [vmem:[#allocation46_spill] sm:$0xff] %v19344_v9  ;;  %v19363_v52 = vrot.slane %v10136_v0, %v22668_v4 }
 0x2a2   :  { %v15691_v42 = vld [vmem:[#allocation2 + $0x1336] ss:$79 sps:$4 sm:$0xff]   ;;  %v11478_v15 = vrot.slane %v15690_v59, %v22668_v4 }
 0x2a3   :  { %14337 = vmatpush1.bf16.xpose.msra.mxu0 %v23127_v51  ;;  %v15692_v51 = vld [vmem:[#allocation2 + $0x1184] ss:$79 sps:$4 sm:$0xff]   ;;  %23134 = vst [vmem:[#allocation47_spill] sm:$0xff] %v19338_v50  ;;  %v11492_v8 = vrot.slane %v15691_v42, %v22668_v4  ;;  %23143 = vst [vmem:[#allocation14_spill] sm:$0xff] %v19363_v52  ;;  %v10816_v42 = vcombine.low %v19274_v2, %v19277_v53  ;;  %v11496_v53 = vcombine.high %v11450_v58, %v11464_v26 }
 0x2a4   :  { %14338 = vmatprep.subr.bf16.mxu0 %v23130_v40  ;;  %v10140_v40 = vcombine.low %v10119_v45, %v10133_v22  ;;  %v23140_v22 = vld [vmem:[#allocation24_spill] sm:$0xff]  ;;  %v23141_v35 = vld [vmem:[#allocation21_spill] sm:$0xff]  ;;  %v12130_v60 = vrot.slane %v15692_v51, %v22668_v4  ;;  %v23146_v51 = vld [vmem:[#allocation26_spill] sm:$0xff] }
 0x2a5   :  { %v23142_v49 = vcombine.high %v23140_v22, %v23141_v35  ;;  %v23145_v22 = vld [vmem:[#allocation67_spill] sm:$0xff]  ;;  %v23149_v0 = vld [vmem:[#allocation65_spill] sm:$0xff]  ;;  %v11499_v45 = vcombine.low %v11478_v15, %v11492_v8  ;;  %v19399_v52 = vrot.slane %v11496_v53, %v22668_v4  ;;  %v23187_v53 = vld [vmem:[#allocation34_spill] sm:$0xff] }
 0x2a6   :  { %v19366_v59 = vrot.slane %v10140_v40, %v22668_v4  ;;  %v23147_v35 = vcombine.high %v23145_v22, %v23146_v51  ;;  %v23150_v40 = vcombine.high %v23148_v46, %v23149_v0  ;;  %v19385_v22 = vrot.slane %v10816_v42, %v22668_v4  ;;  %v23154_v38 = vld [vmem:[#allocation69_spill] sm:$0xff]  ;;  %v23156_v0 = vld [vmem:[#allocation68_spill] sm:$0xff] }
 0x2a7   :  { %13539 = vmatpush1.bf16.xpose.msra.mxu1 %v23139_v6  ;;  %v10820_v6 = vcombine.low %v19280_v20, %v19283_v31  ;;  %v12176_v20 = vcombine.high %v12130_v60, %v12144_v21  ;;  %v12180_v31 = vcombine.high %v12158_v47, %v12172_v44  ;;  %v23155_v19 = vcombine.high %v23153_v30, %v23154_v38  ;;  %v23165_v38 = vld [vmem:[#allocation66_spill] sm:$0xff]  ;;  %v23166_v30 = vld [vmem:[#allocation72_spill] sm:$0xff] }
 0x2a8   :  { %13540 = vmatprep.subr.bf16.mxu1 %v23142_v49  ;;  %23144 = vst [vmem:[#allocation57_spill] sm:$0xff] %v19366_v59  ;;  %v11500_v49 = vcombine.high %v11478_v15, %v11492_v8  ;;  %23151 = vst [vmem:[#allocation19_spill] sm:$0xff] %v19385_v22  ;;  %v19414_v15 = vrot.slane %v11499_v45, %v22668_v4  ;;  %v12175_v8 = vcombine.low %v12130_v60, %v12144_v21 }
 0x2a9   :  { %v19388_v51 = vrot.slane %v10820_v6, %v22668_v4  ;;  %23159 = vst [vmem:[#allocation54_spill] sm:$0xff] %v19399_v52  ;;  %v12179_v6 = vcombine.low %v12158_v47, %v12172_v44  ;;  %v2050_v60 = vcombine.low %v18948_v28, %v18951_v3  ;;  %v23173_v44 = vld [vmem:[#allocation41_spill] sm:$0xff] }
 0x2aa   :  { %v19402_v42 = vrot.slane %v11500_v49, %v22668_v4  ;;  %23164 = vst [vmem:[#allocation58_spill] sm:$0xff] %v19414_v15  ;;  %v19431_v21 = vrot.slane %v12175_v8, %v22668_v4  ;;  %v23186_v49 = vld [vmem:[#allocation29_spill] sm:$0xff] }
 0x2ab   :  { %14339 = vmatpush1.bf16.xpose.msra.mxu0 %v23147_v35  ;;  %23152 = vst [vmem:[#allocation53_spill] sm:$0xff] %v19388_v51  ;;  %v11495_v35 = vcombine.low %v11450_v58, %v11464_v26  ;;  %v19405_v58 = vrot.slane %v12176_v20, %v22668_v4  ;;  %v19408_v26 = vrot.slane %v12180_v31, %v22668_v4  ;;  %v23168_v20 = vld [vmem:[#allocation71_spill] sm:$0xff]  ;;  %v23169_v31 = vld [vmem:[#allocation28_spill] sm:$0xff] }
 0x2ac   :  { %14340 = vmatprep.subr.bf16.mxu0 %v23150_v40  ;;  %v23157_v40 = vld [vmem:[#allocation70_spill] sm:$0xff]  ;;  %23160 = vst [vmem:[#allocation20_spill] sm:$0xff] %v19402_v42  ;;  %23171 = vst [vmem:[#allocation61_spill] sm:$0xff] %v19431_v21  ;;  %v19434_v47 = vrot.slane %v12179_v6, %v22668_v4 }
 0x2ad   :  { %v23158_v2 = vcombine.high %v23156_v0, %v23157_v40  ;;  %23161 = vst [vmem:[#allocation55_spill] sm:$0xff] %v19405_v58  ;;  %23162 = vst [vmem:[#allocation59_spill] sm:$0xff] %v19408_v26  ;;  %v23170_v0 = vcombine.high %v23168_v20, %v23169_v31  ;;  %v23176_v20 = vld [vmem:[#allocation27_spill] sm:$0xff]  ;;  %v23177_v31 = vld [vmem:[#allocation42_spill] sm:$0xff] }
 0x2ae   :  { %23172 = vst [vmem:[#allocation22_spill] sm:$0xff] %v19434_v47  ;;  %v23178_v8 = vcombine.high %v23176_v20, %v23177_v31  ;;  %v2726_v20 = vcombine.low %v18993_v10, %v19003_v32  ;;  %v4089_v31 = vcombine.low %v19053_v36, %v19056_v41 }
 0x2af   :  { %13541 = vmatpush1.bf16.xpose.msra.mxu1 %v23155_v19  ;;  %v19411_v19 = vrot.slane %v11495_v35, %v22668_v4  ;;  %v23174_v35 = vld [vmem:[#allocation73_spill] sm:$0xff] }
 0x2b0   :  { %13542 = vmatprep.subr.bf16.mxu1 %v23158_v2  ;;  %v23167_v2 = vcombine.high %v23165_v38, %v23166_v30  ;;  %v23175_v40 = vcombine.high %v23173_v44, %v23174_v35  ;;  %v2730_v38 = vcombine.low %v18960_v54, %v18963_v24  ;;  %v2046_v44 = vcombine.low %v18987_v23, %v18990_v29  ;;  %v23180_v30 = vld [vmem:[#allocation35_spill] sm:$0xff] }
 0x2b1   :  { %23163 = vst [vmem:[#allocation60_spill] sm:$0xff] %v19411_v19  ;;  %v14865_v45 = vcombine.low %v23180_v30, %v23180_v30  ;;  %v3405_v30 = vcombine.low %v19045_v62, %v19066_v12 }
 0x2b3   :  { %14341 = vmatpush1.bf16.xpose.msra.mxu0 %v23167_v2  ;;  %v19443_v2 = vld [vmem:[#allocation5 + $0x50] sm:$0x77] }
 0x2b4   :  { %14342 = vmatprep.subr.bf16.mxu0 %v23170_v0  ;;  %v23179_v0 = vld [vmem:[#allocation48_spill] sm:$0xff]  ;;  %v14828_v35 = vcombine.high %v19443_v2, %v19443_v2 }
 0x2b5   :  { %v14825_v6 = vcombine.low %v23179_v0, %v23179_v0  ;;  %v4085_v0 = vcombine.low %v19089_v39, %v19092_v48 }
 0x2b7   :  { %13543 = vmatpush1.bf16.xpose.msra.mxu1 %v23175_v40  ;;  %v19454_v40 = vld [vmem:[#allocation5 + $0xf0] sm:$0x77] }
 0x2b8   :  { %13568 = vmatprep.subr.bf16.mxu1 %v2050_v60  ;;  %v3409_v60 = vcombine.low %v19028_v25, %v19042_v16 }
 0x2bb   :  { %14343 = vmatpush1.bf16.xpose.msra.mxu0 %v23178_v8  ;;  %v4768_v8 = vcombine.low %v19097_v5, %v19106_v43 }
 0x2bc   :  { %14368 = vmatprep.subr.bf16.mxu0 %v2730_v38  ;;  %v14868_v38 = vcombine.high %v19454_v40, %v19454_v40 }
 0x2be   :  { %13561 = vmatmul.mubr.bf16.vlgmr.msra.gmra.mrb[0].mxu1 %v14825_v6  ;;  %v5448_v6 = vcombine.low %v19109_v14, %v19112_v17 }
 0x2bf   :  { %13569 = vmatpush1.bf16.xpose.msra.mxu1 %v2046_v44  ;;  %13600 = vmatprep.mubr.bf16.mxu1 %v14828_v35  ;;  %v6127_v44 = vcombine.low %v19170_v61, %v19178_v11  ;;  %v5444_v35 = vcombine.low %v19140_v27, %v19150_v37  ;;  %v23188_v11 = vld [vmem:[#allocation17_spill] sm:$0xff] }
 0x2c0   :  { %13570 = vmatprep.subr.bf16.mxu1 %v3409_v60  ;;  %v23181_v60 = vld [vmem:[#allocation44_spill] sm:$0xff]  ;;  %v8166_v37 = vcombine.low %v23188_v11, %v23187_v53 }
 0x2c2   :  { %14361 = vmatmul.mubr.bf16.vlgmr.msra.gmra.mrb[0].mxu0 %v14865_v45  ;;  %v4764_v45 = vcombine.low %v19131_v1, %v19134_v56 }
 0x2c3   :  { %14369 = vmatpush1.bf16.xpose.msra.mxu0 %v2726_v20  ;;  %14400 = vmatprep.mubr.bf16.mxu0 %v14868_v38  ;;  %v6807_v20 = vcombine.low %v23181_v60, %v19184_v55  ;;  %v23182_v38 = vld [vmem:[#allocation31_spill] sm:$0xff] }
 0x2c4   :  { %14370 = vmatprep.subr.bf16.mxu0 %v4089_v31  ;;  %v23183_v31 = vld [vmem:[#allocation40_spill] sm:$0xff] }
 0x2c7   :  { %13571 = vmatpush1.bf16.xpose.msra.mxu1 %v3405_v30  ;;  %v6123_v30 = vcombine.low %v23183_v31, %v23182_v38  ;;  %v23191_v38 = vld [vmem:[#allocation52_spill] sm:$0xff]  ;;  %v23192_v31 = vld [vmem:[#allocation18_spill] sm:$0xff] }
 0x2c8   :  { %13572 = vmatprep.subr.bf16.mxu1 %v4768_v8  ;;  %v23184_v8 = vld [vmem:[#allocation32_spill] sm:$0xff]  ;;  %v8162_v55 = vcombine.low %v23192_v31, %v23191_v38  ;;  %v15704_v31 = vld [vmem:[#allocation2 + $0xb6] ss:$79 sps:$4 sm:$0xff]  }
 0x2cb   :  { %14371 = vmatpush1.bf16.xpose.msra.mxu0 %v4085_v0  ;;  %v7486_v0 = vcombine.low %v23184_v8, %v19218_v63  ;;  %v23193_v63 = vld [vmem:[#allocation37_spill] sm:$0xff] }
 0x2cc   :  { %14372 = vmatprep.subr.bf16.mxu0 %v5448_v6  ;;  %v23185_v6 = vld [vmem:[#allocation30_spill] sm:$0xff] }
 0x2cd   :  { %v6803_v46 = vcombine.low %v23186_v49, %v23185_v6  ;;  %v9525_v6 = vcombine.low %v23193_v63, %v19303_v13  ;;  %v15706_v13 = vld [vmem:[#allocation2 + $0x154] ss:$79 sps:$4 sm:$0xff]  }
 0x2cf   :  { %13573 = vmatpush1.bf16.xpose.msra.mxu1 %v4764_v45  ;;  %v23189_v45 = vld [vmem:[#allocation15_spill] sm:$0xff] }
 0x2d0   :  { %13574 = vmatprep.subr.bf16.mxu1 %v6127_v44  ;;  %v23190_v44 = vld [vmem:[#allocation36_spill] sm:$0xff] }
 0x2d3   :  { %14373 = vmatpush1.bf16.xpose.msra.mxu0 %v5444_v35  ;;  %v7482_v35 = vcombine.low %v23190_v44, %v23189_v45  ;;  %v9521_v45 = vcombine.low %v19329_v18, %v19332_v57 }
 0x2d4   :  { %14374 = vmatprep.subr.bf16.mxu0 %v6807_v20  ;;  %v8845_v20 = vcombine.low %v19289_v34, %v19297_v7  ;;  %v23196_v7 = vld [vmem:[#allocation12_spill] sm:$0xff]  ;;  %v19536_v34 = vld [vmem:[#allocation5 + $0x58] sm:$0x77] }
 0x2d5   :  { %v10884_v38 = vcombine.low %v23196_v7, %v19344_v9  ;;  %v2094_v9 = vrot.slane %v15706_v13, %v22668_v4  ;;  %23198 = vst [vmem:[#allocation23_spill] sm:$0xff] %v19536_v34 }
 0x2d7   :  { %13575 = vmatpush1.bf16.xpose.msra.mxu1 %v6123_v30  ;;  %v23194_v30 = vld [vmem:[#allocation43_spill] sm:$0xff] }
 0x2d8   :  { %13576 = vmatprep.subr.bf16.mxu1 %v7486_v0  ;;  %v23195_v0 = vld [vmem:[#allocation39_spill] sm:$0xff] }
 0x2db   :  { %14375 = vmatpush1.bf16.xpose.msra.mxu0 %v6803_v46  ;;  %v8841_v46 = vcombine.low %v23195_v0, %v23194_v30  ;;  %v15714_v0 = vld [vmem:[#allocation2 + $0xde] ss:$79 sps:$4 sm:$0xff]  }
 0x2dc   :  { %14376 = vmatprep.subr.bf16.mxu0 %v8166_v37  ;;  %v10204_v37 = vcombine.low %v19335_v33, %v19338_v50  ;;  %v15716_v50 = vld [vmem:[#allocation2 + $0x17c] ss:$79 sps:$4 sm:$0xff]  }
 0x2dd   :  { %v15718_v33 = vld [vmem:[#allocation2 + $0x21a] ss:$79 sps:$4 sm:$0xff]  }
 0x2df   :  { %13577 = vmatpush1.bf16.xpose.msra.mxu1 %v7482_v35  ;;  %v15702_v35 = vld [vmem:[#allocation2 + $0x18] ss:$79 sps:$4 sm:$0xff]  }
 0x2e0   :  { %13578 = vmatprep.subr.bf16.mxu1 %v8845_v20  ;;  %v15708_v20 = vld [vmem:[#allocation2 + $0x1f2] ss:$79 sps:$4 sm:$0xff]   ;;  %v2066_v57 = vrot.slane %v15702_v35, %v22668_v4  ;;  %v2788_v35 = vrot.slane %v15718_v33, %v22668_v4  ;;  %v14827_v33 = vcombine.low %v19443_v2, %v19443_v2 }
 0x2e1   :  { %v2108_v7 = vrot.slane %v15708_v20, %v22668_v4  ;;  %v15720_v20 = vld [vmem:[#allocation2 + $0x290] ss:$79 sps:$4 sm:$0xff]  }
 0x2e2   :  { %v3425_v44 = vrot.slane %v15720_v20, %v22668_v4  ;;  %v15746_v20 = vld [vmem:[#allocation2 + $0x5ce] ss:$79 sps:$4 sm:$0xff]  }
 0x2e3   :  { %14377 = vmatpush1.bf16.xpose.msra.mxu0 %v8162_v55  ;;  %v15712_v55 = vld [vmem:[#allocation2 + $0x40] ss:$79 sps:$4 sm:$0xff]   ;;  %v2121_v13 = vcombine.high %v2094_v9, %v2108_v7  ;;  %v2120_v63 = vcombine.low %v2094_v9, %v2108_v7  ;;  %v23200_v9 = vcombine.high %v18948_v28, %v18951_v3 }
 0x2e4   :  { %14378 = vmatprep.subr.bf16.mxu0 %v9525_v6  ;;  %v23197_v6 = vld [vmem:[#allocation14_spill] sm:$0xff] }
 0x2e5   :  { %v10200_v30 = vcombine.low %v23197_v6, %v19366_v59  ;;  %v2746_v59 = vrot.slane %v15712_v55, %v22668_v4  ;;  %v2760_v6 = vrot.slane %v15714_v0, %v22668_v4  ;;  %v15726_v55 = vld [vmem:[#allocation2 + $0x46a] ss:$79 sps:$4 sm:$0xff]  }
 0x2e6   :  { %v3467_v7 = vrot.slane %v15726_v55, %v22668_v4 }
 0x2e7   :  { %13579 = vmatpush1.bf16.xpose.msra.mxu1 %v8841_v46  ;;  %v11563_v46 = vcombine.low %v19399_v52, %v19402_v42  ;;  %v2774_v42 = vrot.slane %v15716_v50, %v22668_v4  ;;  %v15722_v52 = vld [vmem:[#allocation2 + $0x32e] ss:$79 sps:$4 sm:$0xff]   ;;  %v12239_v50 = vcombine.low %v19431_v21, %v19434_v47  ;;  %v2796_v21 = vcombine.low %v2746_v59, %v2760_v6 }
 0x2e8   :  { %13580 = vmatprep.subr.bf16.mxu1 %v10204_v37  ;;  %v2080_v37 = vrot.slane %v15704_v31, %v22668_v4  ;;  %v19538_v47 = vld [vmem:[#allocation5 + $0xf8] sm:$0x77]  ;;  %v3439_v0 = vrot.slane %v15722_v52, %v22668_v4 }
 0x2e9   :  { %23199 = vst [vmem:[#allocation62_spill] sm:$0xff] %v19538_v47  ;;  %v2800_v2 = vcombine.low %v2774_v42, %v2788_v35  ;;  %v14870_v28 = vcombine.high %v19538_v47, %v19538_v47 }
 0x2ea   :  { %v2117_v31 = vcombine.high %v2066_v57, %v2080_v37  ;;  %v3476_v55 = vcombine.high %v3425_v44, %v3439_v0  ;;  %v3475_v47 = vcombine.low %v3425_v44, %v3439_v0  ;;  %v19608_v0 = vrot.slane %v15746_v20, %v22668_v4 }
 0x2eb   :  { %14379 = vmatpush1.bf16.xpose.msra.mxu0 %v9521_v45  ;;  %v12243_v45 = vcombine.low %v19405_v58, %v19408_v26  ;;  %v2797_v26 = vcombine.high %v2746_v59, %v2760_v6  ;;  %v15724_v58 = vld [vmem:[#allocation2 + $0x3cc] ss:$79 sps:$4 sm:$0xff]   ;;  %v15740_v6 = vld [vmem:[#allocation2 + $0x644] ss:$79 sps:$4 sm:$0xff]  }
 0x2ec   :  { %14380 = vmatprep.subr.bf16.mxu0 %v10884_v38  ;;  %v10880_v38 = vcombine.low %v19385_v22, %v19388_v51  ;;  %v11559_v51 = vcombine.low %v19411_v19, %v19414_v15  ;;  %v15728_v22 = vld [vmem:[#allocation2 + $0x2b8] ss:$79 sps:$4 sm:$0xff]   ;;  %v19531_v18 = vrot.slane %v2117_v31, %v22668_v4  ;;  %v19534_v15 = vrot.slane %v2121_v13, %v22668_v4  ;;  %v15744_v13 = vld [vmem:[#allocation2 + $0x530] ss:$79 sps:$4 sm:$0xff]  }
 0x2ed   :  { %v2116_v19 = vcombine.low %v2066_v57, %v2080_v37  ;;  %v19543_v53 = vrot.slane %v2797_v26, %v22668_v4  ;;  %v3453_v57 = vrot.slane %v15724_v58, %v22668_v4  ;;  %v19554_v59 = vrot.slane %v15728_v22, %v22668_v4  ;;  %v15736_v26 = vld [vmem:[#allocation2 + $0x508] ss:$79 sps:$4 sm:$0xff]  }
 0x2ee   :  { %v15738_v58 = vld [vmem:[#allocation2 + $0x5a6] ss:$79 sps:$4 sm:$0xff]   ;;  %v14830_v37 = vcombine.high %v19536_v34, %v19536_v34  ;;  %v19573_v22 = vrot.slane %v2120_v63, %v22668_v4  ;;  %v23201_v63 = vcombine.high %v18960_v54, %v18963_v24  ;;  %v19599_v54 = vrot.slane %v15740_v6, %v22668_v4 }
 0x2ef   :  { %13581 = vmatpush1.bf16.xpose.msra.mxu1 %v10200_v30  ;;  %v2801_v30 = vcombine.high %v2774_v42, %v2788_v35  ;;  %v19570_v3 = vrot.slane %v2116_v19, %v22668_v4  ;;  %v15742_v35 = vld [vmem:[#allocation2 + $0x6e2] ss:$79 sps:$4 sm:$0xff]   ;;  %v19596_v19 = vrot.slane %v15738_v58, %v22668_v4  ;;  %v19605_v44 = vrot.slane %v15744_v13, %v22668_v4 }
 0x2f0   :  { %13582 = vmatprep.subr.bf16.mxu1 %v11563_v46  ;;  %v15730_v46 = vld [vmem:[#allocation2 + $0x356] ss:$79 sps:$4 sm:$0xff]   ;;  %v19602_v24 = vrot.slane %v15742_v35, %v22668_v4  ;;  %v23202_v58 = vcombine.high %v18987_v23, %v18990_v29  ;;  %v23203_v13 = vcombine.high %v19028_v25, %v19042_v16 }
 0x2f1   :  { %v19546_v31 = vrot.slane %v2801_v30, %v22668_v4  ;;  %v19557_v52 = vrot.slane %v15730_v46, %v22668_v4  ;;  %v19576_v30 = vrot.slane %v2796_v21, %v22668_v4  ;;  %v15748_v46 = vld [vmem:[#allocation2 + $0x66c] ss:$79 sps:$4 sm:$0xff]   ;;  %v3479_v21 = vcombine.low %v3453_v57, %v3467_v7 }
 0x2f2   :  { %v4839_v16 = vcombine.high %v19599_v54, %v19602_v24 }
 0x2f3   :  { %14381 = vmatpush1.bf16.xpose.msra.mxu0 %v10880_v38  ;;  %v15732_v38 = vld [vmem:[#allocation2 + $0x3f4] ss:$79 sps:$4 sm:$0xff]   ;;  %v4156_v34 = vcombine.high %v19554_v59, %v19557_v52  ;;  %v4155_v35 = vcombine.low %v19554_v59, %v19557_v52  ;;  %v19649_v59 = vrot.slane %v3479_v21, %v22668_v4 }
 0x2f4   :  { %14382 = vmatprep.subr.bf16.mxu0 %v12243_v45  ;;  %v15734_v45 = vld [vmem:[#allocation2 + $0x492] ss:$79 sps:$4 sm:$0xff]  }
 0x2f5   :  { %v19563_v42 = vrot.slane %v15734_v45, %v22668_v4  ;;  %v19593_v45 = vrot.slane %v15736_v26, %v22668_v4  ;;  %v19636_v20 = vrot.slane %v4156_v34, %v22668_v4  ;;  %v23205_v34 = vcombine.high %v18993_v10, %v19003_v32  ;;  %v15752_v52 = vld [vmem:[#allocation2 + $0x780] ss:$79 sps:$4 sm:$0xff]   ;;  %v15760_v10 = vld [vmem:[#allocation2 + $0x7a8] ss:$79 sps:$4 sm:$0xff]  }
 0x2f6   :  { %v23231_v26 = vld [vmem:[#allocation31_spill] sm:$0xff] }
 0x2f7   :  { %13583 = vmatpush1.bf16.xpose.msra.mxu1 %v11559_v51  ;;  %v19560_v51 = vrot.slane %v15732_v38, %v22668_v4  ;;  %v15750_v38 = vld [vmem:[#allocation2 + $0x70a] ss:$79 sps:$4 sm:$0xff]   ;;  %v4835_v25 = vcombine.high %v19593_v45, %v19596_v19  ;;  %v4834_v21 = vcombine.low %v19593_v45, %v19596_v19 }
 0x2f8   :  { %13608 = vmatprep.subr.bf16.mxu1 %v23200_v9  ;;  %v19586_v9 = vrot.slane %v2800_v2, %v22668_v4  ;;  %v19611_v2 = vrot.slane %v3476_v55, %v22668_v4 }
 0x2f9   :  { %v4160_v11 = vcombine.high %v19560_v51, %v19563_v42  ;;  %v4159_v29 = vcombine.low %v19560_v51, %v19563_v42  ;;  %v15754_v51 = vld [vmem:[#allocation2 + $0x81e] ss:$79 sps:$4 sm:$0xff]  }
 0x2fb   :  { %14383 = vmatpush1.bf16.xpose.msra.mxu0 %v12239_v50  ;;  %v3480_v50 = vcombine.high %v3453_v57, %v3467_v7  ;;  %v19614_v57 = vrot.slane %v15748_v46, %v22668_v4  ;;  %v19617_v7 = vrot.slane %v15750_v38, %v22668_v4  ;;  %v19639_v23 = vrot.slane %v4160_v11, %v22668_v4  ;;  %v15756_v38 = vld [vmem:[#allocation2 + $0x8bc] ss:$79 sps:$4 sm:$0xff]  }
 0x2fc   :  { %14408 = vmatprep.subr.bf16.mxu0 %v23201_v63  ;;  %v5515_v11 = vcombine.high %v19605_v44, %v19608_v0  ;;  %v23206_v46 = vcombine.high %v19053_v36, %v19056_v41  ;;  %v15758_v63 = vld [vmem:[#allocation2 + $0x95a] ss:$79 sps:$4 sm:$0xff]   ;;  %v19680_v36 = vrot.slane %v4835_v25, %v22668_v4  ;;  %v4838_v41 = vcombine.low %v19599_v54, %v19602_v24 }
 0x2fd   :  { %v19625_v6 = vrot.slane %v3480_v50, %v22668_v4  ;;  %v19675_v50 = vrot.slane %v4159_v29, %v22668_v4  ;;  %v19689_v29 = vrot.slane %v4839_v16, %v22668_v4  ;;  %v6143_v25 = vrot.slane %v15752_v52, %v22668_v4  ;;  %v15770_v52 = vld [vmem:[#allocation2 + $0xa96] ss:$79 sps:$4 sm:$0xff]  }
 0x2fe   :  { %13601 = vmatmul.mubr.bf16.vlgmr.msra.gmra.mrb[0].mxu1 %v14827_v33  ;;  %v19628_v33 = vrot.slane %v3475_v47, %v22668_v4  ;;  %v19692_v45 = vrot.slane %v5515_v11, %v22668_v4  ;;  %v23207_v54 = vcombine.high %v19045_v62, %v19066_v12  ;;  %v6157_v24 = vrot.slane %v15754_v51, %v22668_v4 }
 0x2ff   :  { %13609 = vmatpush1.bf16.xpose.msra.mxu1 %v23202_v58  ;;  %13640 = vmatprep.mubr.bf16.mxu1 %v14830_v37  ;;  %v23204_v37 = vcombine.low %v19454_v40, %v19454_v40  ;;  %v5519_v40 = vcombine.high %v19614_v57, %v19617_v7  ;;  %v15762_v58 = vld [vmem:[#allocation2 + $0x846] ss:$79 sps:$4 sm:$0xff]   ;;  %v6823_v16 = vrot.slane %v15760_v10, %v22668_v4 }
 0x300   :  { %13610 = vmatprep.subr.bf16.mxu1 %v23203_v13  ;;  %v15764_v13 = vld [vmem:[#allocation2 + $0x8e4] ss:$79 sps:$4 sm:$0xff]   ;;  %v6837_v11 = vrot.slane %v15762_v58, %v22668_v4  ;;  %v19714_v51 = vrot.slane %v4834_v21, %v22668_v4  ;;  %v15778_v58 = vld [vmem:[#allocation2 + $0xabe] ss:$79 sps:$4 sm:$0xff]  }
 0x301   :  { %v19695_v19 = vrot.slane %v5519_v40, %v22668_v4  ;;  %v6851_v62 = vrot.slane %v15764_v13, %v22668_v4  ;;  %v15768_v40 = vld [vmem:[#allocation2 + $0x9f8] ss:$79 sps:$4 sm:$0xff]   ;;  %v15780_v13 = vld [vmem:[#allocation2 + $0xb5c] ss:$79 sps:$4 sm:$0xff]  }
 0x302   :  { %14401 = vmatmul.mubr.bf16.vlgmr.msra.gmra.mrb[0].mxu0 %v23204_v37  ;;  %v15766_v37 = vld [vmem:[#allocation2 + $0x982] ss:$79 sps:$4 sm:$0xff]   ;;  %v7502_v21 = vrot.slane %v15768_v40, %v22668_v4  ;;  %v6873_v40 = vcombine.low %v6823_v16, %v6837_v11 }
 0x303   :  { %14409 = vmatpush1.bf16.xpose.msra.mxu0 %v23205_v34  ;;  %14440 = vmatprep.mubr.bf16.mxu0 %v14870_v28  ;;  %v19672_v28 = vrot.slane %v4155_v35, %v22668_v4  ;;  %v5514_v34 = vcombine.low %v19605_v44, %v19608_v0  ;;  %v5518_v35 = vcombine.low %v19614_v57, %v19617_v7 }
 0x304   :  { %14410 = vmatprep.subr.bf16.mxu0 %v23206_v46  ;;  %v6171_v44 = vrot.slane %v15756_v38, %v22668_v4  ;;  %v6185_v0 = vrot.slane %v15758_v63, %v22668_v4  ;;  %v23208_v7 = vcombine.high %v19097_v5, %v19106_v43  ;;  %v6865_v12 = vrot.slane %v15766_v37, %v22668_v4  ;;  %v15772_v38 = vld [vmem:[#allocation2 + $0xb34] ss:$79 sps:$4 sm:$0xff]   ;;  %v15782_v37 = vld [vmem:[#allocation2 + $0xbfa] ss:$79 sps:$4 sm:$0xff]  }
 0x305   :  { %v19717_v46 = vrot.slane %v4838_v41, %v22668_v4  ;;  %v15774_v63 = vld [vmem:[#allocation2 + $0xbd2] ss:$79 sps:$4 sm:$0xff]   ;;  %v23209_v43 = vcombine.high %v19089_v39, %v19092_v48  ;;  %v19723_v10 = vrot.slane %v5514_v34, %v22668_v4  ;;  %v6194_v39 = vcombine.high %v6143_v25, %v6157_v24 }
 0x306   :  { %v15776_v5 = vld [vmem:[#allocation2 + $0xa20] ss:$79 sps:$4 sm:$0xff]   ;;  %v6193_v48 = vcombine.low %v6143_v25, %v6157_v24  ;;  %v6874_v57 = vcombine.high %v6823_v16, %v6837_v11  ;;  %v6878_v32 = vcombine.high %v6851_v62, %v6865_v12  ;;  %v6197_v55 = vcombine.low %v6171_v44, %v6185_v0 }
 0x307   :  { %13611 = vmatpush1.bf16.xpose.msra.mxu1 %v23207_v54  ;;  %v23210_v54 = vcombine.high %v19109_v14, %v19112_v17  ;;  %v7516_v41 = vrot.slane %v15770_v52, %v22668_v4  ;;  %v7530_v47 = vrot.slane %v15772_v38, %v22668_v4  ;;  %v7544_v14 = vrot.slane %v15774_v63, %v22668_v4  ;;  %v23213_v38 = vld [vmem:[#allocation33_spill] sm:$0xff] }
 0x308   :  { %13612 = vmatprep.subr.bf16.mxu1 %v23208_v7  ;;  %v19733_v7 = vrot.slane %v5518_v35, %v22668_v4  ;;  %v8182_v17 = vrot.slane %v15776_v5, %v22668_v4  ;;  %v8196_v35 = vrot.slane %v15778_v58, %v22668_v4  ;;  %v19744_v25 = vrot.slane %v15780_v13, %v22668_v4  ;;  %v15796_v34 = vld [vmem:[#allocation2 + $0xdd4] ss:$79 sps:$4 sm:$0xff]  }
 0x309   :  { %v19747_v24 = vrot.slane %v15782_v37, %v22668_v4  ;;  %v23214_v63 = vcombine.high %v19170_v61, %v23213_v38  ;;  %v19764_v58 = vrot.slane %v6874_v57, %v22668_v4  ;;  %v19770_v13 = vrot.slane %v6193_v48, %v22668_v4  ;;  %v23220_v61 = vld [vmem:[#allocation51_spill] sm:$0xff] }
 0x30a   :  { %23211 = vst [vmem:[#allocation64_spill] sm:$0xff] %v19733_v7  ;;  %v19773_v16 = vrot.slane %v6197_v55, %v22668_v4  ;;  %v7553_v11 = vcombine.high %v7502_v21, %v7516_v41  ;;  %v7557_v37 = vcombine.high %v7530_v47, %v7544_v14  ;;  %v23222_v55 = vld [vmem:[#allocation50_spill] sm:$0xff]  ;;  %v7552_v52 = vcombine.low %v7502_v21, %v7516_v41  ;;  %v23230_v41 = vld [vmem:[#allocation40_spill] sm:$0xff] }
 0x30b   :  { %14411 = vmatpush1.bf16.xpose.msra.mxu0 %v23209_v43  ;;  %v6198_v43 = vcombine.high %v6171_v44, %v6185_v0  ;;  %v23212_v44 = vcombine.high %v19131_v1, %v19134_v56  ;;  %v19753_v0 = vrot.slane %v6194_v39, %v22668_v4  ;;  %23216 = vst [vmem:[#allocation21_spill] sm:$0xff] %v19764_v58  ;;  %23218 = vst [vmem:[#allocation26_spill] sm:$0xff] %v19770_v13  ;;  %v15790_v38 = vld [vmem:[#allocation2 + $0xe4a] ss:$79 sps:$4 sm:$0xff]  }
 0x30c   :  { %14412 = vmatprep.subr.bf16.mxu0 %v23210_v54  ;;  %v19767_v1 = vrot.slane %v6878_v32, %v22668_v4  ;;  %v6877_v56 = vcombine.low %v6851_v62, %v6865_v12  ;;  %23219 = vst [vmem:[#allocation63_spill] sm:$0xff] %v19773_v16  ;;  %v23221_v54 = vcombine.high %v19140_v27, %v23220_v61  ;;  %v15786_v32 = vld [vmem:[#allocation2 + $0xd0e] ss:$79 sps:$4 sm:$0xff]   ;;  %v15792_v27 = vld [vmem:[#allocation2 + $0xc98] ss:$79 sps:$4 sm:$0xff]  }
 0x30d   :  { %v19761_v5 = vrot.slane %v6198_v43, %v22668_v4  ;;  %v8233_v39 = vcombine.high %v8182_v17, %v8196_v35  ;;  %v8237_v57 = vcombine.high %v19744_v25, %v19747_v24  ;;  %v15784_v43 = vld [vmem:[#allocation2 + $0xc70] ss:$79 sps:$4 sm:$0xff]   ;;  %v23223_v48 = vcombine.high %v23181_v60, %v23222_v55  ;;  %v15794_v62 = vld [vmem:[#allocation2 + $0xd36] ss:$79 sps:$4 sm:$0xff]  }
 0x30e   :  { %23217 = vst [vmem:[#allocation67_spill] sm:$0xff] %v19767_v1  ;;  %v19790_v61 = vrot.slane %v6873_v40, %v22668_v4  ;;  %v15798_v12 = vld [vmem:[#allocation2 + $0xe72] ss:$79 sps:$4 sm:$0xff]   ;;  %v19796_v42 = vrot.slane %v7553_v11, %v22668_v4  ;;  %v7556_v60 = vcombine.low %v7530_v47, %v7544_v14  ;;  %v8232_v55 = vcombine.low %v8182_v17, %v8196_v35 }
 0x30f   :  { %13613 = vmatpush1.bf16.xpose.msra.mxu1 %v23212_v44  ;;  %23215 = vst [vmem:[#allocation24_spill] sm:$0xff] %v19761_v5  ;;  %v15788_v44 = vld [vmem:[#allocation2 + $0xdac] ss:$79 sps:$4 sm:$0xff]   ;;  %v19804_v40 = vrot.slane %v8233_v39, %v22668_v4  ;;  %v8861_v21 = vrot.slane %v15784_v43, %v22668_v4  ;;  %v23232_v11 = vcombine.high %v23230_v41, %v23231_v26  ;;  %v15800_v43 = vld [vmem:[#allocation2 + $0xee8] ss:$79 sps:$4 sm:$0xff]  }
 0x310   :  { %13614 = vmatprep.subr.bf16.mxu1 %v23214_v63  ;;  %23224 = vst [vmem:[#allocation65_spill] sm:$0xff] %v19790_v61  ;;  %23226 = vst [vmem:[#allocation69_spill] sm:$0xff] %v19796_v42  ;;  %v19801_v63 = vrot.slane %v7557_v37, %v22668_v4  ;;  %v8875_v47 = vrot.slane %v15786_v32, %v22668_v4  ;;  %v8889_v14 = vrot.slane %v15788_v44, %v22668_v4  ;;  %v15802_v32 = vld [vmem:[#allocation2 + $0xf86] ss:$79 sps:$4 sm:$0xff]   ;;  %v23241_v61 = vld [vmem:[#allocation34_spill] sm:$0xff] }
 0x311   :  { %23228 = vst [vmem:[#allocation70_spill] sm:$0xff] %v19804_v40  ;;  %v8903_v17 = vrot.slane %v15790_v38, %v22668_v4  ;;  %v9541_v37 = vrot.slane %v15792_v27, %v22668_v4  ;;  %v9555_v39 = vrot.slane %v15794_v62, %v22668_v4  ;;  %v19824_v26 = vrot.slane %v15796_v34, %v22668_v4  ;;  %v15804_v41 = vld [vmem:[#allocation2 + $0x1024] ss:$79 sps:$4 sm:$0xff]   ;;  %v23237_v27 = vld [vmem:[#allocation30_spill] sm:$0xff] }
 0x312   :  { %23227 = vst [vmem:[#allocation68_spill] sm:$0xff] %v19801_v63  ;;  %v19828_v44 = vrot.slane %v7552_v52, %v22668_v4  ;;  %v19831_v38 = vrot.slane %v7556_v60, %v22668_v4  ;;  %v19837_v34 = vrot.slane %v8232_v55, %v22668_v4  ;;  %v15810_v62 = vld [vmem:[#allocation2 + $0xfae] ss:$79 sps:$4 sm:$0xff]   ;;  %v23240_v35 = vld [vmem:[#allocation17_spill] sm:$0xff]  ;;  %v10220_v42 = vrot.slane %v15800_v43, %v22668_v4 }
 0x313   :  { %14413 = vmatpush1.bf16.xpose.msra.mxu0 %v23221_v54  ;;  %v19793_v54 = vrot.slane %v6877_v56, %v22668_v4  ;;  %v19807_v56 = vrot.slane %v8237_v57, %v22668_v4  ;;  %v9583_v57 = vrot.slane %v15798_v12, %v22668_v4  ;;  %v15812_v12 = vld [vmem:[#allocation2 + $0x104c] ss:$79 sps:$4 sm:$0xff]   ;;  %v9592_v16 = vcombine.high %v9541_v37, %v9555_v39  ;;  %v15828_v40 = vld [vmem:[#allocation2 + $0x12c4] ss:$79 sps:$4 sm:$0xff]  }
 0x314   :  { %14414 = vmatprep.subr.bf16.mxu0 %v23223_v48  ;;  %v8236_v48 = vcombine.low %v19744_v25, %v19747_v24  ;;  %v23233_v25 = vld [vmem:[#allocation49_spill] sm:$0xff]  ;;  %23235 = vst [vmem:[#allocation72_spill] sm:$0xff] %v19828_v44  ;;  %23236 = vst [vmem:[#allocation71_spill] sm:$0xff] %v19831_v38  ;;  %v8915_v52 = vcombine.low %v8889_v14, %v8903_v17  ;;  %v10234_v60 = vrot.slane %v15802_v32, %v22668_v4 }
 0x315   :  { %23225 = vst [vmem:[#allocation25_spill] sm:$0xff] %v19793_v54  ;;  %23229 = vst [vmem:[#allocation66_spill] sm:$0xff] %v19807_v56  ;;  %v23234_v24 = vcombine.high %v23184_v8, %v23233_v25  ;;  %v15806_v8 = vld [vmem:[#allocation2 + $0x10c2] ss:$79 sps:$4 sm:$0xff]   ;;  %v23238_v25 = vcombine.high %v23186_v49, %v23237_v27  ;;  %v23242_v54 = vcombine.high %v23240_v35, %v23241_v61  ;;  %v15826_v38 = vld [vmem:[#allocation2 + $0x1226] ss:$79 sps:$4 sm:$0xff]  }
 0x316   :  { %23239 = vst [vmem:[#allocation28_spill] sm:$0xff] %v19837_v34  ;;  %v19847_v13 = vrot.slane %v8236_v48, %v22668_v4  ;;  %v8912_v49 = vcombine.high %v8861_v21, %v8875_v47  ;;  %v8911_v27 = vcombine.low %v8861_v21, %v8875_v47  ;;  %v9596_v58 = vcombine.high %v19824_v26, %v9583_v57  ;;  %v15830_v56 = vld [vmem:[#allocation2 + $0x1362] ss:$79 sps:$4 sm:$0xff]  }
 0x317   :  { %13615 = vmatpush1.bf16.xpose.msra.mxu1 %v23232_v11  ;;  %v15808_v11 = vld [vmem:[#allocation2 + $0xf10] ss:$79 sps:$4 sm:$0xff]   ;;  %v10248_v61 = vrot.slane %v15804_v41, %v22668_v4  ;;  %v19860_v21 = vrot.slane %v15810_v62, %v22668_v4  ;;  %v19863_v47 = vrot.slane %v15812_v12, %v22668_v4  ;;  %v9591_v41 = vcombine.low %v9541_v37, %v9555_v39  ;;  %v23249_v62 = vld [vmem:[#allocation11_spill] sm:$0xff] }
 0x318   :  { %13616 = vmatprep.subr.bf16.mxu1 %v23234_v24  ;;  %v15814_v24 = vld [vmem:[#allocation2 + $0x10ea] ss:$79 sps:$4 sm:$0xff]   ;;  %23243 = vst [vmem:[#allocation41_spill] sm:$0xff] %v19847_v13  ;;  %v19857_v48 = vrot.slane %v15808_v11, %v22668_v4  ;;  %v19872_v32 = vrot.slane %v8912_v49, %v22668_v4  ;;  %v19889_v49 = vrot.slane %v8911_v27, %v22668_v4 }
 0x319   :  { %v19866_v35 = vrot.slane %v15814_v24, %v22668_v4  ;;  %v23248_v11 = vld [vmem:[#allocation16_spill] sm:$0xff]  ;;  %v19883_v24 = vrot.slane %v9592_v16, %v22668_v4  ;;  %v19892_v37 = vrot.slane %v8915_v52, %v22668_v4  ;;  %v9595_v39 = vcombine.low %v19824_v26, %v9583_v57  ;;  %v23259_v57 = vld [vmem:[#allocation37_spill] sm:$0xff] }
 0x31a   :  { %23247 = vst [vmem:[#allocation73_spill] sm:$0xff] %v19872_v32  ;;  %v23250_v55 = vcombine.high %v23248_v11, %v23249_v62  ;;  %23254 = vst [vmem:[#allocation35_spill] sm:$0xff] %v19889_v49  ;;  %v23257_v11 = vld [vmem:[#allocation52_spill] sm:$0xff]  ;;  %v10951_v16 = vcombine.high %v19857_v48, %v19860_v21  ;;  %v19912_v44 = vrot.slane %v9591_v41, %v22668_v4  ;;  %v23268_v49 = vld [vmem:[#allocation39_spill] sm:$0xff] }
 0x31b   :  { %14415 = vmatpush1.bf16.xpose.msra.mxu0 %v23238_v25  ;;  %v8916_v25 = vcombine.high %v8889_v14, %v8903_v17  ;;  %v23244_v14 = vld [vmem:[#allocation36_spill] sm:$0xff]  ;;  %v23245_v17 = vld [vmem:[#allocation15_spill] sm:$0xff]  ;;  %23252 = vst [vmem:[#allocation42_spill] sm:$0xff] %v19883_v24  ;;  %23255 = vst [vmem:[#allocation44_spill] sm:$0xff] %v19892_v37  ;;  %v19915_v52 = vrot.slane %v9595_v39, %v22668_v4 }
 0x31c   :  { %14416 = vmatprep.subr.bf16.mxu0 %v23242_v54  ;;  %v10262_v54 = vrot.slane %v15806_v8, %v22668_v4  ;;  %v23246_v43 = vcombine.high %v23244_v14, %v23245_v17  ;;  %v19886_v14 = vrot.slane %v9596_v58, %v22668_v4  ;;  %v10271_v17 = vcombine.high %v10220_v42, %v10234_v60  ;;  %v15816_v62 = vld [vmem:[#allocation2 + $0x1160] ss:$79 sps:$4 sm:$0xff]   ;;  %v23269_v37 = vld [vmem:[#allocation43_spill] sm:$0xff] }
 0x31d   :  { %v19880_v12 = vrot.slane %v8916_v25, %v22668_v4  ;;  %v10955_v58 = vcombine.high %v19863_v47, %v19866_v35  ;;  %v15818_v27 = vld [vmem:[#allocation2 + $0x11fe] ss:$79 sps:$4 sm:$0xff]   ;;  %23262 = vst [vmem:[#allocation32_spill] sm:$0xff] %v19912_v44  ;;  %23263 = vst [vmem:[#allocation29_spill] sm:$0xff] %v19915_v52  ;;  %v19924_v24 = vrot.slane %v10951_v16, %v22668_v4 }
 0x31e   :  { %23253 = vst [vmem:[#allocation48_spill] sm:$0xff] %v19886_v14  ;;  %v23260_v8 = vld [vmem:[#allocation38_spill] sm:$0xff]  ;;  %v19918_v26 = vrot.slane %v10271_v17, %v22668_v4  ;;  %v11579_v13 = vrot.slane %v15816_v62, %v22668_v4  ;;  %v23270_v39 = vcombine.high %v23268_v49, %v23269_v37  ;;  %v11593_v17 = vrot.slane %v15818_v27, %v22668_v4 }
 0x31f   :  { %13617 = vmatpush1.bf16.xpose.msra.mxu1 %v23246_v43  ;;  %23251 = vst [vmem:[#allocation27_spill] sm:$0xff] %v19880_v12  ;;  %v10275_v43 = vcombine.high %v10248_v61, %v10262_v54  ;;  %v23261_v34 = vcombine.high %v23259_v57, %v23260_v8  ;;  %v10270_v8 = vcombine.low %v10220_v42, %v10234_v60  ;;  %23266 = vst [vmem:[#allocation50_spill] sm:$0xff] %v19924_v24 }
 0x320   :  { %13618 = vmatprep.subr.bf16.mxu1 %v23250_v55  ;;  %v23256_v55 = vld [vmem:[#allocation18_spill] sm:$0xff]  ;;  %23264 = vst [vmem:[#allocation33_spill] sm:$0xff] %v19918_v26  ;;  %v19927_v41 = vrot.slane %v10955_v58, %v22668_v4  ;;  %v12273_v62 = vrot.slane %v15826_v38, %v22668_v4  ;;  %v12287_v49 = vrot.slane %v15828_v40, %v22668_v4  ;;  %v23279_v38 = vld [vmem:[#allocation12_spill] sm:$0xff]  ;;  %v23285_v40 = vld [vmem:[#allocation57_spill] sm:$0xff] }
 0x321   :  { %v23258_v25 = vcombine.high %v23256_v55, %v23257_v11  ;;  %v15820_v55 = vld [vmem:[#allocation2 + $0x129c] ss:$79 sps:$4 sm:$0xff]   ;;  %v19921_v57 = vrot.slane %v10275_v43, %v22668_v4  ;;  %v12301_v37 = vrot.slane %v15830_v56, %v22668_v4  ;;  %v19946_v27 = vrot.slane %v10270_v8, %v22668_v4 }
 0x322   :  { %v15822_v11 = vld [vmem:[#allocation2 + $0x133a] ss:$79 sps:$4 sm:$0xff]   ;;  %23267 = vst [vmem:[#allocation40_spill] sm:$0xff] %v19927_v41  ;;  %v11607_v42 = vrot.slane %v15820_v55, %v22668_v4 }
 0x323   :  { %14417 = vmatpush1.bf16.xpose.msra.mxu0 %v23258_v25  ;;  %v15824_v25 = vld [vmem:[#allocation2 + $0x1188] ss:$79 sps:$4 sm:$0xff]   ;;  %23265 = vst [vmem:[#allocation51_spill] sm:$0xff] %v19921_v57  ;;  %v11621_v60 = vrot.slane %v15822_v11, %v22668_v4  ;;  %23274 = vst [vmem:[#allocation31_spill] sm:$0xff] %v19946_v27  ;;  %v10950_v11 = vcombine.low %v19857_v48, %v19860_v21  ;;  %v23280_v8 = vld [vmem:[#allocation46_spill] sm:$0xff]  ;;  %v11630_v21 = vcombine.high %v11579_v13, %v11593_v17 }
 0x324   :  { %14418 = vmatprep.subr.bf16.mxu0 %v23261_v34  ;;  %v10274_v34 = vcombine.low %v10248_v61, %v10262_v54  ;;  %v23271_v54 = vld [vmem:[#allocation45_spill] sm:$0xff]  ;;  %v23272_v43 = vld [vmem:[#allocation47_spill] sm:$0xff]  ;;  %v12259_v58 = vrot.slane %v15824_v25, %v22668_v4  ;;  %v23284_v56 = vld [vmem:[#allocation14_spill] sm:$0xff] }
 0x325   :  { %v23273_v16 = vcombine.high %v23271_v54, %v23272_v43  ;;  %v23276_v54 = vld [vmem:[#allocation56_spill] sm:$0xff]  ;;  %v23277_v25 = vld [vmem:[#allocation13_spill] sm:$0xff]  ;;  %v11633_v61 = vcombine.low %v11607_v42, %v11621_v60  ;;  %v23286_v24 = vcombine.high %v23284_v56, %v23285_v40  ;;  %v19982_v27 = vrot.slane %v11630_v21, %v22668_v4  ;;  %v23296_v40 = vld [vmem:[#allocation19_spill] sm:$0xff] }
 0x326   :  { %v19949_v55 = vrot.slane %v10274_v34, %v22668_v4  ;;  %v23278_v43 = vcombine.high %v23276_v54, %v23277_v25  ;;  %v23281_v34 = vcombine.high %v23279_v38, %v23280_v8  ;;  %v19968_v54 = vrot.slane %v10950_v11, %v22668_v4  ;;  %v23287_v8 = vld [vmem:[#allocation54_spill] sm:$0xff]  ;;  %v23297_v56 = vld [vmem:[#allocation53_spill] sm:$0xff] }
 0x327   :  { %13619 = vmatpush1.bf16.xpose.msra.mxu1 %v23270_v39  ;;  %v10954_v39 = vcombine.low %v19863_v47, %v19866_v35  ;;  %v12310_v47 = vcombine.high %v12259_v58, %v12273_v62  ;;  %v12314_v35 = vcombine.high %v12287_v49, %v12301_v37  ;;  %23290 = vst [vmem:[#allocation34_spill] sm:$0xff] %v19982_v27  ;;  %v23318_v21 = vld [vmem:[#allocation66_spill] sm:$0xff] }
 0x328   :  { %13620 = vmatprep.subr.bf16.mxu1 %v23273_v16  ;;  %23275 = vst [vmem:[#allocation49_spill] sm:$0xff] %v19949_v55  ;;  %v11634_v16 = vcombine.high %v11607_v42, %v11621_v60  ;;  %23282 = vst [vmem:[#allocation30_spill] sm:$0xff] %v19968_v54  ;;  %v19997_v42 = vrot.slane %v11633_v61, %v22668_v4  ;;  %v12309_v60 = vcombine.low %v12259_v58, %v12273_v62 }
 0x329   :  { %v19971_v25 = vrot.slane %v10954_v39, %v22668_v4  ;;  %v12313_v39 = vcombine.low %v12287_v49, %v12301_v37  ;;  %v2184_v58 = vcombine.low %v19531_v18, %v19534_v15  ;;  %v23304_v37 = vld [vmem:[#allocation60_spill] sm:$0xff] }
 0x32a   :  { %v19985_v11 = vrot.slane %v11634_v16, %v22668_v4  ;;  %23295 = vst [vmem:[#allocation18_spill] sm:$0xff] %v19997_v42  ;;  %v20014_v62 = vrot.slane %v12309_v60, %v22668_v4  ;;  %v23317_v16 = vld [vmem:[#allocation65_spill] sm:$0xff] }
 0x32b   :  { %14419 = vmatpush1.bf16.xpose.msra.mxu0 %v23278_v43  ;;  %23283 = vst [vmem:[#allocation17_spill] sm:$0xff] %v19971_v25  ;;  %v11629_v43 = vcombine.low %v11579_v13, %v11593_v17  ;;  %v19988_v13 = vrot.slane %v12310_v47, %v22668_v4  ;;  %v19991_v17 = vrot.slane %v12314_v35, %v22668_v4  ;;  %v23299_v47 = vld [vmem:[#allocation55_spill] sm:$0xff] }
 0x32c   :  { %14420 = vmatprep.subr.bf16.mxu0 %v23281_v34  ;;  %v23288_v34 = vld [vmem:[#allocation20_spill] sm:$0xff]  ;;  %23291 = vst [vmem:[#allocation36_spill] sm:$0xff] %v19985_v11  ;;  %v23300_v35 = vld [vmem:[#allocation59_spill] sm:$0xff]  ;;  %23302 = vst [vmem:[#allocation52_spill] sm:$0xff] %v20014_v62  ;;  %v20017_v49 = vrot.slane %v12313_v39, %v22668_v4 }
 0x32d   :  { %v23289_v48 = vcombine.high %v23287_v8, %v23288_v34  ;;  %23292 = vst [vmem:[#allocation15_spill] sm:$0xff] %v19988_v13  ;;  %23293 = vst [vmem:[#allocation16_spill] sm:$0xff] %v19991_v17  ;;  %v23301_v8 = vcombine.high %v23299_v47, %v23300_v35  ;;  %v23307_v47 = vld [vmem:[#allocation61_spill] sm:$0xff]  ;;  %v23308_v35 = vld [vmem:[#allocation22_spill] sm:$0xff] }
 0x32e   :  { %23303 = vst [vmem:[#allocation37_spill] sm:$0xff] %v20017_v49  ;;  %v23309_v60 = vcombine.high %v23307_v47, %v23308_v35  ;;  %v2860_v47 = vcombine.low %v19576_v30, %v19586_v9  ;;  %v4223_v35 = vcombine.low %v19636_v20, %v19639_v23 }
 0x32f   :  { %13621 = vmatpush1.bf16.xpose.msra.mxu1 %v23286_v24  ;;  %v19994_v24 = vrot.slane %v11629_v43, %v22668_v4  ;;  %v23305_v43 = vld [vmem:[#allocation58_spill] sm:$0xff] }
 0x330   :  { %13622 = vmatprep.subr.bf16.mxu1 %v23289_v48  ;;  %v23298_v48 = vcombine.high %v23296_v40, %v23297_v56  ;;  %v23306_v34 = vcombine.high %v23304_v37, %v23305_v43  ;;  %v2864_v40 = vcombine.low %v19543_v53, %v19546_v31  ;;  %v2180_v37 = vcombine.low %v19570_v3, %v19573_v22  ;;  %v23311_v56 = vld [vmem:[#allocation62_spill] sm:$0xff] }
 0x331   :  { %23294 = vst [vmem:[#allocation11_spill] sm:$0xff] %v19994_v24  ;;  %v14869_v61 = vcombine.low %v23311_v56, %v23311_v56  ;;  %v3539_v56 = vcombine.low %v19628_v33, %v19649_v59 }
 0x333   :  { %14421 = vmatpush1.bf16.xpose.msra.mxu0 %v23298_v48  ;;  %v20026_v48 = vld [vmem:[#allocation5 + $0x60] sm:$0x77] }
 0x334   :  { %14422 = vmatprep.subr.bf16.mxu0 %v23301_v8  ;;  %v23310_v8 = vld [vmem:[#allocation23_spill] sm:$0xff]  ;;  %v14832_v43 = vcombine.high %v20026_v48, %v20026_v48 }
 0x335   :  { %v14829_v39 = vcombine.low %v23310_v8, %v23310_v8  ;;  %v4219_v8 = vcombine.low %v19672_v28, %v19675_v50 }
 0x337   :  { %13623 = vmatpush1.bf16.xpose.msra.mxu1 %v23306_v34  ;;  %v20037_v34 = vld [vmem:[#allocation5 + $0x100] sm:$0x77] }
 0x338   :  { %13648 = vmatprep.subr.bf16.mxu1 %v2184_v58  ;;  %v3543_v58 = vcombine.low %v19611_v2, %v19625_v6 }
 0x33b   :  { %14423 = vmatpush1.bf16.xpose.msra.mxu0 %v23309_v60  ;;  %v4902_v60 = vcombine.low %v19680_v36, %v19689_v29 }
 0x33c   :  { %14448 = vmatprep.subr.bf16.mxu0 %v2864_v40  ;;  %v14872_v40 = vcombine.high %v20037_v34, %v20037_v34 }
 0x33e   :  { %13641 = vmatmul.mubr.bf16.vlgmr.msra.gmra.mrb[0].mxu1 %v14829_v39  ;;  %v5582_v39 = vcombine.low %v19692_v45, %v19695_v19 }
 0x33f   :  { %13649 = vmatpush1.bf16.xpose.msra.mxu1 %v2180_v37  ;;  %13680 = vmatprep.mubr.bf16.mxu1 %v14832_v43  ;;  %v6261_v37 = vcombine.low %v19753_v0, %v19761_v5  ;;  %v5578_v43 = vcombine.low %v19723_v10, %v19733_v7  ;;  %v23319_v5 = vld [vmem:[#allocation70_spill] sm:$0xff] }
 0x340   :  { %13650 = vmatprep.subr.bf16.mxu1 %v3543_v58  ;;  %v23312_v58 = vld [vmem:[#allocation21_spill] sm:$0xff]  ;;  %v8300_v7 = vcombine.low %v23319_v5, %v23318_v21 }
 0x342   :  { %14441 = vmatmul.mubr.bf16.vlgmr.msra.gmra.mrb[0].mxu0 %v14869_v61  ;;  %v4898_v61 = vcombine.low %v19714_v51, %v19717_v46 }
 0x343   :  { %14449 = vmatpush1.bf16.xpose.msra.mxu0 %v2860_v47  ;;  %14480 = vmatprep.mubr.bf16.mxu0 %v14872_v40  ;;  %v6941_v47 = vcombine.low %v23312_v58, %v19767_v1  ;;  %v23313_v40 = vld [vmem:[#allocation63_spill] sm:$0xff] }
 0x344   :  { %14450 = vmatprep.subr.bf16.mxu0 %v4223_v35  ;;  %v23314_v35 = vld [vmem:[#allocation26_spill] sm:$0xff] }
 0x347   :  { %13651 = vmatpush1.bf16.xpose.msra.mxu1 %v3539_v56  ;;  %v6257_v56 = vcombine.low %v23314_v35, %v23313_v40  ;;  %v23322_v40 = vld [vmem:[#allocation41_spill] sm:$0xff]  ;;  %v23323_v35 = vld [vmem:[#allocation28_spill] sm:$0xff] }
 0x348   :  { %13652 = vmatprep.subr.bf16.mxu1 %v4902_v60  ;;  %v23315_v60 = vld [vmem:[#allocation69_spill] sm:$0xff]  ;;  %v8296_v1 = vcombine.low %v23323_v35, %v23322_v40 }
 0x349   :  { %v15839_v35 = vld [vmem:[#allocation2 + $0xba] ss:$79 sps:$4 sm:$0xff]  }
 0x34b   :  { %14451 = vmatpush1.bf16.xpose.msra.mxu0 %v4219_v8  ;;  %v7620_v8 = vcombine.low %v23315_v60, %v19801_v63  ;;  %v23324_v63 = vld [vmem:[#allocation42_spill] sm:$0xff] }
 0x34c   :  { %14452 = vmatprep.subr.bf16.mxu0 %v5582_v39  ;;  %v23316_v39 = vld [vmem:[#allocation25_spill] sm:$0xff] }
 0x34d   :  { %v6937_v38 = vcombine.low %v23317_v16, %v23316_v39  ;;  %v9659_v39 = vcombine.low %v23324_v63, %v19886_v14  ;;  %v15840_v14 = vld [vmem:[#allocation2 + $0x158] ss:$79 sps:$4 sm:$0xff]  }
 0x34f   :  { %13653 = vmatpush1.bf16.xpose.msra.mxu1 %v4898_v61  ;;  %v23320_v61 = vld [vmem:[#allocation71_spill] sm:$0xff] }
 0x350   :  { %13654 = vmatprep.subr.bf16.mxu1 %v6261_v37  ;;  %v23321_v37 = vld [vmem:[#allocation72_spill] sm:$0xff] }
 0x353   :  { %14453 = vmatpush1.bf16.xpose.msra.mxu0 %v5578_v43  ;;  %v7616_v43 = vcombine.low %v23321_v37, %v23320_v61  ;;  %v9655_v61 = vcombine.low %v19912_v44, %v19915_v52 }
 0x354   :  { %14454 = vmatprep.subr.bf16.mxu0 %v6941_v47  ;;  %v8979_v47 = vcombine.low %v19872_v32, %v19880_v12  ;;  %v23327_v12 = vld [vmem:[#allocation50_spill] sm:$0xff]  ;;  %v20119_v32 = vld [vmem:[#allocation5 + $0x68] sm:$0x77] }
 0x355   :  { %v11018_v40 = vcombine.low %v23327_v12, %v19927_v41  ;;  %v2101_v41 = vrot.slane %v15840_v14, %v22668_v4  ;;  %23329 = vst [vmem:[#allocation38_spill] sm:$0xff] %v20119_v32 }
 0x357   :  { %13655 = vmatpush1.bf16.xpose.msra.mxu1 %v6257_v56  ;;  %v23325_v56 = vld [vmem:[#allocation44_spill] sm:$0xff] }
 0x358   :  { %13656 = vmatprep.subr.bf16.mxu1 %v7620_v8  ;;  %v23326_v8 = vld [vmem:[#allocation35_spill] sm:$0xff] }
 0x35b   :  { %14455 = vmatpush1.bf16.xpose.msra.mxu0 %v6937_v38  ;;  %v8975_v38 = vcombine.low %v23326_v8, %v23325_v56  ;;  %v15845_v8 = vld [vmem:[#allocation2 + $0xe2] ss:$79 sps:$4 sm:$0xff]  }
 0x35c   :  { %14456 = vmatprep.subr.bf16.mxu0 %v8300_v7  ;;  %v10338_v7 = vcombine.low %v19918_v26, %v19921_v57  ;;  %v15846_v57 = vld [vmem:[#allocation2 + $0x180] ss:$79 sps:$4 sm:$0xff]  }
 0x35d   :  { %v15847_v26 = vld [vmem:[#allocation2 + $0x21e] ss:$79 sps:$4 sm:$0xff]  }
 0x35f   :  { %13657 = vmatpush1.bf16.xpose.msra.mxu1 %v7616_v43  ;;  %v15838_v43 = vld [vmem:[#allocation2 + $0x1c] ss:$79 sps:$4 sm:$0xff]  }
 0x360   :  { %13658 = vmatprep.subr.bf16.mxu1 %v8979_v47  ;;  %v15841_v47 = vld [vmem:[#allocation2 + $0x1f6] ss:$79 sps:$4 sm:$0xff]   ;;  %v2073_v52 = vrot.slane %v15838_v43, %v22668_v4  ;;  %v2795_v43 = vrot.slane %v15847_v26, %v22668_v4  ;;  %v14831_v26 = vcombine.low %v20026_v48, %v20026_v48 }
 0x361   :  { %v2115_v12 = vrot.slane %v15841_v47, %v22668_v4  ;;  %v15848_v47 = vld [vmem:[#allocation2 + $0x294] ss:$79 sps:$4 sm:$0xff]  }
 0x362   :  { %v3432_v37 = vrot.slane %v15848_v47, %v22668_v4  ;;  %v15861_v47 = vld [vmem:[#allocation2 + $0x5d2] ss:$79 sps:$4 sm:$0xff]  }
 0x363   :  { %14457 = vmatpush1.bf16.xpose.msra.mxu0 %v8296_v1  ;;  %v15844_v1 = vld [vmem:[#allocation2 + $0x44] ss:$79 sps:$4 sm:$0xff]   ;;  %v2123_v14 = vcombine.high %v2101_v41, %v2115_v12  ;;  %v2122_v63 = vcombine.low %v2101_v41, %v2115_v12  ;;  %v23331_v41 = vcombine.high %v19531_v18, %v19534_v15 }
 0x364   :  { %14458 = vmatprep.subr.bf16.mxu0 %v9659_v39  ;;  %v23328_v39 = vld [vmem:[#allocation31_spill] sm:$0xff] }
 0x365   :  { %v10334_v56 = vcombine.low %v23328_v39, %v19949_v55  ;;  %v2753_v55 = vrot.slane %v15844_v1, %v22668_v4  ;;  %v2767_v39 = vrot.slane %v15845_v8, %v22668_v4  ;;  %v15851_v1 = vld [vmem:[#allocation2 + $0x46e] ss:$79 sps:$4 sm:$0xff]  }
 0x366   :  { %v3474_v12 = vrot.slane %v15851_v1, %v22668_v4 }
 0x367   :  { %13659 = vmatpush1.bf16.xpose.msra.mxu1 %v8975_v38  ;;  %v11697_v38 = vcombine.low %v19982_v27, %v19985_v11  ;;  %v2781_v11 = vrot.slane %v15846_v57, %v22668_v4  ;;  %v15849_v27 = vld [vmem:[#allocation2 + $0x332] ss:$79 sps:$4 sm:$0xff]   ;;  %v12373_v57 = vcombine.low %v20014_v62, %v20017_v49  ;;  %v20121_v49 = vld [vmem:[#allocation5 + $0x108] sm:$0x77]  ;;  %v2798_v62 = vcombine.low %v2753_v55, %v2767_v39 }
 0x368   :  { %13660 = vmatprep.subr.bf16.mxu1 %v10338_v7  ;;  %v2087_v7 = vrot.slane %v15839_v35, %v22668_v4  ;;  %23330 = vst [vmem:[#allocation39_spill] sm:$0xff] %v20121_v49  ;;  %v3446_v8 = vrot.slane %v15849_v27, %v22668_v4  ;;  %v14874_v18 = vcombine.high %v20121_v49, %v20121_v49 }
 0x369   :  { %v2802_v48 = vcombine.low %v2781_v11, %v2795_v43 }
 0x36a   :  { %v2119_v35 = vcombine.high %v2073_v52, %v2087_v7  ;;  %v3478_v1 = vcombine.high %v3432_v37, %v3446_v8  ;;  %v3477_v49 = vcombine.low %v3432_v37, %v3446_v8  ;;  %v20191_v8 = vrot.slane %v15861_v47, %v22668_v4 }
 0x36b   :  { %14459 = vmatpush1.bf16.xpose.msra.mxu0 %v9655_v61  ;;  %v12377_v61 = vcombine.low %v19988_v13, %v19991_v17  ;;  %v2799_v17 = vcombine.high %v2753_v55, %v2767_v39  ;;  %v15850_v13 = vld [vmem:[#allocation2 + $0x3d0] ss:$79 sps:$4 sm:$0xff]   ;;  %v15858_v39 = vld [vmem:[#allocation2 + $0x648] ss:$79 sps:$4 sm:$0xff]  }
 0x36c   :  { %14460 = vmatprep.subr.bf16.mxu0 %v11018_v40  ;;  %v11014_v40 = vcombine.low %v19968_v54, %v19971_v25  ;;  %v11693_v25 = vcombine.low %v19994_v24, %v19997_v42  ;;  %v15852_v54 = vld [vmem:[#allocation2 + $0x2bc] ss:$79 sps:$4 sm:$0xff]   ;;  %v20114_v44 = vrot.slane %v2119_v35, %v22668_v4  ;;  %v20117_v42 = vrot.slane %v2123_v14, %v22668_v4  ;;  %v15860_v14 = vld [vmem:[#allocation2 + $0x534] ss:$79 sps:$4 sm:$0xff]  }
 0x36d   :  { %v2118_v24 = vcombine.low %v2073_v52, %v2087_v7  ;;  %v20126_v21 = vrot.slane %v2799_v17, %v22668_v4  ;;  %v3460_v52 = vrot.slane %v15850_v13, %v22668_v4  ;;  %v20137_v55 = vrot.slane %v15852_v54, %v22668_v4  ;;  %v15856_v17 = vld [vmem:[#allocation2 + $0x50c] ss:$79 sps:$4 sm:$0xff]  }
 0x36e   :  { %v15857_v13 = vld [vmem:[#allocation2 + $0x5aa] ss:$79 sps:$4 sm:$0xff]   ;;  %v14834_v7 = vcombine.high %v20119_v32, %v20119_v32  ;;  %v20156_v54 = vrot.slane %v2122_v63, %v22668_v4  ;;  %v23332_v63 = vcombine.high %v19543_v53, %v19546_v31  ;;  %v20182_v53 = vrot.slane %v15858_v39, %v22668_v4 }
 0x36f   :  { %13661 = vmatpush1.bf16.xpose.msra.mxu1 %v10334_v56  ;;  %v2803_v56 = vcombine.high %v2781_v11, %v2795_v43  ;;  %v20153_v15 = vrot.slane %v2118_v24, %v22668_v4  ;;  %v15859_v43 = vld [vmem:[#allocation2 + $0x6e6] ss:$79 sps:$4 sm:$0xff]   ;;  %v20179_v24 = vrot.slane %v15857_v13, %v22668_v4  ;;  %v20188_v37 = vrot.slane %v15860_v14, %v22668_v4 }
 0x370   :  { %13662 = vmatprep.subr.bf16.mxu1 %v11697_v38  ;;  %v15853_v38 = vld [vmem:[#allocation2 + $0x35a] ss:$79 sps:$4 sm:$0xff]   ;;  %v20185_v31 = vrot.slane %v15859_v43, %v22668_v4  ;;  %v23333_v13 = vcombine.high %v19570_v3, %v19573_v22  ;;  %v23334_v14 = vcombine.high %v19611_v2, %v19625_v6 }
 0x371   :  { %v20129_v35 = vrot.slane %v2803_v56, %v22668_v4  ;;  %v20140_v27 = vrot.slane %v15853_v38, %v22668_v4  ;;  %v20159_v56 = vrot.slane %v2798_v62, %v22668_v4  ;;  %v15862_v38 = vld [vmem:[#allocation2 + $0x670] ss:$79 sps:$4 sm:$0xff]   ;;  %v3481_v62 = vcombine.low %v3460_v52, %v3474_v12 }
 0x372   :  { %v4841_v6 = vcombine.high %v20182_v53, %v20185_v31 }
 0x373   :  { %14461 = vmatpush1.bf16.xpose.msra.mxu0 %v11014_v40  ;;  %v15854_v40 = vld [vmem:[#allocation2 + $0x3f8] ss:$79 sps:$4 sm:$0xff]   ;;  %v4158_v32 = vcombine.high %v20137_v55, %v20140_v27  ;;  %v4157_v43 = vcombine.low %v20137_v55, %v20140_v27  ;;  %v20232_v55 = vrot.slane %v3481_v62, %v22668_v4 }
 0x374   :  { %14462 = vmatprep.subr.bf16.mxu0 %v12377_v61  ;;  %v15855_v61 = vld [vmem:[#allocation2 + $0x496] ss:$79 sps:$4 sm:$0xff]  }
 0x375   :  { %v20146_v11 = vrot.slane %v15855_v61, %v22668_v4  ;;  %v20176_v61 = vrot.slane %v15856_v17, %v22668_v4  ;;  %v20219_v47 = vrot.slane %v4158_v32, %v22668_v4  ;;  %v23336_v32 = vcombine.high %v19576_v30, %v19586_v9  ;;  %v15864_v27 = vld [vmem:[#allocation2 + $0x784] ss:$79 sps:$4 sm:$0xff]   ;;  %v15868_v30 = vld [vmem:[#allocation2 + $0x7ac] ss:$79 sps:$4 sm:$0xff]  }
 0x376   :  { %v23362_v17 = vld [vmem:[#allocation63_spill] sm:$0xff] }
 0x377   :  { %13663 = vmatpush1.bf16.xpose.msra.mxu1 %v11693_v25  ;;  %v20143_v25 = vrot.slane %v15854_v40, %v22668_v4  ;;  %v15863_v40 = vld [vmem:[#allocation2 + $0x70e] ss:$79 sps:$4 sm:$0xff]   ;;  %v4837_v2 = vcombine.high %v20176_v61, %v20179_v24  ;;  %v4836_v62 = vcombine.low %v20176_v61, %v20179_v24 }
 0x378   :  { %13688 = vmatprep.subr.bf16.mxu1 %v23331_v41  ;;  %v20169_v41 = vrot.slane %v2802_v48, %v22668_v4  ;;  %v20194_v48 = vrot.slane %v3478_v1, %v22668_v4 }
 0x379   :  { %v4162_v5 = vcombine.high %v20143_v25, %v20146_v11  ;;  %v4161_v22 = vcombine.low %v20143_v25, %v20146_v11  ;;  %v15865_v25 = vld [vmem:[#allocation2 + $0x822] ss:$79 sps:$4 sm:$0xff]  }
 0x37b   :  { %14463 = vmatpush1.bf16.xpose.msra.mxu0 %v12373_v57  ;;  %v3482_v57 = vcombine.high %v3460_v52, %v3474_v12  ;;  %v20197_v52 = vrot.slane %v15862_v38, %v22668_v4  ;;  %v20200_v12 = vrot.slane %v15863_v40, %v22668_v4  ;;  %v20222_v3 = vrot.slane %v4162_v5, %v22668_v4  ;;  %v15866_v40 = vld [vmem:[#allocation2 + $0x8c0] ss:$79 sps:$4 sm:$0xff]  }
 0x37c   :  { %14488 = vmatprep.subr.bf16.mxu0 %v23332_v63  ;;  %v5517_v5 = vcombine.high %v20188_v37, %v20191_v8  ;;  %v23337_v38 = vcombine.high %v19636_v20, %v19639_v23  ;;  %v15867_v63 = vld [vmem:[#allocation2 + $0x95e] ss:$79 sps:$4 sm:$0xff]   ;;  %v20263_v20 = vrot.slane %v4837_v2, %v22668_v4  ;;  %v4840_v23 = vcombine.low %v20182_v53, %v20185_v31 }
 0x37d   :  { %v20208_v39 = vrot.slane %v3482_v57, %v22668_v4  ;;  %v20258_v57 = vrot.slane %v4161_v22, %v22668_v4  ;;  %v20272_v22 = vrot.slane %v4841_v6, %v22668_v4  ;;  %v6150_v2 = vrot.slane %v15864_v27, %v22668_v4  ;;  %v15873_v27 = vld [vmem:[#allocation2 + $0xa9a] ss:$79 sps:$4 sm:$0xff]  }
 0x37e   :  { %13681 = vmatmul.mubr.bf16.vlgmr.msra.gmra.mrb[0].mxu1 %v14831_v26  ;;  %v20211_v26 = vrot.slane %v3477_v49, %v22668_v4  ;;  %v20275_v61 = vrot.slane %v5517_v5, %v22668_v4  ;;  %v23338_v53 = vcombine.high %v19628_v33, %v19649_v59  ;;  %v6164_v31 = vrot.slane %v15865_v25, %v22668_v4 }
 0x37f   :  { %13689 = vmatpush1.bf16.xpose.msra.mxu1 %v23333_v13  ;;  %13720 = vmatprep.mubr.bf16.mxu1 %v14834_v7  ;;  %v23335_v7 = vcombine.low %v20037_v34, %v20037_v34  ;;  %v5521_v34 = vcombine.high %v20197_v52, %v20200_v12  ;;  %v15869_v13 = vld [vmem:[#allocation2 + $0x84a] ss:$79 sps:$4 sm:$0xff]   ;;  %v6830_v6 = vrot.slane %v15868_v30, %v22668_v4 }
 0x380   :  { %13690 = vmatprep.subr.bf16.mxu1 %v23334_v14  ;;  %v15870_v14 = vld [vmem:[#allocation2 + $0x8e8] ss:$79 sps:$4 sm:$0xff]   ;;  %v6844_v5 = vrot.slane %v15869_v13, %v22668_v4  ;;  %v20297_v25 = vrot.slane %v4836_v62, %v22668_v4  ;;  %v15877_v13 = vld [vmem:[#allocation2 + $0xac2] ss:$79 sps:$4 sm:$0xff]  }
 0x381   :  { %v20278_v24 = vrot.slane %v5521_v34, %v22668_v4  ;;  %v6858_v33 = vrot.slane %v15870_v14, %v22668_v4  ;;  %v15872_v34 = vld [vmem:[#allocation2 + $0x9fc] ss:$79 sps:$4 sm:$0xff]   ;;  %v15878_v14 = vld [vmem:[#allocation2 + $0xb60] ss:$79 sps:$4 sm:$0xff]  }
 0x382   :  { %14481 = vmatmul.mubr.bf16.vlgmr.msra.gmra.mrb[0].mxu0 %v23335_v7  ;;  %v15871_v7 = vld [vmem:[#allocation2 + $0x986] ss:$79 sps:$4 sm:$0xff]   ;;  %v7509_v62 = vrot.slane %v15872_v34, %v22668_v4  ;;  %v6875_v34 = vcombine.low %v6830_v6, %v6844_v5 }
 0x383   :  { %14489 = vmatpush1.bf16.xpose.msra.mxu0 %v23336_v32  ;;  %14520 = vmatprep.mubr.bf16.mxu0 %v14874_v18  ;;  %v20255_v18 = vrot.slane %v4157_v43, %v22668_v4  ;;  %v5516_v32 = vcombine.low %v20188_v37, %v20191_v8  ;;  %v5520_v43 = vcombine.low %v20197_v52, %v20200_v12 }
 0x384   :  { %14490 = vmatprep.subr.bf16.mxu0 %v23337_v38  ;;  %v6178_v37 = vrot.slane %v15866_v40, %v22668_v4  ;;  %v6192_v8 = vrot.slane %v15867_v63, %v22668_v4  ;;  %v23339_v12 = vcombine.high %v19680_v36, %v19689_v29  ;;  %v6872_v59 = vrot.slane %v15871_v7, %v22668_v4  ;;  %v15874_v40 = vld [vmem:[#allocation2 + $0xb38] ss:$79 sps:$4 sm:$0xff]   ;;  %v15879_v7 = vld [vmem:[#allocation2 + $0xbfe] ss:$79 sps:$4 sm:$0xff]  }
 0x385   :  { %v20300_v38 = vrot.slane %v4840_v23, %v22668_v4  ;;  %v15875_v63 = vld [vmem:[#allocation2 + $0xbd6] ss:$79 sps:$4 sm:$0xff]   ;;  %v23340_v29 = vcombine.high %v19672_v28, %v19675_v50  ;;  %v20306_v30 = vrot.slane %v5516_v32, %v22668_v4  ;;  %v6196_v28 = vcombine.high %v6150_v2, %v6164_v31 }
 0x386   :  { %v15876_v36 = vld [vmem:[#allocation2 + $0xa24] ss:$79 sps:$4 sm:$0xff]   ;;  %v6195_v50 = vcombine.low %v6150_v2, %v6164_v31  ;;  %v6876_v52 = vcombine.high %v6830_v6, %v6844_v5  ;;  %v6880_v9 = vcombine.high %v6858_v33, %v6872_v59  ;;  %v6199_v1 = vcombine.low %v6178_v37, %v6192_v8 }
 0x387   :  { %13691 = vmatpush1.bf16.xpose.msra.mxu1 %v23338_v53  ;;  %v23341_v53 = vcombine.high %v19692_v45, %v19695_v19  ;;  %v7523_v23 = vrot.slane %v15873_v27, %v22668_v4  ;;  %v7537_v49 = vrot.slane %v15874_v40, %v22668_v4  ;;  %v7551_v45 = vrot.slane %v15875_v63, %v22668_v4  ;;  %v23344_v40 = vld [vmem:[#allocation24_spill] sm:$0xff]  ;;  %v15886_v32 = vld [vmem:[#allocation2 + $0xdd8] ss:$79 sps:$4 sm:$0xff]  }
 0x388   :  { %13692 = vmatprep.subr.bf16.mxu1 %v23339_v12  ;;  %v20316_v12 = vrot.slane %v5520_v43, %v22668_v4  ;;  %v8189_v19 = vrot.slane %v15876_v36, %v22668_v4  ;;  %v8203_v43 = vrot.slane %v15877_v13, %v22668_v4  ;;  %v20327_v2 = vrot.slane %v15878_v14, %v22668_v4 }
 0x389   :  { %v20330_v31 = vrot.slane %v15879_v7, %v22668_v4  ;;  %v23345_v63 = vcombine.high %v19753_v0, %v23344_v40  ;;  %v20347_v13 = vrot.slane %v6876_v52, %v22668_v4  ;;  %v20353_v14 = vrot.slane %v6195_v50, %v22668_v4  ;;  %v23351_v0 = vld [vmem:[#allocation64_spill] sm:$0xff] }
 0x38a   :  { %23342 = vst [vmem:[#allocation43_spill] sm:$0xff] %v20316_v12  ;;  %v20356_v6 = vrot.slane %v6199_v1, %v22668_v4  ;;  %v7555_v5 = vcombine.high %v7509_v62, %v7523_v23  ;;  %v7559_v7 = vcombine.high %v7537_v49, %v7551_v45  ;;  %v23353_v1 = vld [vmem:[#allocation67_spill] sm:$0xff]  ;;  %v15883_v40 = vld [vmem:[#allocation2 + $0xe4e] ss:$79 sps:$4 sm:$0xff]   ;;  %v7554_v27 = vcombine.low %v7509_v62, %v7523_v23 }
 0x38b   :  { %14491 = vmatpush1.bf16.xpose.msra.mxu0 %v23340_v29  ;;  %v6200_v29 = vcombine.high %v6178_v37, %v6192_v8  ;;  %v23343_v37 = vcombine.high %v19714_v51, %v19717_v46  ;;  %v20336_v8 = vrot.slane %v6196_v28, %v22668_v4  ;;  %23347 = vst [vmem:[#allocation47_spill] sm:$0xff] %v20347_v13  ;;  %23349 = vst [vmem:[#allocation13_spill] sm:$0xff] %v20353_v14  ;;  %v23361_v23 = vld [vmem:[#allocation26_spill] sm:$0xff] }
 0x38c   :  { %14492 = vmatprep.subr.bf16.mxu0 %v23341_v53  ;;  %v20350_v51 = vrot.slane %v6880_v9, %v22668_v4  ;;  %v6879_v46 = vcombine.low %v6858_v33, %v6872_v59  ;;  %23350 = vst [vmem:[#allocation12_spill] sm:$0xff] %v20356_v6  ;;  %v23352_v53 = vcombine.high %v19723_v10, %v23351_v0  ;;  %v15881_v9 = vld [vmem:[#allocation2 + $0xd12] ss:$79 sps:$4 sm:$0xff]   ;;  %v15884_v10 = vld [vmem:[#allocation2 + $0xc9c] ss:$79 sps:$4 sm:$0xff]  }
 0x38d   :  { %v20344_v36 = vrot.slane %v6200_v29, %v22668_v4  ;;  %v8235_v28 = vcombine.high %v8189_v19, %v8203_v43  ;;  %v8239_v52 = vcombine.high %v20327_v2, %v20330_v31  ;;  %v15880_v29 = vld [vmem:[#allocation2 + $0xc74] ss:$79 sps:$4 sm:$0xff]   ;;  %v23354_v50 = vcombine.high %v23312_v58, %v23353_v1  ;;  %v15885_v33 = vld [vmem:[#allocation2 + $0xd3a] ss:$79 sps:$4 sm:$0xff]  }
 0x38e   :  { %23348 = vst [vmem:[#allocation56_spill] sm:$0xff] %v20350_v51  ;;  %v20373_v0 = vrot.slane %v6875_v34, %v22668_v4  ;;  %v15887_v59 = vld [vmem:[#allocation2 + $0xe76] ss:$79 sps:$4 sm:$0xff]   ;;  %v20379_v11 = vrot.slane %v7555_v5, %v22668_v4  ;;  %v7558_v58 = vcombine.low %v7537_v49, %v7551_v45  ;;  %v8234_v1 = vcombine.low %v8189_v19, %v8203_v43  ;;  %v23371_v43 = vld [vmem:[#allocation70_spill] sm:$0xff] }
 0x38f   :  { %13693 = vmatpush1.bf16.xpose.msra.mxu1 %v23343_v37  ;;  %23346 = vst [vmem:[#allocation45_spill] sm:$0xff] %v20344_v36  ;;  %v15882_v37 = vld [vmem:[#allocation2 + $0xdb0] ss:$79 sps:$4 sm:$0xff]   ;;  %v20387_v34 = vrot.slane %v8235_v28, %v22668_v4  ;;  %v8868_v62 = vrot.slane %v15880_v29, %v22668_v4  ;;  %v23363_v5 = vcombine.high %v23361_v23, %v23362_v17  ;;  %v15888_v29 = vld [vmem:[#allocation2 + $0xeec] ss:$79 sps:$4 sm:$0xff]  }
 0x390   :  { %13694 = vmatprep.subr.bf16.mxu1 %v23345_v63  ;;  %23355 = vst [vmem:[#allocation46_spill] sm:$0xff] %v20373_v0  ;;  %23357 = vst [vmem:[#allocation57_spill] sm:$0xff] %v20379_v11  ;;  %v20384_v63 = vrot.slane %v7559_v7, %v22668_v4  ;;  %v8882_v49 = vrot.slane %v15881_v9, %v22668_v4  ;;  %v8896_v45 = vrot.slane %v15882_v37, %v22668_v4  ;;  %v15889_v9 = vld [vmem:[#allocation2 + $0xf8a] ss:$79 sps:$4 sm:$0xff]  }
 0x391   :  { %23359 = vst [vmem:[#allocation20_spill] sm:$0xff] %v20387_v34  ;;  %v8910_v19 = vrot.slane %v15883_v40, %v22668_v4  ;;  %v9548_v7 = vrot.slane %v15884_v10, %v22668_v4  ;;  %v9562_v28 = vrot.slane %v15885_v33, %v22668_v4  ;;  %v20407_v17 = vrot.slane %v15886_v32, %v22668_v4  ;;  %v15890_v23 = vld [vmem:[#allocation2 + $0x1028] ss:$79 sps:$4 sm:$0xff]   ;;  %v15893_v33 = vld [vmem:[#allocation2 + $0xfb2] ss:$79 sps:$4 sm:$0xff]  }
 0x392   :  { %23358 = vst [vmem:[#allocation54_spill] sm:$0xff] %v20384_v63  ;;  %v20411_v37 = vrot.slane %v7554_v27, %v22668_v4  ;;  %v20414_v40 = vrot.slane %v7558_v58, %v22668_v4  ;;  %v23368_v10 = vld [vmem:[#allocation25_spill] sm:$0xff]  ;;  %v20420_v32 = vrot.slane %v8234_v1, %v22668_v4  ;;  %v23372_v0 = vld [vmem:[#allocation66_spill] sm:$0xff]  ;;  %v10227_v11 = vrot.slane %v15888_v29, %v22668_v4 }
 0x393   :  { %14493 = vmatpush1.bf16.xpose.msra.mxu0 %v23352_v53  ;;  %v20376_v53 = vrot.slane %v6879_v46, %v22668_v4  ;;  %v20390_v46 = vrot.slane %v8239_v52, %v22668_v4  ;;  %v9590_v52 = vrot.slane %v15887_v59, %v22668_v4  ;;  %v15894_v59 = vld [vmem:[#allocation2 + $0x1050] ss:$79 sps:$4 sm:$0xff]   ;;  %v9594_v6 = vcombine.high %v9548_v7, %v9562_v28  ;;  %v15902_v34 = vld [vmem:[#allocation2 + $0x12c8] ss:$79 sps:$4 sm:$0xff]  }
 0x394   :  { %14494 = vmatprep.subr.bf16.mxu0 %v23354_v50  ;;  %v8238_v50 = vcombine.low %v20327_v2, %v20330_v31  ;;  %v23364_v2 = vld [vmem:[#allocation68_spill] sm:$0xff]  ;;  %23366 = vst [vmem:[#allocation53_spill] sm:$0xff] %v20411_v37  ;;  %23367 = vst [vmem:[#allocation55_spill] sm:$0xff] %v20414_v40  ;;  %v8917_v27 = vcombine.low %v8896_v45, %v8910_v19  ;;  %v10241_v58 = vrot.slane %v15889_v9, %v22668_v4 }
 0x395   :  { %23356 = vst [vmem:[#allocation14_spill] sm:$0xff] %v20376_v53  ;;  %23360 = vst [vmem:[#allocation19_spill] sm:$0xff] %v20390_v46  ;;  %v23365_v31 = vcombine.high %v23315_v60, %v23364_v2  ;;  %v15891_v60 = vld [vmem:[#allocation2 + $0x10c6] ss:$79 sps:$4 sm:$0xff]   ;;  %v23369_v2 = vcombine.high %v23317_v16, %v23368_v10  ;;  %v23373_v53 = vcombine.high %v23371_v43, %v23372_v0  ;;  %v15901_v40 = vld [vmem:[#allocation2 + $0x122a] ss:$79 sps:$4 sm:$0xff]  }
 0x396   :  { %23370 = vst [vmem:[#allocation59_spill] sm:$0xff] %v20420_v32  ;;  %v20430_v14 = vrot.slane %v8238_v50, %v22668_v4  ;;  %v8914_v16 = vcombine.high %v8868_v62, %v8882_v49  ;;  %v8913_v10 = vcombine.low %v8868_v62, %v8882_v49  ;;  %v9598_v13 = vcombine.high %v20407_v17, %v9590_v52  ;;  %v15903_v46 = vld [vmem:[#allocation2 + $0x1366] ss:$79 sps:$4 sm:$0xff]  }
 0x397   :  { %13695 = vmatpush1.bf16.xpose.msra.mxu1 %v23363_v5  ;;  %v15892_v5 = vld [vmem:[#allocation2 + $0xf14] ss:$79 sps:$4 sm:$0xff]   ;;  %v10255_v0 = vrot.slane %v15890_v23, %v22668_v4  ;;  %v20443_v62 = vrot.slane %v15893_v33, %v22668_v4  ;;  %v20446_v49 = vrot.slane %v15894_v59, %v22668_v4  ;;  %v9593_v23 = vcombine.low %v9548_v7, %v9562_v28 }
 0x398   :  { %13696 = vmatprep.subr.bf16.mxu1 %v23365_v31  ;;  %v15895_v31 = vld [vmem:[#allocation2 + $0x10ee] ss:$79 sps:$4 sm:$0xff]   ;;  %23374 = vst [vmem:[#allocation60_spill] sm:$0xff] %v20430_v14  ;;  %v20440_v50 = vrot.slane %v15892_v5, %v22668_v4  ;;  %v20455_v9 = vrot.slane %v8914_v16, %v22668_v4  ;;  %v23379_v5 = vld [vmem:[#allocation73_spill] sm:$0xff]  ;;  %v23380_v33 = vld [vmem:[#allocation27_spill] sm:$0xff]  ;;  %v20472_v16 = vrot.slane %v8913_v10, %v22668_v4 }
 0x399   :  { %v20449_v43 = vrot.slane %v15895_v31, %v22668_v4  ;;  %v23381_v1 = vcombine.high %v23379_v5, %v23380_v33  ;;  %v20466_v31 = vrot.slane %v9594_v6, %v22668_v4  ;;  %v20475_v7 = vrot.slane %v8917_v27, %v22668_v4  ;;  %v23388_v5 = vld [vmem:[#allocation41_spill] sm:$0xff] }
 0x39a   :  { %23378 = vst [vmem:[#allocation58_spill] sm:$0xff] %v20455_v9  ;;  %23385 = vst [vmem:[#allocation62_spill] sm:$0xff] %v20472_v16  ;;  %v9597_v28 = vcombine.low %v20407_v17, %v9590_v52  ;;  %v10953_v6 = vcombine.high %v20440_v50, %v20443_v62  ;;  %v15896_v33 = vld [vmem:[#allocation2 + $0x1164] ss:$79 sps:$4 sm:$0xff]   ;;  %v23390_v52 = vld [vmem:[#allocation42_spill] sm:$0xff]  ;;  %v20495_v37 = vrot.slane %v9593_v23, %v22668_v4 }
 0x39b   :  { %14495 = vmatpush1.bf16.xpose.msra.mxu0 %v23369_v2  ;;  %v8918_v2 = vcombine.high %v8896_v45, %v8910_v19  ;;  %v23375_v45 = vld [vmem:[#allocation72_spill] sm:$0xff]  ;;  %v23376_v19 = vld [vmem:[#allocation71_spill] sm:$0xff]  ;;  %23383 = vst [vmem:[#allocation22_spill] sm:$0xff] %v20466_v31  ;;  %23386 = vst [vmem:[#allocation21_spill] sm:$0xff] %v20475_v7  ;;  %v11586_v14 = vrot.slane %v15896_v33, %v22668_v4  ;;  %v12280_v33 = vrot.slane %v15901_v40, %v22668_v4 }
 0x39c   :  { %14496 = vmatprep.subr.bf16.mxu0 %v23373_v53  ;;  %v10269_v53 = vrot.slane %v15891_v60, %v22668_v4  ;;  %v23377_v29 = vcombine.high %v23375_v45, %v23376_v19  ;;  %v20469_v45 = vrot.slane %v9598_v13, %v22668_v4  ;;  %v10273_v19 = vcombine.high %v10227_v11, %v10241_v58  ;;  %v15897_v10 = vld [vmem:[#allocation2 + $0x1202] ss:$79 sps:$4 sm:$0xff]  }
 0x39d   :  { %v20463_v59 = vrot.slane %v8918_v2, %v22668_v4  ;;  %v10957_v13 = vcombine.high %v20446_v49, %v20449_v43  ;;  %v23391_v60 = vld [vmem:[#allocation48_spill] sm:$0xff]  ;;  %23393 = vst [vmem:[#allocation69_spill] sm:$0xff] %v20495_v37  ;;  %v20498_v27 = vrot.slane %v9597_v28, %v22668_v4  ;;  %v20507_v31 = vrot.slane %v10953_v6, %v22668_v4  ;;  %v23399_v16 = vld [vmem:[#allocation35_spill] sm:$0xff]  ;;  %v23410_v40 = vld [vmem:[#allocation50_spill] sm:$0xff] }
 0x39e   :  { %23384 = vst [vmem:[#allocation23_spill] sm:$0xff] %v20469_v45  ;;  %v23392_v32 = vcombine.high %v23390_v52, %v23391_v60  ;;  %v20501_v17 = vrot.slane %v10273_v19, %v22668_v4  ;;  %v10272_v60 = vcombine.low %v10227_v11, %v10241_v58  ;;  %v23400_v7 = vld [vmem:[#allocation44_spill] sm:$0xff]  ;;  %v11600_v19 = vrot.slane %v15897_v10, %v22668_v4 }
 0x39f   :  { %13697 = vmatpush1.bf16.xpose.msra.mxu1 %v23377_v29  ;;  %23382 = vst [vmem:[#allocation61_spill] sm:$0xff] %v20463_v59  ;;  %v10277_v29 = vcombine.high %v10255_v0, %v10269_v53  ;;  %23394 = vst [vmem:[#allocation65_spill] sm:$0xff] %v20498_v27  ;;  %v20510_v23 = vrot.slane %v10957_v13, %v22668_v4  ;;  %v23401_v28 = vcombine.high %v23399_v16, %v23400_v7 }
 0x3a0   :  { %13698 = vmatprep.subr.bf16.mxu1 %v23381_v1  ;;  %v23387_v1 = vld [vmem:[#allocation28_spill] sm:$0xff]  ;;  %23395 = vst [vmem:[#allocation24_spill] sm:$0xff] %v20501_v17  ;;  %23397 = vst [vmem:[#allocation67_spill] sm:$0xff] %v20507_v31  ;;  %v12294_v16 = vrot.slane %v15902_v34, %v22668_v4  ;;  %v12308_v7 = vrot.slane %v15903_v46, %v22668_v4  ;;  %v20529_v10 = vrot.slane %v10272_v60, %v22668_v4  ;;  %v23415_v46 = vld [vmem:[#allocation31_spill] sm:$0xff] }
 0x3a1   :  { %v23389_v2 = vcombine.high %v23387_v1, %v23388_v5  ;;  %v15898_v1 = vld [vmem:[#allocation2 + $0x12a0] ss:$79 sps:$4 sm:$0xff]   ;;  %v20504_v52 = vrot.slane %v10277_v29, %v22668_v4  ;;  %23398 = vst [vmem:[#allocation26_spill] sm:$0xff] %v20510_v23  ;;  %v23403_v29 = vld [vmem:[#allocation51_spill] sm:$0xff]  ;;  %v23416_v34 = vld [vmem:[#allocation49_spill] sm:$0xff] }
 0x3a2   :  { %v15899_v5 = vld [vmem:[#allocation2 + $0x133e] ss:$79 sps:$4 sm:$0xff]   ;;  %v11614_v11 = vrot.slane %v15898_v1, %v22668_v4  ;;  %23405 = vst [vmem:[#allocation63_spill] sm:$0xff] %v20529_v10  ;;  %v23417_v31 = vcombine.high %v23415_v46, %v23416_v34  ;;  %v23428_v46 = vld [vmem:[#allocation17_spill] sm:$0xff] }
 0x3a3   :  { %14497 = vmatpush1.bf16.xpose.msra.mxu0 %v23389_v2  ;;  %v15900_v2 = vld [vmem:[#allocation2 + $0x118c] ss:$79 sps:$4 sm:$0xff]   ;;  %23396 = vst [vmem:[#allocation64_spill] sm:$0xff] %v20504_v52  ;;  %v11628_v58 = vrot.slane %v15899_v5, %v22668_v4  ;;  %v10952_v5 = vcombine.low %v20440_v50, %v20443_v62  ;;  %v11632_v62 = vcombine.high %v11586_v14, %v11600_v19 }
 0x3a4   :  { %14498 = vmatprep.subr.bf16.mxu0 %v23392_v32  ;;  %v10276_v32 = vcombine.low %v10255_v0, %v10269_v53  ;;  %v23402_v53 = vld [vmem:[#allocation33_spill] sm:$0xff]  ;;  %v12266_v13 = vrot.slane %v15900_v2, %v22668_v4  ;;  %v23411_v60 = vld [vmem:[#allocation40_spill] sm:$0xff]  ;;  %v23427_v34 = vld [vmem:[#allocation30_spill] sm:$0xff] }
 0x3a5   :  { %v23404_v6 = vcombine.high %v23402_v53, %v23403_v29  ;;  %v23407_v53 = vld [vmem:[#allocation32_spill] sm:$0xff]  ;;  %v23408_v2 = vld [vmem:[#allocation29_spill] sm:$0xff]  ;;  %v11635_v0 = vcombine.low %v11614_v11, %v11628_v58  ;;  %v20565_v10 = vrot.slane %v11632_v62, %v22668_v4  ;;  %v23449_v62 = vld [vmem:[#allocation19_spill] sm:$0xff] }
 0x3a6   :  { %v20532_v1 = vrot.slane %v10276_v32, %v22668_v4  ;;  %v23409_v29 = vcombine.high %v23407_v53, %v23408_v2  ;;  %v23412_v32 = vcombine.high %v23410_v40, %v23411_v60  ;;  %v20551_v53 = vrot.slane %v10952_v5, %v22668_v4  ;;  %v23418_v60 = vld [vmem:[#allocation34_spill] sm:$0xff] }
 0x3a7   :  { %13699 = vmatpush1.bf16.xpose.msra.mxu1 %v23401_v28  ;;  %v10956_v28 = vcombine.low %v20446_v49, %v20449_v43  ;;  %v12312_v49 = vcombine.high %v12266_v13, %v12280_v33  ;;  %v12316_v43 = vcombine.high %v12294_v16, %v12308_v7  ;;  %23421 = vst [vmem:[#allocation66_spill] sm:$0xff] %v20565_v10 }
 0x3a8   :  { %13700 = vmatprep.subr.bf16.mxu1 %v23404_v6  ;;  %23406 = vst [vmem:[#allocation68_spill] sm:$0xff] %v20532_v1  ;;  %v11636_v6 = vcombine.high %v11614_v11, %v11628_v58  ;;  %23413 = vst [vmem:[#allocation25_spill] sm:$0xff] %v20551_v53  ;;  %v20580_v11 = vrot.slane %v11635_v0, %v22668_v4  ;;  %v12311_v58 = vcombine.low %v12266_v13, %v12280_v33 }
 0x3a9   :  { %v20554_v2 = vrot.slane %v10956_v28, %v22668_v4  ;;  %v12315_v28 = vcombine.low %v12294_v16, %v12308_v7  ;;  %v2186_v13 = vcombine.low %v20114_v44, %v20117_v42  ;;  %v23435_v7 = vld [vmem:[#allocation11_spill] sm:$0xff] }
 0x3aa   :  { %v20568_v5 = vrot.slane %v11636_v6, %v22668_v4  ;;  %23426 = vst [vmem:[#allocation28_spill] sm:$0xff] %v20580_v11  ;;  %v20597_v33 = vrot.slane %v12311_v58, %v22668_v4  ;;  %v23448_v6 = vld [vmem:[#allocation46_spill] sm:$0xff] }
 0x3ab   :  { %14499 = vmatpush1.bf16.xpose.msra.mxu0 %v23409_v29  ;;  %23414 = vst [vmem:[#allocation70_spill] sm:$0xff] %v20554_v2  ;;  %v11631_v29 = vcombine.low %v11586_v14, %v11600_v19  ;;  %v20571_v14 = vrot.slane %v12312_v49, %v22668_v4  ;;  %v20574_v19 = vrot.slane %v12316_v43, %v22668_v4  ;;  %v23430_v49 = vld [vmem:[#allocation15_spill] sm:$0xff]  ;;  %v23431_v43 = vld [vmem:[#allocation16_spill] sm:$0xff] }
 0x3ac   :  { %14500 = vmatprep.subr.bf16.mxu0 %v23412_v32  ;;  %v23419_v32 = vld [vmem:[#allocation36_spill] sm:$0xff]  ;;  %23422 = vst [vmem:[#allocation72_spill] sm:$0xff] %v20568_v5  ;;  %23433 = vst [vmem:[#allocation41_spill] sm:$0xff] %v20597_v33  ;;  %v20600_v16 = vrot.slane %v12315_v28, %v22668_v4 }
 0x3ad   :  { %v23420_v50 = vcombine.high %v23418_v60, %v23419_v32  ;;  %23423 = vst [vmem:[#allocation71_spill] sm:$0xff] %v20571_v14  ;;  %23424 = vst [vmem:[#allocation73_spill] sm:$0xff] %v20574_v19  ;;  %v23432_v60 = vcombine.high %v23430_v49, %v23431_v43  ;;  %v23438_v49 = vld [vmem:[#allocation52_spill] sm:$0xff]  ;;  %v23439_v43 = vld [vmem:[#allocation37_spill] sm:$0xff] }
 0x3ae   :  { %23434 = vst [vmem:[#allocation42_spill] sm:$0xff] %v20600_v16  ;;  %v23440_v58 = vcombine.high %v23438_v49, %v23439_v43  ;;  %v2862_v49 = vcombine.low %v20159_v56, %v20169_v41  ;;  %v4225_v43 = vcombine.low %v20219_v47, %v20222_v3 }
 0x3af   :  { %13701 = vmatpush1.bf16.xpose.msra.mxu1 %v23417_v31  ;;  %v20577_v31 = vrot.slane %v11631_v29, %v22668_v4  ;;  %v23436_v29 = vld [vmem:[#allocation18_spill] sm:$0xff] }
 0x3b0   :  { %13702 = vmatprep.subr.bf16.mxu1 %v23420_v50  ;;  %v23429_v50 = vcombine.high %v23427_v34, %v23428_v46  ;;  %v23437_v32 = vcombine.high %v23435_v7, %v23436_v29  ;;  %v2866_v34 = vcombine.low %v20126_v21, %v20129_v35  ;;  %v2182_v7 = vcombine.low %v20153_v15, %v20156_v54  ;;  %v23442_v46 = vld [vmem:[#allocation39_spill] sm:$0xff] }
 0x3b1   :  { %23425 = vst [vmem:[#allocation27_spill] sm:$0xff] %v20577_v31  ;;  %v14873_v0 = vcombine.low %v23442_v46, %v23442_v46  ;;  %v3541_v46 = vcombine.low %v20211_v26, %v20232_v55 }
 0x3b3   :  { %14501 = vmatpush1.bf16.xpose.msra.mxu0 %v23429_v50  ;;  %v20609_v50 = vld [vmem:[#allocation5 + $0x70] sm:$0x77] }
 0x3b4   :  { %14502 = vmatprep.subr.bf16.mxu0 %v23432_v60  ;;  %v23441_v60 = vld [vmem:[#allocation38_spill] sm:$0xff]  ;;  %v14836_v29 = vcombine.high %v20609_v50, %v20609_v50 }
 0x3b5   :  { %v14833_v28 = vcombine.low %v23441_v60, %v23441_v60  ;;  %v4221_v60 = vcombine.low %v20255_v18, %v20258_v57 }
 0x3b7   :  { %13703 = vmatpush1.bf16.xpose.msra.mxu1 %v23437_v32  ;;  %v20620_v32 = vld [vmem:[#allocation5 + $0x110] sm:$0x77] }
 0x3b8   :  { %13728 = vmatprep.subr.bf16.mxu1 %v2186_v13  ;;  %v3545_v13 = vcombine.low %v20194_v48, %v20208_v39 }
 0x3bb   :  { %14503 = vmatpush1.bf16.xpose.msra.mxu0 %v23440_v58  ;;  %v4904_v58 = vcombine.low %v20263_v20, %v20272_v22 }
 0x3bc   :  { %14528 = vmatprep.subr.bf16.mxu0 %v2866_v34  ;;  %v14876_v34 = vcombine.high %v20620_v32, %v20620_v32 }
 0x3be   :  { %13721 = vmatmul.mubr.bf16.vlgmr.msra.gmra.mrb[0].mxu1 %v14833_v28  ;;  %v5584_v28 = vcombine.low %v20275_v61, %v20278_v24 }
 0x3bf   :  { %13729 = vmatpush1.bf16.xpose.msra.mxu1 %v2182_v7  ;;  %13760 = vmatprep.mubr.bf16.mxu1 %v14836_v29  ;;  %v6263_v7 = vcombine.low %v20336_v8, %v20344_v36  ;;  %v5580_v29 = vcombine.low %v20306_v30, %v20316_v12  ;;  %v23450_v36 = vld [vmem:[#allocation20_spill] sm:$0xff] }
 0x3c0   :  { %13730 = vmatprep.subr.bf16.mxu1 %v3545_v13  ;;  %v23443_v13 = vld [vmem:[#allocation47_spill] sm:$0xff]  ;;  %v8302_v12 = vcombine.low %v23450_v36, %v23449_v62 }
 0x3c2   :  { %14521 = vmatmul.mubr.bf16.vlgmr.msra.gmra.mrb[0].mxu0 %v14873_v0  ;;  %v4900_v0 = vcombine.low %v20297_v25, %v20300_v38 }
 0x3c3   :  { %14529 = vmatpush1.bf16.xpose.msra.mxu0 %v2862_v49  ;;  %14560 = vmatprep.mubr.bf16.mxu0 %v14876_v34  ;;  %v6943_v49 = vcombine.low %v23443_v13, %v20350_v51  ;;  %v23444_v34 = vld [vmem:[#allocation12_spill] sm:$0xff] }
 0x3c4   :  { %14530 = vmatprep.subr.bf16.mxu0 %v4225_v43  ;;  %v23445_v43 = vld [vmem:[#allocation13_spill] sm:$0xff] }
 0x3c7   :  { %13731 = vmatpush1.bf16.xpose.msra.mxu1 %v3541_v46  ;;  %v6259_v46 = vcombine.low %v23445_v43, %v23444_v34  ;;  %v23453_v34 = vld [vmem:[#allocation60_spill] sm:$0xff]  ;;  %v23454_v43 = vld [vmem:[#allocation59_spill] sm:$0xff] }
 0x3c8   :  { %13732 = vmatprep.subr.bf16.mxu1 %v4904_v58  ;;  %v23446_v58 = vld [vmem:[#allocation57_spill] sm:$0xff]  ;;  %v8298_v51 = vcombine.low %v23454_v43, %v23453_v34  ;;  %v15912_v43 = vld [vmem:[#allocation2 + $0xbe] ss:$79 sps:$4 sm:$0xff]  }
 0x3cb   :  { %14531 = vmatpush1.bf16.xpose.msra.mxu0 %v4221_v60  ;;  %v7622_v60 = vcombine.low %v23446_v58, %v20384_v63  ;;  %v23455_v63 = vld [vmem:[#allocation22_spill] sm:$0xff] }
 0x3cc   :  { %14532 = vmatprep.subr.bf16.mxu0 %v5584_v28  ;;  %v23447_v28 = vld [vmem:[#allocation14_spill] sm:$0xff] }
 0x3cd   :  { %v6939_v40 = vcombine.low %v23448_v6, %v23447_v28  ;;  %v9661_v28 = vcombine.low %v23455_v63, %v20469_v45  ;;  %v15914_v45 = vld [vmem:[#allocation2 + $0x15c] ss:$79 sps:$4 sm:$0xff]  }
 0x3cf   :  { %13733 = vmatpush1.bf16.xpose.msra.mxu1 %v4900_v0  ;;  %v23451_v0 = vld [vmem:[#allocation55_spill] sm:$0xff] }
 0x3d0   :  { %13734 = vmatprep.subr.bf16.mxu1 %v6263_v7  ;;  %v23452_v7 = vld [vmem:[#allocation53_spill] sm:$0xff] }
 0x3d3   :  { %14533 = vmatpush1.bf16.xpose.msra.mxu0 %v5580_v29  ;;  %v7618_v29 = vcombine.low %v23452_v7, %v23451_v0  ;;  %v9657_v0 = vcombine.low %v20495_v37, %v20498_v27 }
 0x3d4   :  { %14534 = vmatprep.subr.bf16.mxu0 %v6943_v49  ;;  %v8981_v49 = vcombine.low %v20455_v9, %v20463_v59  ;;  %v23458_v59 = vld [vmem:[#allocation67_spill] sm:$0xff]  ;;  %v20702_v9 = vld [vmem:[#allocation5 + $0x78] sm:$0x77] }
 0x3d5   :  { %v11020_v34 = vcombine.low %v23458_v59, %v20510_v23  ;;  %v2230_v23 = vrot.slane %v15914_v45, %v22668_v4  ;;  %23460 = vst [vmem:[#allocation48_spill] sm:$0xff] %v20702_v9 }
 0x3d7   :  { %13735 = vmatpush1.bf16.xpose.msra.mxu1 %v6259_v46  ;;  %v23456_v46 = vld [vmem:[#allocation21_spill] sm:$0xff] }
 0x3d8   :  { %13736 = vmatprep.subr.bf16.mxu1 %v7622_v60  ;;  %v23457_v60 = vld [vmem:[#allocation62_spill] sm:$0xff] }
 0x3db   :  { %14535 = vmatpush1.bf16.xpose.msra.mxu0 %v6939_v40  ;;  %v8977_v40 = vcombine.low %v23457_v60, %v23456_v46  ;;  %v15922_v60 = vld [vmem:[#allocation2 + $0xe6] ss:$79 sps:$4 sm:$0xff]  }
 0x3dc   :  { %14536 = vmatprep.subr.bf16.mxu0 %v8302_v12  ;;  %v10340_v12 = vcombine.low %v20501_v17, %v20504_v52  ;;  %v15924_v52 = vld [vmem:[#allocation2 + $0x184] ss:$79 sps:$4 sm:$0xff]  }
 0x3dd   :  { %v15926_v17 = vld [vmem:[#allocation2 + $0x222] ss:$79 sps:$4 sm:$0xff]  }
 0x3df   :  { %13737 = vmatpush1.bf16.xpose.msra.mxu1 %v7618_v29  ;;  %v15910_v29 = vld [vmem:[#allocation2 + $0x20] ss:$79 sps:$4 sm:$0xff]  }
 0x3e0   :  { %13738 = vmatprep.subr.bf16.mxu1 %v8981_v49  ;;  %v15916_v49 = vld [vmem:[#allocation2 + $0x1fa] ss:$79 sps:$4 sm:$0xff]   ;;  %v2202_v27 = vrot.slane %v15910_v29, %v22668_v4  ;;  %v2924_v29 = vrot.slane %v15926_v17, %v22668_v4  ;;  %v14835_v17 = vcombine.low %v20609_v50, %v20609_v50 }
 0x3e1   :  { %v2244_v59 = vrot.slane %v15916_v49, %v22668_v4  ;;  %v15928_v49 = vld [vmem:[#allocation2 + $0x298] ss:$79 sps:$4 sm:$0xff]  }
 0x3e2   :  { %v3561_v7 = vrot.slane %v15928_v49, %v22668_v4  ;;  %v15954_v49 = vld [vmem:[#allocation2 + $0x5d6] ss:$79 sps:$4 sm:$0xff]  }
 0x3e3   :  { %14537 = vmatpush1.bf16.xpose.msra.mxu0 %v8298_v51  ;;  %v15920_v51 = vld [vmem:[#allocation2 + $0x48] ss:$79 sps:$4 sm:$0xff]   ;;  %v2257_v45 = vcombine.high %v2230_v23, %v2244_v59  ;;  %v2256_v63 = vcombine.low %v2230_v23, %v2244_v59  ;;  %v23462_v23 = vcombine.high %v20114_v44, %v20117_v42 }
 0x3e4   :  { %14538 = vmatprep.subr.bf16.mxu0 %v9661_v28  ;;  %v23459_v28 = vld [vmem:[#allocation63_spill] sm:$0xff] }
 0x3e5   :  { %v10336_v46 = vcombine.low %v23459_v28, %v20532_v1  ;;  %v2882_v1 = vrot.slane %v15920_v51, %v22668_v4  ;;  %v2896_v28 = vrot.slane %v15922_v60, %v22668_v4  ;;  %v15934_v51 = vld [vmem:[#allocation2 + $0x472] ss:$79 sps:$4 sm:$0xff]  }
 0x3e6   :  { %v3603_v59 = vrot.slane %v15934_v51, %v22668_v4 }
 0x3e7   :  { %13739 = vmatpush1.bf16.xpose.msra.mxu1 %v8977_v40  ;;  %v11699_v40 = vcombine.low %v20565_v10, %v20568_v5  ;;  %v2910_v5 = vrot.slane %v15924_v52, %v22668_v4  ;;  %v15930_v10 = vld [vmem:[#allocation2 + $0x336] ss:$79 sps:$4 sm:$0xff]   ;;  %v12375_v52 = vcombine.low %v20597_v33, %v20600_v16  ;;  %v2932_v33 = vcombine.low %v2882_v1, %v2896_v28 }
 0x3e8   :  { %13740 = vmatprep.subr.bf16.mxu1 %v10340_v12  ;;  %v2216_v12 = vrot.slane %v15912_v43, %v22668_v4  ;;  %v20704_v16 = vld [vmem:[#allocation5 + $0x118] sm:$0x77]  ;;  %v3575_v60 = vrot.slane %v15930_v10, %v22668_v4 }
 0x3e9   :  { %23461 = vst [vmem:[#allocation35_spill] sm:$0xff] %v20704_v16  ;;  %v2936_v50 = vcombine.low %v2910_v5, %v2924_v29  ;;  %v14878_v44 = vcombine.high %v20704_v16, %v20704_v16 }
 0x3ea   :  { %v2253_v43 = vcombine.high %v2202_v27, %v2216_v12  ;;  %v3612_v51 = vcombine.high %v3561_v7, %v3575_v60  ;;  %v3611_v16 = vcombine.low %v3561_v7, %v3575_v60  ;;  %v20774_v60 = vrot.slane %v15954_v49, %v22668_v4 }
 0x3eb   :  { %14539 = vmatpush1.bf16.xpose.msra.mxu0 %v9657_v0  ;;  %v12379_v0 = vcombine.low %v20571_v14, %v20574_v19  ;;  %v2933_v19 = vcombine.high %v2882_v1, %v2896_v28  ;;  %v15932_v14 = vld [vmem:[#allocation2 + $0x3d4] ss:$79 sps:$4 sm:$0xff]   ;;  %v15948_v28 = vld [vmem:[#allocation2 + $0x64c] ss:$79 sps:$4 sm:$0xff]  }
 0x3ec   :  { %14540 = vmatprep.subr.bf16.mxu0 %v11020_v34  ;;  %v11016_v34 = vcombine.low %v20551_v53, %v20554_v2  ;;  %v11695_v2 = vcombine.low %v20577_v31, %v20580_v11  ;;  %v15936_v53 = vld [vmem:[#allocation2 + $0x2c0] ss:$79 sps:$4 sm:$0xff]   ;;  %v20697_v37 = vrot.slane %v2253_v43, %v22668_v4  ;;  %v20700_v11 = vrot.slane %v2257_v45, %v22668_v4  ;;  %v15952_v45 = vld [vmem:[#allocation2 + $0x538] ss:$79 sps:$4 sm:$0xff]  }
 0x3ed   :  { %v2252_v31 = vcombine.low %v2202_v27, %v2216_v12  ;;  %v20709_v62 = vrot.slane %v2933_v19, %v22668_v4  ;;  %v3589_v27 = vrot.slane %v15932_v14, %v22668_v4  ;;  %v20720_v1 = vrot.slane %v15936_v53, %v22668_v4  ;;  %v15944_v19 = vld [vmem:[#allocation2 + $0x510] ss:$79 sps:$4 sm:$0xff]  }
 0x3ee   :  { %v15946_v14 = vld [vmem:[#allocation2 + $0x5ae] ss:$79 sps:$4 sm:$0xff]   ;;  %v14838_v12 = vcombine.high %v20702_v9, %v20702_v9  ;;  %v20739_v53 = vrot.slane %v2256_v63, %v22668_v4  ;;  %v23463_v63 = vcombine.high %v20126_v21, %v20129_v35  ;;  %v20765_v21 = vrot.slane %v15948_v28, %v22668_v4 }
 0x3ef   :  { %13741 = vmatpush1.bf16.xpose.msra.mxu1 %v10336_v46  ;;  %v2937_v46 = vcombine.high %v2910_v5, %v2924_v29  ;;  %v20736_v42 = vrot.slane %v2252_v31, %v22668_v4  ;;  %v15950_v29 = vld [vmem:[#allocation2 + $0x6ea] ss:$79 sps:$4 sm:$0xff]   ;;  %v20762_v31 = vrot.slane %v15946_v14, %v22668_v4  ;;  %v20771_v7 = vrot.slane %v15952_v45, %v22668_v4 }
 0x3f0   :  { %13742 = vmatprep.subr.bf16.mxu1 %v11699_v40  ;;  %v15938_v40 = vld [vmem:[#allocation2 + $0x35e] ss:$79 sps:$4 sm:$0xff]   ;;  %v20768_v35 = vrot.slane %v15950_v29, %v22668_v4  ;;  %v23464_v14 = vcombine.high %v20153_v15, %v20156_v54  ;;  %v23465_v45 = vcombine.high %v20194_v48, %v20208_v39 }
 0x3f1   :  { %v20712_v43 = vrot.slane %v2937_v46, %v22668_v4  ;;  %v20723_v10 = vrot.slane %v15938_v40, %v22668_v4  ;;  %v20742_v46 = vrot.slane %v2932_v33, %v22668_v4  ;;  %v15956_v40 = vld [vmem:[#allocation2 + $0x674] ss:$79 sps:$4 sm:$0xff]   ;;  %v3615_v33 = vcombine.low %v3589_v27, %v3603_v59 }
 0x3f2   :  { %v4975_v39 = vcombine.high %v20765_v21, %v20768_v35 }
 0x3f3   :  { %14541 = vmatpush1.bf16.xpose.msra.mxu0 %v11016_v34  ;;  %v15940_v34 = vld [vmem:[#allocation2 + $0x3fc] ss:$79 sps:$4 sm:$0xff]   ;;  %v4292_v9 = vcombine.high %v20720_v1, %v20723_v10  ;;  %v4291_v29 = vcombine.low %v20720_v1, %v20723_v10  ;;  %v20815_v1 = vrot.slane %v3615_v33, %v22668_v4 }
 0x3f4   :  { %14542 = vmatprep.subr.bf16.mxu0 %v12379_v0  ;;  %v15942_v0 = vld [vmem:[#allocation2 + $0x49a] ss:$79 sps:$4 sm:$0xff]  }
 0x3f5   :  { %v20729_v5 = vrot.slane %v15942_v0, %v22668_v4  ;;  %v20759_v0 = vrot.slane %v15944_v19, %v22668_v4  ;;  %v20802_v49 = vrot.slane %v4292_v9, %v22668_v4  ;;  %v23467_v9 = vcombine.high %v20159_v56, %v20169_v41  ;;  %v15960_v10 = vld [vmem:[#allocation2 + $0x788] ss:$79 sps:$4 sm:$0xff]   ;;  %v15968_v56 = vld [vmem:[#allocation2 + $0x7b0] ss:$79 sps:$4 sm:$0xff]  }
 0x3f6   :  { %v23493_v19 = vld [vmem:[#allocation12_spill] sm:$0xff] }
 0x3f7   :  { %13743 = vmatpush1.bf16.xpose.msra.mxu1 %v11695_v2  ;;  %v20726_v2 = vrot.slane %v15940_v34, %v22668_v4  ;;  %v15958_v34 = vld [vmem:[#allocation2 + $0x712] ss:$79 sps:$4 sm:$0xff]   ;;  %v4971_v48 = vcombine.high %v20759_v0, %v20762_v31  ;;  %v4970_v33 = vcombine.low %v20759_v0, %v20762_v31 }
 0x3f8   :  { %13768 = vmatprep.subr.bf16.mxu1 %v23462_v23  ;;  %v20752_v23 = vrot.slane %v2936_v50, %v22668_v4  ;;  %v20777_v50 = vrot.slane %v3612_v51, %v22668_v4 }
 0x3f9   :  { %v4296_v36 = vcombine.high %v20726_v2, %v20729_v5  ;;  %v4295_v54 = vcombine.low %v20726_v2, %v20729_v5  ;;  %v15962_v2 = vld [vmem:[#allocation2 + $0x826] ss:$79 sps:$4 sm:$0xff]  }
 0x3fb   :  { %14543 = vmatpush1.bf16.xpose.msra.mxu0 %v12375_v52  ;;  %v3616_v52 = vcombine.high %v3589_v27, %v3603_v59  ;;  %v20780_v27 = vrot.slane %v15956_v40, %v22668_v4  ;;  %v20783_v59 = vrot.slane %v15958_v34, %v22668_v4  ;;  %v20805_v15 = vrot.slane %v4296_v36, %v22668_v4  ;;  %v15964_v34 = vld [vmem:[#allocation2 + $0x8c4] ss:$79 sps:$4 sm:$0xff]  }
 0x3fc   :  { %14568 = vmatprep.subr.bf16.mxu0 %v23463_v63  ;;  %v5651_v36 = vcombine.high %v20771_v7, %v20774_v60  ;;  %v23468_v40 = vcombine.high %v20219_v47, %v20222_v3  ;;  %v15966_v63 = vld [vmem:[#allocation2 + $0x962] ss:$79 sps:$4 sm:$0xff]   ;;  %v20846_v47 = vrot.slane %v4971_v48, %v22668_v4  ;;  %v4974_v3 = vcombine.low %v20765_v21, %v20768_v35 }
 0x3fd   :  { %v20791_v28 = vrot.slane %v3616_v52, %v22668_v4  ;;  %v20841_v52 = vrot.slane %v4295_v54, %v22668_v4  ;;  %v20855_v54 = vrot.slane %v4975_v39, %v22668_v4  ;;  %v6279_v48 = vrot.slane %v15960_v10, %v22668_v4  ;;  %v15978_v10 = vld [vmem:[#allocation2 + $0xa9e] ss:$79 sps:$4 sm:$0xff]  }
 0x3fe   :  { %13761 = vmatmul.mubr.bf16.vlgmr.msra.gmra.mrb[0].mxu1 %v14835_v17  ;;  %v20794_v17 = vrot.slane %v3611_v16, %v22668_v4  ;;  %v20858_v0 = vrot.slane %v5651_v36, %v22668_v4  ;;  %v23469_v21 = vcombine.high %v20211_v26, %v20232_v55  ;;  %v6293_v35 = vrot.slane %v15962_v2, %v22668_v4 }
 0x3ff   :  { %13769 = vmatpush1.bf16.xpose.msra.mxu1 %v23464_v14  ;;  %13800 = vmatprep.mubr.bf16.mxu1 %v14838_v12  ;;  %v23466_v12 = vcombine.low %v20620_v32, %v20620_v32  ;;  %v5655_v32 = vcombine.high %v20780_v27, %v20783_v59  ;;  %v15970_v14 = vld [vmem:[#allocation2 + $0x84e] ss:$79 sps:$4 sm:$0xff]   ;;  %v6959_v39 = vrot.slane %v15968_v56, %v22668_v4 }
 0x400   :  { %13770 = vmatprep.subr.bf16.mxu1 %v23465_v45  ;;  %v15972_v45 = vld [vmem:[#allocation2 + $0x8ec] ss:$79 sps:$4 sm:$0xff]   ;;  %v6973_v36 = vrot.slane %v15970_v14, %v22668_v4  ;;  %v20880_v2 = vrot.slane %v4970_v33, %v22668_v4  ;;  %v15986_v14 = vld [vmem:[#allocation2 + $0xac6] ss:$79 sps:$4 sm:$0xff]  }
 0x401   :  { %v20861_v31 = vrot.slane %v5655_v32, %v22668_v4  ;;  %v6987_v26 = vrot.slane %v15972_v45, %v22668_v4  ;;  %v15976_v32 = vld [vmem:[#allocation2 + $0xa00] ss:$79 sps:$4 sm:$0xff]   ;;  %v15988_v45 = vld [vmem:[#allocation2 + $0xb64] ss:$79 sps:$4 sm:$0xff]  }
 0x402   :  { %14561 = vmatmul.mubr.bf16.vlgmr.msra.gmra.mrb[0].mxu0 %v23466_v12  ;;  %v15974_v12 = vld [vmem:[#allocation2 + $0x98a] ss:$79 sps:$4 sm:$0xff]   ;;  %v7638_v33 = vrot.slane %v15976_v32, %v22668_v4  ;;  %v7009_v32 = vcombine.low %v6959_v39, %v6973_v36 }
 0x403   :  { %14569 = vmatpush1.bf16.xpose.msra.mxu0 %v23467_v9  ;;  %14600 = vmatprep.mubr.bf16.mxu0 %v14878_v44  ;;  %v20838_v44 = vrot.slane %v4291_v29, %v22668_v4  ;;  %v5650_v9 = vcombine.low %v20771_v7, %v20774_v60  ;;  %v5654_v29 = vcombine.low %v20780_v27, %v20783_v59 }
 0x404   :  { %14570 = vmatprep.subr.bf16.mxu0 %v23468_v40  ;;  %v6307_v7 = vrot.slane %v15964_v34, %v22668_v4  ;;  %v6321_v60 = vrot.slane %v15966_v63, %v22668_v4  ;;  %v23470_v59 = vcombine.high %v20263_v20, %v20272_v22  ;;  %v7001_v55 = vrot.slane %v15974_v12, %v22668_v4  ;;  %v15980_v34 = vld [vmem:[#allocation2 + $0xb3c] ss:$79 sps:$4 sm:$0xff]   ;;  %v15990_v12 = vld [vmem:[#allocation2 + $0xc02] ss:$79 sps:$4 sm:$0xff]  }
 0x405   :  { %v20883_v40 = vrot.slane %v4974_v3, %v22668_v4  ;;  %v15982_v63 = vld [vmem:[#allocation2 + $0xbda] ss:$79 sps:$4 sm:$0xff]   ;;  %v23471_v22 = vcombine.high %v20255_v18, %v20258_v57  ;;  %v20889_v56 = vrot.slane %v5650_v9, %v22668_v4  ;;  %v6330_v18 = vcombine.high %v6279_v48, %v6293_v35 }
 0x406   :  { %v15984_v20 = vld [vmem:[#allocation2 + $0xa28] ss:$79 sps:$4 sm:$0xff]   ;;  %v6329_v57 = vcombine.low %v6279_v48, %v6293_v35  ;;  %v7010_v27 = vcombine.high %v6959_v39, %v6973_v36  ;;  %v7014_v41 = vcombine.high %v6987_v26, %v7001_v55  ;;  %v6333_v51 = vcombine.low %v6307_v7, %v6321_v60 }
 0x407   :  { %13771 = vmatpush1.bf16.xpose.msra.mxu1 %v23469_v21  ;;  %v23472_v21 = vcombine.high %v20275_v61, %v20278_v24  ;;  %v7652_v3 = vrot.slane %v15978_v10, %v22668_v4  ;;  %v7666_v16 = vrot.slane %v15980_v34, %v22668_v4  ;;  %v7680_v61 = vrot.slane %v15982_v63, %v22668_v4  ;;  %v23475_v34 = vld [vmem:[#allocation45_spill] sm:$0xff]  ;;  %v16004_v9 = vld [vmem:[#allocation2 + $0xddc] ss:$79 sps:$4 sm:$0xff]  }
 0x408   :  { %13772 = vmatprep.subr.bf16.mxu1 %v23470_v59  ;;  %v20899_v59 = vrot.slane %v5654_v29, %v22668_v4  ;;  %v8318_v24 = vrot.slane %v15984_v20, %v22668_v4  ;;  %v8332_v29 = vrot.slane %v15986_v14, %v22668_v4  ;;  %v20910_v48 = vrot.slane %v15988_v45, %v22668_v4 }
 0x409   :  { %v20913_v35 = vrot.slane %v15990_v12, %v22668_v4  ;;  %v23476_v63 = vcombine.high %v20336_v8, %v23475_v34  ;;  %v20930_v14 = vrot.slane %v7010_v27, %v22668_v4  ;;  %v20936_v45 = vrot.slane %v6329_v57, %v22668_v4  ;;  %v23482_v8 = vld [vmem:[#allocation43_spill] sm:$0xff] }
 0x40a   :  { %23473 = vst [vmem:[#allocation44_spill] sm:$0xff] %v20899_v59  ;;  %v20939_v39 = vrot.slane %v6333_v51, %v22668_v4  ;;  %v7689_v36 = vcombine.high %v7638_v33, %v7652_v3  ;;  %v7693_v12 = vcombine.high %v7666_v16, %v7680_v61  ;;  %v23484_v51 = vld [vmem:[#allocation56_spill] sm:$0xff]  ;;  %v7688_v10 = vcombine.low %v7638_v33, %v7652_v3  ;;  %v23492_v3 = vld [vmem:[#allocation13_spill] sm:$0xff] }
 0x40b   :  { %14571 = vmatpush1.bf16.xpose.msra.mxu0 %v23471_v22  ;;  %v6334_v22 = vcombine.high %v6307_v7, %v6321_v60  ;;  %v23474_v7 = vcombine.high %v20297_v25, %v20300_v38  ;;  %v20919_v60 = vrot.slane %v6330_v18, %v22668_v4  ;;  %23478 = vst [vmem:[#allocation51_spill] sm:$0xff] %v20930_v14  ;;  %23480 = vst [vmem:[#allocation29_spill] sm:$0xff] %v20936_v45  ;;  %v15998_v34 = vld [vmem:[#allocation2 + $0xe52] ss:$79 sps:$4 sm:$0xff]  }
 0x40c   :  { %14572 = vmatprep.subr.bf16.mxu0 %v23472_v21  ;;  %v20933_v25 = vrot.slane %v7014_v41, %v22668_v4  ;;  %v7013_v38 = vcombine.low %v6987_v26, %v7001_v55  ;;  %23481 = vst [vmem:[#allocation50_spill] sm:$0xff] %v20939_v39  ;;  %v23483_v21 = vcombine.high %v20306_v30, %v23482_v8  ;;  %v15994_v41 = vld [vmem:[#allocation2 + $0xd16] ss:$79 sps:$4 sm:$0xff]   ;;  %v16000_v30 = vld [vmem:[#allocation2 + $0xca0] ss:$79 sps:$4 sm:$0xff]  }
 0x40d   :  { %v20927_v20 = vrot.slane %v6334_v22, %v22668_v4  ;;  %v8369_v18 = vcombine.high %v8318_v24, %v8332_v29  ;;  %v8373_v27 = vcombine.high %v20910_v48, %v20913_v35  ;;  %v15992_v22 = vld [vmem:[#allocation2 + $0xc78] ss:$79 sps:$4 sm:$0xff]   ;;  %v23485_v57 = vcombine.high %v23443_v13, %v23484_v51  ;;  %v16002_v26 = vld [vmem:[#allocation2 + $0xd3e] ss:$79 sps:$4 sm:$0xff]  }
 0x40e   :  { %23479 = vst [vmem:[#allocation32_spill] sm:$0xff] %v20933_v25  ;;  %v20956_v8 = vrot.slane %v7009_v32, %v22668_v4  ;;  %v16006_v55 = vld [vmem:[#allocation2 + $0xe7a] ss:$79 sps:$4 sm:$0xff]   ;;  %v20962_v5 = vrot.slane %v7689_v36, %v22668_v4  ;;  %v7692_v13 = vcombine.low %v7666_v16, %v7680_v61  ;;  %v8368_v51 = vcombine.low %v8318_v24, %v8332_v29 }
 0x40f   :  { %13773 = vmatpush1.bf16.xpose.msra.mxu1 %v23474_v7  ;;  %23477 = vst [vmem:[#allocation33_spill] sm:$0xff] %v20927_v20  ;;  %v15996_v7 = vld [vmem:[#allocation2 + $0xdb4] ss:$79 sps:$4 sm:$0xff]   ;;  %v20970_v32 = vrot.slane %v8369_v18, %v22668_v4  ;;  %v8997_v33 = vrot.slane %v15992_v22, %v22668_v4  ;;  %v23494_v36 = vcombine.high %v23492_v3, %v23493_v19  ;;  %v16008_v22 = vld [vmem:[#allocation2 + $0xef0] ss:$79 sps:$4 sm:$0xff]  }
 0x410   :  { %13774 = vmatprep.subr.bf16.mxu1 %v23476_v63  ;;  %23486 = vst [vmem:[#allocation40_spill] sm:$0xff] %v20956_v8  ;;  %23488 = vst [vmem:[#allocation49_spill] sm:$0xff] %v20962_v5  ;;  %v20967_v63 = vrot.slane %v7693_v12, %v22668_v4  ;;  %v9011_v16 = vrot.slane %v15994_v41, %v22668_v4  ;;  %v9025_v61 = vrot.slane %v15996_v7, %v22668_v4  ;;  %v16010_v41 = vld [vmem:[#allocation2 + $0xf8e] ss:$79 sps:$4 sm:$0xff]   ;;  %v23503_v8 = vld [vmem:[#allocation19_spill] sm:$0xff] }
 0x411   :  { %23490 = vst [vmem:[#allocation36_spill] sm:$0xff] %v20970_v32  ;;  %v9039_v24 = vrot.slane %v15998_v34, %v22668_v4  ;;  %v9677_v12 = vrot.slane %v16000_v30, %v22668_v4  ;;  %v9691_v18 = vrot.slane %v16002_v26, %v22668_v4  ;;  %v20990_v19 = vrot.slane %v16004_v9, %v22668_v4  ;;  %v16012_v3 = vld [vmem:[#allocation2 + $0x102c] ss:$79 sps:$4 sm:$0xff]   ;;  %v16018_v26 = vld [vmem:[#allocation2 + $0xfb6] ss:$79 sps:$4 sm:$0xff]  }
 0x412   :  { %23489 = vst [vmem:[#allocation34_spill] sm:$0xff] %v20967_v63  ;;  %v20994_v7 = vrot.slane %v7688_v10, %v22668_v4  ;;  %v20997_v34 = vrot.slane %v7692_v13, %v22668_v4  ;;  %v23499_v30 = vld [vmem:[#allocation14_spill] sm:$0xff]  ;;  %v21003_v9 = vrot.slane %v8368_v51, %v22668_v4  ;;  %v23502_v29 = vld [vmem:[#allocation20_spill] sm:$0xff]  ;;  %v10356_v5 = vrot.slane %v16008_v22, %v22668_v4 }
 0x413   :  { %14573 = vmatpush1.bf16.xpose.msra.mxu0 %v23483_v21  ;;  %v20959_v21 = vrot.slane %v7013_v38, %v22668_v4  ;;  %v20973_v38 = vrot.slane %v8373_v27, %v22668_v4  ;;  %v9719_v27 = vrot.slane %v16006_v55, %v22668_v4  ;;  %v16020_v55 = vld [vmem:[#allocation2 + $0x1054] ss:$79 sps:$4 sm:$0xff]   ;;  %v9728_v39 = vcombine.high %v9677_v12, %v9691_v18  ;;  %v16036_v32 = vld [vmem:[#allocation2 + $0x12cc] ss:$79 sps:$4 sm:$0xff]  }
 0x414   :  { %14574 = vmatprep.subr.bf16.mxu0 %v23485_v57  ;;  %v8372_v57 = vcombine.low %v20910_v48, %v20913_v35  ;;  %v23495_v48 = vld [vmem:[#allocation54_spill] sm:$0xff]  ;;  %23497 = vst [vmem:[#allocation17_spill] sm:$0xff] %v20994_v7  ;;  %23498 = vst [vmem:[#allocation15_spill] sm:$0xff] %v20997_v34  ;;  %v9051_v10 = vcombine.low %v9025_v61, %v9039_v24  ;;  %v10370_v13 = vrot.slane %v16010_v41, %v22668_v4 }
 0x415   :  { %23487 = vst [vmem:[#allocation31_spill] sm:$0xff] %v20959_v21  ;;  %23491 = vst [vmem:[#allocation30_spill] sm:$0xff] %v20973_v38  ;;  %v23496_v35 = vcombine.high %v23446_v58, %v23495_v48  ;;  %v16014_v58 = vld [vmem:[#allocation2 + $0x10ca] ss:$79 sps:$4 sm:$0xff]   ;;  %v23500_v48 = vcombine.high %v23448_v6, %v23499_v30  ;;  %v23504_v21 = vcombine.high %v23502_v29, %v23503_v8  ;;  %v16034_v34 = vld [vmem:[#allocation2 + $0x122e] ss:$79 sps:$4 sm:$0xff]  }
 0x416   :  { %23501 = vst [vmem:[#allocation16_spill] sm:$0xff] %v21003_v9  ;;  %v21013_v45 = vrot.slane %v8372_v57, %v22668_v4  ;;  %v9048_v6 = vcombine.high %v8997_v33, %v9011_v16  ;;  %v9047_v30 = vcombine.low %v8997_v33, %v9011_v16  ;;  %v9732_v14 = vcombine.high %v20990_v19, %v9719_v27  ;;  %v16038_v38 = vld [vmem:[#allocation2 + $0x136a] ss:$79 sps:$4 sm:$0xff]  }
 0x417   :  { %13775 = vmatpush1.bf16.xpose.msra.mxu1 %v23494_v36  ;;  %v16016_v36 = vld [vmem:[#allocation2 + $0xf18] ss:$79 sps:$4 sm:$0xff]   ;;  %v10384_v8 = vrot.slane %v16012_v3, %v22668_v4  ;;  %v21026_v33 = vrot.slane %v16018_v26, %v22668_v4  ;;  %v21029_v16 = vrot.slane %v16020_v55, %v22668_v4  ;;  %v9727_v3 = vcombine.low %v9677_v12, %v9691_v18 }
 0x418   :  { %13776 = vmatprep.subr.bf16.mxu1 %v23496_v35  ;;  %v16022_v35 = vld [vmem:[#allocation2 + $0x10f2] ss:$79 sps:$4 sm:$0xff]   ;;  %23505 = vst [vmem:[#allocation11_spill] sm:$0xff] %v21013_v45  ;;  %v21023_v57 = vrot.slane %v16016_v36, %v22668_v4  ;;  %v21038_v41 = vrot.slane %v9048_v6, %v22668_v4  ;;  %v21055_v6 = vrot.slane %v9047_v30, %v22668_v4 }
 0x419   :  { %v21032_v29 = vrot.slane %v16022_v35, %v22668_v4  ;;  %v23509_v36 = vld [vmem:[#allocation58_spill] sm:$0xff]  ;;  %v23510_v26 = vld [vmem:[#allocation61_spill] sm:$0xff]  ;;  %v21049_v35 = vrot.slane %v9728_v39, %v22668_v4  ;;  %v21058_v12 = vrot.slane %v9051_v10, %v22668_v4  ;;  %v9731_v18 = vcombine.low %v20990_v19, %v9719_v27 }
 0x41a   :  { %v23511_v51 = vcombine.high %v23509_v36, %v23510_v26  ;;  %23515 = vst [vmem:[#allocation38_spill] sm:$0xff] %v21055_v6  ;;  %v23518_v36 = vld [vmem:[#allocation60_spill] sm:$0xff]  ;;  %v11087_v39 = vcombine.high %v21023_v57, %v21026_v33  ;;  %v16024_v26 = vld [vmem:[#allocation2 + $0x1168] ss:$79 sps:$4 sm:$0xff]   ;;  %v23520_v27 = vld [vmem:[#allocation22_spill] sm:$0xff]  ;;  %v21078_v7 = vrot.slane %v9727_v3, %v22668_v4 }
 0x41b   :  { %14575 = vmatpush1.bf16.xpose.msra.mxu0 %v23500_v48  ;;  %v9052_v48 = vcombine.high %v9025_v61, %v9039_v24  ;;  %v23506_v61 = vld [vmem:[#allocation53_spill] sm:$0xff]  ;;  %v23507_v24 = vld [vmem:[#allocation55_spill] sm:$0xff]  ;;  %23513 = vst [vmem:[#allocation52_spill] sm:$0xff] %v21049_v35  ;;  %23516 = vst [vmem:[#allocation39_spill] sm:$0xff] %v21058_v12  ;;  %v21081_v10 = vrot.slane %v9731_v18, %v22668_v4  ;;  %v11715_v45 = vrot.slane %v16024_v26, %v22668_v4 }
 0x41c   :  { %14576 = vmatprep.subr.bf16.mxu0 %v23504_v21  ;;  %v10398_v21 = vrot.slane %v16014_v58, %v22668_v4  ;;  %v23508_v22 = vcombine.high %v23506_v61, %v23507_v24  ;;  %v21052_v61 = vrot.slane %v9732_v14, %v22668_v4  ;;  %v10407_v24 = vcombine.high %v10356_v5, %v10370_v13  ;;  %v16026_v30 = vld [vmem:[#allocation2 + $0x1206] ss:$79 sps:$4 sm:$0xff]   ;;  %v23528_v6 = vld [vmem:[#allocation62_spill] sm:$0xff] }
 0x41d   :  { %v21046_v55 = vrot.slane %v9052_v48, %v22668_v4  ;;  %v11091_v14 = vcombine.high %v21029_v16, %v21032_v29  ;;  %v23521_v58 = vld [vmem:[#allocation23_spill] sm:$0xff]  ;;  %23523 = vst [vmem:[#allocation47_spill] sm:$0xff] %v21078_v7  ;;  %23524 = vst [vmem:[#allocation57_spill] sm:$0xff] %v21081_v10  ;;  %v21090_v35 = vrot.slane %v11087_v39, %v22668_v4  ;;  %v23529_v12 = vld [vmem:[#allocation21_spill] sm:$0xff] }
 0x41e   :  { %23514 = vst [vmem:[#allocation37_spill] sm:$0xff] %v21052_v61  ;;  %v23522_v9 = vcombine.high %v23520_v27, %v23521_v58  ;;  %v21084_v19 = vrot.slane %v10407_v24, %v22668_v4  ;;  %v10406_v58 = vcombine.low %v10356_v5, %v10370_v13  ;;  %v23530_v18 = vcombine.high %v23528_v6, %v23529_v12 }
 0x41f   :  { %13777 = vmatpush1.bf16.xpose.msra.mxu1 %v23508_v22  ;;  %23512 = vst [vmem:[#allocation18_spill] sm:$0xff] %v21046_v55  ;;  %v10411_v22 = vcombine.high %v10384_v8, %v10398_v21  ;;  %23526 = vst [vmem:[#allocation45_spill] sm:$0xff] %v21090_v35  ;;  %v21093_v3 = vrot.slane %v11091_v14, %v22668_v4  ;;  %v11729_v24 = vrot.slane %v16026_v30, %v22668_v4 }
 0x420   :  { %13778 = vmatprep.subr.bf16.mxu1 %v23511_v51  ;;  %v23517_v51 = vld [vmem:[#allocation59_spill] sm:$0xff]  ;;  %v12409_v26 = vrot.slane %v16034_v34, %v22668_v4  ;;  %v12423_v6 = vrot.slane %v16036_v32, %v22668_v4  ;;  %v12437_v12 = vrot.slane %v16038_v38, %v22668_v4  ;;  %v21112_v30 = vrot.slane %v10406_v58, %v22668_v4  ;;  %v23540_v58 = vld [vmem:[#allocation26_spill] sm:$0xff]  ;;  %v23545_v32 = vld [vmem:[#allocation68_spill] sm:$0xff] }
 0x421   :  { %v23519_v48 = vcombine.high %v23517_v51, %v23518_v36  ;;  %v16028_v51 = vld [vmem:[#allocation2 + $0x12a4] ss:$79 sps:$4 sm:$0xff]   ;;  %v21087_v27 = vrot.slane %v10411_v22, %v22668_v4  ;;  %23527 = vst [vmem:[#allocation43_spill] sm:$0xff] %v21093_v3 }
 0x422   :  { %v16030_v36 = vld [vmem:[#allocation2 + $0x1342] ss:$79 sps:$4 sm:$0xff]   ;;  %v11743_v5 = vrot.slane %v16028_v51, %v22668_v4  ;;  %23534 = vst [vmem:[#allocation56_spill] sm:$0xff] %v21112_v30 }
 0x423   :  { %14577 = vmatpush1.bf16.xpose.msra.mxu0 %v23519_v48  ;;  %v16032_v48 = vld [vmem:[#allocation2 + $0x1190] ss:$79 sps:$4 sm:$0xff]   ;;  %23525 = vst [vmem:[#allocation46_spill] sm:$0xff] %v21087_v27  ;;  %v11757_v13 = vrot.slane %v16030_v36, %v22668_v4  ;;  %v11086_v36 = vcombine.low %v21023_v57, %v21026_v33  ;;  %v23539_v34 = vld [vmem:[#allocation67_spill] sm:$0xff]  ;;  %v11766_v33 = vcombine.high %v11715_v45, %v11729_v24 }
 0x424   :  { %14578 = vmatprep.subr.bf16.mxu0 %v23522_v9  ;;  %v10410_v9 = vcombine.low %v10384_v8, %v10398_v21  ;;  %v23531_v21 = vld [vmem:[#allocation24_spill] sm:$0xff]  ;;  %v12395_v14 = vrot.slane %v16032_v48, %v22668_v4  ;;  %v23537_v48 = vld [vmem:[#allocation65_spill] sm:$0xff]  ;;  %v23544_v38 = vld [vmem:[#allocation63_spill] sm:$0xff] }
 0x425   :  { %v23532_v22 = vld [vmem:[#allocation64_spill] sm:$0xff]  ;;  %v11769_v8 = vcombine.low %v11743_v5, %v11757_v13  ;;  %v23546_v35 = vcombine.high %v23544_v38, %v23545_v32  ;;  %v21148_v30 = vrot.slane %v11766_v33, %v22668_v4  ;;  %v23556_v32 = vld [vmem:[#allocation25_spill] sm:$0xff]  ;;  %v23557_v38 = vld [vmem:[#allocation70_spill] sm:$0xff] }
 0x426   :  { %v23533_v39 = vcombine.high %v23531_v21, %v23532_v22  ;;  %v21115_v51 = vrot.slane %v10410_v9, %v22668_v4  ;;  %v23536_v21 = vld [vmem:[#allocation69_spill] sm:$0xff]  ;;  %v23541_v9 = vcombine.high %v23539_v34, %v23540_v58  ;;  %v23547_v58 = vld [vmem:[#allocation66_spill] sm:$0xff] }
 0x427   :  { %13779 = vmatpush1.bf16.xpose.msra.mxu1 %v23530_v18  ;;  %v11090_v18 = vcombine.low %v21029_v16, %v21032_v29  ;;  %v23538_v22 = vcombine.high %v23536_v21, %v23537_v48  ;;  %v12446_v16 = vcombine.high %v12395_v14, %v12409_v26  ;;  %v12450_v29 = vcombine.high %v12423_v6, %v12437_v12  ;;  %v23578_v33 = vld [vmem:[#allocation30_spill] sm:$0xff] }
 0x428   :  { %13780 = vmatprep.subr.bf16.mxu1 %v23533_v39  ;;  %23535 = vst [vmem:[#allocation13_spill] sm:$0xff] %v21115_v51  ;;  %v11770_v39 = vcombine.high %v11743_v5, %v11757_v13  ;;  %v21134_v21 = vrot.slane %v11086_v36, %v22668_v4  ;;  %23550 = vst [vmem:[#allocation14_spill] sm:$0xff] %v21148_v30  ;;  %v21163_v5 = vrot.slane %v11769_v8, %v22668_v4 }
 0x429   :  { %v21137_v48 = vrot.slane %v11090_v18, %v22668_v4  ;;  %v12445_v13 = vcombine.low %v12395_v14, %v12409_v26  ;;  %v12449_v18 = vcombine.low %v12423_v6, %v12437_v12  ;;  %v2320_v14 = vcombine.low %v20697_v37, %v20700_v11  ;;  %v23564_v12 = vld [vmem:[#allocation27_spill] sm:$0xff] }
 0x42a   :  { %23542 = vst [vmem:[#allocation12_spill] sm:$0xff] %v21134_v21  ;;  %v21151_v36 = vrot.slane %v11770_v39, %v22668_v4  ;;  %23555 = vst [vmem:[#allocation58_spill] sm:$0xff] %v21163_v5  ;;  %v23577_v39 = vld [vmem:[#allocation40_spill] sm:$0xff] }
 0x42b   :  { %14579 = vmatpush1.bf16.xpose.msra.mxu0 %v23538_v22  ;;  %23543 = vst [vmem:[#allocation54_spill] sm:$0xff] %v21137_v48  ;;  %v11765_v22 = vcombine.low %v11715_v45, %v11729_v24  ;;  %v21154_v45 = vrot.slane %v12446_v16, %v22668_v4  ;;  %v21157_v24 = vrot.slane %v12450_v29, %v22668_v4  ;;  %v23559_v16 = vld [vmem:[#allocation71_spill] sm:$0xff]  ;;  %v23560_v29 = vld [vmem:[#allocation73_spill] sm:$0xff] }
 0x42c   :  { %14580 = vmatprep.subr.bf16.mxu0 %v23541_v9  ;;  %v23548_v9 = vld [vmem:[#allocation72_spill] sm:$0xff]  ;;  %23551 = vst [vmem:[#allocation20_spill] sm:$0xff] %v21151_v36  ;;  %v21180_v26 = vrot.slane %v12445_v13, %v22668_v4  ;;  %v21183_v6 = vrot.slane %v12449_v18, %v22668_v4 }
 0x42d   :  { %v23549_v57 = vcombine.high %v23547_v58, %v23548_v9  ;;  %23552 = vst [vmem:[#allocation19_spill] sm:$0xff] %v21154_v45  ;;  %23553 = vst [vmem:[#allocation53_spill] sm:$0xff] %v21157_v24  ;;  %v23561_v58 = vcombine.high %v23559_v16, %v23560_v29  ;;  %v23567_v16 = vld [vmem:[#allocation41_spill] sm:$0xff]  ;;  %v23568_v29 = vld [vmem:[#allocation42_spill] sm:$0xff] }
 0x42e   :  { %23562 = vst [vmem:[#allocation61_spill] sm:$0xff] %v21180_v26  ;;  %23563 = vst [vmem:[#allocation59_spill] sm:$0xff] %v21183_v6  ;;  %v23569_v13 = vcombine.high %v23567_v16, %v23568_v29  ;;  %v2996_v16 = vcombine.low %v20742_v46, %v20752_v23  ;;  %v4359_v29 = vcombine.low %v20802_v49, %v20805_v15 }
 0x42f   :  { %13781 = vmatpush1.bf16.xpose.msra.mxu1 %v23546_v35  ;;  %v21160_v35 = vrot.slane %v11765_v22, %v22668_v4  ;;  %v23565_v22 = vld [vmem:[#allocation28_spill] sm:$0xff] }
 0x430   :  { %13782 = vmatprep.subr.bf16.mxu1 %v23549_v57  ;;  %v23558_v57 = vcombine.high %v23556_v32, %v23557_v38  ;;  %v23566_v9 = vcombine.high %v23564_v12, %v23565_v22  ;;  %v3000_v32 = vcombine.low %v20709_v62, %v20712_v43  ;;  %v2316_v12 = vcombine.low %v20736_v42, %v20739_v53  ;;  %v23571_v38 = vld [vmem:[#allocation35_spill] sm:$0xff] }
 0x431   :  { %23554 = vst [vmem:[#allocation55_spill] sm:$0xff] %v21160_v35  ;;  %v14877_v8 = vcombine.low %v23571_v38, %v23571_v38  ;;  %v3675_v38 = vcombine.low %v20794_v17, %v20815_v1 }
 0x433   :  { %14581 = vmatpush1.bf16.xpose.msra.mxu0 %v23558_v57  ;;  %v21192_v57 = vld [vmem:[#allocation5 + $0x80] sm:$0x77] }
 0x434   :  { %14582 = vmatprep.subr.bf16.mxu0 %v23561_v58  ;;  %v23570_v58 = vld [vmem:[#allocation48_spill] sm:$0xff]  ;;  %v14840_v22 = vcombine.high %v21192_v57, %v21192_v57 }
 0x435   :  { %v14837_v18 = vcombine.low %v23570_v58, %v23570_v58  ;;  %v4355_v58 = vcombine.low %v20838_v44, %v20841_v52 }
 0x437   :  { %13783 = vmatpush1.bf16.xpose.msra.mxu1 %v23566_v9  ;;  %v21203_v9 = vld [vmem:[#allocation5 + $0x120] sm:$0x77] }
 0x438   :  { %13808 = vmatprep.subr.bf16.mxu1 %v2320_v14  ;;  %v3679_v14 = vcombine.low %v20777_v50, %v20791_v28 }
 0x43b   :  { %14583 = vmatpush1.bf16.xpose.msra.mxu0 %v23569_v13  ;;  %v5038_v13 = vcombine.low %v20846_v47, %v20855_v54 }
 0x43c   :  { %14608 = vmatprep.subr.bf16.mxu0 %v3000_v32  ;;  %v14880_v32 = vcombine.high %v21203_v9, %v21203_v9 }
 0x43e   :  { %13801 = vmatmul.mubr.bf16.vlgmr.msra.gmra.mrb[0].mxu1 %v14837_v18  ;;  %v5718_v18 = vcombine.low %v20858_v0, %v20861_v31 }
 0x43f   :  { %13809 = vmatpush1.bf16.xpose.msra.mxu1 %v2316_v12  ;;  %13840 = vmatprep.mubr.bf16.mxu1 %v14840_v22  ;;  %v6397_v12 = vcombine.low %v20919_v60, %v20927_v20  ;;  %v5714_v22 = vcombine.low %v20889_v56, %v20899_v59  ;;  %v23579_v20 = vld [vmem:[#allocation36_spill] sm:$0xff] }
 0x440   :  { %13810 = vmatprep.subr.bf16.mxu1 %v3679_v14  ;;  %v23572_v14 = vld [vmem:[#allocation51_spill] sm:$0xff]  ;;  %v8436_v59 = vcombine.low %v23579_v20, %v23578_v33 }
 0x442   :  { %14601 = vmatmul.mubr.bf16.vlgmr.msra.gmra.mrb[0].mxu0 %v14877_v8  ;;  %v5034_v8 = vcombine.low %v20880_v2, %v20883_v40 }
 0x443   :  { %14609 = vmatpush1.bf16.xpose.msra.mxu0 %v2996_v16  ;;  %14640 = vmatprep.mubr.bf16.mxu0 %v14880_v32  ;;  %v7077_v16 = vcombine.low %v23572_v14, %v20933_v25  ;;  %v23573_v32 = vld [vmem:[#allocation50_spill] sm:$0xff] }
 0x444   :  { %14610 = vmatprep.subr.bf16.mxu0 %v4359_v29  ;;  %v23574_v29 = vld [vmem:[#allocation29_spill] sm:$0xff] }
 0x447   :  { %13811 = vmatpush1.bf16.xpose.msra.mxu1 %v3675_v38  ;;  %v6393_v38 = vcombine.low %v23574_v29, %v23573_v32  ;;  %v23582_v32 = vld [vmem:[#allocation11_spill] sm:$0xff]  ;;  %v23583_v29 = vld [vmem:[#allocation16_spill] sm:$0xff] }
 0x448   :  { %13812 = vmatprep.subr.bf16.mxu1 %v5038_v13  ;;  %v23575_v13 = vld [vmem:[#allocation49_spill] sm:$0xff]  ;;  %v8432_v25 = vcombine.low %v23583_v29, %v23582_v32 }
 0x44b   :  { %14611 = vmatpush1.bf16.xpose.msra.mxu0 %v4355_v58  ;;  %v7756_v58 = vcombine.low %v23575_v13, %v20967_v63  ;;  %v23584_v63 = vld [vmem:[#allocation52_spill] sm:$0xff] }
 0x44c   :  { %14612 = vmatprep.subr.bf16.mxu0 %v5718_v18  ;;  %v23576_v18 = vld [vmem:[#allocation31_spill] sm:$0xff] }
 0x44d   :  { %v7073_v34 = vcombine.low %v23577_v39, %v23576_v18  ;;  %v9795_v18 = vcombine.low %v23584_v63, %v21052_v61  ;;  %v16047_v61 = vld [vmem:[#allocation2 + $0xc2] ss:$79 sps:$4 sm:$0xff]  }
 0x44f   :  { %13813 = vmatpush1.bf16.xpose.msra.mxu1 %v5034_v8  ;;  %v23580_v8 = vld [vmem:[#allocation15_spill] sm:$0xff] }
 0x450   :  { %13814 = vmatprep.subr.bf16.mxu1 %v6397_v12  ;;  %v23581_v12 = vld [vmem:[#allocation17_spill] sm:$0xff] }
 0x453   :  { %14613 = vmatpush1.bf16.xpose.msra.mxu0 %v5714_v22  ;;  %v7752_v22 = vcombine.low %v23581_v12, %v23580_v8  ;;  %v9791_v8 = vcombine.low %v21078_v7, %v21081_v10  ;;  %v11150_v10 = vcombine.low %v21134_v21, %v21137_v48  ;;  %v16055_v7 = vld [vmem:[#allocation2 + $0x226] ss:$79 sps:$4 sm:$0x77]   ;;  %v11829_v48 = vcombine.low %v21160_v35, %v21163_v5 }
 0x454   :  { %14614 = vmatprep.subr.bf16.mxu0 %v7077_v16  ;;  %v9115_v16 = vcombine.low %v21038_v41, %v21046_v55  ;;  %v23587_v55 = vld [vmem:[#allocation45_spill] sm:$0xff]  ;;  %v12509_v5 = vcombine.low %v21180_v26, %v21183_v6  ;;  %v23596_v6 = vcombine.high %v20697_v37, %v20700_v11  ;;  %v16063_v26 = vld [vmem:[#allocation2 + $0x49e] ss:$79 sps:$4 sm:$0x77]   ;;  %v14879_v37 = vcombine.low %v21203_v9, %v21203_v9 }
 0x455   :  { %v11154_v32 = vcombine.low %v23587_v55, %v21093_v3  ;;  %v2223_v3 = vrot.slane %v16047_v61, %v22668_v4  ;;  %v16054_v55 = vld [vmem:[#allocation2 + $0x188] ss:$79 sps:$4 sm:$0x77]  }
 0x457   :  { %13815 = vmatpush1.bf16.xpose.msra.mxu1 %v6393_v38  ;;  %v23585_v38 = vld [vmem:[#allocation39_spill] sm:$0xff] }
 0x458   :  { %13816 = vmatprep.subr.bf16.mxu1 %v7756_v58  ;;  %v23586_v58 = vld [vmem:[#allocation38_spill] sm:$0xff] }
 0x45b   :  { %14615 = vmatpush1.bf16.xpose.msra.mxu0 %v7073_v34  ;;  %v9111_v34 = vcombine.low %v23586_v58, %v23585_v38  ;;  %v16049_v38 = vld [vmem:[#allocation2 + $0x1fe] ss:$79 sps:$4 sm:$0xff]  }
 0x45c   :  { %14616 = vmatprep.subr.bf16.mxu0 %v8436_v59  ;;  %v10474_v59 = vcombine.low %v21084_v19, %v21087_v27  ;;  %v11833_v27 = vcombine.low %v21148_v30, %v21151_v36  ;;  %v14839_v30 = vcombine.low %v21192_v57, %v21192_v57 }
 0x45f   :  { %13817 = vmatpush1.bf16.xpose.msra.mxu1 %v7752_v22  ;;  %v16046_v22 = vld [vmem:[#allocation2 + $0x24] ss:$79 sps:$4 sm:$0xff]  }
 0x460   :  { %13818 = vmatprep.subr.bf16.mxu1 %v9115_v16  ;;  %v16048_v16 = vld [vmem:[#allocation2 + $0x160] ss:$79 sps:$4 sm:$0xff]  }
 0x463   :  { %14617 = vmatpush1.bf16.xpose.msra.mxu0 %v8432_v25  ;;  %v23588_v25 = vld [vmem:[#allocation56_spill] sm:$0xff] }
 0x464   :  { %14618 = vmatprep.subr.bf16.mxu0 %v9795_v18  ;;  %v10470_v18 = vcombine.low %v23588_v25, %v21115_v51  ;;  %v2237_v51 = vrot.slane %v16048_v16, %v22668_v4  ;;  %v2251_v25 = vrot.slane %v16049_v38, %v22668_v4  ;;  %v21276_v16 = vrot.slane %v16054_v55, %v22668_v4 }
 0x465   :  { %v21279_v38 = vrot.slane %v16055_v7, %v22668_v4 }
 0x466   :  { %23591 = vst [vmem:[#allocation23_spill] sm:$0xff] %v21276_v16  ;;  %v2258_v35 = vcombine.low %v2237_v51, %v2251_v25 }
 0x467   :  { %13819 = vmatpush1.bf16.xpose.msra.mxu1 %v9111_v34  ;;  %v2209_v34 = vrot.slane %v16046_v22, %v22668_v4  ;;  %23592 = vst [vmem:[#allocation62_spill] sm:$0xff] %v21279_v38  ;;  %v2938_v36 = vcombine.low %v21276_v16, %v21279_v38  ;;  %v16066_v16 = vld [vmem:[#allocation2 + $0x650] ss:$79 sps:$4 sm:$0xff]  }
 0x468   :  { %13820 = vmatprep.subr.bf16.mxu1 %v10474_v59  ;;  %v16052_v59 = vld [vmem:[#allocation2 + $0x4c] ss:$79 sps:$4 sm:$0x77]   ;;  %v21319_v57 = vrot.slane %v2258_v35, %v22668_v4  ;;  %v21337_v35 = vrot.slane %v16063_v26, %v22668_v4  ;;  %v4955_v26 = vrot.slane %v16066_v16, %v22668_v4 }
 0x469   :  { %v2255_v22 = vcombine.high %v2209_v34, %v2223_v3  ;;  %v21270_v61 = vrot.slane %v16052_v59, %v22668_v4 }
 0x46b   :  { %14619 = vmatpush1.bf16.xpose.msra.mxu0 %v9791_v8  ;;  %v16053_v8 = vld [vmem:[#allocation2 + $0xea] ss:$79 sps:$4 sm:$0x77]   ;;  %23589 = vst [vmem:[#allocation60_spill] sm:$0xff] %v21270_v61  ;;  %v21284_v59 = vrot.slane %v2255_v22, %v22668_v4 }
 0x46c   :  { %14620 = vmatprep.subr.bf16.mxu0 %v11154_v32  ;;  %v12513_v32 = vcombine.low %v21154_v45, %v21157_v24  ;;  %v21273_v21 = vrot.slane %v16053_v8, %v22668_v4  ;;  %v16058_v24 = vld [vmem:[#allocation2 + $0x3d8] ss:$79 sps:$4 sm:$0xff]  }
 0x46d   :  { %v16059_v45 = vld [vmem:[#allocation2 + $0x476] ss:$79 sps:$4 sm:$0xff]   ;;  %23593 = vst [vmem:[#allocation21_spill] sm:$0xff] %v21284_v59 }
 0x46e   :  { %23590 = vst [vmem:[#allocation22_spill] sm:$0xff] %v21273_v21  ;;  %v21286_v8 = vld [vmem:[#allocation5 + $0x88] sm:$0x77]  ;;  %v2934_v7 = vcombine.low %v21270_v61, %v21273_v21 }
 0x46f   :  { %13821 = vmatpush1.bf16.xpose.msra.mxu1 %v10470_v18  ;;  %v2259_v18 = vcombine.high %v2237_v51, %v2251_v25  ;;  %23594 = vst [vmem:[#allocation24_spill] sm:$0xff] %v21286_v8  ;;  %v16061_v51 = vld [vmem:[#allocation2 + $0x362] ss:$79 sps:$4 sm:$0x77]   ;;  %v14842_v11 = vcombine.high %v21286_v8, %v21286_v8  ;;  %v21325_v8 = vrot.slane %v2938_v36, %v22668_v4 }
 0x470   :  { %13822 = vmatprep.subr.bf16.mxu1 %v11833_v27  ;;  %v16056_v27 = vld [vmem:[#allocation2 + $0x29c] ss:$79 sps:$4 sm:$0xff]   ;;  %v16062_v25 = vld [vmem:[#allocation2 + $0x400] ss:$79 sps:$4 sm:$0x77]   ;;  %v21322_v9 = vrot.slane %v2934_v7, %v22668_v4 }
 0x471   :  { %v21289_v55 = vrot.slane %v2259_v18, %v22668_v4  ;;  %v3568_v22 = vrot.slane %v16056_v27, %v22668_v4  ;;  %v16060_v18 = vld [vmem:[#allocation2 + $0x2c4] ss:$79 sps:$4 sm:$0x77]   ;;  %v16068_v36 = vld [vmem:[#allocation2 + $0x53c] ss:$79 sps:$4 sm:$0x77]  }
 0x472   :  { %v16065_v27 = vld [vmem:[#allocation2 + $0x5b2] ss:$79 sps:$4 sm:$0xff]   ;;  %v16069_v21 = vld [vmem:[#allocation2 + $0x5da] ss:$79 sps:$4 sm:$0x77]  }
 0x473   :  { %14621 = vmatpush1.bf16.xpose.msra.mxu0 %v11150_v10  ;;  %v16057_v10 = vld [vmem:[#allocation2 + $0x33a] ss:$79 sps:$4 sm:$0xff]   ;;  %23595 = vst [vmem:[#allocation64_spill] sm:$0xff] %v21289_v55 }
 0x474   :  { %14622 = vmatprep.subr.bf16.mxu0 %v12513_v32  ;;  %v2254_v32 = vcombine.low %v2209_v34, %v2223_v3  ;;  %v3582_v3 = vrot.slane %v16057_v10, %v22668_v4  ;;  %v3610_v34 = vrot.slane %v16059_v45, %v22668_v4  ;;  %v23597_v45 = vcombine.high %v20709_v62, %v20712_v43  ;;  %v21313_v10 = vld [vmem:[#allocation5 + $0x128] sm:$0x77] }
 0x475   :  { %v21328_v62 = vrot.slane %v16060_v18, %v22668_v4  ;;  %v21331_v43 = vrot.slane %v16061_v51, %v22668_v4  ;;  %v14882_v38 = vcombine.high %v21313_v10, %v21313_v10  ;;  %v4941_v18 = vrot.slane %v16065_v27, %v22668_v4  ;;  %v16079_v27 = vld [vmem:[#allocation2 + $0x98e] ss:$79 sps:$4 sm:$0x77]  }
 0x476   :  { %v3614_v59 = vcombine.high %v3568_v22, %v3582_v3  ;;  %v3613_v7 = vcombine.low %v3568_v22, %v3582_v3  ;;  %v16070_v22 = vld [vmem:[#allocation2 + $0x678] ss:$79 sps:$4 sm:$0x77]   ;;  %v16084_v51 = vld [vmem:[#allocation2 + $0xa2c] ss:$79 sps:$4 sm:$0x77]  }
 0x477   :  { %13823 = vmatpush1.bf16.xpose.msra.mxu1 %v11829_v48  ;;  %v3596_v48 = vrot.slane %v16058_v24, %v22668_v4  ;;  %v16067_v24 = vld [vmem:[#allocation2 + $0x6ee] ss:$79 sps:$4 sm:$0xff]   ;;  %v16071_v3 = vld [vmem:[#allocation2 + $0x716] ss:$79 sps:$4 sm:$0x77]  }
 0x478   :  { %13848 = vmatprep.subr.bf16.mxu1 %v23596_v6  ;;  %v16064_v6 = vld [vmem:[#allocation2 + $0x514] ss:$79 sps:$4 sm:$0xff]   ;;  %v21364_v16 = vrot.slane %v3613_v7, %v22668_v4 }
 0x479   :  { %v3618_v55 = vcombine.high %v3596_v48, %v3610_v34  ;;  %v4927_v61 = vrot.slane %v16064_v6, %v22668_v4  ;;  %v21356_v6 = vrot.slane %v3614_v59, %v22668_v4  ;;  %v23600_v59 = vcombine.high %v20742_v46, %v20752_v23  ;;  %v16072_v46 = vld [vmem:[#allocation2 + $0x78c] ss:$79 sps:$4 sm:$0xff]  }
 0x47b   :  { %14623 = vmatpush1.bf16.xpose.msra.mxu0 %v12509_v5  ;;  %v21316_v5 = vrot.slane %v2254_v32, %v22668_v4  ;;  %v21334_v32 = vrot.slane %v16062_v25, %v22668_v4  ;;  %v23598_v25 = vcombine.high %v20736_v42, %v20739_v53  ;;  %v21359_v42 = vrot.slane %v3618_v55, %v22668_v4 }
 0x47c   :  { %14648 = vmatprep.subr.bf16.mxu0 %v23597_v45  ;;  %v3617_v45 = vcombine.low %v3596_v48, %v3610_v34  ;;  %v23599_v34 = vcombine.high %v20777_v50, %v20791_v28  ;;  %v4293_v53 = vcombine.low %v21328_v62, %v21331_v43  ;;  %v21372_v28 = vrot.slane %v16068_v36, %v22668_v4 }
 0x47d   :  { %v4297_v50 = vcombine.low %v21334_v32, %v21337_v35  ;;  %v4973_v55 = vcombine.high %v4927_v61, %v4941_v18  ;;  %v21389_v36 = vrot.slane %v16071_v3, %v22668_v4  ;;  %v23603_v3 = vcombine.high %v20794_v17, %v20815_v1 }
 0x47e   :  { %13841 = vmatmul.mubr.bf16.vlgmr.msra.gmra.mrb[0].mxu1 %v14839_v30  ;;  %v4969_v30 = vrot.slane %v16067_v24, %v22668_v4  ;;  %v23601_v24 = vcombine.high %v20802_v49, %v20805_v15  ;;  %v4972_v15 = vcombine.low %v4927_v61, %v4941_v18  ;;  %v23604_v18 = vcombine.high %v20846_v47, %v20855_v54  ;;  %v16078_v61 = vld [vmem:[#allocation2 + $0x8f0] ss:$79 sps:$4 sm:$0x77]   ;;  %v16080_v54 = vld [vmem:[#allocation2 + $0xa04] ss:$79 sps:$4 sm:$0xff]  }
 0x47f   :  { %13849 = vmatpush1.bf16.xpose.msra.mxu1 %v23598_v25  ;;  %13880 = vmatprep.mubr.bf16.mxu1 %v14842_v11  ;;  %v21367_v11 = vrot.slane %v3617_v45, %v22668_v4  ;;  %v21386_v45 = vrot.slane %v16070_v22, %v22668_v4  ;;  %v16075_v25 = vld [vmem:[#allocation2 + $0x966] ss:$79 sps:$4 sm:$0xff]   ;;  %v21397_v49 = vrot.slane %v4297_v50, %v22668_v4 }
 0x480   :  { %13850 = vmatprep.subr.bf16.mxu1 %v23599_v34  ;;  %v4977_v7 = vcombine.high %v4955_v26, %v4969_v30  ;;  %v21394_v34 = vrot.slane %v4293_v53, %v22668_v4  ;;  %v21400_v22 = vrot.slane %v4973_v55, %v22668_v4  ;;  %v16076_v50 = vld [vmem:[#allocation2 + $0x7b4] ss:$79 sps:$4 sm:$0x77]   ;;  %v23607_v47 = vcombine.high %v20838_v44, %v20841_v52 }
 0x481   :  { %v5656_v53 = vcombine.low %v21386_v45, %v21389_v36  ;;  %v16077_v55 = vld [vmem:[#allocation2 + $0x852] ss:$79 sps:$4 sm:$0x77]   ;;  %v21444_v48 = vrot.slane %v16076_v50, %v22668_v4  ;;  %v23611_v50 = vcombine.high %v20880_v2, %v20883_v40 }
 0x482   :  { %14641 = vmatmul.mubr.bf16.vlgmr.msra.gmra.mrb[0].mxu0 %v14879_v37  ;;  %v21378_v37 = vrot.slane %v16069_v21, %v22668_v4  ;;  %v16073_v21 = vld [vmem:[#allocation2 + $0x82a] ss:$79 sps:$4 sm:$0xff]   ;;  %23602 = vst [vmem:[#allocation69_spill] sm:$0xff] %v21394_v34  ;;  %v16087_v34 = vld [vmem:[#allocation2 + $0xc06] ss:$79 sps:$4 sm:$0x77]  }
 0x483   :  { %14649 = vmatpush1.bf16.xpose.msra.mxu0 %v23600_v59  ;;  %14680 = vmatprep.mubr.bf16.mxu0 %v14882_v38  ;;  %v16074_v38 = vld [vmem:[#allocation2 + $0x8c8] ss:$79 sps:$4 sm:$0xff]   ;;  %v4976_v59 = vcombine.low %v4955_v26, %v4969_v30  ;;  %v6286_v26 = vrot.slane %v16072_v46, %v22668_v4  ;;  %v6300_v17 = vrot.slane %v16073_v21, %v22668_v4  ;;  %v16081_v46 = vld [vmem:[#allocation2 + $0xaa2] ss:$79 sps:$4 sm:$0xff]  }
 0x484   :  { %14650 = vmatprep.subr.bf16.mxu0 %v23601_v24  ;;  %v21406_v24 = vrot.slane %v4977_v7, %v22668_v4  ;;  %v5652_v23 = vcombine.low %v21372_v28, %v21378_v37  ;;  %v6314_v1 = vrot.slane %v16074_v38, %v22668_v4  ;;  %v6328_v30 = vrot.slane %v16075_v25, %v22668_v4 }
 0x485   :  { %v21422_v7 = vrot.slane %v4972_v15, %v22668_v4  ;;  %v23608_v38 = vcombine.high %v20858_v0, %v20861_v31  ;;  %v21439_v15 = vrot.slane %v5656_v53, %v22668_v4  ;;  %v6332_v52 = vcombine.high %v6286_v26, %v6300_v17 }
 0x486   :  { %v21436_v25 = vrot.slane %v5652_v23, %v22668_v4  ;;  %v21447_v21 = vrot.slane %v16077_v55, %v22668_v4  ;;  %v21450_v0 = vrot.slane %v16078_v61, %v22668_v4  ;;  %v21453_v31 = vrot.slane %v16079_v27, %v22668_v4  ;;  %v16091_v27 = vld [vmem:[#allocation2 + $0xe56] ss:$79 sps:$4 sm:$0xff]  }
 0x487   :  { %13851 = vmatpush1.bf16.xpose.msra.mxu1 %v23603_v3  ;;  %23605 = vst [vmem:[#allocation65_spill] sm:$0xff] %v21422_v7  ;;  %v21425_v3 = vrot.slane %v4976_v59, %v22668_v4  ;;  %23610 = vst [vmem:[#allocation63_spill] sm:$0xff] %v21439_v15  ;;  %v16082_v59 = vld [vmem:[#allocation2 + $0xb40] ss:$79 sps:$4 sm:$0xff]   ;;  %v6331_v23 = vcombine.low %v6286_v26, %v6300_v17  ;;  %v6335_v53 = vcombine.low %v6314_v1, %v6328_v30  ;;  %v23612_v26 = vld [vmem:[#allocation33_spill] sm:$0xff] }
 0x488   :  { %13852 = vmatprep.subr.bf16.mxu1 %v23604_v18  ;;  %23609 = vst [vmem:[#allocation26_spill] sm:$0xff] %v21436_v25  ;;  %v16083_v18 = vld [vmem:[#allocation2 + $0xbde] ss:$79 sps:$4 sm:$0xff]   ;;  %v7659_v44 = vrot.slane %v16081_v46, %v22668_v4  ;;  %v16085_v7 = vld [vmem:[#allocation2 + $0xaca] ss:$79 sps:$4 sm:$0x77]   ;;  %v7673_v55 = vrot.slane %v16082_v59, %v22668_v4  ;;  %v23613_v17 = vcombine.high %v20919_v60, %v23612_v26 }
 0x489   :  { %23606 = vst [vmem:[#allocation67_spill] sm:$0xff] %v21425_v3  ;;  %v7687_v61 = vrot.slane %v16083_v18, %v22668_v4  ;;  %v16086_v3 = vld [vmem:[#allocation2 + $0xb68] ss:$79 sps:$4 sm:$0x77]   ;;  %v21474_v2 = vrot.slane %v6331_v23, %v22668_v4  ;;  %v21477_v40 = vrot.slane %v6335_v53, %v22668_v4  ;;  %v7015_v46 = vcombine.low %v21450_v0, %v21453_v31  ;;  %v23616_v60 = vld [vmem:[#allocation44_spill] sm:$0xff]  ;;  %v23626_v25 = vld [vmem:[#allocation50_spill] sm:$0xff] }
 0x48a   :  { %v23617_v59 = vcombine.high %v20889_v56, %v23616_v60  ;;  %v23618_v53 = vld [vmem:[#allocation32_spill] sm:$0xff]  ;;  %v21501_v56 = vrot.slane %v16087_v34, %v22668_v4  ;;  %v23625_v34 = vld [vmem:[#allocation29_spill] sm:$0xff] }
 0x48b   :  { %14651 = vmatpush1.bf16.xpose.msra.mxu0 %v23607_v47  ;;  %v6336_v47 = vcombine.high %v6314_v1, %v6328_v30  ;;  %v21468_v1 = vrot.slane %v6332_v52, %v22668_v4  ;;  %23614 = vst [vmem:[#allocation68_spill] sm:$0xff] %v21474_v2  ;;  %23615 = vst [vmem:[#allocation66_spill] sm:$0xff] %v21477_v40  ;;  %v21487_v52 = vrot.slane %v16084_v51, %v22668_v4  ;;  %v16088_v60 = vld [vmem:[#allocation2 + $0xc7c] ss:$79 sps:$4 sm:$0xff]  }
 0x48c   :  { %14652 = vmatprep.subr.bf16.mxu0 %v23608_v38  ;;  %v7645_v38 = vrot.slane %v16080_v54, %v22668_v4  ;;  %v7011_v54 = vcombine.low %v21444_v48, %v21447_v21  ;;  %v7695_v26 = vcombine.high %v7673_v55, %v7687_v61  ;;  %23621 = vst [vmem:[#allocation25_spill] sm:$0xff] %v21501_v56 }
 0x48d   :  { %v21471_v30 = vrot.slane %v6336_v47, %v22668_v4  ;;  %v21490_v47 = vrot.slane %v16085_v7, %v22668_v4  ;;  %v16089_v7 = vld [vmem:[#allocation2 + $0xd1a] ss:$79 sps:$4 sm:$0xff]   ;;  %v23627_v15 = vcombine.high %v23625_v34, %v23626_v25 }
 0x48e   :  { %v7691_v18 = vcombine.high %v7645_v38, %v7659_v44  ;;  %v21506_v23 = vrot.slane %v7011_v54, %v22668_v4  ;;  %v21518_v51 = vrot.slane %v7695_v26, %v22668_v4  ;;  %v9018_v25 = vrot.slane %v16089_v7, %v22668_v4  ;;  %v16093_v26 = vld [vmem:[#allocation2 + $0xd42] ss:$79 sps:$4 sm:$0x77]  }
 0x48f   :  { %13853 = vmatpush1.bf16.xpose.msra.mxu1 %v23611_v50  ;;  %v23619_v50 = vcombine.high %v23572_v14, %v23618_v53  ;;  %v21509_v14 = vrot.slane %v7015_v46, %v22668_v4  ;;  %v7690_v53 = vcombine.low %v7645_v38, %v7659_v44  ;;  %v8370_v2 = vcombine.low %v21487_v52, %v21490_v47  ;;  %v23629_v38 = vld [vmem:[#allocation34_spill] sm:$0xff] }
 0x490   :  { %13854 = vmatprep.subr.bf16.mxu1 %v23613_v17  ;;  %v21498_v17 = vrot.slane %v16086_v3, %v22668_v4  ;;  %23622 = vst [vmem:[#allocation70_spill] sm:$0xff] %v21506_v23  ;;  %v21512_v3 = vrot.slane %v7691_v18, %v22668_v4  ;;  %23628 = vst [vmem:[#allocation27_spill] sm:$0xff] %v21518_v51  ;;  %v9046_v46 = vrot.slane %v16091_v27, %v22668_v4  ;;  %v16092_v18 = vld [vmem:[#allocation2 + $0xca4] ss:$79 sps:$4 sm:$0x77]  }
 0x491   :  { %23623 = vst [vmem:[#allocation71_spill] sm:$0xff] %v21509_v14  ;;  %v21534_v34 = vrot.slane %v7690_v53, %v22668_v4  ;;  %v16094_v44 = vld [vmem:[#allocation2 + $0xde0] ss:$79 sps:$4 sm:$0x77]   ;;  %v23635_v27 = vcombine.high %v23579_v20, %v23578_v33  ;;  %v21548_v53 = vrot.slane %v8370_v2, %v22668_v4 }
 0x492   :  { %23620 = vst [vmem:[#allocation72_spill] sm:$0xff] %v21498_v17  ;;  %23624 = vst [vmem:[#allocation73_spill] sm:$0xff] %v21512_v3  ;;  %v8374_v54 = vcombine.low %v21498_v17, %v21501_v56  ;;  %v16095_v23 = vld [vmem:[#allocation2 + $0xe7e] ss:$79 sps:$4 sm:$0x77]   ;;  %v21556_v17 = vrot.slane %v16092_v18, %v22668_v4  ;;  %v21562_v20 = vrot.slane %v16094_v44, %v22668_v4  ;;  %v23637_v18 = vld [vmem:[#allocation15_spill] sm:$0xff] }
 0x493   :  { %14653 = vmatpush1.bf16.xpose.msra.mxu0 %v23617_v59  ;;  %v16090_v59 = vld [vmem:[#allocation2 + $0xdb8] ss:$79 sps:$4 sm:$0xff]   ;;  %23631 = vst [vmem:[#allocation28_spill] sm:$0xff] %v21534_v34  ;;  %v16097_v7 = vld [vmem:[#allocation2 + $0xf92] ss:$79 sps:$4 sm:$0xff]   ;;  %23636 = vst [vmem:[#allocation42_spill] sm:$0xff] %v21548_v53  ;;  %v21565_v33 = vrot.slane %v16095_v23, %v22668_v4  ;;  %v23638_v3 = vcombine.high %v23581_v12, %v23637_v18 }
 0x494   :  { %14654 = vmatprep.subr.bf16.mxu0 %v23619_v50  ;;  %v7694_v50 = vcombine.low %v7673_v55, %v7687_v61  ;;  %v23630_v55 = vcombine.high %v23575_v13, %v23629_v38  ;;  %v9004_v61 = vrot.slane %v16088_v60, %v22668_v4  ;;  %v23633_v13 = vld [vmem:[#allocation31_spill] sm:$0xff]  ;;  %v16099_v14 = vld [vmem:[#allocation2 + $0x10ce] ss:$79 sps:$4 sm:$0xff]  }
 0x495   :  { %v23634_v38 = vcombine.high %v23577_v39, %v23633_v13  ;;  %v16096_v60 = vld [vmem:[#allocation2 + $0xef4] ss:$79 sps:$4 sm:$0xff]   ;;  %v10377_v39 = vrot.slane %v16097_v7, %v22668_v4  ;;  %v16100_v34 = vld [vmem:[#allocation2 + $0xf1c] ss:$79 sps:$4 sm:$0x77]   ;;  %v10405_v44 = vrot.slane %v16099_v14, %v22668_v4 }
 0x496   :  { %v21537_v40 = vrot.slane %v7694_v50, %v22668_v4  ;;  %v21551_v50 = vrot.slane %v8374_v54, %v22668_v4  ;;  %v9050_v13 = vcombine.high %v9004_v61, %v9018_v25  ;;  %v9049_v2 = vcombine.low %v9004_v61, %v9018_v25  ;;  %v16102_v51 = vld [vmem:[#allocation2 + $0x1058] ss:$79 sps:$4 sm:$0x77]   ;;  %v23639_v61 = vld [vmem:[#allocation18_spill] sm:$0xff] }
 0x497   :  { %13855 = vmatpush1.bf16.xpose.msra.mxu1 %v23627_v15  ;;  %v9032_v15 = vrot.slane %v16090_v59, %v22668_v4  ;;  %v21559_v59 = vrot.slane %v16093_v26, %v22668_v4  ;;  %v16103_v56 = vld [vmem:[#allocation2 + $0x10f6] ss:$79 sps:$4 sm:$0x77]   ;;  %v23640_v25 = vcombine.high %v21038_v41, %v23639_v61 }
 0x498   :  { %13856 = vmatprep.subr.bf16.mxu1 %v23630_v55  ;;  %23632 = vst [vmem:[#allocation41_spill] sm:$0xff] %v21537_v40  ;;  %v16098_v55 = vld [vmem:[#allocation2 + $0x1030] ss:$79 sps:$4 sm:$0xff]   ;;  %v16101_v40 = vld [vmem:[#allocation2 + $0xfba] ss:$79 sps:$4 sm:$0x77]   ;;  %v21586_v12 = vrot.slane %v9049_v2, %v22668_v4 }
 0x499   :  { %v9053_v54 = vcombine.low %v9032_v15, %v9046_v46  ;;  %v10391_v26 = vrot.slane %v16098_v55, %v22668_v4  ;;  %v23645_v41 = vld [vmem:[#allocation11_spill] sm:$0xff] }
 0x49a   :  { %23643 = vst [vmem:[#allocation51_spill] sm:$0xff] %v21586_v12  ;;  %v23646_v7 = vcombine.high %v23583_v29, %v23645_v41  ;;  %v21613_v29 = vrot.slane %v16103_v56, %v22668_v4  ;;  %v16104_v41 = vld [vmem:[#allocation2 + $0x116c] ss:$79 sps:$4 sm:$0xff]   ;;  %v16107_v23 = vld [vmem:[#allocation2 + $0x1346] ss:$79 sps:$4 sm:$0xff]  }
 0x49b   :  { %14655 = vmatpush1.bf16.xpose.msra.mxu0 %v23634_v38  ;;  %v9054_v38 = vcombine.high %v9032_v15, %v9046_v46  ;;  %v21580_v15 = vrot.slane %v9050_v13, %v22668_v4  ;;  %v21589_v14 = vrot.slane %v9053_v54, %v22668_v4  ;;  %v21599_v13 = vrot.slane %v16100_v34, %v22668_v4  ;;  %v23649_v54 = vld [vmem:[#allocation37_spill] sm:$0xff]  ;;  %v23656_v56 = vld [vmem:[#allocation39_spill] sm:$0xff] }
 0x49c   :  { %14656 = vmatprep.subr.bf16.mxu0 %v23635_v27  ;;  %v10363_v27 = vrot.slane %v16096_v60, %v22668_v4  ;;  %v9733_v60 = vcombine.low %v21562_v20, %v21565_v33  ;;  %v23650_v18 = vcombine.high %v23584_v63, %v23649_v54  ;;  %v10413_v61 = vcombine.high %v10391_v26, %v10405_v44 }
 0x49d   :  { %23641 = vst [vmem:[#allocation48_spill] sm:$0xff] %v21580_v15  ;;  %v21583_v46 = vrot.slane %v9054_v38, %v22668_v4  ;;  %23644 = vst [vmem:[#allocation49_spill] sm:$0xff] %v21589_v14  ;;  %v21602_v38 = vrot.slane %v16101_v40, %v22668_v4  ;;  %v16105_v40 = vld [vmem:[#allocation2 + $0x120a] ss:$79 sps:$4 sm:$0xff]   ;;  %v23657_v53 = vcombine.high %v23586_v58, %v23656_v56 }
 0x49e   :  { %v10409_v55 = vcombine.high %v10363_v27, %v10377_v39  ;;  %23647 = vst [vmem:[#allocation40_spill] sm:$0xff] %v21599_v13  ;;  %23652 = vst [vmem:[#allocation17_spill] sm:$0xff] %v21613_v29  ;;  %v21621_v63 = vrot.slane %v9733_v60, %v22668_v4  ;;  %v10408_v54 = vcombine.low %v10363_v27, %v10377_v39  ;;  %v23659_v27 = vld [vmem:[#allocation46_spill] sm:$0xff] }
 0x49f   :  { %13857 = vmatpush1.bf16.xpose.msra.mxu1 %v23638_v3  ;;  %23642 = vst [vmem:[#allocation35_spill] sm:$0xff] %v21583_v46  ;;  %v9729_v3 = vcombine.low %v21556_v17, %v21559_v59  ;;  %23648 = vst [vmem:[#allocation30_spill] sm:$0xff] %v21602_v38  ;;  %v21630_v34 = vrot.slane %v10413_v61, %v22668_v4  ;;  %v11088_v12 = vcombine.low %v21599_v13, %v21602_v38  ;;  %v16109_v61 = vld [vmem:[#allocation2 + $0x1232] ss:$79 sps:$4 sm:$0x77]  }
 0x4a0   :  { %13858 = vmatprep.subr.bf16.mxu1 %v23640_v25  ;;  %v21610_v25 = vrot.slane %v16102_v51, %v22668_v4  ;;  %23654 = vst [vmem:[#allocation52_spill] sm:$0xff] %v21621_v63  ;;  %v21624_v51 = vrot.slane %v10409_v55, %v22668_v4  ;;  %v11736_v58 = vrot.slane %v16105_v40, %v22668_v4  ;;  %v16108_v55 = vld [vmem:[#allocation2 + $0x1194] ss:$79 sps:$4 sm:$0x77]   ;;  %v23677_v13 = vld [vmem:[#allocation20_spill] sm:$0xff] }
 0x4a1   :  { %v21618_v2 = vrot.slane %v9729_v3, %v22668_v4  ;;  %23658 = vst [vmem:[#allocation33_spill] sm:$0xff] %v21630_v34  ;;  %v11764_v60 = vrot.slane %v16107_v23, %v22668_v4  ;;  %v21646_v56 = vrot.slane %v10408_v54, %v22668_v4  ;;  %v16110_v39 = vld [vmem:[#allocation2 + $0x12d0] ss:$79 sps:$4 sm:$0x77]   ;;  %v23666_v40 = vld [vmem:[#allocation45_spill] sm:$0xff]  ;;  %v21660_v63 = vrot.slane %v11088_v12, %v22668_v4 }
 0x4a2   :  { %23651 = vst [vmem:[#allocation36_spill] sm:$0xff] %v21610_v25  ;;  %23655 = vst [vmem:[#allocation38_spill] sm:$0xff] %v21624_v51  ;;  %v11092_v3 = vcombine.low %v21610_v25, %v21613_v29  ;;  %v23675_v51 = vld [vmem:[#allocation23_spill] sm:$0xff] }
 0x4a3   :  { %14657 = vmatpush1.bf16.xpose.msra.mxu0 %v23646_v7  ;;  %v16106_v7 = vld [vmem:[#allocation2 + $0x12a8] ss:$79 sps:$4 sm:$0xff]   ;;  %23653 = vst [vmem:[#allocation16_spill] sm:$0xff] %v21618_v2  ;;  %23661 = vst [vmem:[#allocation44_spill] sm:$0xff] %v21646_v56  ;;  %v23673_v56 = vld [vmem:[#allocation60_spill] sm:$0xff] }
 0x4a4   :  { %14658 = vmatprep.subr.bf16.mxu0 %v23650_v18  ;;  %v10412_v18 = vcombine.low %v10391_v26, %v10405_v44  ;;  %v23660_v26 = vcombine.high %v21084_v19, %v23659_v27  ;;  %v11722_v44 = vrot.slane %v16104_v41, %v22668_v4  ;;  %v16111_v2 = vld [vmem:[#allocation2 + $0x136e] ss:$79 sps:$4 sm:$0x77]   ;;  %v23663_v19 = vld [vmem:[#allocation47_spill] sm:$0xff]  ;;  %v23664_v27 = vld [vmem:[#allocation57_spill] sm:$0xff]  ;;  %v21663_v54 = vrot.slane %v11092_v3, %v22668_v4 }
 0x4a5   :  { %v21677_v12 = vrot.slane %v16111_v2, %v22668_v4 }
 0x4a6   :  { %v21649_v14 = vrot.slane %v10412_v18, %v22668_v4  ;;  %v11768_v25 = vcombine.high %v11722_v44, %v11736_v58  ;;  %v23672_v18 = vld [vmem:[#allocation22_spill] sm:$0xff] }
 0x4a7   :  { %13859 = vmatpush1.bf16.xpose.msra.mxu1 %v23657_v53  ;;  %v11750_v53 = vrot.slane %v16106_v7, %v22668_v4  ;;  %v23667_v7 = vld [vmem:[#allocation43_spill] sm:$0xff] }
 0x4a8   :  { %13860 = vmatprep.subr.bf16.mxu1 %v23660_v26  ;;  %23662 = vst [vmem:[#allocation32_spill] sm:$0xff] %v21649_v14  ;;  %v23665_v26 = vcombine.high %v23663_v19, %v23664_v27  ;;  %v23668_v23 = vcombine.high %v23666_v40, %v23667_v7  ;;  %v21668_v19 = vrot.slane %v16108_v55, %v22668_v4  ;;  %v23669_v7 = vld [vmem:[#allocation56_spill] sm:$0xff]  ;;  %v23674_v55 = vld [vmem:[#allocation62_spill] sm:$0xff] }
 0x4a9   :  { %v11772_v29 = vcombine.high %v11750_v53, %v11764_v60  ;;  %v21671_v27 = vrot.slane %v16109_v61, %v22668_v4  ;;  %v11767_v40 = vcombine.low %v11722_v44, %v11736_v58  ;;  %v11771_v3 = vcombine.low %v11750_v53, %v11764_v60 }
 0x4aa   :  { %v2935_v14 = vcombine.high %v23673_v56, %v23672_v18  ;;  %v2939_v34 = vcombine.high %v23675_v51, %v23674_v55  ;;  %v21692_v2 = vrot.slane %v11768_v25, %v22668_v4  ;;  %v23686_v55 = vld [vmem:[#allocation21_spill] sm:$0xff]  ;;  %v23688_v25 = vld [vmem:[#allocation58_spill] sm:$0xff] }
 0x4ab   :  { %14659 = vmatpush1.bf16.xpose.msra.mxu0 %v23665_v26  ;;  %v21674_v26 = vrot.slane %v16110_v39, %v22668_v4  ;;  %v23676_v39 = vld [vmem:[#allocation14_spill] sm:$0xff]  ;;  %v21695_v44 = vrot.slane %v11772_v29, %v22668_v4  ;;  %v21698_v58 = vrot.slane %v11767_v40, %v22668_v4  ;;  %v21701_v53 = vrot.slane %v11771_v3, %v22668_v4  ;;  %v23682_v29 = vld [vmem:[#allocation19_spill] sm:$0xff] }
 0x4ac   :  { %14660 = vmatprep.subr.bf16.mxu0 %v23668_v23  ;;  %v23670_v23 = vld [vmem:[#allocation13_spill] sm:$0xff]  ;;  %v23678_v38 = vcombine.high %v23676_v39, %v23677_v13  ;;  %v12447_v51 = vcombine.low %v21668_v19, %v21671_v27  ;;  %v23679_v13 = vld [vmem:[#allocation12_spill] sm:$0xff]  ;;  %v2967_v40 = vrot.slane %v2935_v14, %v22668_v4  ;;  %v2995_v3 = vrot.slane %v2939_v34, %v22668_v4 }
 0x4ad   :  { %v23671_v41 = vcombine.high %v23669_v7, %v23670_v23  ;;  %v12451_v60 = vcombine.low %v21674_v26, %v21677_v12  ;;  %v23685_v23 = vld [vmem:[#allocation64_spill] sm:$0xff]  ;;  %v4294_v14 = vcombine.high %v21328_v62, %v21331_v43  ;;  %v4298_v34 = vcombine.high %v21334_v32, %v21337_v35  ;;  %v23690_v7 = vld [vmem:[#allocation61_spill] sm:$0xff] }
 0x4ae   :  { %v2322_v39 = vcombine.low %v23686_v55, %v23685_v23  ;;  %v23693_v23 = vld [vmem:[#allocation24_spill] sm:$0xff]  ;;  %v2318_v62 = vcombine.low %v21316_v5, %v21319_v57 }
 0x4af   :  { %13861 = vmatpush1.bf16.xpose.msra.mxu1 %v23671_v41  ;;  %v23683_v41 = vld [vmem:[#allocation53_spill] sm:$0xff]  ;;  %v4326_v43 = vrot.slane %v4294_v14, %v22668_v4  ;;  %v4354_v32 = vrot.slane %v4298_v34, %v22668_v4 }
 0x4b0   :  { %13862 = vmatprep.subr.bf16.mxu1 %v23678_v38  ;;  %v23680_v38 = vld [vmem:[#allocation54_spill] sm:$0xff]  ;;  %v23684_v18 = vcombine.high %v23682_v29, %v23683_v41  ;;  %v3002_v41 = vcombine.low %v2967_v40, %v2995_v3  ;;  %v21749_v40 = vld [vmem:[#allocation5 + $0x130] sm:$0x77]  ;;  %v3681_v3 = vcombine.low %v21356_v6, %v21359_v42 }
 0x4b1   :  { %v23681_v56 = vcombine.high %v23679_v13, %v23680_v38  ;;  %v21722_v13 = vrot.slane %v12447_v51, %v22668_v4  ;;  %v21725_v38 = vrot.slane %v12451_v60, %v22668_v4  ;;  %v21736_v51 = vld [vmem:[#allocation5 + $0x90] sm:$0x77]  ;;  %v23691_v60 = vld [vmem:[#allocation59_spill] sm:$0xff] }
 0x4b2   :  { %v23692_v61 = vcombine.high %v23690_v7, %v23691_v60  ;;  %v14844_v35 = vcombine.high %v21736_v51, %v21736_v51  ;;  %v2998_v7 = vcombine.low %v21322_v9, %v21325_v8 }
 0x4b3   :  { %14661 = vmatpush1.bf16.xpose.msra.mxu0 %v23681_v56  ;;  %v23687_v56 = vld [vmem:[#allocation55_spill] sm:$0xff] }
 0x4b4   :  { %14662 = vmatprep.subr.bf16.mxu0 %v23684_v18  ;;  %v23689_v29 = vcombine.high %v23687_v56, %v23688_v25  ;;  %v14841_v25 = vcombine.low %v23693_v23, %v23693_v23  ;;  %v14884_v23 = vcombine.high %v21749_v40, %v21749_v40  ;;  %v5653_v56 = vcombine.high %v21372_v28, %v21378_v37  ;;  %v23716_v18 = vld [vmem:[#allocation33_spill] sm:$0xff] }
 0x4b5   :  { %v16201_v37 = vmov 0  }
 0x4b6   :  { %v5685_v14 = vrot.slane %v5653_v56, %v22668_v4  ;;  %15079 = vset.pattern.permute.xlu0 %v16201_v37 }
 0x4b7   :  { %13863 = vmatpush1.bf16.xpose.msra.mxu1 %v23689_v29  ;;  %v5657_v29 = vcombine.high %v21386_v45, %v21389_v36  ;;  %v5040_v45 = vcombine.low %v21400_v22, %v21406_v24  ;;  %v23694_v36 = vld [vmem:[#allocation69_spill] sm:$0xff] }
 0x4b8   :  { %13888 = vmatprep.subr.bf16.mxu1 %v2322_v39  ;;  %v4361_v39 = vcombine.low %v4326_v43, %v4354_v32  ;;  %v4357_v34 = vcombine.low %v23694_v36, %v21397_v49  ;;  %v23695_v43 = vld [vmem:[#allocation67_spill] sm:$0xff]  ;;  %v23696_v32 = vld [vmem:[#allocation65_spill] sm:$0xff] }
 0x4b9   :  { %v5713_v28 = vrot.slane %v5657_v29, %v22668_v4 }
 0x4bb   :  { %14663 = vmatpush1.bf16.xpose.msra.mxu0 %v23692_v61  ;;  %v14881_v61 = vcombine.low %v21313_v10, %v21313_v10  ;;  %v722_v10 = vld [vmem:[%s21937_s2] sm:$0x3f]  ;;  %v5720_v60 = vcombine.low %v5685_v14, %v5713_v28  ;;  %s16204_s2 = smov [#allocation7]  }
 0x4bc   :  { %14688 = vmatprep.subr.bf16.mxu0 %v3002_v41  ;;  %v3677_v41 = vcombine.low %v21364_v16, %v21367_v11  ;;  %725 = vperm.xlu0 %15079, %v722_v10   ;;  %v23701_v10 = vld [vmem:[#allocation66_spill] sm:$0xff]  ;;  %s14797_s12 = sshll.u32 %s16204_s2, 4  ;;  %s14798_s12 = int_to_ptr.vmem [resolvable:$true] %s14797_s12 }
 0x4bd   :  { %s16168_s13 = scalar_lea.vmem %s14798_s12, 128  ;;  %p16173_p3 = scmp.lt.s32.totalorder %s14798_s12, %s14798_s12 }
 0x4be   :  { %13881 = vmatmul.mubr.bf16.vlgmr.msra.gmra.mrb[0].mxu1 %v14841_v25  ;;  %v7012_v25 = vcombine.high %v21444_v48, %v21447_v21  ;;  %v8371_v21 = vcombine.high %v21487_v52, %v21490_v47  ;;  %v9730_v47 = vcombine.high %v21556_v17, %v21559_v59  ;;  %v23710_v59 = vld [vmem:[#allocation30_spill] sm:$0xff]  ;;  %p16169_p2 = scmp.ne.s32.totalorder %s14798_s12, %s16168_s13  ;;  %p16174_p4 = scmp.lt.s32.totalorder %s16168_s13, %s16168_s13 }
 0x4bf   :  { %13889 = vmatpush1.bf16.xpose.msra.mxu1 %v2318_v62  ;;  %13920 = vmatprep.mubr.bf16.mxu1 %v14844_v35  ;;  %v7016_v62 = vcombine.high %v21450_v0, %v21453_v31  ;;  %v5036_v35 = vcombine.low %v23696_v32, %v23695_v43  ;;  %v23699_v0 = vld [vmem:[#allocation25_spill] sm:$0xff]  ;;  %v23700_v31 = vld [vmem:[#allocation72_spill] sm:$0xff] }
 0x4c0   :  { %13890 = vmatprep.subr.bf16.mxu1 %v3681_v3  ;;  %v7044_v3 = vrot.slane %v7012_v25, %v22668_v4  ;;  %v8375_v29 = vcombine.high %v23700_v31, %v23699_v0  ;;  %v8403_v28 = vrot.slane %v8371_v21, %v22668_v4  ;;  %v23705_v25 = vld [vmem:[#allocation71_spill] sm:$0xff]  ;;  %v9117_v0 = vcombine.low %v21580_v15, %v21583_v46  ;;  %v23709_v31 = vld [vmem:[#allocation42_spill] sm:$0xff]  ;;  %p16175_p5 = por %p16174_p4, %p16173_p3 }
 0x4c1   :  { %v23717_v46 = vld [vmem:[#allocation38_spill] sm:$0xff] }
 0x4c2   :  { %14681 = vmatmul.mubr.bf16.vlgmr.msra.gmra.mrb[0].mxu0 %v14881_v61  ;;  %v7072_v61 = vrot.slane %v7016_v62, %v22668_v4  ;;  %v8431_v37 = vrot.slane %v8375_v29, %v22668_v4  ;;  %v23706_v62 = vld [vmem:[#allocation70_spill] sm:$0xff]  ;;  %v8434_v29 = vcombine.low %v23709_v31, %v21551_v50  ;;  %p16176_p6 = pnand %p16175_p5, %p16169_p2 }
 0x4c3   :  { %14689 = vmatpush1.bf16.xpose.msra.mxu0 %v2998_v7  ;;  %14720 = vmatprep.mubr.bf16.mxu0 %v14884_v23  ;;  %v6399_v7 = vcombine.low %v21468_v1, %v21471_v30  ;;  %v23697_v23 = vld [vmem:[#allocation63_spill] sm:$0xff] }
 0x4c4   :  { %14690 = vmatprep.subr.bf16.mxu0 %v4361_v39  ;;  %v23698_v39 = vld [vmem:[#allocation26_spill] sm:$0xff]  ;;  %v7079_v48 = vcombine.low %v7044_v3, %v7072_v61  ;;  %v8438_v52 = vcombine.low %v8403_v28, %v8431_v37  ;;  %v9734_v3 = vcombine.high %v21562_v20, %v21565_v33  ;;  %v23707_v61 = vld [vmem:[#allocation41_spill] sm:$0xff]  ;;  %v23711_v20 = vld [vmem:[#allocation40_spill] sm:$0xff] }
 0x4c5   :  { %v5716_v56 = vcombine.low %v23698_v39, %v23697_v23  ;;  %v11089_v33 = vcombine.high %v23711_v20, %v23710_v59  ;;  %v23713_v28 = vld [vmem:[#allocation36_spill] sm:$0xff] }
 0x4c6   :  { %v9790_v21 = vrot.slane %v9734_v3, %v22668_v4  ;;  %v23721_v20 = vld [vmem:[#allocation44_spill] sm:$0xff] }
 0x4c7   :  { %13891 = vmatpush1.bf16.xpose.msra.mxu1 %v3677_v41  ;;  %v23702_v41 = vld [vmem:[#allocation68_spill] sm:$0xff] }
 0x4c8   :  { %13892 = vmatprep.subr.bf16.mxu1 %v5040_v45  ;;  %v6395_v14 = vcombine.low %v23702_v41, %v23701_v10  ;;  %v23703_v45 = vld [vmem:[#allocation27_spill] sm:$0xff] }
 0x4cb   :  { %14691 = vmatpush1.bf16.xpose.msra.mxu0 %v4357_v34  ;;  %v23704_v34 = vld [vmem:[#allocation73_spill] sm:$0xff] }
 0x4cc   :  { %14692 = vmatprep.subr.bf16.mxu0 %v5720_v60  ;;  %v7758_v60 = vcombine.low %v23704_v34, %v23703_v45 }
 0x4cf   :  { %13893 = vmatpush1.bf16.xpose.msra.mxu1 %v5036_v35  ;;  %v7075_v35 = vcombine.low %v23706_v62, %v23705_v25 }
 0x4d0   :  { %13894 = vmatprep.subr.bf16.mxu1 %v6399_v7  ;;  %v23708_v7 = vld [vmem:[#allocation28_spill] sm:$0xff] }
 0x4d3   :  { %14693 = vmatpush1.bf16.xpose.msra.mxu0 %v5716_v56  ;;  %v7754_v56 = vcombine.low %v23708_v7, %v23707_v61 }
 0x4d4   :  { %14694 = vmatprep.subr.bf16.mxu0 %v7079_v48  ;;  %v9762_v48 = vrot.slane %v9730_v47, %v22668_v4  ;;  %v11121_v47 = vrot.slane %v11089_v33, %v22668_v4 }
 0x4d6   :  { %v9797_v17 = vcombine.low %v9762_v48, %v9790_v21  ;;  %v23718_v48 = vld [vmem:[#allocation52_spill] sm:$0xff] }
 0x4d7   :  { %13895 = vmatpush1.bf16.xpose.msra.mxu1 %v6395_v14  ;;  %v23712_v14 = vld [vmem:[#allocation17_spill] sm:$0xff]  ;;  %v23719_v21 = vld [vmem:[#allocation16_spill] sm:$0xff] }
 0x4d8   :  { %13896 = vmatprep.subr.bf16.mxu1 %v7758_v60  ;;  %v11093_v37 = vcombine.high %v23713_v28, %v23712_v14  ;;  %v23714_v60 = vld [vmem:[#allocation49_spill] sm:$0xff]  ;;  %v9793_v15 = vcombine.low %v23719_v21, %v23718_v48 }
 0x4da   :  { %v11149_v3 = vrot.slane %v11093_v37, %v22668_v4  ;;  %v11835_v37 = vcombine.low %v21692_v2, %v21695_v44 }
 0x4db   :  { %14695 = vmatpush1.bf16.xpose.msra.mxu0 %v7075_v35  ;;  %v23715_v35 = vld [vmem:[#allocation51_spill] sm:$0xff] }
 0x4dc   :  { %14696 = vmatprep.subr.bf16.mxu0 %v8438_v52  ;;  %v9113_v52 = vcombine.low %v23715_v35, %v23714_v60  ;;  %v11156_v59 = vcombine.low %v11121_v47, %v11149_v3  ;;  %v14843_v47 = vcombine.low %v21736_v51, %v21736_v51  ;;  %v16202_v3 = vmov 0.0  }
 0x4dd   :  { %v23726_v51 = vcombine.high %v21356_v6, %v21359_v42  ;;  %v23731_v6 = vcombine.high %v23698_v39, %v23697_v23  ;;  %v23741_v39 = vcombine.high %v23715_v35, %v23714_v60 }
 0x4df   :  { %13897 = vmatpush1.bf16.xpose.msra.mxu1 %v7754_v56  ;;  %v10476_v56 = vcombine.low %v23717_v46, %v23716_v18  ;;  %v13151_v42 = vsel %vm13140_vm0, %v23731_v6, 0 }
 0x4e0   :  { %13898 = vmatprep.subr.bf16.mxu1 %v9117_v0  ;;  %v12448_v0 = vcombine.high %v21668_v19, %v21671_v27  ;;  %v12511_v27 = vcombine.low %v21722_v13, %v21725_v38 }
 0x4e2   :  { %v12480_v14 = vrot.slane %v12448_v0, %v22668_v4  ;;  %v23724_v0 = vcombine.high %v21316_v5, %v21319_v57  ;;  %v23728_v5 = vcombine.high %v23694_v36, %v21397_v49  ;;  %v23729_v57 = vcombine.high %v21400_v22, %v21406_v24 }
 0x4e3   :  { %14697 = vmatpush1.bf16.xpose.msra.mxu0 %v8434_v29  ;;  %v12452_v29 = vcombine.high %v21674_v26, %v21677_v12  ;;  %v701_v12 = vld [vmem:[#allocation5 + $0x98] sm:$0x77]  ;;  %v23734_v49 = vcombine.high %v23706_v62, %v23705_v25  ;;  %v23735_v24 = vcombine.high %v23704_v34, %v23703_v45  ;;  %v23745_v34 = vcombine.high %v21660_v63, %v21663_v54 }
 0x4e4   :  { %14698 = vmatprep.subr.bf16.mxu0 %v9797_v17  ;;  %v23720_v17 = vld [vmem:[#allocation32_spill] sm:$0xff]  ;;  %v23746_v62 = vcombine.high %v21692_v2, %v21695_v44 }
 0x4e5   :  { %v10472_v33 = vcombine.low %v23721_v20, %v23720_v17  ;;  %v12508_v28 = vrot.slane %v12452_v29, %v22668_v4  ;;  %v23722_v4 = vld [vmem:[#allocation64_spill] sm:$0xff]  ;;  %v13154_v22 = vsel %vm13140_vm0, %v23734_v49, 0  ;;  %v23744_v45 = vcombine.high %v23721_v20, %v23720_v17 }
 0x4e6   :  { %v23723_v26 = vcombine.high %v23686_v55, %v23722_v4  ;;  %v23725_v55 = vcombine.high %v21322_v9, %v21325_v8  ;;  %v13148_v8 = vsel %vm13140_vm0, %v23728_v5, 0  ;;  %v23730_v9 = vcombine.high %v23696_v32, %v23695_v43  ;;  %v23738_v43 = vld [vmem:[#allocation48_spill] sm:$0xff]  ;;  %v23739_v32 = vld [vmem:[#allocation35_spill] sm:$0xff] }
 0x4e7   :  { %13899 = vmatpush1.bf16.xpose.msra.mxu1 %v9113_v52  ;;  %v11152_v52 = vcombine.low %v21660_v63, %v21663_v54  ;;  %v12515_v19 = vcombine.low %v12480_v14, %v12508_v28  ;;  %v23740_v23 = vcombine.high %v23738_v43, %v23739_v32  ;;  %v13163_v25 = vsel %vm13140_vm0, %v23745_v34, 0  ;;  %v16118_v63 = vld [vmem:[#allocation5 + $0x138] ss:$0 sps:$4 sm:$0x77]  }
 0x4e8   :  { %13900 = vmatprep.subr.bf16.mxu1 %v10476_v56  ;;  %v14846_v56 = vcombine.high %v701_v12, %v701_v12  ;;  %v13145_v29 = vsel %vm13140_vm0, %v23725_v55, 0 }
 0x4eb   :  { %14699 = vmatpush1.bf16.xpose.msra.mxu0 %v9793_v15  ;;  %v11831_v15 = vcombine.low %v21698_v58, %v21701_v53 }
 0x4ec   :  { %14700 = vmatprep.subr.bf16.mxu0 %v11156_v59  ;;  %v14883_v59 = vcombine.low %v21749_v40, %v21749_v40  ;;  %v23727_v40 = vcombine.high %v21364_v16, %v21367_v11  ;;  %v23732_v16 = vcombine.high %v21468_v1, %v21471_v30  ;;  %v23733_v11 = vcombine.high %v23702_v41, %v23701_v10 }
 0x4ed   :  { %v23736_v1 = vcombine.high %v23708_v7, %v23707_v61  ;;  %v23737_v30 = vcombine.high %v23709_v31, %v21551_v50  ;;  %v23742_v10 = vcombine.high %v23719_v21, %v23718_v48  ;;  %v23743_v50 = vcombine.high %v23717_v46, %v23716_v18 }
 0x4ee   :  { %v23747_v46 = vcombine.high %v21698_v58, %v21701_v53  ;;  %v23748_v18 = vcombine.high %v21722_v13, %v21725_v38  ;;  %v14845_v7 = vcombine.low %v701_v12, %v701_v12 }
 0x4ef   :  { %13901 = vmatpush1.bf16.xpose.msra.mxu1 %v10472_v33  ;;  %v13157_v36 = vsel %vm13140_vm0, %v23737_v30, 0  ;;  %v13160_v41 = vsel %vm13140_vm0, %v23742_v10, 0 }
 0x4f0   :  { %13902 = vmatprep.subr.bf16.mxu1 %v11835_v37  ;;  %v13166_v61 = vsel %vm13140_vm0, %v23748_v18, 0 }
 0x4f3   :  { %14701 = vmatpush1.bf16.xpose.msra.mxu0 %v11152_v52 }
 0x4f4   :  { %14702 = vmatprep.subr.bf16.mxu0 %v12515_v19 }
 0x4f7   :  { %13903 = vmatpush1.bf16.xpose.msra.mxu1 %v11831_v15 }
 0x4f8   :  { %13928 = vmatprep.subr.bf16.mxu1 %v23723_v26 }
 0x4fb   :  { %14703 = vmatpush1.bf16.xpose.msra.mxu0 %v12511_v27 }
 0x4fc   :  { %14896 = vmatprep.subr.bf16.mxu0 %v16202_v3 }
 0x4fe   :  { %13921 = vmatmul.mubr.bf16.vlgmr.msra.gmra.mrb[0].mxu1 %v14843_v47 }
 0x4ff   :  { %13929 = vmatpush1.bf16.xpose.msra.mxu1 %v23724_v0  ;;  %13960 = vmatprep.mubr.bf16.mxu1 %v14846_v56 }
 0x500   :  { %13930 = vmatprep.subr.bf16.mxu1 %v23726_v51 }
 0x502   :  { %14721 = vmatmul.mubr.bf16.vlgmr.msra.gmra.mrb[0].mxu0 %v14883_v59 }
 0x503   :  { %14897 = vmatpush3.bf16.xpose.msra.mxu0 %v13145_v29  ;;  %14912 = vmatprep.mubr.msk.bf16.mxu0 %vm16203_vm1, %v16202_v3 }
 0x504   :  { %14898 = vmatprep.subr.bf16.mxu0 %v16202_v3 }
 0x507   :  { %13931 = vmatpush1.bf16.xpose.msra.mxu1 %v23727_v40 }
 0x508   :  { %13932 = vmatprep.subr.bf16.mxu1 %v23729_v57 }
 0x50b   :  { %14899 = vmatpush3.bf16.xpose.msra.mxu0 %v13148_v8 }
 0x50c   :  { %14900 = vmatprep.subr.bf16.mxu0 %v16202_v3 }
 0x50f   :  { %13933 = vmatpush1.bf16.xpose.msra.mxu1 %v23730_v9 }
 0x510   :  { %13934 = vmatprep.subr.bf16.mxu1 %v23732_v16 }
 0x513   :  { %14901 = vmatpush3.bf16.xpose.msra.mxu0 %v13151_v42 }
 0x514   :  { %14902 = vmatprep.subr.bf16.mxu0 %v16202_v3 }
 0x517   :  { %13935 = vmatpush1.bf16.xpose.msra.mxu1 %v23733_v11 }
 0x518   :  { %13936 = vmatprep.subr.bf16.mxu1 %v23735_v24 }
 0x51b   :  { %14903 = vmatpush3.bf16.xpose.msra.mxu0 %v13154_v22 }
 0x51c   :  { %14904 = vmatprep.subr.bf16.mxu0 %v16202_v3 }
 0x51f   :  { %13937 = vmatpush1.bf16.xpose.msra.mxu1 %v23736_v1 }
 0x520   :  { %13938 = vmatprep.subr.bf16.mxu1 %v23740_v23 }
 0x523   :  { %14905 = vmatpush3.bf16.xpose.msra.mxu0 %v13157_v36 }
 0x524   :  { %14906 = vmatprep.subr.bf16.mxu0 %v16202_v3 }
 0x527   :  { %13939 = vmatpush1.bf16.xpose.msra.mxu1 %v23741_v39 }
 0x528   :  { %13940 = vmatprep.subr.bf16.mxu1 %v23743_v50 }
 0x52b   :  { %14907 = vmatpush3.bf16.xpose.msra.mxu0 %v13160_v41 }
 0x52c   :  { %14908 = vmatprep.subr.bf16.mxu0 %v16202_v3 }
 0x52f   :  { %13941 = vmatpush1.bf16.xpose.msra.mxu1 %v23744_v45 }
 0x530   :  { %13942 = vmatprep.subr.bf16.mxu1 %v23746_v62 }
 0x533   :  { %14909 = vmatpush3.bf16.xpose.msra.mxu0 %v13163_v25 }
 0x534   :  { %14910 = vmatprep.subr.bf16.mxu0 %v16202_v3 }
 0x537   :  { %13943 = vmatpush1.bf16.xpose.msra.mxu1 %v23747_v46 }
 0x53b   :  { %14911 = vmatpush3.bf16.xpose.msra.mxu0 %v13166_v61  ;;  %v726_v54 = vpop.permute.xlu0 %725 }
 0x53e   :  { %13961 = vmatmul.mubr.bf16.vlgmr.msra.gmra.mrb[0].mxu1 %v14845_v7 }
 0x542   :  { %14913 = vmatmul.mubr.msk.bf16.vlgmr.msra.gmra.mrb[0].mxu0 %vm13140_vm0, %v16118_v63 }
 0x611   :  { %v13962_v2 = vpop.f32.mrb[0].mxu1 }
 0x612   :  { %v14916_v44 = vadd.f32 %v13962_v2, %v726_v54  ;;  %v13964_v31 = vpop.f32.mrb[1].mxu1 }
 0x613   :  { %v13965_v60 = vpop.f32.mrb[2].mxu1 }
 0x614   :  { %v13966_v48 = vpop.f32.mrb[3].mxu1 }
 0x615   :  { %v14762_v35 = vpop.f32.mrb[0].mxu0 }
 0x616   :  { %v14917_v58 = vadd.f32 %v14916_v44, %v14762_v35  ;;  %v14914_v53 = vpop.f32.mrb[1].mxu0 }
 0x617   :  { %v14765_v21 = vpop.f32.mrb[2].mxu0 }
 0x618   :  { %v14768_v13 = vmax.f32 %v14917_v58, 0.0  ;;  %v14915_v38 = vpop.f32.mrb[3].mxu0 }
 0x61a   :  { %v14770_v17 = vsel %vm14769_vm2, %v14768_v13, -inf }
 0x61b   :  { %v14771_v20 = vrot.slane %v14770_v17, 4 }
 0x61d   :  { %v14772_v33 = vmax.f32 %v14770_v17, %v14771_v20 }
 0x61f   :  { %v14773_v14 = vrot.slane %v14772_v33, 2 }
 0x621   :  { %v14774_v28 = vmax.f32 %v14772_v33, %v14773_v14 }
 0x623   :  { %v14775_v37 = vrot.slane %v14774_v28, 1 }
 0x625   :  { %v14776_v52 = vmax.f32 %v14774_v28, %v14775_v37 }
 0x627   :  { %v14777_v19 = vsub.f32 %v14768_v13, %v14776_v52 }
 0x629   :  { %v14778_v15 = vmul.f32 1.442695, %v14777_v19 }
 0x62b   :  { %16119 = vpow2.f32 %v14778_v15 }
 0x635   :  { %v16120_v27 = vpop.eup %16119 }
 0x636   :  { %v14780_v4 = vsel %vm14769_vm2, %v16120_v27, 0.0 }
 0x637   :  { %v14781_v26 = vrot.slane %v14780_v4, 4 }
 0x639   :  { %v14782_v12 = vadd.f32 %v14781_v26, %v14780_v4 }
 0x63b   :  { %v14783_v47 = vrot.slane %v14782_v12, 2 }
 0x63d   :  { %v14784_v3 = vadd.f32 %v14783_v47, %v14782_v12 }
 0x63f   :  { %v14785_v56 = vrot.slane %v14784_v3, 1 }
 0x641   :  { %v14786_v59 = vadd.f32 %v14785_v56, %v14784_v3 }
 0x643   :  { %16121 = vlog2.f32 %v14786_v59 }
 0x64d   :  { %v16122_v0 = vpop.eup %16121 }
 0x64e   :  { %v14788_v55 = vmul.f32 0.6931472, %v16122_v0 }
 0x650   :  { %v14789_v29 = vsub.f32 %v14777_v19, %v14788_v55 }
 0x652   :  { %14790 = vst [vmem:[#allocation7] sm:$0x3f] %v14789_v29 }
 0x653   :  { %16179 = shalt.err (!%p16176_p6)
}
 0x654   :  { %s16180_s16 = scalar_lea.hbm %s21938_s3, 128 }
 0x655   :  { %p16181_p7 = scmp.ne.s32.totalorder %s21938_s3, %s16180_s16  ;;  %p16184_p8 = scmp.lt.u32.totalorder %s16180_s16, %s21938_s3 }
 0x657   :  { %p16186_p9 = pnand %p16184_p8, %p16181_p7 }
 0x659   :  { %16189 = shalt.err (!%p16186_p9)
}
 0x65a   :  { %14800 = dma.vmem_to_hbm [thread:$0]  %s14798_s12, 128, %s21938_s3, [#allocation4]  }
 0x65b   :  { %16194 = dma.done.wait [#allocation4], 128  }
 0x65c   :  { %16195 = vsyncadd [#allocation4], 4294967168 }
 0x65d   :  { %14804 = vsyncpa [#allocation3], 1 }
 0x65e   :  { %14805 = vsyncpa [#allocation6], 1 }
 0x65f   :  { %14806 = vsyncpa [#allocation4], 1 }

</bundles_post_ra>
